<compile_context>
chip_gen: v5e
topology: v5e:2x2
jax: 0.10.0
libtpu: 0.0.40
codegen_flags: <defaults>
</compile_context>

<pallas_src>
import numpy as np
import jax
import jax.numpy as jnp
from jax.experimental import pallas as pl
from jax.experimental.pallas import tpu as pltpu


# ---------------------------------------------------------------------------
# Geometry (3x32x32 input, implied by fc1 = Linear(16*5*5, 120)).
# ---------------------------------------------------------------------------
H = W = 32
KH = KW = 5
C1_IN, C1_OUT = 3, 6
C2_IN, C2_OUT = 6, 16
OH1 = H - KH + 1            # 28  conv1 output grid
PH1 = OH1 // 2              # 14  pool1 output grid
OH2 = PH1 - KH + 1          # 10  conv2 output grid
PH2 = OH2 // 2              # 5   pool2 output grid
FC1_OUT, FC2_OUT, FC3_OUT = 120, 84, 10

# Flat lane-widths of each intermediate.  Everything lives on the original
# 32-wide pixel grid flattened as h*W + w, so every conv tap / pool window is a
# *constant* lane shift.  Valid outputs occupy a strided subset of lanes; the
# in-between lanes hold garbage that is never read.
N_P2 = 4 * W * (PH2 - 1) + 4 * (PH2 - 1) + 1          # 529  pool2 (stride-4 sparse)
N_A2 = N_P2 + (2 * W + 2)                             # 595  conv2 out (stride-2 sparse)
N_P1 = N_A2 + 2 * W * (KH - 1) + 2 * (KW - 1)         # 859  pool1 (stride-2 sparse)
N_A1 = N_P1 + (W + 1)                                 # 892  conv1 out (dense)
assert N_A1 + W * (KH - 1) + (KW - 1) == H * W        # exactly covers the 1024 input lanes


# ---------------------------------------------------------------------------
# The fused kernel (runs once per image; everything stays in VMEM/vregs).
# ---------------------------------------------------------------------------
def _lenet_kernel(x_ref, w1_ref, b1_ref, w2_ref, b2_ref, sel_ref,
                  fw1_ref, fb1_ref, fw2_ref, fb2_ref, fw3_ref, fb3_ref,
                  o_ref):
    f32 = jnp.float32
    x = x_ref[0]                                              # (3, 1024)

    # conv1 + bias + ReLU: 25 shift-and-accumulate matmuls (lanes = space).
    a1 = None
    for kh in range(KH):
        for kw in range(KW):
            off = kh * W + kw
            t = jnp.dot(w1_ref[kh * KW + kw],                 # (6, 3)
                        x[:, off:off + N_A1],                 # (3, N_A1)
                        preferred_element_type=f32)
            a1 = t if a1 is None else a1 + t
    a1 = jnp.maximum(a1 + b1_ref[...], 0.0)

    # maxpool1 (2x2 / 2): 4-way max of constant lane shifts {0, 1, W, W+1}.
    p1 = jnp.maximum(
        jnp.maximum(a1[:, 0:N_P1], a1[:, 1:1 + N_P1]),
        jnp.maximum(a1[:, W:W + N_P1], a1[:, W + 1:W + 1 + N_P1]))

    # conv2 + bias + ReLU on the stride-2-sparse layout (shifts 2*W*kh + 2*kw).
    a2 = None
    for kh in range(KH):
        for kw in range(KW):
            off = 2 * W * kh + 2 * kw
            t = jnp.dot(w2_ref[kh * KW + kw],                 # (16, 6)
                        p1[:, off:off + N_A2],                # (6, N_A2)
                        preferred_element_type=f32)
            a2 = t if a2 is None else a2 + t
    a2 = jnp.maximum(a2 + b2_ref[...], 0.0)

    # maxpool2 (2x2 / 2): lane shifts {0, 2, 2W, 2W+2}.
    p2 = jnp.maximum(
        jnp.maximum(a2[:, 0:N_P2], a2[:, 2:2 + N_P2]),
        jnp.maximum(a2[:, 2 * W:2 * W + N_P2],
                    a2[:, 2 * W + 2:2 * W + 2 + N_P2]))       # (16, N_P2)

    # flatten: compact the 25 valid lanes per channel with a 0/1 selection
    # matmul (MXU gather).  feat[c, p*5 + q] == pooled2[c, p, q].
    feat = jnp.dot(p2, sel_ref[...], preferred_element_type=f32)   # (16, 25)

    # fc1 + ReLU: per-input-channel accumulation; fw1 is host-laid-out as
    # (16, 25, 120) so the sum reproduces torch.flatten's c*25 + p*5 + q order.
    h = fb1_ref[...]                                               # (1, 120)
    for c in range(C2_OUT):
        h = h + jnp.dot(feat[c:c + 1, :], fw1_ref[c],
                        preferred_element_type=f32)
    h = jnp.maximum(h, 0.0)

    # fc2 + ReLU, fc3.
    h = jnp.maximum(jnp.dot(h, fw2_ref[...], preferred_element_type=f32)
                    + fb2_ref[...], 0.0)
    h = jnp.dot(h, fw3_ref[...], preferred_element_type=f32) + fb3_ref[...]

    o_ref[0] = h                                                   # (1, 10)


# ---------------------------------------------------------------------------
# Host-side layout glue (tiny, one-time per call, inside jit).
# ---------------------------------------------------------------------------
def _flatten_selector():
    """(N_P2, 25) 0/1 matrix: sparse pool2 lane 4*W*p + 4*q -> flat p*5 + q."""
    sel = np.zeros((N_P2, PH2 * PH2), np.float32)
    for p in range(PH2):
        for q in range(PH2):
            sel[4 * W * p + 4 * q, p * PH2 + q] = 1.0
    return sel


_SEL = _flatten_selector()


def _prep_operands(params, x):
    B = x.shape[0]
    x_flat = x.reshape(B, C1_IN, H * W).astype(jnp.float32)
    w1 = jnp.transpose(params["conv1_w"], (2, 3, 0, 1)).reshape(KH * KW, C1_OUT, C1_IN)
    b1 = params["conv1_b"].reshape(C1_OUT, 1)
    w2 = jnp.transpose(params["conv2_w"], (2, 3, 0, 1)).reshape(KH * KW, C2_OUT, C2_IN)
    b2 = params["conv2_b"].reshape(C2_OUT, 1)
    fw1 = params["fc1_w"].reshape(FC1_OUT, C2_OUT, PH2 * PH2).transpose(1, 2, 0)
    fb1 = params["fc1_b"].reshape(1, FC1_OUT)
    fw2 = params["fc2_w"].T                                        # (120, 84)
    fb2 = params["fc2_b"].reshape(1, FC2_OUT)
    fw3 = params["fc3_w"].T                                        # (84, 10)
    fb3 = params["fc3_b"].reshape(1, FC3_OUT)
    sel = jnp.asarray(_SEL)
    return (x_flat, w1, b1, w2, b2, sel, fw1, fb1, fw2, fb2, fw3, fb3)


def _replicated_spec(a):
    zeros = (0,) * a.ndim
    return pl.BlockSpec(a.shape, lambda b, _z=zeros: _z)   # resident across grid


def net_forward(params, x):
    """x: (B, 3, 32, 32) float32 NCHW -> (B, 10) logits."""
    operands = _prep_operands(params, x)
    B = x.shape[0]
    _, *weights = operands
    in_specs = [pl.BlockSpec((1, C1_IN, H * W), lambda b: (b, 0, 0))]
    in_specs += [_replicated_spec(wgt) for wgt in weights]
    out = pl.pallas_call(
        _lenet_kernel,
        out_shape=jax.ShapeDtypeStruct((B, 1, FC3_OUT), jnp.float32),
        grid=(B,),
        in_specs=in_specs,
        out_specs=pl.BlockSpec((1, 1, FC3_OUT), lambda b: (b, 0, 0)),
        compiler_params=pltpu.CompilerParams(
            dimension_semantics=("parallel",)),
    )(*operands)
    return out.reshape(B, FC3_OUT)


# ---------------------------------------------------------------------------
# Parameters + pure-JAX reference (for a correctness check).
# ---------------------------------------------------------------------------
def init_params(key):
    def uniform(k, shape, fan_in):
        bound = 1.0 / float(fan_in) ** 0.5
        return jax.random.uniform(k, shape, jnp.float32, -bound, bound)

    ks = jax.random.split(key, 10)
    return {
        "conv1_w": uniform(ks[0], (6, 3, 5, 5), 3 * 5 * 5),
        "conv1_b": uniform(ks[1], (6,), 3 * 5 * 5),
        "conv2_w": uniform(ks[2], (16, 6, 5, 5), 6 * 5 * 5),
        "conv2_b": uniform(ks[3], (16,), 6 * 5 * 5),
        "fc1_w": uniform(ks[4], (120, 16 * 5 * 5), 16 * 5 * 5),
        "fc1_b": uniform(ks[5], (120,), 16 * 5 * 5),
        "fc2_w": uniform(ks[6], (84, 120), 120),
        "fc2_b": uniform(ks[7], (84,), 120),
        "fc3_w": uniform(ks[8], (10, 84), 84),
        "fc3_b": uniform(ks[9], (10,), 84),
    }


def net_reference(params, x):
    dn = ("NCHW", "OIHW", "NCHW")
    y = jax.lax.conv_general_dilated(x, params["conv1_w"], (1, 1), "VALID",
                                     dimension_numbers=dn)
    y = jax.nn.relu(y + params["conv1_b"].reshape(1, -1, 1, 1))
    y = jax.lax.reduce_window(y, -jnp.inf, jax.lax.max,
                              (1, 1, 2, 2), (1, 1, 2, 2), "VALID")
    y = jax.lax.conv_general_dilated(y, params["conv2_w"], (1, 1), "VALID",
                                     dimension_numbers=dn)
    y = jax.nn.relu(y + params["conv2_b"].reshape(1, -1, 1, 1))
    y = jax.lax.reduce_window(y, -jnp.inf, jax.lax.max,
                              (1, 1, 2, 2), (1, 1, 2, 2), "VALID")
    y = y.reshape(y.shape[0], -1)
    y = jax.nn.relu(y @ params["fc1_w"].T + params["fc1_b"])
    y = jax.nn.relu(y @ params["fc2_w"].T + params["fc2_b"])
    return y @ params["fc3_w"].T + params["fc3_b"]


if __name__ == "__main__":
    key = jax.random.PRNGKey(0)
    pkey, xkey = jax.random.split(key)
    params = init_params(pkey)
    x = jax.random.normal(xkey, (2, 3, 32, 32), jnp.float32)

    out = jax.jit(net_forward)(params, x)
    out = jax.block_until_ready(out)
    assert out.shape == (2, 10) and out.dtype == jnp.float32

    ref = np.asarray(net_reference(params, x))
    assert np.allclose(np.asarray(out), ref, rtol=5e-2, atol=5e-2), (
        "max abs diff vs reference: %g" % np.max(np.abs(np.asarray(out) - ref)))
    print("KERNEL_OK")
</pallas_src>

<mosaic_0001>
module attributes {stable_mosaic.version = 11 : i64} {
  func.func @_lenet_kernel(%arg0: i32, %arg1: memref<1x3x1024xf32, #tpu.memory_space<vmem>>, %arg2: memref<25x6x3xf32, #tpu.memory_space<vmem>>, %arg3: memref<6x1xf32, #tpu.memory_space<vmem>>, %arg4: memref<25x16x6xf32, #tpu.memory_space<vmem>>, %arg5: memref<16x1xf32, #tpu.memory_space<vmem>>, %arg6: memref<529x25xf32, #tpu.memory_space<vmem>>, %arg7: memref<16x25x120xf32, #tpu.memory_space<vmem>>, %arg8: memref<1x120xf32, #tpu.memory_space<vmem>>, %arg9: memref<120x84xf32, #tpu.memory_space<vmem>>, %arg10: memref<1x84xf32, #tpu.memory_space<vmem>>, %arg11: memref<84x10xf32, #tpu.memory_space<vmem>>, %arg12: memref<1x10xf32, #tpu.memory_space<vmem>>, %arg13: memref<1x1x10xf32, #tpu.memory_space<vmem>>) attributes {dimension_semantics = [#tpu.dimension_semantics<parallel>], iteration_bounds = array<i64: 2>, scalar_prefetch = 0 : i64, scratch_operands = 0 : i64, tpu.core_type = #tpu.core_type<tc>, window_params = [{transform_indices = @transform_0, window_bounds = array<i64: 1, 3, 1024>}, {pipeline_mode = #tpu.pipeline_mode<synchronous>, transform_indices = @transform_1, window_bounds = array<i64: 25, 6, 3>}, {pipeline_mode = #tpu.pipeline_mode<synchronous>, transform_indices = @transform_2, window_bounds = array<i64: 6, 1>}, {pipeline_mode = #tpu.pipeline_mode<synchronous>, transform_indices = @transform_3, window_bounds = array<i64: 25, 16, 6>}, {pipeline_mode = #tpu.pipeline_mode<synchronous>, transform_indices = @transform_4, window_bounds = array<i64: 16, 1>}, {pipeline_mode = #tpu.pipeline_mode<synchronous>, transform_indices = @transform_5, window_bounds = array<i64: 529, 25>}, {pipeline_mode = #tpu.pipeline_mode<synchronous>, transform_indices = @transform_6, window_bounds = array<i64: 16, 25, 120>}, {pipeline_mode = #tpu.pipeline_mode<synchronous>, transform_indices = @transform_7, window_bounds = array<i64: 1, 120>}, {pipeline_mode = #tpu.pipeline_mode<synchronous>, transform_indices = @transform_8, window_bounds = array<i64: 120, 84>}, {pipeline_mode = #tpu.pipeline_mode<synchronous>, transform_indices = @transform_9, window_bounds = array<i64: 1, 84>}, {pipeline_mode = #tpu.pipeline_mode<synchronous>, transform_indices = @transform_10, window_bounds = array<i64: 84, 10>}, {pipeline_mode = #tpu.pipeline_mode<synchronous>, transform_indices = @transform_11, window_bounds = array<i64: 1, 10>}, {transform_indices = @transform_12, window_bounds = array<i64: 1, 1, 10>}]} {
    %c0 = arith.constant 0 : index
    %c0_0 = arith.constant 0 : index
    %c0_1 = arith.constant 0 : index
    %0 = vector.load %arg1[%c0, %c0_0, %c0_1] : memref<1x3x1024xf32, #tpu.memory_space<vmem>>, vector<1x3x1024xf32>
    %1 = vector.shape_cast %0 : vector<1x3x1024xf32> to vector<3x1024xf32>
    %c0_2 = arith.constant 0 : index
    %c0_3 = arith.constant 0 : index
    %c0_4 = arith.constant 0 : index
    %2 = vector.load %arg2[%c0_2, %c0_3, %c0_4] : memref<25x6x3xf32, #tpu.memory_space<vmem>>, vector<1x6x3xf32>
    %3 = vector.shape_cast %2 : vector<1x6x3xf32> to vector<6x3xf32>
    %4 = vector.extract_strided_slice %1 {offsets = [0, 0], sizes = [3, 892], strides = [1, 1]} : vector<3x1024xf32> to vector<3x892xf32>
    %cst = arith.constant dense<0.000000e+00> : vector<6x892xf32>
    %5 = tpu.matmul %3, %4, %cst {dimension_numbers = #tpu.dot_dimension_numbers<[1], [0], [0], [1], [0, 0, 1, 1], [], []>} : vector<6x3xf32>, vector<3x892xf32>, vector<6x892xf32> -> vector<6x892xf32>
    %c1 = arith.constant 1 : index
    %c0_5 = arith.constant 0 : index
    %c0_6 = arith.constant 0 : index
    %6 = vector.load %arg2[%c1, %c0_5, %c0_6] : memref<25x6x3xf32, #tpu.memory_space<vmem>>, vector<1x6x3xf32>
    %7 = vector.shape_cast %6 : vector<1x6x3xf32> to vector<6x3xf32>
    %8 = vector.extract_strided_slice %1 {offsets = [0, 1], sizes = [3, 892], strides = [1, 1]} : vector<3x1024xf32> to vector<3x892xf32>
    %cst_7 = arith.constant dense<0.000000e+00> : vector<6x892xf32>
    %9 = tpu.matmul %7, %8, %cst_7 {dimension_numbers = #tpu.dot_dimension_numbers<[1], [0], [0], [1], [0, 0, 1, 1], [], []>} : vector<6x3xf32>, vector<3x892xf32>, vector<6x892xf32> -> vector<6x892xf32>
    %10 = arith.addf %5, %9 : vector<6x892xf32>
    %c2 = arith.constant 2 : index
    %c0_8 = arith.constant 0 : index
    %c0_9 = arith.constant 0 : index
    %11 = vector.load %arg2[%c2, %c0_8, %c0_9] : memref<25x6x3xf32, #tpu.memory_space<vmem>>, vector<1x6x3xf32>
    %12 = vector.shape_cast %11 : vector<1x6x3xf32> to vector<6x3xf32>
    %13 = vector.extract_strided_slice %1 {offsets = [0, 2], sizes = [3, 892], strides = [1, 1]} : vector<3x1024xf32> to vector<3x892xf32>
    %cst_10 = arith.constant dense<0.000000e+00> : vector<6x892xf32>
    %14 = tpu.matmul %12, %13, %cst_10 {dimension_numbers = #tpu.dot_dimension_numbers<[1], [0], [0], [1], [0, 0, 1, 1], [], []>} : vector<6x3xf32>, vector<3x892xf32>, vector<6x892xf32> -> vector<6x892xf32>
    %15 = arith.addf %10, %14 : vector<6x892xf32>
    %c3 = arith.constant 3 : index
    %c0_11 = arith.constant 0 : index
    %c0_12 = arith.constant 0 : index
    %16 = vector.load %arg2[%c3, %c0_11, %c0_12] : memref<25x6x3xf32, #tpu.memory_space<vmem>>, vector<1x6x3xf32>
    %17 = vector.shape_cast %16 : vector<1x6x3xf32> to vector<6x3xf32>
    %18 = vector.extract_strided_slice %1 {offsets = [0, 3], sizes = [3, 892], strides = [1, 1]} : vector<3x1024xf32> to vector<3x892xf32>
    %cst_13 = arith.constant dense<0.000000e+00> : vector<6x892xf32>
    %19 = tpu.matmul %17, %18, %cst_13 {dimension_numbers = #tpu.dot_dimension_numbers<[1], [0], [0], [1], [0, 0, 1, 1], [], []>} : vector<6x3xf32>, vector<3x892xf32>, vector<6x892xf32> -> vector<6x892xf32>
    %20 = arith.addf %15, %19 : vector<6x892xf32>
    %c4 = arith.constant 4 : index
    %c0_14 = arith.constant 0 : index
    %c0_15 = arith.constant 0 : index
    %21 = vector.load %arg2[%c4, %c0_14, %c0_15] : memref<25x6x3xf32, #tpu.memory_space<vmem>>, vector<1x6x3xf32>
    %22 = vector.shape_cast %21 : vector<1x6x3xf32> to vector<6x3xf32>
    %23 = vector.extract_strided_slice %1 {offsets = [0, 4], sizes = [3, 892], strides = [1, 1]} : vector<3x1024xf32> to vector<3x892xf32>
    %cst_16 = arith.constant dense<0.000000e+00> : vector<6x892xf32>
    %24 = tpu.matmul %22, %23, %cst_16 {dimension_numbers = #tpu.dot_dimension_numbers<[1], [0], [0], [1], [0, 0, 1, 1], [], []>} : vector<6x3xf32>, vector<3x892xf32>, vector<6x892xf32> -> vector<6x892xf32>
    %25 = arith.addf %20, %24 : vector<6x892xf32>
    %c5 = arith.constant 5 : index
    %c0_17 = arith.constant 0 : index
    %c0_18 = arith.constant 0 : index
    %26 = vector.load %arg2[%c5, %c0_17, %c0_18] : memref<25x6x3xf32, #tpu.memory_space<vmem>>, vector<1x6x3xf32>
    %27 = vector.shape_cast %26 : vector<1x6x3xf32> to vector<6x3xf32>
    %28 = vector.extract_strided_slice %1 {offsets = [0, 32], sizes = [3, 892], strides = [1, 1]} : vector<3x1024xf32> to vector<3x892xf32>
    %cst_19 = arith.constant dense<0.000000e+00> : vector<6x892xf32>
    %29 = tpu.matmul %27, %28, %cst_19 {dimension_numbers = #tpu.dot_dimension_numbers<[1], [0], [0], [1], [0, 0, 1, 1], [], []>} : vector<6x3xf32>, vector<3x892xf32>, vector<6x892xf32> -> vector<6x892xf32>
    %30 = arith.addf %25, %29 : vector<6x892xf32>
    %c6 = arith.constant 6 : index
    %c0_20 = arith.constant 0 : index
    %c0_21 = arith.constant 0 : index
    %31 = vector.load %arg2[%c6, %c0_20, %c0_21] : memref<25x6x3xf32, #tpu.memory_space<vmem>>, vector<1x6x3xf32>
    %32 = vector.shape_cast %31 : vector<1x6x3xf32> to vector<6x3xf32>
    %33 = vector.extract_strided_slice %1 {offsets = [0, 33], sizes = [3, 892], strides = [1, 1]} : vector<3x1024xf32> to vector<3x892xf32>
    %cst_22 = arith.constant dense<0.000000e+00> : vector<6x892xf32>
    %34 = tpu.matmul %32, %33, %cst_22 {dimension_numbers = #tpu.dot_dimension_numbers<[1], [0], [0], [1], [0, 0, 1, 1], [], []>} : vector<6x3xf32>, vector<3x892xf32>, vector<6x892xf32> -> vector<6x892xf32>
    %35 = arith.addf %30, %34 : vector<6x892xf32>
    %c7 = arith.constant 7 : index
    %c0_23 = arith.constant 0 : index
    %c0_24 = arith.constant 0 : index
    %36 = vector.load %arg2[%c7, %c0_23, %c0_24] : memref<25x6x3xf32, #tpu.memory_space<vmem>>, vector<1x6x3xf32>
    %37 = vector.shape_cast %36 : vector<1x6x3xf32> to vector<6x3xf32>
    %38 = vector.extract_strided_slice %1 {offsets = [0, 34], sizes = [3, 892], strides = [1, 1]} : vector<3x1024xf32> to vector<3x892xf32>
    %cst_25 = arith.constant dense<0.000000e+00> : vector<6x892xf32>
    %39 = tpu.matmul %37, %38, %cst_25 {dimension_numbers = #tpu.dot_dimension_numbers<[1], [0], [0], [1], [0, 0, 1, 1], [], []>} : vector<6x3xf32>, vector<3x892xf32>, vector<6x892xf32> -> vector<6x892xf32>
    %40 = arith.addf %35, %39 : vector<6x892xf32>
    %c8 = arith.constant 8 : index
    %c0_26 = arith.constant 0 : index
    %c0_27 = arith.constant 0 : index
    %41 = vector.load %arg2[%c8, %c0_26, %c0_27] : memref<25x6x3xf32, #tpu.memory_space<vmem>>, vector<1x6x3xf32>
    %42 = vector.shape_cast %41 : vector<1x6x3xf32> to vector<6x3xf32>
    %43 = vector.extract_strided_slice %1 {offsets = [0, 35], sizes = [3, 892], strides = [1, 1]} : vector<3x1024xf32> to vector<3x892xf32>
    %cst_28 = arith.constant dense<0.000000e+00> : vector<6x892xf32>
    %44 = tpu.matmul %42, %43, %cst_28 {dimension_numbers = #tpu.dot_dimension_numbers<[1], [0], [0], [1], [0, 0, 1, 1], [], []>} : vector<6x3xf32>, vector<3x892xf32>, vector<6x892xf32> -> vector<6x892xf32>
    %45 = arith.addf %40, %44 : vector<6x892xf32>
    %c9 = arith.constant 9 : index
    %c0_29 = arith.constant 0 : index
    %c0_30 = arith.constant 0 : index
    %46 = vector.load %arg2[%c9, %c0_29, %c0_30] : memref<25x6x3xf32, #tpu.memory_space<vmem>>, vector<1x6x3xf32>
    %47 = vector.shape_cast %46 : vector<1x6x3xf32> to vector<6x3xf32>
    %48 = vector.extract_strided_slice %1 {offsets = [0, 36], sizes = [3, 892], strides = [1, 1]} : vector<3x1024xf32> to vector<3x892xf32>
    %cst_31 = arith.constant dense<0.000000e+00> : vector<6x892xf32>
    %49 = tpu.matmul %47, %48, %cst_31 {dimension_numbers = #tpu.dot_dimension_numbers<[1], [0], [0], [1], [0, 0, 1, 1], [], []>} : vector<6x3xf32>, vector<3x892xf32>, vector<6x892xf32> -> vector<6x892xf32>
    %50 = arith.addf %45, %49 : vector<6x892xf32>
    %c10 = arith.constant 10 : index
    %c0_32 = arith.constant 0 : index
    %c0_33 = arith.constant 0 : index
    %51 = vector.load %arg2[%c10, %c0_32, %c0_33] : memref<25x6x3xf32, #tpu.memory_space<vmem>>, vector<1x6x3xf32>
    %52 = vector.shape_cast %51 : vector<1x6x3xf32> to vector<6x3xf32>
    %53 = vector.extract_strided_slice %1 {offsets = [0, 64], sizes = [3, 892], strides = [1, 1]} : vector<3x1024xf32> to vector<3x892xf32>
    %cst_34 = arith.constant dense<0.000000e+00> : vector<6x892xf32>
    %54 = tpu.matmul %52, %53, %cst_34 {dimension_numbers = #tpu.dot_dimension_numbers<[1], [0], [0], [1], [0, 0, 1, 1], [], []>} : vector<6x3xf32>, vector<3x892xf32>, vector<6x892xf32> -> vector<6x892xf32>
    %55 = arith.addf %50, %54 : vector<6x892xf32>
    %c11 = arith.constant 11 : index
    %c0_35 = arith.constant 0 : index
    %c0_36 = arith.constant 0 : index
    %56 = vector.load %arg2[%c11, %c0_35, %c0_36] : memref<25x6x3xf32, #tpu.memory_space<vmem>>, vector<1x6x3xf32>
    %57 = vector.shape_cast %56 : vector<1x6x3xf32> to vector<6x3xf32>
    %58 = vector.extract_strided_slice %1 {offsets = [0, 65], sizes = [3, 892], strides = [1, 1]} : vector<3x1024xf32> to vector<3x892xf32>
    %cst_37 = arith.constant dense<0.000000e+00> : vector<6x892xf32>
    %59 = tpu.matmul %57, %58, %cst_37 {dimension_numbers = #tpu.dot_dimension_numbers<[1], [0], [0], [1], [0, 0, 1, 1], [], []>} : vector<6x3xf32>, vector<3x892xf32>, vector<6x892xf32> -> vector<6x892xf32>
    %60 = arith.addf %55, %59 : vector<6x892xf32>
    %c12 = arith.constant 12 : index
    %c0_38 = arith.constant 0 : index
    %c0_39 = arith.constant 0 : index
    %61 = vector.load %arg2[%c12, %c0_38, %c0_39] : memref<25x6x3xf32, #tpu.memory_space<vmem>>, vector<1x6x3xf32>
    %62 = vector.shape_cast %61 : vector<1x6x3xf32> to vector<6x3xf32>
    %63 = vector.extract_strided_slice %1 {offsets = [0, 66], sizes = [3, 892], strides = [1, 1]} : vector<3x1024xf32> to vector<3x892xf32>
    %cst_40 = arith.constant dense<0.000000e+00> : vector<6x892xf32>
    %64 = tpu.matmul %62, %63, %cst_40 {dimension_numbers = #tpu.dot_dimension_numbers<[1], [0], [0], [1], [0, 0, 1, 1], [], []>} : vector<6x3xf32>, vector<3x892xf32>, vector<6x892xf32> -> vector<6x892xf32>
    %65 = arith.addf %60, %64 : vector<6x892xf32>
    %c13 = arith.constant 13 : index
    %c0_41 = arith.constant 0 : index
    %c0_42 = arith.constant 0 : index
    %66 = vector.load %arg2[%c13, %c0_41, %c0_42] : memref<25x6x3xf32, #tpu.memory_space<vmem>>, vector<1x6x3xf32>
    %67 = vector.shape_cast %66 : vector<1x6x3xf32> to vector<6x3xf32>
    %68 = vector.extract_strided_slice %1 {offsets = [0, 67], sizes = [3, 892], strides = [1, 1]} : vector<3x1024xf32> to vector<3x892xf32>
    %cst_43 = arith.constant dense<0.000000e+00> : vector<6x892xf32>
    %69 = tpu.matmul %67, %68, %cst_43 {dimension_numbers = #tpu.dot_dimension_numbers<[1], [0], [0], [1], [0, 0, 1, 1], [], []>} : vector<6x3xf32>, vector<3x892xf32>, vector<6x892xf32> -> vector<6x892xf32>
    %70 = arith.addf %65, %69 : vector<6x892xf32>
    %c14 = arith.constant 14 : index
    %c0_44 = arith.constant 0 : index
    %c0_45 = arith.constant 0 : index
    %71 = vector.load %arg2[%c14, %c0_44, %c0_45] : memref<25x6x3xf32, #tpu.memory_space<vmem>>, vector<1x6x3xf32>
    %72 = vector.shape_cast %71 : vector<1x6x3xf32> to vector<6x3xf32>
    %73 = vector.extract_strided_slice %1 {offsets = [0, 68], sizes = [3, 892], strides = [1, 1]} : vector<3x1024xf32> to vector<3x892xf32>
    %cst_46 = arith.constant dense<0.000000e+00> : vector<6x892xf32>
    %74 = tpu.matmul %72, %73, %cst_46 {dimension_numbers = #tpu.dot_dimension_numbers<[1], [0], [0], [1], [0, 0, 1, 1], [], []>} : vector<6x3xf32>, vector<3x892xf32>, vector<6x892xf32> -> vector<6x892xf32>
    %75 = arith.addf %70, %74 : vector<6x892xf32>
    %c15 = arith.constant 15 : index
    %c0_47 = arith.constant 0 : index
    %c0_48 = arith.constant 0 : index
    %76 = vector.load %arg2[%c15, %c0_47, %c0_48] : memref<25x6x3xf32, #tpu.memory_space<vmem>>, vector<1x6x3xf32>
    %77 = vector.shape_cast %76 : vector<1x6x3xf32> to vector<6x3xf32>
    %78 = vector.extract_strided_slice %1 {offsets = [0, 96], sizes = [3, 892], strides = [1, 1]} : vector<3x1024xf32> to vector<3x892xf32>
    %cst_49 = arith.constant dense<0.000000e+00> : vector<6x892xf32>
    %79 = tpu.matmul %77, %78, %cst_49 {dimension_numbers = #tpu.dot_dimension_numbers<[1], [0], [0], [1], [0, 0, 1, 1], [], []>} : vector<6x3xf32>, vector<3x892xf32>, vector<6x892xf32> -> vector<6x892xf32>
    %80 = arith.addf %75, %79 : vector<6x892xf32>
    %c16 = arith.constant 16 : index
    %c0_50 = arith.constant 0 : index
    %c0_51 = arith.constant 0 : index
    %81 = vector.load %arg2[%c16, %c0_50, %c0_51] : memref<25x6x3xf32, #tpu.memory_space<vmem>>, vector<1x6x3xf32>
    %82 = vector.shape_cast %81 : vector<1x6x3xf32> to vector<6x3xf32>
    %83 = vector.extract_strided_slice %1 {offsets = [0, 97], sizes = [3, 892], strides = [1, 1]} : vector<3x1024xf32> to vector<3x892xf32>
    %cst_52 = arith.constant dense<0.000000e+00> : vector<6x892xf32>
    %84 = tpu.matmul %82, %83, %cst_52 {dimension_numbers = #tpu.dot_dimension_numbers<[1], [0], [0], [1], [0, 0, 1, 1], [], []>} : vector<6x3xf32>, vector<3x892xf32>, vector<6x892xf32> -> vector<6x892xf32>
    %85 = arith.addf %80, %84 : vector<6x892xf32>
    %c17 = arith.constant 17 : index
    %c0_53 = arith.constant 0 : index
    %c0_54 = arith.constant 0 : index
    %86 = vector.load %arg2[%c17, %c0_53, %c0_54] : memref<25x6x3xf32, #tpu.memory_space<vmem>>, vector<1x6x3xf32>
    %87 = vector.shape_cast %86 : vector<1x6x3xf32> to vector<6x3xf32>
    %88 = vector.extract_strided_slice %1 {offsets = [0, 98], sizes = [3, 892], strides = [1, 1]} : vector<3x1024xf32> to vector<3x892xf32>
    %cst_55 = arith.constant dense<0.000000e+00> : vector<6x892xf32>
    %89 = tpu.matmul %87, %88, %cst_55 {dimension_numbers = #tpu.dot_dimension_numbers<[1], [0], [0], [1], [0, 0, 1, 1], [], []>} : vector<6x3xf32>, vector<3x892xf32>, vector<6x892xf32> -> vector<6x892xf32>
    %90 = arith.addf %85, %89 : vector<6x892xf32>
    %c18 = arith.constant 18 : index
    %c0_56 = arith.constant 0 : index
    %c0_57 = arith.constant 0 : index
    %91 = vector.load %arg2[%c18, %c0_56, %c0_57] : memref<25x6x3xf32, #tpu.memory_space<vmem>>, vector<1x6x3xf32>
    %92 = vector.shape_cast %91 : vector<1x6x3xf32> to vector<6x3xf32>
    %93 = vector.extract_strided_slice %1 {offsets = [0, 99], sizes = [3, 892], strides = [1, 1]} : vector<3x1024xf32> to vector<3x892xf32>
    %cst_58 = arith.constant dense<0.000000e+00> : vector<6x892xf32>
    %94 = tpu.matmul %92, %93, %cst_58 {dimension_numbers = #tpu.dot_dimension_numbers<[1], [0], [0], [1], [0, 0, 1, 1], [], []>} : vector<6x3xf32>, vector<3x892xf32>, vector<6x892xf32> -> vector<6x892xf32>
    %95 = arith.addf %90, %94 : vector<6x892xf32>
    %c19 = arith.constant 19 : index
    %c0_59 = arith.constant 0 : index
    %c0_60 = arith.constant 0 : index
    %96 = vector.load %arg2[%c19, %c0_59, %c0_60] : memref<25x6x3xf32, #tpu.memory_space<vmem>>, vector<1x6x3xf32>
    %97 = vector.shape_cast %96 : vector<1x6x3xf32> to vector<6x3xf32>
    %98 = vector.extract_strided_slice %1 {offsets = [0, 100], sizes = [3, 892], strides = [1, 1]} : vector<3x1024xf32> to vector<3x892xf32>
    %cst_61 = arith.constant dense<0.000000e+00> : vector<6x892xf32>
    %99 = tpu.matmul %97, %98, %cst_61 {dimension_numbers = #tpu.dot_dimension_numbers<[1], [0], [0], [1], [0, 0, 1, 1], [], []>} : vector<6x3xf32>, vector<3x892xf32>, vector<6x892xf32> -> vector<6x892xf32>
    %100 = arith.addf %95, %99 : vector<6x892xf32>
    %c20 = arith.constant 20 : index
    %c0_62 = arith.constant 0 : index
    %c0_63 = arith.constant 0 : index
    %101 = vector.load %arg2[%c20, %c0_62, %c0_63] : memref<25x6x3xf32, #tpu.memory_space<vmem>>, vector<1x6x3xf32>
    %102 = vector.shape_cast %101 : vector<1x6x3xf32> to vector<6x3xf32>
    %103 = vector.extract_strided_slice %1 {offsets = [0, 128], sizes = [3, 892], strides = [1, 1]} : vector<3x1024xf32> to vector<3x892xf32>
    %cst_64 = arith.constant dense<0.000000e+00> : vector<6x892xf32>
    %104 = tpu.matmul %102, %103, %cst_64 {dimension_numbers = #tpu.dot_dimension_numbers<[1], [0], [0], [1], [0, 0, 1, 1], [], []>} : vector<6x3xf32>, vector<3x892xf32>, vector<6x892xf32> -> vector<6x892xf32>
    %105 = arith.addf %100, %104 : vector<6x892xf32>
    %c21 = arith.constant 21 : index
    %c0_65 = arith.constant 0 : index
    %c0_66 = arith.constant 0 : index
    %106 = vector.load %arg2[%c21, %c0_65, %c0_66] : memref<25x6x3xf32, #tpu.memory_space<vmem>>, vector<1x6x3xf32>
    %107 = vector.shape_cast %106 : vector<1x6x3xf32> to vector<6x3xf32>
    %108 = vector.extract_strided_slice %1 {offsets = [0, 129], sizes = [3, 892], strides = [1, 1]} : vector<3x1024xf32> to vector<3x892xf32>
    %cst_67 = arith.constant dense<0.000000e+00> : vector<6x892xf32>
    %109 = tpu.matmul %107, %108, %cst_67 {dimension_numbers = #tpu.dot_dimension_numbers<[1], [0], [0], [1], [0, 0, 1, 1], [], []>} : vector<6x3xf32>, vector<3x892xf32>, vector<6x892xf32> -> vector<6x892xf32>
    %110 = arith.addf %105, %109 : vector<6x892xf32>
    %c22 = arith.constant 22 : index
    %c0_68 = arith.constant 0 : index
    %c0_69 = arith.constant 0 : index
    %111 = vector.load %arg2[%c22, %c0_68, %c0_69] : memref<25x6x3xf32, #tpu.memory_space<vmem>>, vector<1x6x3xf32>
    %112 = vector.shape_cast %111 : vector<1x6x3xf32> to vector<6x3xf32>
    %113 = vector.extract_strided_slice %1 {offsets = [0, 130], sizes = [3, 892], strides = [1, 1]} : vector<3x1024xf32> to vector<3x892xf32>
    %cst_70 = arith.constant dense<0.000000e+00> : vector<6x892xf32>
    %114 = tpu.matmul %112, %113, %cst_70 {dimension_numbers = #tpu.dot_dimension_numbers<[1], [0], [0], [1], [0, 0, 1, 1], [], []>} : vector<6x3xf32>, vector<3x892xf32>, vector<6x892xf32> -> vector<6x892xf32>
    %115 = arith.addf %110, %114 : vector<6x892xf32>
    %c23 = arith.constant 23 : index
    %c0_71 = arith.constant 0 : index
    %c0_72 = arith.constant 0 : index
    %116 = vector.load %arg2[%c23, %c0_71, %c0_72] : memref<25x6x3xf32, #tpu.memory_space<vmem>>, vector<1x6x3xf32>
    %117 = vector.shape_cast %116 : vector<1x6x3xf32> to vector<6x3xf32>
    %118 = vector.extract_strided_slice %1 {offsets = [0, 131], sizes = [3, 892], strides = [1, 1]} : vector<3x1024xf32> to vector<3x892xf32>
    %cst_73 = arith.constant dense<0.000000e+00> : vector<6x892xf32>
    %119 = tpu.matmul %117, %118, %cst_73 {dimension_numbers = #tpu.dot_dimension_numbers<[1], [0], [0], [1], [0, 0, 1, 1], [], []>} : vector<6x3xf32>, vector<3x892xf32>, vector<6x892xf32> -> vector<6x892xf32>
    %120 = arith.addf %115, %119 : vector<6x892xf32>
    %c24 = arith.constant 24 : index
    %c0_74 = arith.constant 0 : index
    %c0_75 = arith.constant 0 : index
    %121 = vector.load %arg2[%c24, %c0_74, %c0_75] : memref<25x6x3xf32, #tpu.memory_space<vmem>>, vector<1x6x3xf32>
    %122 = vector.shape_cast %121 : vector<1x6x3xf32> to vector<6x3xf32>
    %123 = vector.extract_strided_slice %1 {offsets = [0, 132], sizes = [3, 892], strides = [1, 1]} : vector<3x1024xf32> to vector<3x892xf32>
    %cst_76 = arith.constant dense<0.000000e+00> : vector<6x892xf32>
    %124 = tpu.matmul %122, %123, %cst_76 {dimension_numbers = #tpu.dot_dimension_numbers<[1], [0], [0], [1], [0, 0, 1, 1], [], []>} : vector<6x3xf32>, vector<3x892xf32>, vector<6x892xf32> -> vector<6x892xf32>
    %125 = arith.addf %120, %124 : vector<6x892xf32>
    %c0_77 = arith.constant 0 : index
    %c0_78 = arith.constant 0 : index
    %126 = vector.load %arg3[%c0_77, %c0_78] : memref<6x1xf32, #tpu.memory_space<vmem>>, vector<6x1xf32>
    %127 = vector.broadcast %126 : vector<6x1xf32> to vector<6x892xf32>
    %128 = arith.addf %125, %127 : vector<6x892xf32>
    %cst_79 = arith.constant 0.000000e+00 : f32
    %129 = vector.broadcast %cst_79 : f32 to vector<6x892xf32>
    %130 = arith.maximumf %128, %129 : vector<6x892xf32>
    %131 = vector.extract_strided_slice %130 {offsets = [0, 0], sizes = [6, 859], strides = [1, 1]} : vector<6x892xf32> to vector<6x859xf32>
    %132 = vector.extract_strided_slice %130 {offsets = [0, 1], sizes = [6, 859], strides = [1, 1]} : vector<6x892xf32> to vector<6x859xf32>
    %133 = arith.maximumf %131, %132 : vector<6x859xf32>
    %134 = vector.extract_strided_slice %130 {offsets = [0, 32], sizes = [6, 859], strides = [1, 1]} : vector<6x892xf32> to vector<6x859xf32>
    %135 = vector.extract_strided_slice %130 {offsets = [0, 33], sizes = [6, 859], strides = [1, 1]} : vector<6x892xf32> to vector<6x859xf32>
    %136 = arith.maximumf %134, %135 : vector<6x859xf32>
    %137 = arith.maximumf %133, %136 : vector<6x859xf32>
    %c0_80 = arith.constant 0 : index
    %c0_81 = arith.constant 0 : index
    %c0_82 = arith.constant 0 : index
    %138 = vector.load %arg4[%c0_80, %c0_81, %c0_82] : memref<25x16x6xf32, #tpu.memory_space<vmem>>, vector<1x16x6xf32>
    %139 = vector.shape_cast %138 : vector<1x16x6xf32> to vector<16x6xf32>
    %140 = vector.extract_strided_slice %137 {offsets = [0, 0], sizes = [6, 595], strides = [1, 1]} : vector<6x859xf32> to vector<6x595xf32>
    %cst_83 = arith.constant dense<0.000000e+00> : vector<16x595xf32>
    %141 = tpu.matmul %139, %140, %cst_83 {dimension_numbers = #tpu.dot_dimension_numbers<[1], [0], [0], [1], [0, 0, 1, 1], [], []>} : vector<16x6xf32>, vector<6x595xf32>, vector<16x595xf32> -> vector<16x595xf32>
    %c1_84 = arith.constant 1 : index
    %c0_85 = arith.constant 0 : index
    %c0_86 = arith.constant 0 : index
    %142 = vector.load %arg4[%c1_84, %c0_85, %c0_86] : memref<25x16x6xf32, #tpu.memory_space<vmem>>, vector<1x16x6xf32>
    %143 = vector.shape_cast %142 : vector<1x16x6xf32> to vector<16x6xf32>
    %144 = vector.extract_strided_slice %137 {offsets = [0, 2], sizes = [6, 595], strides = [1, 1]} : vector<6x859xf32> to vector<6x595xf32>
    %cst_87 = arith.constant dense<0.000000e+00> : vector<16x595xf32>
    %145 = tpu.matmul %143, %144, %cst_87 {dimension_numbers = #tpu.dot_dimension_numbers<[1], [0], [0], [1], [0, 0, 1, 1], [], []>} : vector<16x6xf32>, vector<6x595xf32>, vector<16x595xf32> -> vector<16x595xf32>
    %146 = arith.addf %141, %145 : vector<16x595xf32>
    %c2_88 = arith.constant 2 : index
    %c0_89 = arith.constant 0 : index
    %c0_90 = arith.constant 0 : index
    %147 = vector.load %arg4[%c2_88, %c0_89, %c0_90] : memref<25x16x6xf32, #tpu.memory_space<vmem>>, vector<1x16x6xf32>
    %148 = vector.shape_cast %147 : vector<1x16x6xf32> to vector<16x6xf32>
    %149 = vector.extract_strided_slice %137 {offsets = [0, 4], sizes = [6, 595], strides = [1, 1]} : vector<6x859xf32> to vector<6x595xf32>
    %cst_91 = arith.constant dense<0.000000e+00> : vector<16x595xf32>
    %150 = tpu.matmul %148, %149, %cst_91 {dimension_numbers = #tpu.dot_dimension_numbers<[1], [0], [0], [1], [0, 0, 1, 1], [], []>} : vector<16x6xf32>, vector<6x595xf32>, vector<16x595xf32> -> vector<16x595xf32>
    %151 = arith.addf %146, %150 : vector<16x595xf32>
    %c3_92 = arith.constant 3 : index
    %c0_93 = arith.constant 0 : index
    %c0_94 = arith.constant 0 : index
    %152 = vector.load %arg4[%c3_92, %c0_93, %c0_94] : memref<25x16x6xf32, #tpu.memory_space<vmem>>, vector<1x16x6xf32>
    %153 = vector.shape_cast %152 : vector<1x16x6xf32> to vector<16x6xf32>
    %154 = vector.extract_strided_slice %137 {offsets = [0, 6], sizes = [6, 595], strides = [1, 1]} : vector<6x859xf32> to vector<6x595xf32>
    %cst_95 = arith.constant dense<0.000000e+00> : vector<16x595xf32>
    %155 = tpu.matmul %153, %154, %cst_95 {dimension_numbers = #tpu.dot_dimension_numbers<[1], [0], [0], [1], [0, 0, 1, 1], [], []>} : vector<16x6xf32>, vector<6x595xf32>, vector<16x595xf32> -> vector<16x595xf32>
    %156 = arith.addf %151, %155 : vector<16x595xf32>
    %c4_96 = arith.constant 4 : index
    %c0_97 = arith.constant 0 : index
    %c0_98 = arith.constant 0 : index
    %157 = vector.load %arg4[%c4_96, %c0_97, %c0_98] : memref<25x16x6xf32, #tpu.memory_space<vmem>>, vector<1x16x6xf32>
    %158 = vector.shape_cast %157 : vector<1x16x6xf32> to vector<16x6xf32>
    %159 = vector.extract_strided_slice %137 {offsets = [0, 8], sizes = [6, 595], strides = [1, 1]} : vector<6x859xf32> to vector<6x595xf32>
    %cst_99 = arith.constant dense<0.000000e+00> : vector<16x595xf32>
    %160 = tpu.matmul %158, %159, %cst_99 {dimension_numbers = #tpu.dot_dimension_numbers<[1], [0], [0], [1], [0, 0, 1, 1], [], []>} : vector<16x6xf32>, vector<6x595xf32>, vector<16x595xf32> -> vector<16x595xf32>
    %161 = arith.addf %156, %160 : vector<16x595xf32>
    %c5_100 = arith.constant 5 : index
    %c0_101 = arith.constant 0 : index
    %c0_102 = arith.constant 0 : index
    %162 = vector.load %arg4[%c5_100, %c0_101, %c0_102] : memref<25x16x6xf32, #tpu.memory_space<vmem>>, vector<1x16x6xf32>
    %163 = vector.shape_cast %162 : vector<1x16x6xf32> to vector<16x6xf32>
    %164 = vector.extract_strided_slice %137 {offsets = [0, 64], sizes = [6, 595], strides = [1, 1]} : vector<6x859xf32> to vector<6x595xf32>
    %cst_103 = arith.constant dense<0.000000e+00> : vector<16x595xf32>
    %165 = tpu.matmul %163, %164, %cst_103 {dimension_numbers = #tpu.dot_dimension_numbers<[1], [0], [0], [1], [0, 0, 1, 1], [], []>} : vector<16x6xf32>, vector<6x595xf32>, vector<16x595xf32> -> vector<16x595xf32>
    %166 = arith.addf %161, %165 : vector<16x595xf32>
    %c6_104 = arith.constant 6 : index
    %c0_105 = arith.constant 0 : index
    %c0_106 = arith.constant 0 : index
    %167 = vector.load %arg4[%c6_104, %c0_105, %c0_106] : memref<25x16x6xf32, #tpu.memory_space<vmem>>, vector<1x16x6xf32>
    %168 = vector.shape_cast %167 : vector<1x16x6xf32> to vector<16x6xf32>
    %169 = vector.extract_strided_slice %137 {offsets = [0, 66], sizes = [6, 595], strides = [1, 1]} : vector<6x859xf32> to vector<6x595xf32>
    %cst_107 = arith.constant dense<0.000000e+00> : vector<16x595xf32>
    %170 = tpu.matmul %168, %169, %cst_107 {dimension_numbers = #tpu.dot_dimension_numbers<[1], [0], [0], [1], [0, 0, 1, 1], [], []>} : vector<16x6xf32>, vector<6x595xf32>, vector<16x595xf32> -> vector<16x595xf32>
    %171 = arith.addf %166, %170 : vector<16x595xf32>
    %c7_108 = arith.constant 7 : index
    %c0_109 = arith.constant 0 : index
    %c0_110 = arith.constant 0 : index
    %172 = vector.load %arg4[%c7_108, %c0_109, %c0_110] : memref<25x16x6xf32, #tpu.memory_space<vmem>>, vector<1x16x6xf32>
    %173 = vector.shape_cast %172 : vector<1x16x6xf32> to vector<16x6xf32>
    %174 = vector.extract_strided_slice %137 {offsets = [0, 68], sizes = [6, 595], strides = [1, 1]} : vector<6x859xf32> to vector<6x595xf32>
    %cst_111 = arith.constant dense<0.000000e+00> : vector<16x595xf32>
    %175 = tpu.matmul %173, %174, %cst_111 {dimension_numbers = #tpu.dot_dimension_numbers<[1], [0], [0], [1], [0, 0, 1, 1], [], []>} : vector<16x6xf32>, vector<6x595xf32>, vector<16x595xf32> -> vector<16x595xf32>
    %176 = arith.addf %171, %175 : vector<16x595xf32>
    %c8_112 = arith.constant 8 : index
    %c0_113 = arith.constant 0 : index
    %c0_114 = arith.constant 0 : index
    %177 = vector.load %arg4[%c8_112, %c0_113, %c0_114] : memref<25x16x6xf32, #tpu.memory_space<vmem>>, vector<1x16x6xf32>
    %178 = vector.shape_cast %177 : vector<1x16x6xf32> to vector<16x6xf32>
    %179 = vector.extract_strided_slice %137 {offsets = [0, 70], sizes = [6, 595], strides = [1, 1]} : vector<6x859xf32> to vector<6x595xf32>
    %cst_115 = arith.constant dense<0.000000e+00> : vector<16x595xf32>
    %180 = tpu.matmul %178, %179, %cst_115 {dimension_numbers = #tpu.dot_dimension_numbers<[1], [0], [0], [1], [0, 0, 1, 1], [], []>} : vector<16x6xf32>, vector<6x595xf32>, vector<16x595xf32> -> vector<16x595xf32>
    %181 = arith.addf %176, %180 : vector<16x595xf32>
    %c9_116 = arith.constant 9 : index
    %c0_117 = arith.constant 0 : index
    %c0_118 = arith.constant 0 : index
    %182 = vector.load %arg4[%c9_116, %c0_117, %c0_118] : memref<25x16x6xf32, #tpu.memory_space<vmem>>, vector<1x16x6xf32>
    %183 = vector.shape_cast %182 : vector<1x16x6xf32> to vector<16x6xf32>
    %184 = vector.extract_strided_slice %137 {offsets = [0, 72], sizes = [6, 595], strides = [1, 1]} : vector<6x859xf32> to vector<6x595xf32>
    %cst_119 = arith.constant dense<0.000000e+00> : vector<16x595xf32>
    %185 = tpu.matmul %183, %184, %cst_119 {dimension_numbers = #tpu.dot_dimension_numbers<[1], [0], [0], [1], [0, 0, 1, 1], [], []>} : vector<16x6xf32>, vector<6x595xf32>, vector<16x595xf32> -> vector<16x595xf32>
    %186 = arith.addf %181, %185 : vector<16x595xf32>
    %c10_120 = arith.constant 10 : index
    %c0_121 = arith.constant 0 : index
    %c0_122 = arith.constant 0 : index
    %187 = vector.load %arg4[%c10_120, %c0_121, %c0_122] : memref<25x16x6xf32, #tpu.memory_space<vmem>>, vector<1x16x6xf32>
    %188 = vector.shape_cast %187 : vector<1x16x6xf32> to vector<16x6xf32>
    %189 = vector.extract_strided_slice %137 {offsets = [0, 128], sizes = [6, 595], strides = [1, 1]} : vector<6x859xf32> to vector<6x595xf32>
    %cst_123 = arith.constant dense<0.000000e+00> : vector<16x595xf32>
    %190 = tpu.matmul %188, %189, %cst_123 {dimension_numbers = #tpu.dot_dimension_numbers<[1], [0], [0], [1], [0, 0, 1, 1], [], []>} : vector<16x6xf32>, vector<6x595xf32>, vector<16x595xf32> -> vector<16x595xf32>
    %191 = arith.addf %186, %190 : vector<16x595xf32>
    %c11_124 = arith.constant 11 : index
    %c0_125 = arith.constant 0 : index
    %c0_126 = arith.constant 0 : index
    %192 = vector.load %arg4[%c11_124, %c0_125, %c0_126] : memref<25x16x6xf32, #tpu.memory_space<vmem>>, vector<1x16x6xf32>
    %193 = vector.shape_cast %192 : vector<1x16x6xf32> to vector<16x6xf32>
    %194 = vector.extract_strided_slice %137 {offsets = [0, 130], sizes = [6, 595], strides = [1, 1]} : vector<6x859xf32> to vector<6x595xf32>
    %cst_127 = arith.constant dense<0.000000e+00> : vector<16x595xf32>
    %195 = tpu.matmul %193, %194, %cst_127 {dimension_numbers = #tpu.dot_dimension_numbers<[1], [0], [0], [1], [0, 0, 1, 1], [], []>} : vector<16x6xf32>, vector<6x595xf32>, vector<16x595xf32> -> vector<16x595xf32>
    %196 = arith.addf %191, %195 : vector<16x595xf32>
    %c12_128 = arith.constant 12 : index
    %c0_129 = arith.constant 0 : index
    %c0_130 = arith.constant 0 : index
    %197 = vector.load %arg4[%c12_128, %c0_129, %c0_130] : memref<25x16x6xf32, #tpu.memory_space<vmem>>, vector<1x16x6xf32>
    %198 = vector.shape_cast %197 : vector<1x16x6xf32> to vector<16x6xf32>
    %199 = vector.extract_strided_slice %137 {offsets = [0, 132], sizes = [6, 595], strides = [1, 1]} : vector<6x859xf32> to vector<6x595xf32>
    %cst_131 = arith.constant dense<0.000000e+00> : vector<16x595xf32>
    %200 = tpu.matmul %198, %199, %cst_131 {dimension_numbers = #tpu.dot_dimension_numbers<[1], [0], [0], [1], [0, 0, 1, 1], [], []>} : vector<16x6xf32>, vector<6x595xf32>, vector<16x595xf32> -> vector<16x595xf32>
    %201 = arith.addf %196, %200 : vector<16x595xf32>
    %c13_132 = arith.constant 13 : index
    %c0_133 = arith.constant 0 : index
    %c0_134 = arith.constant 0 : index
    %202 = vector.load %arg4[%c13_132, %c0_133, %c0_134] : memref<25x16x6xf32, #tpu.memory_space<vmem>>, vector<1x16x6xf32>
    %203 = vector.shape_cast %202 : vector<1x16x6xf32> to vector<16x6xf32>
    %204 = vector.extract_strided_slice %137 {offsets = [0, 134], sizes = [6, 595], strides = [1, 1]} : vector<6x859xf32> to vector<6x595xf32>
    %cst_135 = arith.constant dense<0.000000e+00> : vector<16x595xf32>
    %205 = tpu.matmul %203, %204, %cst_135 {dimension_numbers = #tpu.dot_dimension_numbers<[1], [0], [0], [1], [0, 0, 1, 1], [], []>} : vector<16x6xf32>, vector<6x595xf32>, vector<16x595xf32> -> vector<16x595xf32>
    %206 = arith.addf %201, %205 : vector<16x595xf32>
    %c14_136 = arith.constant 14 : index
    %c0_137 = arith.constant 0 : index
    %c0_138 = arith.constant 0 : index
    %207 = vector.load %arg4[%c14_136, %c0_137, %c0_138] : memref<25x16x6xf32, #tpu.memory_space<vmem>>, vector<1x16x6xf32>
    %208 = vector.shape_cast %207 : vector<1x16x6xf32> to vector<16x6xf32>
    %209 = vector.extract_strided_slice %137 {offsets = [0, 136], sizes = [6, 595], strides = [1, 1]} : vector<6x859xf32> to vector<6x595xf32>
    %cst_139 = arith.constant dense<0.000000e+00> : vector<16x595xf32>
    %210 = tpu.matmul %208, %209, %cst_139 {dimension_numbers = #tpu.dot_dimension_numbers<[1], [0], [0], [1], [0, 0, 1, 1], [], []>} : vector<16x6xf32>, vector<6x595xf32>, vector<16x595xf32> -> vector<16x595xf32>
    %211 = arith.addf %206, %210 : vector<16x595xf32>
    %c15_140 = arith.constant 15 : index
    %c0_141 = arith.constant 0 : index
    %c0_142 = arith.constant 0 : index
    %212 = vector.load %arg4[%c15_140, %c0_141, %c0_142] : memref<25x16x6xf32, #tpu.memory_space<vmem>>, vector<1x16x6xf32>
    %213 = vector.shape_cast %212 : vector<1x16x6xf32> to vector<16x6xf32>
    %214 = vector.extract_strided_slice %137 {offsets = [0, 192], sizes = [6, 595], strides = [1, 1]} : vector<6x859xf32> to vector<6x595xf32>
    %cst_143 = arith.constant dense<0.000000e+00> : vector<16x595xf32>
    %215 = tpu.matmul %213, %214, %cst_143 {dimension_numbers = #tpu.dot_dimension_numbers<[1], [0], [0], [1], [0, 0, 1, 1], [], []>} : vector<16x6xf32>, vector<6x595xf32>, vector<16x595xf32> -> vector<16x595xf32>
    %216 = arith.addf %211, %215 : vector<16x595xf32>
    %c16_144 = arith.constant 16 : index
    %c0_145 = arith.constant 0 : index
    %c0_146 = arith.constant 0 : index
    %217 = vector.load %arg4[%c16_144, %c0_145, %c0_146] : memref<25x16x6xf32, #tpu.memory_space<vmem>>, vector<1x16x6xf32>
    %218 = vector.shape_cast %217 : vector<1x16x6xf32> to vector<16x6xf32>
    %219 = vector.extract_strided_slice %137 {offsets = [0, 194], sizes = [6, 595], strides = [1, 1]} : vector<6x859xf32> to vector<6x595xf32>
    %cst_147 = arith.constant dense<0.000000e+00> : vector<16x595xf32>
    %220 = tpu.matmul %218, %219, %cst_147 {dimension_numbers = #tpu.dot_dimension_numbers<[1], [0], [0], [1], [0, 0, 1, 1], [], []>} : vector<16x6xf32>, vector<6x595xf32>, vector<16x595xf32> -> vector<16x595xf32>
    %221 = arith.addf %216, %220 : vector<16x595xf32>
    %c17_148 = arith.constant 17 : index
    %c0_149 = arith.constant 0 : index
    %c0_150 = arith.constant 0 : index
    %222 = vector.load %arg4[%c17_148, %c0_149, %c0_150] : memref<25x16x6xf32, #tpu.memory_space<vmem>>, vector<1x16x6xf32>
    %223 = vector.shape_cast %222 : vector<1x16x6xf32> to vector<16x6xf32>
    %224 = vector.extract_strided_slice %137 {offsets = [0, 196], sizes = [6, 595], strides = [1, 1]} : vector<6x859xf32> to vector<6x595xf32>
    %cst_151 = arith.constant dense<0.000000e+00> : vector<16x595xf32>
    %225 = tpu.matmul %223, %224, %cst_151 {dimension_numbers = #tpu.dot_dimension_numbers<[1], [0], [0], [1], [0, 0, 1, 1], [], []>} : vector<16x6xf32>, vector<6x595xf32>, vector<16x595xf32> -> vector<16x595xf32>
    %226 = arith.addf %221, %225 : vector<16x595xf32>
    %c18_152 = arith.constant 18 : index
    %c0_153 = arith.constant 0 : index
    %c0_154 = arith.constant 0 : index
    %227 = vector.load %arg4[%c18_152, %c0_153, %c0_154] : memref<25x16x6xf32, #tpu.memory_space<vmem>>, vector<1x16x6xf32>
    %228 = vector.shape_cast %227 : vector<1x16x6xf32> to vector<16x6xf32>
    %229 = vector.extract_strided_slice %137 {offsets = [0, 198], sizes = [6, 595], strides = [1, 1]} : vector<6x859xf32> to vector<6x595xf32>
    %cst_155 = arith.constant dense<0.000000e+00> : vector<16x595xf32>
    %230 = tpu.matmul %228, %229, %cst_155 {dimension_numbers = #tpu.dot_dimension_numbers<[1], [0], [0], [1], [0, 0, 1, 1], [], []>} : vector<16x6xf32>, vector<6x595xf32>, vector<16x595xf32> -> vector<16x595xf32>
    %231 = arith.addf %226, %230 : vector<16x595xf32>
    %c19_156 = arith.constant 19 : index
    %c0_157 = arith.constant 0 : index
    %c0_158 = arith.constant 0 : index
    %232 = vector.load %arg4[%c19_156, %c0_157, %c0_158] : memref<25x16x6xf32, #tpu.memory_space<vmem>>, vector<1x16x6xf32>
    %233 = vector.shape_cast %232 : vector<1x16x6xf32> to vector<16x6xf32>
    %234 = vector.extract_strided_slice %137 {offsets = [0, 200], sizes = [6, 595], strides = [1, 1]} : vector<6x859xf32> to vector<6x595xf32>
    %cst_159 = arith.constant dense<0.000000e+00> : vector<16x595xf32>
    %235 = tpu.matmul %233, %234, %cst_159 {dimension_numbers = #tpu.dot_dimension_numbers<[1], [0], [0], [1], [0, 0, 1, 1], [], []>} : vector<16x6xf32>, vector<6x595xf32>, vector<16x595xf32> -> vector<16x595xf32>
    %236 = arith.addf %231, %235 : vector<16x595xf32>
    %c20_160 = arith.constant 20 : index
    %c0_161 = arith.constant 0 : index
    %c0_162 = arith.constant 0 : index
    %237 = vector.load %arg4[%c20_160, %c0_161, %c0_162] : memref<25x16x6xf32, #tpu.memory_space<vmem>>, vector<1x16x6xf32>
    %238 = vector.shape_cast %237 : vector<1x16x6xf32> to vector<16x6xf32>
    %239 = vector.extract_strided_slice %137 {offsets = [0, 256], sizes = [6, 595], strides = [1, 1]} : vector<6x859xf32> to vector<6x595xf32>
    %cst_163 = arith.constant dense<0.000000e+00> : vector<16x595xf32>
    %240 = tpu.matmul %238, %239, %cst_163 {dimension_numbers = #tpu.dot_dimension_numbers<[1], [0], [0], [1], [0, 0, 1, 1], [], []>} : vector<16x6xf32>, vector<6x595xf32>, vector<16x595xf32> -> vector<16x595xf32>
    %241 = arith.addf %236, %240 : vector<16x595xf32>
    %c21_164 = arith.constant 21 : index
    %c0_165 = arith.constant 0 : index
    %c0_166 = arith.constant 0 : index
    %242 = vector.load %arg4[%c21_164, %c0_165, %c0_166] : memref<25x16x6xf32, #tpu.memory_space<vmem>>, vector<1x16x6xf32>
    %243 = vector.shape_cast %242 : vector<1x16x6xf32> to vector<16x6xf32>
    %244 = vector.extract_strided_slice %137 {offsets = [0, 258], sizes = [6, 595], strides = [1, 1]} : vector<6x859xf32> to vector<6x595xf32>
    %cst_167 = arith.constant dense<0.000000e+00> : vector<16x595xf32>
    %245 = tpu.matmul %243, %244, %cst_167 {dimension_numbers = #tpu.dot_dimension_numbers<[1], [0], [0], [1], [0, 0, 1, 1], [], []>} : vector<16x6xf32>, vector<6x595xf32>, vector<16x595xf32> -> vector<16x595xf32>
    %246 = arith.addf %241, %245 : vector<16x595xf32>
    %c22_168 = arith.constant 22 : index
    %c0_169 = arith.constant 0 : index
    %c0_170 = arith.constant 0 : index
    %247 = vector.load %arg4[%c22_168, %c0_169, %c0_170] : memref<25x16x6xf32, #tpu.memory_space<vmem>>, vector<1x16x6xf32>
    %248 = vector.shape_cast %247 : vector<1x16x6xf32> to vector<16x6xf32>
    %249 = vector.extract_strided_slice %137 {offsets = [0, 260], sizes = [6, 595], strides = [1, 1]} : vector<6x859xf32> to vector<6x595xf32>
    %cst_171 = arith.constant dense<0.000000e+00> : vector<16x595xf32>
    %250 = tpu.matmul %248, %249, %cst_171 {dimension_numbers = #tpu.dot_dimension_numbers<[1], [0], [0], [1], [0, 0, 1, 1], [], []>} : vector<16x6xf32>, vector<6x595xf32>, vector<16x595xf32> -> vector<16x595xf32>
    %251 = arith.addf %246, %250 : vector<16x595xf32>
    %c23_172 = arith.constant 23 : index
    %c0_173 = arith.constant 0 : index
    %c0_174 = arith.constant 0 : index
    %252 = vector.load %arg4[%c23_172, %c0_173, %c0_174] : memref<25x16x6xf32, #tpu.memory_space<vmem>>, vector<1x16x6xf32>
    %253 = vector.shape_cast %252 : vector<1x16x6xf32> to vector<16x6xf32>
    %254 = vector.extract_strided_slice %137 {offsets = [0, 262], sizes = [6, 595], strides = [1, 1]} : vector<6x859xf32> to vector<6x595xf32>
    %cst_175 = arith.constant dense<0.000000e+00> : vector<16x595xf32>
    %255 = tpu.matmul %253, %254, %cst_175 {dimension_numbers = #tpu.dot_dimension_numbers<[1], [0], [0], [1], [0, 0, 1, 1], [], []>} : vector<16x6xf32>, vector<6x595xf32>, vector<16x595xf32> -> vector<16x595xf32>
    %256 = arith.addf %251, %255 : vector<16x595xf32>
    %c24_176 = arith.constant 24 : index
    %c0_177 = arith.constant 0 : index
    %c0_178 = arith.constant 0 : index
    %257 = vector.load %arg4[%c24_176, %c0_177, %c0_178] : memref<25x16x6xf32, #tpu.memory_space<vmem>>, vector<1x16x6xf32>
    %258 = vector.shape_cast %257 : vector<1x16x6xf32> to vector<16x6xf32>
    %259 = vector.extract_strided_slice %137 {offsets = [0, 264], sizes = [6, 595], strides = [1, 1]} : vector<6x859xf32> to vector<6x595xf32>
    %cst_179 = arith.constant dense<0.000000e+00> : vector<16x595xf32>
    %260 = tpu.matmul %258, %259, %cst_179 {dimension_numbers = #tpu.dot_dimension_numbers<[1], [0], [0], [1], [0, 0, 1, 1], [], []>} : vector<16x6xf32>, vector<6x595xf32>, vector<16x595xf32> -> vector<16x595xf32>
    %261 = arith.addf %256, %260 : vector<16x595xf32>
    %c0_180 = arith.constant 0 : index
    %c0_181 = arith.constant 0 : index
    %262 = vector.load %arg5[%c0_180, %c0_181] : memref<16x1xf32, #tpu.memory_space<vmem>>, vector<16x1xf32>
    %263 = vector.broadcast %262 : vector<16x1xf32> to vector<16x595xf32>
    %264 = arith.addf %261, %263 : vector<16x595xf32>
    %cst_182 = arith.constant 0.000000e+00 : f32
    %265 = vector.broadcast %cst_182 : f32 to vector<16x595xf32>
    %266 = arith.maximumf %264, %265 : vector<16x595xf32>
    %267 = vector.extract_strided_slice %266 {offsets = [0, 0], sizes = [16, 529], strides = [1, 1]} : vector<16x595xf32> to vector<16x529xf32>
    %268 = vector.extract_strided_slice %266 {offsets = [0, 2], sizes = [16, 529], strides = [1, 1]} : vector<16x595xf32> to vector<16x529xf32>
    %269 = arith.maximumf %267, %268 : vector<16x529xf32>
    %270 = vector.extract_strided_slice %266 {offsets = [0, 64], sizes = [16, 529], strides = [1, 1]} : vector<16x595xf32> to vector<16x529xf32>
    %271 = vector.extract_strided_slice %266 {offsets = [0, 66], sizes = [16, 529], strides = [1, 1]} : vector<16x595xf32> to vector<16x529xf32>
    %272 = arith.maximumf %270, %271 : vector<16x529xf32>
    %273 = arith.maximumf %269, %272 : vector<16x529xf32>
    %c0_183 = arith.constant 0 : index
    %c0_184 = arith.constant 0 : index
    %274 = vector.load %arg6[%c0_183, %c0_184] : memref<529x25xf32, #tpu.memory_space<vmem>>, vector<529x25xf32>
    %cst_185 = arith.constant dense<0.000000e+00> : vector<16x25xf32>
    %275 = tpu.matmul %273, %274, %cst_185 {dimension_numbers = #tpu.dot_dimension_numbers<[1], [0], [0], [1], [0, 0, 1, 1], [], []>} : vector<16x529xf32>, vector<529x25xf32>, vector<16x25xf32> -> vector<16x25xf32>
    %c0_186 = arith.constant 0 : index
    %c0_187 = arith.constant 0 : index
    %276 = vector.load %arg8[%c0_186, %c0_187] : memref<1x120xf32, #tpu.memory_space<vmem>>, vector<1x120xf32>
    %277 = vector.extract_strided_slice %275 {offsets = [0, 0], sizes = [1, 25], strides = [1, 1]} : vector<16x25xf32> to vector<1x25xf32>
    %c0_188 = arith.constant 0 : index
    %c0_189 = arith.constant 0 : index
    %c0_190 = arith.constant 0 : index
    %278 = vector.load %arg7[%c0_188, %c0_189, %c0_190] : memref<16x25x120xf32, #tpu.memory_space<vmem>>, vector<1x25x120xf32>
    %279 = vector.shape_cast %278 : vector<1x25x120xf32> to vector<25x120xf32>
    %cst_191 = arith.constant dense<0.000000e+00> : vector<1x120xf32>
    %280 = tpu.matmul %277, %279, %cst_191 {dimension_numbers = #tpu.dot_dimension_numbers<[1], [0], [0], [1], [0, 0, 1, 1], [], []>} : vector<1x25xf32>, vector<25x120xf32>, vector<1x120xf32> -> vector<1x120xf32>
    %281 = arith.addf %276, %280 : vector<1x120xf32>
    %282 = vector.extract_strided_slice %275 {offsets = [1, 0], sizes = [1, 25], strides = [1, 1]} : vector<16x25xf32> to vector<1x25xf32>
    %c1_192 = arith.constant 1 : index
    %c0_193 = arith.constant 0 : index
    %c0_194 = arith.constant 0 : index
    %283 = vector.load %arg7[%c1_192, %c0_193, %c0_194] : memref<16x25x120xf32, #tpu.memory_space<vmem>>, vector<1x25x120xf32>
    %284 = vector.shape_cast %283 : vector<1x25x120xf32> to vector<25x120xf32>
    %cst_195 = arith.constant dense<0.000000e+00> : vector<1x120xf32>
    %285 = tpu.matmul %282, %284, %cst_195 {dimension_numbers = #tpu.dot_dimension_numbers<[1], [0], [0], [1], [0, 0, 1, 1], [], []>} : vector<1x25xf32>, vector<25x120xf32>, vector<1x120xf32> -> vector<1x120xf32>
    %286 = arith.addf %281, %285 : vector<1x120xf32>
    %287 = vector.extract_strided_slice %275 {offsets = [2, 0], sizes = [1, 25], strides = [1, 1]} : vector<16x25xf32> to vector<1x25xf32>
    %c2_196 = arith.constant 2 : index
    %c0_197 = arith.constant 0 : index
    %c0_198 = arith.constant 0 : index
    %288 = vector.load %arg7[%c2_196, %c0_197, %c0_198] : memref<16x25x120xf32, #tpu.memory_space<vmem>>, vector<1x25x120xf32>
    %289 = vector.shape_cast %288 : vector<1x25x120xf32> to vector<25x120xf32>
    %cst_199 = arith.constant dense<0.000000e+00> : vector<1x120xf32>
    %290 = tpu.matmul %287, %289, %cst_199 {dimension_numbers = #tpu.dot_dimension_numbers<[1], [0], [0], [1], [0, 0, 1, 1], [], []>} : vector<1x25xf32>, vector<25x120xf32>, vector<1x120xf32> -> vector<1x120xf32>
    %291 = arith.addf %286, %290 : vector<1x120xf32>
    %292 = vector.extract_strided_slice %275 {offsets = [3, 0], sizes = [1, 25], strides = [1, 1]} : vector<16x25xf32> to vector<1x25xf32>
    %c3_200 = arith.constant 3 : index
    %c0_201 = arith.constant 0 : index
    %c0_202 = arith.constant 0 : index
    %293 = vector.load %arg7[%c3_200, %c0_201, %c0_202] : memref<16x25x120xf32, #tpu.memory_space<vmem>>, vector<1x25x120xf32>
    %294 = vector.shape_cast %293 : vector<1x25x120xf32> to vector<25x120xf32>
    %cst_203 = arith.constant dense<0.000000e+00> : vector<1x120xf32>
    %295 = tpu.matmul %292, %294, %cst_203 {dimension_numbers = #tpu.dot_dimension_numbers<[1], [0], [0], [1], [0, 0, 1, 1], [], []>} : vector<1x25xf32>, vector<25x120xf32>, vector<1x120xf32> -> vector<1x120xf32>
    %296 = arith.addf %291, %295 : vector<1x120xf32>
    %297 = vector.extract_strided_slice %275 {offsets = [4, 0], sizes = [1, 25], strides = [1, 1]} : vector<16x25xf32> to vector<1x25xf32>
    %c4_204 = arith.constant 4 : index
    %c0_205 = arith.constant 0 : index
    %c0_206 = arith.constant 0 : index
    %298 = vector.load %arg7[%c4_204, %c0_205, %c0_206] : memref<16x25x120xf32, #tpu.memory_space<vmem>>, vector<1x25x120xf32>
    %299 = vector.shape_cast %298 : vector<1x25x120xf32> to vector<25x120xf32>
    %cst_207 = arith.constant dense<0.000000e+00> : vector<1x120xf32>
    %300 = tpu.matmul %297, %299, %cst_207 {dimension_numbers = #tpu.dot_dimension_numbers<[1], [0], [0], [1], [0, 0, 1, 1], [], []>} : vector<1x25xf32>, vector<25x120xf32>, vector<1x120xf32> -> vector<1x120xf32>
    %301 = arith.addf %296, %300 : vector<1x120xf32>
    %302 = vector.extract_strided_slice %275 {offsets = [5, 0], sizes = [1, 25], strides = [1, 1]} : vector<16x25xf32> to vector<1x25xf32>
    %c5_208 = arith.constant 5 : index
    %c0_209 = arith.constant 0 : index
    %c0_210 = arith.constant 0 : index
    %303 = vector.load %arg7[%c5_208, %c0_209, %c0_210] : memref<16x25x120xf32, #tpu.memory_space<vmem>>, vector<1x25x120xf32>
    %304 = vector.shape_cast %303 : vector<1x25x120xf32> to vector<25x120xf32>
    %cst_211 = arith.constant dense<0.000000e+00> : vector<1x120xf32>
    %305 = tpu.matmul %302, %304, %cst_211 {dimension_numbers = #tpu.dot_dimension_numbers<[1], [0], [0], [1], [0, 0, 1, 1], [], []>} : vector<1x25xf32>, vector<25x120xf32>, vector<1x120xf32> -> vector<1x120xf32>
    %306 = arith.addf %301, %305 : vector<1x120xf32>
    %307 = vector.extract_strided_slice %275 {offsets = [6, 0], sizes = [1, 25], strides = [1, 1]} : vector<16x25xf32> to vector<1x25xf32>
    %c6_212 = arith.constant 6 : index
    %c0_213 = arith.constant 0 : index
    %c0_214 = arith.constant 0 : index
    %308 = vector.load %arg7[%c6_212, %c0_213, %c0_214] : memref<16x25x120xf32, #tpu.memory_space<vmem>>, vector<1x25x120xf32>
    %309 = vector.shape_cast %308 : vector<1x25x120xf32> to vector<25x120xf32>
    %cst_215 = arith.constant dense<0.000000e+00> : vector<1x120xf32>
    %310 = tpu.matmul %307, %309, %cst_215 {dimension_numbers = #tpu.dot_dimension_numbers<[1], [0], [0], [1], [0, 0, 1, 1], [], []>} : vector<1x25xf32>, vector<25x120xf32>, vector<1x120xf32> -> vector<1x120xf32>
    %311 = arith.addf %306, %310 : vector<1x120xf32>
    %312 = vector.extract_strided_slice %275 {offsets = [7, 0], sizes = [1, 25], strides = [1, 1]} : vector<16x25xf32> to vector<1x25xf32>
    %c7_216 = arith.constant 7 : index
    %c0_217 = arith.constant 0 : index
    %c0_218 = arith.constant 0 : index
    %313 = vector.load %arg7[%c7_216, %c0_217, %c0_218] : memref<16x25x120xf32, #tpu.memory_space<vmem>>, vector<1x25x120xf32>
    %314 = vector.shape_cast %313 : vector<1x25x120xf32> to vector<25x120xf32>
    %cst_219 = arith.constant dense<0.000000e+00> : vector<1x120xf32>
    %315 = tpu.matmul %312, %314, %cst_219 {dimension_numbers = #tpu.dot_dimension_numbers<[1], [0], [0], [1], [0, 0, 1, 1], [], []>} : vector<1x25xf32>, vector<25x120xf32>, vector<1x120xf32> -> vector<1x120xf32>
    %316 = arith.addf %311, %315 : vector<1x120xf32>
    %317 = vector.extract_strided_slice %275 {offsets = [8, 0], sizes = [1, 25], strides = [1, 1]} : vector<16x25xf32> to vector<1x25xf32>
    %c8_220 = arith.constant 8 : index
    %c0_221 = arith.constant 0 : index
    %c0_222 = arith.constant 0 : index
    %318 = vector.load %arg7[%c8_220, %c0_221, %c0_222] : memref<16x25x120xf32, #tpu.memory_space<vmem>>, vector<1x25x120xf32>
    %319 = vector.shape_cast %318 : vector<1x25x120xf32> to vector<25x120xf32>
    %cst_223 = arith.constant dense<0.000000e+00> : vector<1x120xf32>
    %320 = tpu.matmul %317, %319, %cst_223 {dimension_numbers = #tpu.dot_dimension_numbers<[1], [0], [0], [1], [0, 0, 1, 1], [], []>} : vector<1x25xf32>, vector<25x120xf32>, vector<1x120xf32> -> vector<1x120xf32>
    %321 = arith.addf %316, %320 : vector<1x120xf32>
    %322 = vector.extract_strided_slice %275 {offsets = [9, 0], sizes = [1, 25], strides = [1, 1]} : vector<16x25xf32> to vector<1x25xf32>
    %c9_224 = arith.constant 9 : index
    %c0_225 = arith.constant 0 : index
    %c0_226 = arith.constant 0 : index
    %323 = vector.load %arg7[%c9_224, %c0_225, %c0_226] : memref<16x25x120xf32, #tpu.memory_space<vmem>>, vector<1x25x120xf32>
    %324 = vector.shape_cast %323 : vector<1x25x120xf32> to vector<25x120xf32>
    %cst_227 = arith.constant dense<0.000000e+00> : vector<1x120xf32>
    %325 = tpu.matmul %322, %324, %cst_227 {dimension_numbers = #tpu.dot_dimension_numbers<[1], [0], [0], [1], [0, 0, 1, 1], [], []>} : vector<1x25xf32>, vector<25x120xf32>, vector<1x120xf32> -> vector<1x120xf32>
    %326 = arith.addf %321, %325 : vector<1x120xf32>
    %327 = vector.extract_strided_slice %275 {offsets = [10, 0], sizes = [1, 25], strides = [1, 1]} : vector<16x25xf32> to vector<1x25xf32>
    %c10_228 = arith.constant 10 : index
    %c0_229 = arith.constant 0 : index
    %c0_230 = arith.constant 0 : index
    %328 = vector.load %arg7[%c10_228, %c0_229, %c0_230] : memref<16x25x120xf32, #tpu.memory_space<vmem>>, vector<1x25x120xf32>
    %329 = vector.shape_cast %328 : vector<1x25x120xf32> to vector<25x120xf32>
    %cst_231 = arith.constant dense<0.000000e+00> : vector<1x120xf32>
    %330 = tpu.matmul %327, %329, %cst_231 {dimension_numbers = #tpu.dot_dimension_numbers<[1], [0], [0], [1], [0, 0, 1, 1], [], []>} : vector<1x25xf32>, vector<25x120xf32>, vector<1x120xf32> -> vector<1x120xf32>
    %331 = arith.addf %326, %330 : vector<1x120xf32>
    %332 = vector.extract_strided_slice %275 {offsets = [11, 0], sizes = [1, 25], strides = [1, 1]} : vector<16x25xf32> to vector<1x25xf32>
    %c11_232 = arith.constant 11 : index
    %c0_233 = arith.constant 0 : index
    %c0_234 = arith.constant 0 : index
    %333 = vector.load %arg7[%c11_232, %c0_233, %c0_234] : memref<16x25x120xf32, #tpu.memory_space<vmem>>, vector<1x25x120xf32>
    %334 = vector.shape_cast %333 : vector<1x25x120xf32> to vector<25x120xf32>
    %cst_235 = arith.constant dense<0.000000e+00> : vector<1x120xf32>
    %335 = tpu.matmul %332, %334, %cst_235 {dimension_numbers = #tpu.dot_dimension_numbers<[1], [0], [0], [1], [0, 0, 1, 1], [], []>} : vector<1x25xf32>, vector<25x120xf32>, vector<1x120xf32> -> vector<1x120xf32>
    %336 = arith.addf %331, %335 : vector<1x120xf32>
    %337 = vector.extract_strided_slice %275 {offsets = [12, 0], sizes = [1, 25], strides = [1, 1]} : vector<16x25xf32> to vector<1x25xf32>
    %c12_236 = arith.constant 12 : index
    %c0_237 = arith.constant 0 : index
    %c0_238 = arith.constant 0 : index
    %338 = vector.load %arg7[%c12_236, %c0_237, %c0_238] : memref<16x25x120xf32, #tpu.memory_space<vmem>>, vector<1x25x120xf32>
    %339 = vector.shape_cast %338 : vector<1x25x120xf32> to vector<25x120xf32>
    %cst_239 = arith.constant dense<0.000000e+00> : vector<1x120xf32>
    %340 = tpu.matmul %337, %339, %cst_239 {dimension_numbers = #tpu.dot_dimension_numbers<[1], [0], [0], [1], [0, 0, 1, 1], [], []>} : vector<1x25xf32>, vector<25x120xf32>, vector<1x120xf32> -> vector<1x120xf32>
    %341 = arith.addf %336, %340 : vector<1x120xf32>
    %342 = vector.extract_strided_slice %275 {offsets = [13, 0], sizes = [1, 25], strides = [1, 1]} : vector<16x25xf32> to vector<1x25xf32>
    %c13_240 = arith.constant 13 : index
    %c0_241 = arith.constant 0 : index
    %c0_242 = arith.constant 0 : index
    %343 = vector.load %arg7[%c13_240, %c0_241, %c0_242] : memref<16x25x120xf32, #tpu.memory_space<vmem>>, vector<1x25x120xf32>
    %344 = vector.shape_cast %343 : vector<1x25x120xf32> to vector<25x120xf32>
    %cst_243 = arith.constant dense<0.000000e+00> : vector<1x120xf32>
    %345 = tpu.matmul %342, %344, %cst_243 {dimension_numbers = #tpu.dot_dimension_numbers<[1], [0], [0], [1], [0, 0, 1, 1], [], []>} : vector<1x25xf32>, vector<25x120xf32>, vector<1x120xf32> -> vector<1x120xf32>
    %346 = arith.addf %341, %345 : vector<1x120xf32>
    %347 = vector.extract_strided_slice %275 {offsets = [14, 0], sizes = [1, 25], strides = [1, 1]} : vector<16x25xf32> to vector<1x25xf32>
    %c14_244 = arith.constant 14 : index
    %c0_245 = arith.constant 0 : index
    %c0_246 = arith.constant 0 : index
    %348 = vector.load %arg7[%c14_244, %c0_245, %c0_246] : memref<16x25x120xf32, #tpu.memory_space<vmem>>, vector<1x25x120xf32>
    %349 = vector.shape_cast %348 : vector<1x25x120xf32> to vector<25x120xf32>
    %cst_247 = arith.constant dense<0.000000e+00> : vector<1x120xf32>
    %350 = tpu.matmul %347, %349, %cst_247 {dimension_numbers = #tpu.dot_dimension_numbers<[1], [0], [0], [1], [0, 0, 1, 1], [], []>} : vector<1x25xf32>, vector<25x120xf32>, vector<1x120xf32> -> vector<1x120xf32>
    %351 = arith.addf %346, %350 : vector<1x120xf32>
    %352 = vector.extract_strided_slice %275 {offsets = [15, 0], sizes = [1, 25], strides = [1, 1]} : vector<16x25xf32> to vector<1x25xf32>
    %c15_248 = arith.constant 15 : index
    %c0_249 = arith.constant 0 : index
    %c0_250 = arith.constant 0 : index
    %353 = vector.load %arg7[%c15_248, %c0_249, %c0_250] : memref<16x25x120xf32, #tpu.memory_space<vmem>>, vector<1x25x120xf32>
    %354 = vector.shape_cast %353 : vector<1x25x120xf32> to vector<25x120xf32>
    %cst_251 = arith.constant dense<0.000000e+00> : vector<1x120xf32>
    %355 = tpu.matmul %352, %354, %cst_251 {dimension_numbers = #tpu.dot_dimension_numbers<[1], [0], [0], [1], [0, 0, 1, 1], [], []>} : vector<1x25xf32>, vector<25x120xf32>, vector<1x120xf32> -> vector<1x120xf32>
    %356 = arith.addf %351, %355 : vector<1x120xf32>
    %cst_252 = arith.constant 0.000000e+00 : f32
    %357 = vector.broadcast %cst_252 : f32 to vector<1x120xf32>
    %358 = arith.maximumf %356, %357 : vector<1x120xf32>
    %c0_253 = arith.constant 0 : index
    %c0_254 = arith.constant 0 : index
    %359 = vector.load %arg9[%c0_253, %c0_254] : memref<120x84xf32, #tpu.memory_space<vmem>>, vector<120x84xf32>
    %cst_255 = arith.constant dense<0.000000e+00> : vector<1x84xf32>
    %360 = tpu.matmul %358, %359, %cst_255 {dimension_numbers = #tpu.dot_dimension_numbers<[1], [0], [0], [1], [0, 0, 1, 1], [], []>} : vector<1x120xf32>, vector<120x84xf32>, vector<1x84xf32> -> vector<1x84xf32>
    %c0_256 = arith.constant 0 : index
    %c0_257 = arith.constant 0 : index
    %361 = vector.load %arg10[%c0_256, %c0_257] : memref<1x84xf32, #tpu.memory_space<vmem>>, vector<1x84xf32>
    %362 = arith.addf %360, %361 : vector<1x84xf32>
    %cst_258 = arith.constant 0.000000e+00 : f32
    %363 = vector.broadcast %cst_258 : f32 to vector<1x84xf32>
    %364 = arith.maximumf %362, %363 : vector<1x84xf32>
    %c0_259 = arith.constant 0 : index
    %c0_260 = arith.constant 0 : index
    %365 = vector.load %arg11[%c0_259, %c0_260] : memref<84x10xf32, #tpu.memory_space<vmem>>, vector<84x10xf32>
    %cst_261 = arith.constant dense<0.000000e+00> : vector<1x10xf32>
    %366 = tpu.matmul %364, %365, %cst_261 {dimension_numbers = #tpu.dot_dimension_numbers<[1], [0], [0], [1], [0, 0, 1, 1], [], []>} : vector<1x84xf32>, vector<84x10xf32>, vector<1x10xf32> -> vector<1x10xf32>
    %c0_262 = arith.constant 0 : index
    %c0_263 = arith.constant 0 : index
    %367 = vector.load %arg12[%c0_262, %c0_263] : memref<1x10xf32, #tpu.memory_space<vmem>>, vector<1x10xf32>
    %368 = arith.addf %366, %367 : vector<1x10xf32>
    %c0_264 = arith.constant 0 : index
    %c0_265 = arith.constant 0 : index
    %c0_266 = arith.constant 0 : index
    %369 = vector.load %arg13[%c0_264, %c0_265, %c0_266] : memref<1x1x10xf32, #tpu.memory_space<vmem>>, vector<1x1x10xf32>
    %370 = vector.shape_cast %369 : vector<1x1x10xf32> to vector<1x10xf32>
    %371 = vector.shape_cast %368 : vector<1x10xf32> to vector<1x1x10xf32>
    tpu.vector_store %arg13[%c0_264, %c0_265, %c0_266], %371 {strides = array<i32>} : memref<1x1x10xf32, #tpu.memory_space<vmem>>, vector<1x1x10xf32>,
    return
  }
  func.func @transform_0(%arg0: i32) -> (i32, i32, i32) {
    %c0_i32 = arith.constant 0 : i32
    %c0_i32_0 = arith.constant 0 : i32
    %c0_i32_1 = arith.constant 0 : i32
    return %arg0, %c0_i32, %c0_i32_0 : i32, i32, i32
  }
  func.func @transform_1(%arg0: i32) -> (i32, i32, i32) {
    %c0_i32 = arith.constant 0 : i32
    %c0_i32_0 = arith.constant 0 : i32
    %c0_i32_1 = arith.constant 0 : i32
    %c0_i32_2 = arith.constant 0 : i32
    return %c0_i32, %c0_i32_0, %c0_i32_1 : i32, i32, i32
  }
  func.func @transform_2(%arg0: i32) -> (i32, i32) {
    %c0_i32 = arith.constant 0 : i32
    %c0_i32_0 = arith.constant 0 : i32
    %c0_i32_1 = arith.constant 0 : i32
    return %c0_i32, %c0_i32_0 : i32, i32
  }
  func.func @transform_3(%arg0: i32) -> (i32, i32, i32) {
    %c0_i32 = arith.constant 0 : i32
    %c0_i32_0 = arith.constant 0 : i32
    %c0_i32_1 = arith.constant 0 : i32
    %c0_i32_2 = arith.constant 0 : i32
    return %c0_i32, %c0_i32_0, %c0_i32_1 : i32, i32, i32
  }
  func.func @transform_4(%arg0: i32) -> (i32, i32) {
    %c0_i32 = arith.constant 0 : i32
    %c0_i32_0 = arith.constant 0 : i32
    %c0_i32_1 = arith.constant 0 : i32
    return %c0_i32, %c0_i32_0 : i32, i32
  }
  func.func @transform_5(%arg0: i32) -> (i32, i32) {
    %c0_i32 = arith.constant 0 : i32
    %c0_i32_0 = arith.constant 0 : i32
    %c0_i32_1 = arith.constant 0 : i32
    return %c0_i32, %c0_i32_0 : i32, i32
  }
  func.func @transform_6(%arg0: i32) -> (i32, i32, i32) {
    %c0_i32 = arith.constant 0 : i32
    %c0_i32_0 = arith.constant 0 : i32
    %c0_i32_1 = arith.constant 0 : i32
    %c0_i32_2 = arith.constant 0 : i32
    return %c0_i32, %c0_i32_0, %c0_i32_1 : i32, i32, i32
  }
  func.func @transform_7(%arg0: i32) -> (i32, i32) {
    %c0_i32 = arith.constant 0 : i32
    %c0_i32_0 = arith.constant 0 : i32
    %c0_i32_1 = arith.constant 0 : i32
    return %c0_i32, %c0_i32_0 : i32, i32
  }
  func.func @transform_8(%arg0: i32) -> (i32, i32) {
    %c0_i32 = arith.constant 0 : i32
    %c0_i32_0 = arith.constant 0 : i32
    %c0_i32_1 = arith.constant 0 : i32
    return %c0_i32, %c0_i32_0 : i32, i32
  }
  func.func @transform_9(%arg0: i32) -> (i32, i32) {
    %c0_i32 = arith.constant 0 : i32
    %c0_i32_0 = arith.constant 0 : i32
    %c0_i32_1 = arith.constant 0 : i32
    return %c0_i32, %c0_i32_0 : i32, i32
  }
  func.func @transform_10(%arg0: i32) -> (i32, i32) {
    %c0_i32 = arith.constant 0 : i32
    %c0_i32_0 = arith.constant 0 : i32
    %c0_i32_1 = arith.constant 0 : i32
    return %c0_i32, %c0_i32_0 : i32, i32
  }
  func.func @transform_11(%arg0: i32) -> (i32, i32) {
    %c0_i32 = arith.constant 0 : i32
    %c0_i32_0 = arith.constant 0 : i32
    %c0_i32_1 = arith.constant 0 : i32
    return %c0_i32, %c0_i32_0 : i32, i32
  }
  func.func @transform_12(%arg0: i32) -> (i32, i32, i32) {
    %c0_i32 = arith.constant 0 : i32
    %c0_i32_0 = arith.constant 0 : i32
    %c0_i32_1 = arith.constant 0 : i32
    return %arg0, %c0_i32, %c0_i32_0 : i32, i32, i32
  }
}

</mosaic_0001>

<bundles_post_ra>
// kernel: net_forward.1
= control target key start
LH: loop header
LB: loop body
LE: loop exit
PB: predicated region body
PF: predicated region fallthrough
CT: control target
= control target key end

     0   :  { %s15470_s0 = inlined_call_operand.vmem [shape: f32[2,3,1024], index: 0, kind: input, shape index: {}]   ;;  %s15471_s1 = inlined_call_operand.vmem [shape: f32[25,6,3], index: 1, kind: input, shape index: {}]   ;;  %s15472_s2 = inlined_call_operand.vmem [shape: f32[6,1], index: 2, kind: input, shape index: {}]   ;;  %s15473_s3 = inlined_call_operand.vmem [shape: f32[25,16,6], index: 3, kind: input, shape index: {}]   ;;  %s15474_s4 = inlined_call_operand.vmem [shape: f32[16,1], index: 4, kind: input, shape index: {}]   ;;  %s15475_s5 = inlined_call_operand.vmem [shape: f32[529,25], index: 5, kind: input, shape index: {}]   ;;  %s15476_s6 = inlined_call_operand.vmem [shape: f32[16,25,120], index: 6, kind: input, shape index: {}]   ;;  %s15477_s7 = inlined_call_operand.vmem [shape: f32[1,120], index: 7, kind: input, shape index: {}]   ;;  %s15478_s8 = inlined_call_operand.vmem [shape: f32[120,84], index: 8, kind: input, shape index: {}]   ;;  %s15479_s9 = inlined_call_operand.vmem [shape: f32[1,84], index: 9, kind: input, shape index: {}]   ;;  %s15480_s10 = inlined_call_operand.vmem [shape: f32[84,10], index: 10, kind: input, shape index: {}]   ;;  %s15481_s11 = inlined_call_operand.vmem [shape: f32[1,10], index: 11, kind: input, shape index: {}]   ;;  %s15482_s12 = inlined_call_operand.hbm [shape: f32[2,1,10], index: 12, kind: output, shape index: {}]  }
   0x1   :  { %15529 = sst [smem:[#allocation93_spill]] %s15470_s0 }
   0x2   :  { %15530 = sst [smem:[#allocation94_spill]] %s15471_s1 }
   0x3   :  { %15531 = sst [smem:[#allocation95_spill]] %s15472_s2 }
   0x4   :  { %17 = vsyncpa [#allocation3], 0 }
   0x5   :  { %19 = vsyncpa [#allocation3 + $0x1], 0  ;;  %s11377_s21 = smov 0   ;;  %s11379_s22 = smov 0  }
   0x6   :  { %s11381_s23 = smov 0   ;;  %s11383_s24 = smov 0  }
   0x7 LB: > { %s11398_s25 = sadd.s32 4294967295, %s11286_s24   ;;  %s10220_s26 = sadd.s32 4294967294, %s11286_s24   ;;  %s11286_s24 = sphi %s11383_s24, %s15857_s24   ;;  %s11282_s23 = sphi %s11381_s23, %s15856_s23   ;;  %s11278_s22 = sphi %s11379_s22, %s15855_s22   ;;  %s11274_s21 = sphi %s11377_s21, %s15854_s21  }
   0x8   : > { %s11402_s27 = sadd.s32 1, %s11286_s24   ;;  %s289_s28 = sadd.s32 1, %s11282_s23 }
   0x9   : > { %s286_s29 = ssub.s32 %s11286_s24, %s11402_s27  ;;  %p299_p0 = scmp.ne.s32.totalorder %s11282_s23, %s11278_s22 }
   0xa   : > { %p287_p1 = scmp.eq.s32.totalorder %s286_s29, 0  ;;  %p300_p2 = scmp.eq.s32.totalorder %s11398_s25, 1 }
   0xb   : > { %p305_p3 = scmp.ne.s32.totalorder %s11278_s22, %s11274_s21  ;;  %p306_p4 = scmp.eq.s32.totalorder %s10220_s26, 1 }
   0xc   : > { %s11413_s30 = scalar_select %p287_p1, %s11282_s23, %s289_s28  }
   0xd   : > { %p11415_p5 = por %p300_p2, %p299_p0  ;;  %p11419_p6 = por %p306_p4, %p305_p3 }
   0xe   : > { %p10223_p7 = scmp.ge.s32.totalorder %s11286_s24, 1  ;;  %p365_p8 = scmp.lt.s32.totalorder %s11286_s24, 3 }
  0x10   : > { %p366_p9 = pnand %p10223_p7, %p365_p8 }
  0x12   : > { %369 = sbr.rel (%p366_p9) target bundleno = 2597 (0xa25), region = 68 }
  0x17   : > { %p406_p10 = scmp.lt.s32.totalorder %s11398_s25, 1  ;;  %s15534_s0 = sld [smem:[#allocation93_spill]]  ;;  %vm461_vm0 = vcmask 1042432   ;;  %vm457_vm1 = vcmask 23552   ;;  %vm450_vm2 = vcmask 1039360   ;;  %vm817_vm3 = vcmask 1031168  }
  0x18   : > { %s11288_s20 = smov 127   ;;  %s15495_s26 = smov 126   ;;  %vm1018_vm4 = vcmask 1022976   ;;  %vm1219_vm5 = vcmask 1014784   ;;  %vm1423_vm6 = vcmask 785408   ;;  %vm1628_vm7 = vcmask 777216  }
  0x19   : > { %s407_s15 = scalar_select %p406_p10, %s11398_s25, 1  ;;  %vm1833_vm8 = vcmask 769024   ;;  %vm2038_vm9 = vcmask 760832   ;;  %vm2243_vm10 = vcmask 752640   ;;  %vm2448_vm11 = vcmask 523264  }
  0x1a   : > { %s11290_s28 = smov 125   ;;  %s11291_s29 = smov 124   ;;  %vm2653_vm12 = vcmask 515072   ;;  %vm2858_vm13 = vcmask 506880   ;;  %vm3063_vm14 = vcmask 498688   ;;  %vm3268_vm15 = vcmask 490496  }
  0x1b   : > { %s11123_s16 = sshll.u32 %s407_s15, 5  ;;  %s11292_s15 = smov 96  }
  0x1c   : > { %s15535_s1 = sld [smem:[#allocation94_spill]]  ;;  %s11296_s18 = smov 92  }
  0x1d   : > { %s410_s19 = scalar_lea.vmem %s15534_s0, %s11123_s16  ;;  %s11293_s16 = smov 95  }
  0x1e   : > { %v11430_v0 = vld [vmem:[%s410_s19 + $0x8] sm:$0x77]  ;;  %v11432_v1 = vld [vmem:[%s410_s19] sm:$0x77]  ;;  %v11434_v2 = vld [vmem:[%s410_s19 + $0x10] sm:$0x77] }
  0x1f   : > { %424 = vst [vmem:[#allocation1 + $0x10] ss:$2 sm:$0xff] %v11430_v0  ;;  %v11437_v3 = vld [vmem:[%s410_s19 + $0x18] sm:$0x77]  ;;  %s11294_s19 = smov 94   ;;  %s15485_s17 = smov 64  }
  0x20   : > { %422 = vst [vmem:[#allocation1] ss:$2 sm:$0xff] %v11432_v1  ;;  %s15597_s2 = sld [smem:[#allocation95_spill]] }
  0x21   : > { %426 = vst [vmem:[#allocation1 + $0x20] ss:$2 sm:$0xff] %v11434_v2 }
  0x22   : > { %428 = vst [vmem:[#allocation1 + $0x30] ss:$2 sm:$0xff] %v11437_v3 }
  0x26   : > { %v431_v4 = vld.sshfl [vmem:[#allocation1 + $0x10] sm:$0xff pattern:$0x75316420]  ;;  %v432_v5 = vld.sshfl [vmem:[#allocation1 + $0x18] sm:$0xff pattern:$0x75316420] }
  0x27   : > { %440 = vrot.lane.b32.xlu0 %v431_v4, %s11288_s20  ;;  %v429_v6 = vld.sshfl [vmem:[#allocation1] sm:$0xff pattern:$0x75316420]  ;;  %618 = vst [vmem:[#allocation1 + $0x10] ss:$2 sm:$0xff] %v11430_v0 }
  0x28   : > { %436 = vrot.lane.b32.xlu1 %v429_v6, %s11288_s20  ;;  %v433_v7 = vld.sshfl [vmem:[#allocation1 + $0x20] sm:$0xff pattern:$0x75316420]  ;;  %v430_v8 = vld.sshfl [vmem:[#allocation1 + $0x8] sm:$0xff pattern:$0x75316420] }
  0x29   : > { %444 = vrot.lane.b32.xlu2 %v433_v7, %s11288_s20  ;;  %616 = vst [vmem:[#allocation1] ss:$2 sm:$0xff] %v11432_v1  ;;  %v435_v9 = vld.sshfl [vmem:[#allocation1 + $0x30] sm:$0xff pattern:$0x75316420] }
  0x2a   : > { %622 = vst [vmem:[#allocation1 + $0x30] ss:$2 sm:$0xff] %v11437_v3  ;;  %v434_v10 = vld.sshfl [vmem:[#allocation1 + $0x28] sm:$0xff pattern:$0x75316420] }
  0x2b   : > { %620 = vst [vmem:[#allocation1 + $0x20] ss:$2 sm:$0xff] %v11434_v2  ;;  %v11543_v6 = vld [vmem:[%s15535_s1] sm:$0x3f] }
  0x2e   : > { %v11449_v11 = vld.sshfl [vmem:[#allocation1 + $0x10] sm:$0xff pattern:$0x75316420]  ;;  %v11451_v12 = vld.sshfl [vmem:[#allocation1 + $0x18] sm:$0xff pattern:$0x75316420] }
  0x2f   : > { %442 = vrot.lane.b32.xlu0 %v432_v5, %s11288_s20  ;;  %791 = vst [vmem:[#allocation1 + $0x10] ss:$2 sm:$0xff] %v11430_v0 }
  0x30   : > { %438 = vrot.lane.b32.xlu1 %v430_v8, %s11288_s20  ;;  %v11456_v13 = vld.sshfl [vmem:[#allocation1] sm:$0xff pattern:$0x75316420]  ;;  %v11458_v14 = vld.sshfl [vmem:[#allocation1 + $0x8] sm:$0xff pattern:$0x75316420] }
  0x31   : > { %448 = vrot.lane.b32.xlu2 %v435_v9, %s11288_s20  ;;  %789 = vst [vmem:[#allocation1] ss:$2 sm:$0xff] %v11432_v1  ;;  %v11462_v15 = vld.sshfl [vmem:[#allocation1 + $0x30] sm:$0xff pattern:$0x75316420]  ;;  %10241 = vmatpush.msk.msra.mxu3 %vm461_vm0, %v11456_v13 }
  0x32   : > { %v11464_v16 = vld.sshfl [vmem:[#allocation1 + $0x20] sm:$0xff pattern:$0x75316420]  ;;  %v11466_v17 = vld.sshfl [vmem:[#allocation1 + $0x28] sm:$0xff pattern:$0x75316420]  ;;  %10242 = vmatmul.msk.f32.vlgmr.msra.gmra.mxu3 %vm457_vm1, %v11543_v6 }
  0x33   : > { %793 = vst [vmem:[#allocation1 + $0x20] ss:$2 sm:$0xff] %v11434_v2  ;;  %10249 = vmatpush.msk.msrb.mxu3 %vm461_vm0, %v11464_v16 }
  0x34   : > { %795 = vst [vmem:[#allocation1 + $0x30] ss:$2 sm:$0xff] %v11437_v3 }
  0x36   : > { %v798_v18 = vld.sshfl [vmem:[#allocation1 + $0x10] sm:$0xff pattern:$0x75316420]  ;;  %v799_v19 = vld.sshfl [vmem:[#allocation1 + $0x18] sm:$0xff pattern:$0x75316420] }
  0x37   : > { %446 = vrot.lane.b32.xlu0 %v434_v10, %s11288_s20  ;;  %992 = vst [vmem:[#allocation1 + $0x10] ss:$2 sm:$0xff] %v11430_v0 }
  0x38   : > { %v796_v20 = vld.sshfl [vmem:[#allocation1] sm:$0xff pattern:$0x75316420]  ;;  %v797_v21 = vld.sshfl [vmem:[#allocation1 + $0x8] sm:$0xff pattern:$0x75316420] }
  0x39   : > { %803 = vrot.lane.b32.xlu1 %v796_v20, %s15495_s26  ;;  %805 = vrot.lane.b32.xlu2 %v797_v21, %s15495_s26  ;;  %990 = vst [vmem:[#allocation1] ss:$2 sm:$0xff] %v11432_v1 }
  0x3a   : > { %v800_v22 = vld.sshfl [vmem:[#allocation1 + $0x20] sm:$0xff pattern:$0x75316420]  ;;  %v801_v23 = vld.sshfl [vmem:[#allocation1 + $0x28] sm:$0xff pattern:$0x75316420]  ;;  %10250 = vmatmul.msk.f32.vlgmr.msrb.gmra.mxu3 %vm457_vm1, %v11543_v6 }
  0x3b   : > { %v802_v24 = vld.sshfl [vmem:[#allocation1 + $0x30] sm:$0xff pattern:$0x75316420]  ;;  %994 = vst [vmem:[#allocation1 + $0x20] ss:$2 sm:$0xff] %v11434_v2 }
  0x3c   : > { %996 = vst [vmem:[#allocation1 + $0x30] ss:$2 sm:$0xff] %v11437_v3 }
  0x3e   : > { %v999_v25 = vld.sshfl [vmem:[#allocation1 + $0x10] sm:$0xff pattern:$0x75316420]  ;;  %v1000_v26 = vld.sshfl [vmem:[#allocation1 + $0x18] sm:$0xff pattern:$0x75316420] }
  0x3f   : > { %807 = vrot.lane.b32.xlu0 %v798_v18, %s15495_s26  ;;  %1193 = vst [vmem:[#allocation1 + $0x10] ss:$2 sm:$0xff] %v11430_v0 }
  0x40   : > { %v998_v27 = vld.sshfl [vmem:[#allocation1 + $0x8] sm:$0xff pattern:$0x75316420]  ;;  %v997_v28 = vld.sshfl [vmem:[#allocation1] sm:$0xff pattern:$0x75316420] }
  0x41   : > { %811 = vrot.lane.b32.xlu1 %v800_v22, %s15495_s26  ;;  %813 = vrot.lane.b32.xlu2 %v801_v23, %s15495_s26  ;;  %1191 = vst [vmem:[#allocation1] ss:$2 sm:$0xff] %v11432_v1  ;;  %v10226_v22 = vld [vmem:[%s15535_s1 + $0x8] sm:$0x3f] }
  0x42   : > { %v1002_v29 = vld.sshfl [vmem:[#allocation1 + $0x28] sm:$0xff pattern:$0x75316420]  ;;  %v1001_v30 = vld.sshfl [vmem:[#allocation1 + $0x20] sm:$0xff pattern:$0x75316420] }
  0x43   : > { %v1003_v31 = vld.sshfl [vmem:[#allocation1 + $0x30] sm:$0xff pattern:$0x75316420]  ;;  %1195 = vst [vmem:[#allocation1 + $0x20] ss:$2 sm:$0xff] %v11434_v2 }
  0x44   : > { %1197 = vst [vmem:[#allocation1 + $0x30] ss:$2 sm:$0xff] %v11437_v3 }
  0x46   : > { %v1200_v32 = vld.sshfl [vmem:[#allocation1 + $0x10] sm:$0xff pattern:$0x75316420]  ;;  %v1201_v33 = vld.sshfl [vmem:[#allocation1 + $0x18] sm:$0xff pattern:$0x75316420] }
  0x47   : > { %815 = vrot.lane.b32.xlu0 %v802_v24, %s15495_s26  ;;  %1394 = vst [vmem:[#allocation1 + $0x10] ss:$2 sm:$0xff] %v11430_v0 }
  0x48   : > { %v1199_v34 = vld.sshfl [vmem:[#allocation1 + $0x8] sm:$0xff pattern:$0x75316420]  ;;  %v1198_v35 = vld.sshfl [vmem:[#allocation1] sm:$0xff pattern:$0x75316420] }
  0x49   : > { %809 = vrot.lane.b32.xlu1 %v799_v19, %s15495_s26  ;;  %1006 = vrot.lane.b32.xlu2 %v998_v27, %s11290_s28  ;;  %1392 = vst [vmem:[#allocation1] ss:$2 sm:$0xff] %v11432_v1 }
  0x4a   : > { %v1202_v36 = vld.sshfl [vmem:[#allocation1 + $0x20] sm:$0xff pattern:$0x75316420]  ;;  %v1203_v37 = vld.sshfl [vmem:[#allocation1 + $0x28] sm:$0xff pattern:$0x75316420] }
  0x4b   : > { %1396 = vst [vmem:[#allocation1 + $0x20] ss:$2 sm:$0xff] %v11434_v2  ;;  %v1204_v38 = vld.sshfl [vmem:[#allocation1 + $0x30] sm:$0xff pattern:$0x75316420] }
  0x4c   : > { %1398 = vst [vmem:[#allocation1 + $0x30] ss:$2 sm:$0xff] %v11437_v3 }
  0x4e   : > { %v1402_v41 = vld.sshfl [vmem:[#allocation1 + $0x18] sm:$0xff pattern:$0x75316420]  ;;  %v1401_v42 = vld.sshfl [vmem:[#allocation1 + $0x10] sm:$0xff pattern:$0x75316420] }
  0x4f   : > { %1008 = vrot.lane.b32.xlu0 %v999_v25, %s11290_s28  ;;  %1599 = vst [vmem:[#allocation1 + $0x10] ss:$2 sm:$0xff] %v11430_v0 }
  0x50   : > { %v1400_v39 = vld.sshfl [vmem:[#allocation1 + $0x8] sm:$0xff pattern:$0x75316420]  ;;  %v1399_v40 = vld.sshfl [vmem:[#allocation1] sm:$0xff pattern:$0x75316420] }
  0x51   : > { %1010 = vrot.lane.b32.xlu1 %v1000_v26, %s11290_s28  ;;  %1004 = vrot.lane.b32.xlu2 %v997_v28, %s11290_s28  ;;  %1597 = vst [vmem:[#allocation1] ss:$2 sm:$0xff] %v11432_v1 }
  0x52   : > { %v1403_v43 = vld.sshfl [vmem:[#allocation1 + $0x20] sm:$0xff pattern:$0x75316420]  ;;  %v1404_v44 = vld.sshfl [vmem:[#allocation1 + $0x28] sm:$0xff pattern:$0x75316420] }
  0x53   : > { %1601 = vst [vmem:[#allocation1 + $0x20] ss:$2 sm:$0xff] %v11434_v2  ;;  %v1405_v47 = vld.sshfl [vmem:[#allocation1 + $0x30] sm:$0xff pattern:$0x75316420] }
  0x54   : > { %v1406_v50 = vld.sshfl [vmem:[#allocation1 + $0x38] sm:$0xff pattern:$0x75316420] }
  0x55   : > { %1603 = vst [vmem:[#allocation1 + $0x30] ss:$2 sm:$0xff] %v11437_v3 }
  0x56   : > { %v1606_v48 = vld.sshfl [vmem:[#allocation1 + $0x10] sm:$0xff pattern:$0x75316420]  ;;  %v1607_v52 = vld.sshfl [vmem:[#allocation1 + $0x18] sm:$0xff pattern:$0x75316420] }
  0x57   : > { %1014 = vrot.lane.b32.xlu0 %v1002_v29, %s11290_s28  ;;  %1804 = vst [vmem:[#allocation1 + $0x10] ss:$2 sm:$0xff] %v11430_v0 }
  0x58   : > { %v1604_v45 = vld.sshfl [vmem:[#allocation1] sm:$0xff pattern:$0x75316420]  ;;  %v1605_v46 = vld.sshfl [vmem:[#allocation1 + $0x8] sm:$0xff pattern:$0x75316420] }
  0x59   : > { %1016 = vrot.lane.b32.xlu1 %v1003_v31, %s11290_s28  ;;  %1012 = vrot.lane.b32.xlu2 %v1001_v30, %s11290_s28  ;;  %1802 = vst [vmem:[#allocation1] ss:$2 sm:$0xff] %v11432_v1 }
  0x5a   : > { %v1608_v49 = vld.sshfl [vmem:[#allocation1 + $0x20] sm:$0xff pattern:$0x75316420]  ;;  %v1609_v51 = vld.sshfl [vmem:[#allocation1 + $0x28] sm:$0xff pattern:$0x75316420] }
  0x5b   : > { %1806 = vst [vmem:[#allocation1 + $0x20] ss:$2 sm:$0xff] %v11434_v2 }
  0x5c   : > { %v1611_v55 = vld.sshfl [vmem:[#allocation1 + $0x38] sm:$0xff pattern:$0x75316420]  ;;  %v1610_v56 = vld.sshfl [vmem:[#allocation1 + $0x30] sm:$0xff pattern:$0x75316420] }
  0x5d   : > { %1808 = vst [vmem:[#allocation1 + $0x30] ss:$2 sm:$0xff] %v11437_v3 }
  0x5e   : > { %v1812_v53 = vld.sshfl [vmem:[#allocation1 + $0x18] sm:$0xff pattern:$0x75316420]  ;;  %v1811_v54 = vld.sshfl [vmem:[#allocation1 + $0x10] sm:$0xff pattern:$0x75316420] }
  0x5f   : > { %1209 = vrot.lane.b32.xlu0 %v1200_v32, %s11291_s29  ;;  %2009 = vst [vmem:[#allocation1 + $0x10] ss:$2 sm:$0xff] %v11430_v0 }
  0x60   : > { %v1810_v58 = vld.sshfl [vmem:[#allocation1 + $0x8] sm:$0xff pattern:$0x75316420]  ;;  %v1809_v59 = vld.sshfl [vmem:[#allocation1] sm:$0xff pattern:$0x75316420] }
  0x61   : > { %1211 = vrot.lane.b32.xlu1 %v1201_v33, %s11291_s29  ;;  %1213 = vrot.lane.b32.xlu2 %v1202_v36, %s11291_s29  ;;  %2007 = vst [vmem:[#allocation1] ss:$2 sm:$0xff] %v11432_v1 }
  0x62   : > { %v1814_v61 = vld.sshfl [vmem:[#allocation1 + $0x28] sm:$0xff pattern:$0x75316420]  ;;  %v11531_v62 = vld.sshfl [vmem:[#allocation1 + $0x20] sm:$0xff pattern:$0x75316420] }
  0x63   : > { %2011 = vst [vmem:[#allocation1 + $0x20] ss:$2 sm:$0xff] %v11434_v2 }
  0x64   : > { %v1815_v63 = vld.sshfl [vmem:[#allocation1 + $0x30] sm:$0xff pattern:$0x75316420]  ;;  %v1816_v4 = vld.sshfl [vmem:[#allocation1 + $0x38] sm:$0xff pattern:$0x75316420] }
  0x65   : > { %2013 = vst [vmem:[#allocation1 + $0x30] ss:$2 sm:$0xff] %v11437_v3 }
  0x66   : > { %v2016_v7 = vld.sshfl [vmem:[#allocation1 + $0x10] sm:$0xff pattern:$0x75316420]  ;;  %v2017_v8 = vld.sshfl [vmem:[#allocation1 + $0x18] sm:$0xff pattern:$0x75316420] }
  0x67   : > { %1205 = vrot.lane.b32.xlu0 %v1198_v35, %s11291_s29  ;;  %2214 = vst [vmem:[#allocation1 + $0x10] ss:$2 sm:$0xff] %v11430_v0 }
  0x68   : > { %v11555_v16 = vld.sshfl [vmem:[#allocation1] sm:$0xff pattern:$0x75316420]  ;;  %v11560_v19 = vld.sshfl [vmem:[#allocation1 + $0x8] sm:$0xff pattern:$0x75316420] }
  0x69   : > { %1207 = vrot.lane.b32.xlu1 %v1199_v34, %s11291_s29  ;;  %1407 = vrot.lane.b32.xlu2 %v1399_v40, %s11292_s15  ;;  %2212 = vst [vmem:[#allocation1] ss:$2 sm:$0xff] %v11432_v1  ;;  %v11631_v40 = vld [vmem:[%s15535_s1 + $0x10] sm:$0x3f] }
  0x6a   : > { %v2018_v29 = vld.sshfl [vmem:[#allocation1 + $0x20] sm:$0xff pattern:$0x75316420]  ;;  %v11586_v30 = vld.sshfl [vmem:[#allocation1 + $0x28] sm:$0xff pattern:$0x75316420] }
  0x6b   : > { %2216 = vst [vmem:[#allocation1 + $0x20] ss:$2 sm:$0xff] %v11434_v2 }
  0x6c   : > { %v11558_v18 = vld.sshfl [vmem:[#allocation1 + $0x30] sm:$0xff pattern:$0x75316420]  ;;  %v11563_v20 = vld.sshfl [vmem:[#allocation1 + $0x38] sm:$0xff pattern:$0x75316420] }
  0x6d   : > { %2218 = vst [vmem:[#allocation1 + $0x30] ss:$2 sm:$0xff] %v11437_v3 }
  0x6f   : > { %1409 = vrot.lane.b32.xlu0 %v1400_v39, %s11292_s15 }
  0x70   : > { %v11591_v32 = vld.sshfl [vmem:[#allocation1 + $0x8] sm:$0xff pattern:$0x75316420]  ;;  %v11593_v33 = vld.sshfl [vmem:[#allocation1] sm:$0xff pattern:$0x75316420] }
  0x71   : > { %1217 = vrot.lane.b32.xlu1 %v1204_v38, %s11291_s29  ;;  %1215 = vrot.lane.b32.xlu2 %v1203_v37, %s11291_s29  ;;  %2417 = vst [vmem:[#allocation1] ss:$2 sm:$0xff] %v11432_v1 }
  0x72   : > { %v11620_v39 = vld.sshfl [vmem:[#allocation1 + $0x20] sm:$0xff pattern:$0x75316420] }
  0x77   : > { %1413 = vrot.lane.b32.xlu0 %v1402_v41, %s11292_s15 }
  0x79   : > { %1415 = vrot.lane.b32.xlu1 %v1403_v43, %s11292_s15  ;;  %1417 = vrot.lane.b32.xlu2 %v1404_v44, %s11292_s15  ;;  %v11640_v43 = vld.sshfl [vmem:[#allocation1 + $0x10] sm:$0xff pattern:$0x75316420] }
  0x7f   : > { %1411 = vrot.lane.b32.xlu0 %v1401_v42, %s11292_s15  ;;  %v2222_v42 = vld.sshfl [vmem:[#allocation1 + $0x18] sm:$0xff pattern:$0x75316420] }
  0x80   : > { %2419 = vst [vmem:[#allocation1 + $0x10] ss:$2 sm:$0xff] %v11430_v0 }
  0x81   : > { %1612 = vrot.lane.b32.xlu1 %v1604_v45, %s11293_s16  ;;  %1614 = vrot.lane.b32.xlu2 %v1605_v46, %s11293_s16  ;;  %v11652_v45 = vld.sshfl [vmem:[#allocation1 + $0x8] sm:$0xff pattern:$0x75316420]  ;;  %v11654_v46 = vld.sshfl [vmem:[#allocation1] sm:$0xff pattern:$0x75316420] }
  0x82   : > { %2622 = vst [vmem:[#allocation1] ss:$2 sm:$0xff] %v11432_v1 }
  0x83   : > { %v11521_v57 = vpop.permute.xlu2 %444 }
  0x87   : > { %1616 = vrot.lane.b32.xlu0 %v1606_v48, %s11293_s16 }
  0x89   : > { %1419 = vrot.lane.b32.xlu1 %v1405_v47, %s11292_s15  ;;  %1421 = vrot.lane.b32.xlu2 %v1406_v50, %s11292_s15 }
  0x8b   : > { %v449_v60 = vpop.permute.xlu2 %448 }
  0x8f   : > { %1620 = vrot.lane.b32.xlu0 %v1608_v49, %s11293_s16 }
  0x91   : > { %1622 = vrot.lane.b32.xlu1 %v1609_v51, %s11293_s16  ;;  %1624 = vrot.lane.b32.xlu2 %v1610_v56, %s11293_s16 }
  0x93   : > { %v11538_v5 = vpop.permute.xlu2 %805 }
  0x97   : > { %1618 = vrot.lane.b32.xlu0 %v1607_v52, %s11293_s16  ;;  %v11678_v52 = vld.sshfl [vmem:[#allocation1 + $0x38] sm:$0xff pattern:$0x75316420] }
  0x99   : > { %1819 = vrot.lane.b32.xlu1 %v1810_v58, %s11294_s19  ;;  %v441_v9 = vpop.permute.xlu0 %440  ;;  %1821 = vrot.lane.b32.xlu2 %v1811_v54, %s11294_s19  ;;  %v11686_v54 = vld.sshfl [vmem:[#allocation1 + $0x30] sm:$0xff pattern:$0x75316420] }
  0x9a   : > { %v437_v10 = vpop.permute.xlu1 %436  ;;  %2423 = vst [vmem:[#allocation1 + $0x30] ss:$2 sm:$0xff] %v11437_v3 }
  0x9b   : > { %v11551_v13 = vpop.permute.xlu2 %813 }
  0x9f   : > { %1823 = vrot.lane.b32.xlu0 %v1812_v53, %s11294_s19 }
  0xa1   : > { %1626 = vrot.lane.b32.xlu1 %v1611_v55, %s11293_s16  ;;  %v443_v21 = vpop.permute.xlu0 %442  ;;  %1817 = vrot.lane.b32.xlu2 %v1809_v59, %s11294_s19  ;;  %s11295_s16 = smov 93  }
  0xa2   : > { %v439_v23 = vpop.permute.xlu1 %438  ;;  %v453_v24 = vsel %vm450_vm2, %v441_v9, %v443_v21  ;;  %v454_v25 = vsel %vm450_vm2, %v443_v21, %v11521_v57  ;;  %v2430_v21 = vld.sshfl [vmem:[#allocation1 + $0x30] sm:$0xff pattern:$0x75316420] }
  0xa3   : > { %v451_v26 = vsel %vm450_vm2, %v437_v10, %v439_v23  ;;  %10231 = vmatpush.msk.msra.mxu2 %vm461_vm0, %v453_v24  ;;  %v452_v27 = vsel %vm450_vm2, %v439_v23, %v441_v9  ;;  %v11577_v28 = vpop.permute.xlu2 %1006 }
  0xa4   : > { %10227 = vmatpush.msk.msra.mxu1 %vm461_vm0, %v451_v26  ;;  %10232 = vmatmul.msk.f32.vlgmr.msra.gmra.mxu2 %vm457_vm1, %v10226_v22  ;;  %v2630_v26 = vld.sshfl [vmem:[#allocation1 + $0x8] sm:$0xff pattern:$0x75316420] }
  0xa5   : > { %10228 = vmatmul.msk.f32.vlgmr.msra.gmra.mxu1 %vm457_vm1, %v10226_v22  ;;  %10233 = vmatpush.msk.msrb.mxu2 %vm461_vm0, %v454_v25  ;;  %v11769_v25 = vld.sshfl [vmem:[#allocation1 + $0x38] sm:$0xff pattern:$0x75316420] }
  0xa6   : > { %10229 = vmatpush.msk.msrb.mxu1 %vm461_vm0, %v452_v27  ;;  %2628 = vst [vmem:[#allocation1 + $0x30] ss:$2 sm:$0xff] %v11437_v3  ;;  %v11779_v27 = vld.sshfl [vmem:[#allocation1] sm:$0xff pattern:$0x75316420] }
  0xa7   : > { %10239 = vmatpush.msk.msra.mxu2 %vm461_vm0, %v449_v60  ;;  %1827 = vrot.lane.b32.xlu0 %v1814_v61, %s11294_s19  ;;  %v11709_v61 = vld [vmem:[%s15535_s1 + $0x18] sm:$0x3f]  ;;  %2827 = vst [vmem:[#allocation1] ss:$2 sm:$0xff] %v11432_v1 }
  0xa9   : > { %1829 = vrot.lane.b32.xlu1 %v1815_v63, %s11294_s19  ;;  %v447_v31 = vpop.permute.xlu0 %446  ;;  %1831 = vrot.lane.b32.xlu2 %v1816_v4, %s11294_s19 }
  0xaa   : > { %v456_v34 = vsel %vm450_vm2, %v447_v31, %v449_v60  ;;  %v455_v35 = vsel %vm450_vm2, %v11521_v57, %v447_v31 }
  0xab   : > { %v804_v36 = vpop.permute.xlu1 %803  ;;  %10235 = vmatpush.msk.msra.mxu0 %vm461_vm0, %v455_v35  ;;  %10237 = vmatpush.msk.msra.mxu1 %vm461_vm0, %v456_v34  ;;  %v11601_v37 = vpop.permute.xlu2 %1004 }
  0xac   : > { %10234 = vmatmul.msk.f32.vlgmr.msrb.gmra.mxu2 %vm457_vm1, %v10226_v22  ;;  %10236 = vmatmul.msk.f32.vlgmr.msra.gmra.mxu0 %vm457_vm1, %v10226_v22  ;;  %v818_v41 = vsel %vm817_vm3, %v804_v36, %v11538_v5  ;;  %v1019_v60 = vsel %vm1018_vm4, %v11601_v37, %v11577_v28  ;;  %v11817_v37 = vld [vmem:[%s15535_s1 + $0x28] sm:$0x3f] }
  0xad   : > { %10230 = vmatmul.msk.f32.vlgmr.msrb.gmra.mxu1 %vm457_vm1, %v10226_v22  ;;  %10243 = vmatpush.msk.msrb.mxu0 %vm461_vm0, %v11458_v14  ;;  %v11618_v14 = vld.sshfl [vmem:[#allocation1 + $0x28] sm:$0xff pattern:$0x75316420]  ;;  %v11805_v34 = vld.sshfl [vmem:[#allocation1 + $0x30] sm:$0xff pattern:$0x75316420] }
  0xae   : > { %10247 = vmatpush.msk.msrb.mxu2 %vm461_vm0, %v11451_v12  ;;  %10245 = vmatpush.msk.msrb.mxu1 %vm461_vm0, %v11449_v11  ;;  %2421 = vst [vmem:[#allocation1 + $0x20] ss:$2 sm:$0xff] %v11434_v2  ;;  %v11807_v35 = vld.sshfl [vmem:[#allocation1 + $0x38] sm:$0xff pattern:$0x75316420] }
  0xaf   : > { %1825 = vrot.lane.b32.xlu0 %v11531_v62, %s11294_s19  ;;  %10251 = vmatpush.msk.msra.mxu0 %vm461_vm0, %v11466_v17  ;;  %v2426_v62 = vld.sshfl [vmem:[#allocation1 + $0x10] sm:$0xff pattern:$0x75316420]  ;;  %2833 = vst [vmem:[#allocation1 + $0x30] ss:$2 sm:$0xff] %v11437_v3  ;;  %s15716_s19 = smov 64  }
  0xb1   : > { %2026 = vrot.lane.b32.xlu1 %v2016_v7, %s11295_s16  ;;  %v808_v38 = vpop.permute.xlu0 %807  ;;  %2028 = vrot.lane.b32.xlu2 %v2017_v8, %s11295_s16 }
  0xb2   : > { %v819_v11 = vsel %vm817_vm3, %v11538_v5, %v808_v38 }
  0xb3   : > { %v812_v12 = vpop.permute.xlu1 %811  ;;  %10258 = vmatpush.msk.msra.mxu3 %vm461_vm0, %v819_v11  ;;  %v11626_v17 = vpop.permute.xlu2 %1012 }
  0xb4   : > { %10240 = vmatmul.msk.f32.vlgmr.msra.gmra.mxu2 %vm457_vm1, %v10226_v22  ;;  %10244 = vmatmul.msk.f32.vlgmr.msrb.gmra.mxu0 %vm457_vm1, %v11543_v6  ;;  %v822_v51 = vsel %vm817_vm3, %v812_v12, %v11551_v13 }
  0xb5   : > { %10238 = vmatmul.msk.f32.vlgmr.msra.gmra.mxu1 %vm457_vm1, %v10226_v22  ;;  %10256 = vmatpush.msk.msra.mxu2 %vm461_vm0, %v818_v41  ;;  %v11721_v4 = vld.sshfl [vmem:[#allocation1 + $0x20] sm:$0xff pattern:$0x75316420]  ;;  %v11723_v5 = vld.sshfl [vmem:[#allocation1 + $0x28] sm:$0xff pattern:$0x75316420] }
  0xb6   : > { %10253 = vmatpush.msk.msra.mxu1 %vm461_vm0, %v11462_v15  ;;  %10259 = vmatmul.msk.f32.vlgmr.msra.gmra.mxu3 %vm457_vm1, %v11631_v40  ;;  %2626 = vst [vmem:[#allocation1 + $0x20] ss:$2 sm:$0xff] %v11434_v2  ;;  %v11761_v22 = vld [vmem:[%s15535_s1 + $0x20] sm:$0x3f] }
  0xb7   : > { %2030 = vrot.lane.b32.xlu0 %v2018_v29, %s11295_s16 }
  0xb9   : > { %2022 = vrot.lane.b32.xlu1 %v11555_v16, %s11295_s16  ;;  %v816_v44 = vpop.permute.xlu0 %815  ;;  %2024 = vrot.lane.b32.xlu2 %v11560_v19, %s11295_s16 }
  0xba   : > { %v823_v15 = vsel %vm817_vm3, %v11551_v13, %v816_v44 }
  0xbb   : > { %v810_v47 = vpop.permute.xlu1 %809  ;;  %10266 = vmatpush.msk.msrb.mxu3 %vm461_vm0, %v823_v15  ;;  %v11660_v48 = vpop.permute.xlu2 %1213  ;;  %v11861_v15 = vld.sshfl [vmem:[#allocation1 + $0x8] sm:$0xff pattern:$0x75316420] }
  0xbc   : > { %v820_v49 = vsel %vm817_vm3, %v808_v38, %v810_v47  ;;  %v821_v50 = vsel %vm817_vm3, %v810_v47, %v812_v12  ;;  %10248 = vmatmul.msk.f32.vlgmr.msrb.gmra.mxu2 %vm457_vm1, %v11543_v6  ;;  %10252 = vmatmul.msk.f32.vlgmr.msra.gmra.mxu0 %vm457_vm1, %v11543_v6 }
  0xbd   : > { %10260 = vmatpush.msk.msrb.mxu0 %vm461_vm0, %v820_v49  ;;  %10246 = vmatmul.msk.f32.vlgmr.msrb.gmra.mxu1 %vm457_vm1, %v11543_v6  ;;  %v2634_v12 = vld.sshfl [vmem:[#allocation1 + $0x28] sm:$0xff pattern:$0x75316420] }
  0xbe   : > { %10262 = vmatpush.msk.msrb.mxu1 %vm461_vm0, %v821_v50  ;;  %10264 = vmatpush.msk.msrb.mxu2 %vm461_vm0, %v822_v51 }
  0xbf   : > { %10268 = vmatpush.msk.msra.mxu0 %vm461_vm0, %v816_v44  ;;  %2034 = vrot.lane.b32.xlu0 %v11558_v18, %s11295_s16 }
  0xc0   : > { %10267 = vmatmul.msk.f32.vlgmr.msrb.gmra.mxu3 %vm457_vm1, %v11631_v40 }
  0xc1   : > { %2036 = vrot.lane.b32.xlu1 %v11563_v20, %s11295_s16  ;;  %v1009_v53 = vpop.permute.xlu0 %1008  ;;  %2227 = vrot.lane.b32.xlu2 %v11593_v33, %s11296_s18 }
  0xc2   : > { %v1020_v55 = vsel %vm1018_vm4, %v11577_v28, %v1009_v53 }
  0xc3   : > { %v1011_v56 = vpop.permute.xlu1 %1010  ;;  %v11691_v57 = vpop.permute.xlu2 %1407 }
  0xc4   : > { %v1021_v58 = vsel %vm1018_vm4, %v1009_v53, %v1011_v56  ;;  %v1022_v59 = vsel %vm1018_vm4, %v1011_v56, %v11626_v17  ;;  %10257 = vmatmul.msk.f32.vlgmr.msra.gmra.mxu2 %vm457_vm1, %v11631_v40  ;;  %10261 = vmatmul.msk.f32.vlgmr.msrb.gmra.mxu0 %vm457_vm1, %v11631_v40 }
  0xc5   : > { %10275 = vmatpush.msk.msra.mxu3 %vm461_vm0, %v1021_v58  ;;  %10254 = vmatmul.msk.f32.vlgmr.msra.gmra.mxu1 %vm457_vm1, %v11543_v6  ;;  %v11726_v6 = vld.sshfl [vmem:[#allocation1 + $0x18] sm:$0xff pattern:$0x75316420] }
  0xc6   : > { %10271 = vmatpush.msk.msra.mxu1 %vm461_vm0, %v1019_v60  ;;  %10273 = vmatpush.msk.msra.mxu2 %vm461_vm0, %v1020_v55  ;;  %2624 = vst [vmem:[#allocation1 + $0x10] ss:$2 sm:$0xff] %v11430_v0  ;;  %v11887_v55 = vld.sshfl [vmem:[#allocation1 + $0x38] sm:$0xff pattern:$0x75316420] }
  0xc7   : > { %10277 = vmatpush.msk.msrb.mxu0 %vm461_vm0, %v1022_v59  ;;  %2229 = vrot.lane.b32.xlu0 %v11591_v32, %s11296_s18  ;;  %v11901_v60 = vld [vmem:[%s15535_s1 + $0x30] sm:$0x3f] }
  0xc8   : > { %10276 = vmatmul.msk.f32.vlgmr.msra.gmra.mxu3 %vm457_vm1, %v11709_v61 }
  0xc9   : > { %2032 = vrot.lane.b32.xlu1 %v11586_v30, %s11295_s16  ;;  %v1015_v63 = vpop.permute.xlu0 %1014  ;;  %2233 = vrot.lane.b32.xlu2 %v2222_v42, %s11296_s18  ;;  %s11300_s16 = smov 61  }
  0xca   : > { %v1023_v7 = vsel %vm1018_vm4, %v11626_v17, %v1015_v63  ;;  %v11830_v17 = vld.sshfl [vmem:[#allocation1 + $0x20] sm:$0xff pattern:$0x75316420] }
  0xcb   : > { %v1017_v8 = vpop.permute.xlu1 %1016  ;;  %v11730_v9 = vpop.permute.xlu2 %1215  ;;  %2831 = vst [vmem:[#allocation1 + $0x20] ss:$2 sm:$0xff] %v11434_v2 }
  0xcc   : > { %v1024_v10 = vsel %vm1018_vm4, %v1015_v63, %v1017_v8  ;;  %10283 = vmatpush.msk.msrb.mxu3 %vm461_vm0, %v1017_v8  ;;  %10265 = vmatmul.msk.f32.vlgmr.msrb.gmra.mxu2 %vm457_vm1, %v11631_v40  ;;  %v1224_v33 = vsel %vm1219_vm5, %v11660_v48, %v11730_v9 }
  0xcd   : > { %10263 = vmatmul.msk.f32.vlgmr.msrb.gmra.mxu1 %vm457_vm1, %v11631_v40  ;;  %10281 = vmatpush.msk.msrb.mxu2 %vm461_vm0, %v1024_v10  ;;  %v11763_v23 = vld.sshfl [vmem:[#allocation1 + $0x10] sm:$0xff pattern:$0x75316420]  ;;  %v11767_v24 = vld.sshfl [vmem:[#allocation1 + $0x18] sm:$0xff pattern:$0x75316420] }
  0xce   : > { %10279 = vmatpush.msk.msrb.mxu1 %vm461_vm0, %v1023_v7  ;;  %10269 = vmatmul.msk.f32.vlgmr.msra.gmra.mxu0 %vm457_vm1, %v11631_v40  ;;  %2829 = vst [vmem:[#allocation1 + $0x10] ss:$2 sm:$0xff] %v11430_v0 }
  0xcf   : > { %2235 = vrot.lane.b32.xlu0 %v11620_v39, %s11296_s18 }
  0xd0   : > { %10284 = vmatmul.msk.f32.vlgmr.msrb.gmra.mxu3 %vm457_vm1, %v11709_v61 }
  0xd1   : > { %2237 = vrot.lane.b32.xlu1 %v11618_v14, %s11296_s18  ;;  %v1210_v13 = vpop.permute.xlu0 %1209  ;;  %2231 = vrot.lane.b32.xlu2 %v11640_v43, %s11296_s18 }
  0xd2   : > { %v2838_v63 = vld.sshfl [vmem:[#allocation1 + $0x20] sm:$0xff pattern:$0x75316420] }
  0xd3   : > { %v1212_v16 = vpop.permute.xlu1 %1211  ;;  %v11751_v18 = vpop.permute.xlu2 %1417 }
  0xd4   : > { %v1222_v19 = vsel %vm1219_vm5, %v1210_v13, %v1212_v16  ;;  %v1223_v20 = vsel %vm1219_vm5, %v1212_v16, %v11660_v48  ;;  %10274 = vmatmul.msk.f32.vlgmr.msra.gmra.mxu2 %vm457_vm1, %v11709_v61  ;;  %v11867_v48 = vld.sshfl [vmem:[#allocation1] sm:$0xff pattern:$0x75316420] }
  0xd5   : > { %10292 = vmatpush.msk.msra.mxu3 %vm461_vm0, %v1223_v20  ;;  %10290 = vmatpush.msk.msra.mxu2 %vm461_vm0, %v1222_v19  ;;  %v11839_v40 = vld.sshfl [vmem:[#allocation1 + $0x10] sm:$0xff pattern:$0x75316420]  ;;  %v11841_v41 = vld.sshfl [vmem:[#allocation1 + $0x18] sm:$0xff pattern:$0x75316420] }
  0xd6   : > { %10272 = vmatmul.msk.f32.vlgmr.msra.gmra.mxu1 %vm457_vm1, %v11709_v61  ;;  %10278 = vmatmul.msk.f32.vlgmr.msrb.gmra.mxu0 %vm457_vm1, %v11709_v61  ;;  %3034 = vst [vmem:[#allocation1 + $0x10] ss:$2 sm:$0xff] %v11430_v0 }
  0xd7   : > { %2432 = vrot.lane.b32.xlu0 %v11654_v46, %s15485_s17  ;;  %3032 = vst [vmem:[#allocation1] ss:$2 sm:$0xff] %v11432_v1 }
  0xd8   : > { %10293 = vmatmul.msk.f32.vlgmr.msra.gmra.mxu3 %vm457_vm1, %v11761_v22 }
  0xd9   : > { %2434 = vrot.lane.b32.xlu1 %v11652_v45, %s15485_s17  ;;  %v1206_v28 = vpop.permute.xlu0 %1205  ;;  %2436 = vrot.lane.b32.xlu2 %v2426_v62, %s15485_s17 }
  0xdb   : > { %v1208_v29 = vpop.permute.xlu1 %1207  ;;  %v11787_v30 = vpop.permute.xlu2 %1614 }
  0xdc   : > { %v1221_v31 = vsel %vm1219_vm5, %v1208_v29, %v1210_v13  ;;  %v1220_v32 = vsel %vm1219_vm5, %v1206_v28, %v1208_v29  ;;  %10282 = vmatmul.msk.f32.vlgmr.msrb.gmra.mxu2 %vm457_vm1, %v11709_v61 }
  0xdd   : > { %10286 = vmatpush.msk.msra.mxu0 %vm461_vm0, %v1220_v32  ;;  %10288 = vmatpush.msk.msra.mxu1 %vm461_vm0, %v1221_v31  ;;  %v11939_v19 = vld.sshfl [vmem:[#allocation1 + $0x10] sm:$0xff pattern:$0x75316420]  ;;  %v3042_v20 = vld.sshfl [vmem:[#allocation1 + $0x18] sm:$0xff pattern:$0x75316420] }
  0xde   : > { %10280 = vmatmul.msk.f32.vlgmr.msrb.gmra.mxu1 %vm457_vm1, %v11709_v61  ;;  %10287 = vmatmul.msk.f32.vlgmr.msra.gmra.mxu0 %vm457_vm1, %v11761_v22  ;;  %3239 = vst [vmem:[#allocation1 + $0x10] ss:$2 sm:$0xff] %v11430_v0 }
  0xdf   : > { %10294 = vmatpush.msk.msrb.mxu0 %vm461_vm0, %v1224_v33  ;;  %2239 = vrot.lane.b32.xlu0 %v11686_v54, %s11296_s18  ;;  %v11885_v54 = vld.sshfl [vmem:[#allocation1 + $0x30] sm:$0xff pattern:$0x75316420] }
  0xe0   : > { %3038 = vst [vmem:[#allocation1 + $0x30] ss:$2 sm:$0xff] %v11437_v3 }
  0xe1   : > { %2241 = vrot.lane.b32.xlu1 %v11678_v52, %s11296_s18  ;;  %v1410_v36 = vpop.permute.xlu0 %1409  ;;  %2440 = vrot.lane.b32.xlu2 %v11721_v4, %s15485_s17  ;;  %s11298_s18 = smov 63   ;;  %v3039_v4 = vld.sshfl [vmem:[#allocation1] sm:$0xff pattern:$0x75316420] }
  0xe2   : > { %v1424_v38 = vsel %vm1423_vm6, %v11691_v57, %v1410_v36 }
  0xe3   : > { %v1218_v14 = vpop.permute.xlu1 %1217  ;;  %10301 = vmatpush.msk.msrb.mxu3 %vm461_vm0, %v1424_v38  ;;  %v1422_v39 = vpop.permute.xlu2 %1421 }
  0xe4   : > { %v1225_v11 = vsel %vm1219_vm5, %v11730_v9, %v1218_v14  ;;  %10298 = vmatpush.msk.msrb.mxu2 %vm461_vm0, %v1218_v14  ;;  %10302 = vmatmul.msk.f32.vlgmr.msrb.gmra.mxu3 %vm457_vm1, %v11817_v37 }
  0xe5   : > { %10296 = vmatpush.msk.msrb.mxu1 %vm461_vm0, %v1225_v11  ;;  %10291 = vmatmul.msk.f32.vlgmr.msra.gmra.mxu2 %vm457_vm1, %v11761_v22 }
  0xe6   : > { %10289 = vmatmul.msk.f32.vlgmr.msra.gmra.mxu1 %vm457_vm1, %v11761_v22  ;;  %10295 = vmatmul.msk.f32.vlgmr.msrb.gmra.mxu0 %vm457_vm1, %v11761_v22 }
  0xe7   : > { %2442 = vrot.lane.b32.xlu0 %v11723_v5, %s15485_s17  ;;  %v11914_v5 = vld.sshfl [vmem:[#allocation1 + $0x28] sm:$0xff pattern:$0x75316420]  ;;  %v3045_v38 = vld.sshfl [vmem:[#allocation1 + $0x30] sm:$0xff pattern:$0x75316420] }
  0xe8   : > { %3036 = vst [vmem:[#allocation1 + $0x20] ss:$2 sm:$0xff] %v11434_v2 }
  0xe9   : > { %2444 = vrot.lane.b32.xlu1 %v2430_v21, %s15485_s17  ;;  %v1414_v42 = vpop.permute.xlu0 %1413  ;;  %2438 = vrot.lane.b32.xlu2 %v11726_v6, %s15485_s17  ;;  %v3040_v6 = vld.sshfl [vmem:[#allocation1 + $0x8] sm:$0xff pattern:$0x75316420] }
  0xea   : > { %3237 = vst [vmem:[#allocation1] ss:$2 sm:$0xff] %v11432_v1 }
  0xeb   : > { %v1416_v43 = vpop.permute.xlu1 %1415  ;;  %v11847_v44 = vpop.permute.xlu2 %1624 }
  0xec   : > { %v1428_v45 = vsel %vm1423_vm6, %v1416_v43, %v11751_v18  ;;  %v1427_v46 = vsel %vm1423_vm6, %v1414_v42, %v1416_v43 }
  0xed   : > { %10307 = vmatpush.msk.msra.mxu2 %vm461_vm0, %v1427_v46  ;;  %10309 = vmatpush.msk.msra.mxu3 %vm461_vm0, %v1428_v45 }
  0xee   : > { %10299 = vmatmul.msk.f32.vlgmr.msrb.gmra.mxu2 %vm457_vm1, %v11761_v22  ;;  %10297 = vmatmul.msk.f32.vlgmr.msrb.gmra.mxu1 %vm457_vm1, %v11761_v22 }
  0xef   : > { %2639 = vrot.lane.b32.xlu0 %v2630_v26, %s11298_s18  ;;  %10310 = vmatmul.msk.f32.vlgmr.msra.gmra.mxu3 %vm457_vm1, %v11817_v37  ;;  %v11935_v16 = vld.sshfl [vmem:[#allocation1 + $0x28] sm:$0xff pattern:$0x75316420]  ;;  %v10330_v26 = vld [vmem:[%s15535_s1 + $0x38] sm:$0x3f] }
  0xf1   : > { %2641 = vrot.lane.b32.xlu1 %v11763_v23, %s11298_s18  ;;  %v1412_v47 = vpop.permute.xlu0 %1411  ;;  %2643 = vrot.lane.b32.xlu2 %v11767_v24, %s11298_s18  ;;  %v3244_v31 = vld.sshfl [vmem:[#allocation1] sm:$0xff pattern:$0x75316420] }
  0xf2   : > { %v1425_v49 = vsel %vm1423_vm6, %v1410_v36, %v1412_v47  ;;  %v1426_v50 = vsel %vm1423_vm6, %v1412_v47, %v1414_v42 }
  0xf3   : > { %v1613_v51 = vpop.permute.xlu1 %1612  ;;  %10303 = vmatpush.msk.msra.mxu0 %vm461_vm0, %v1425_v49  ;;  %10305 = vmatpush.msk.msra.mxu1 %vm461_vm0, %v1426_v50  ;;  %v11874_v52 = vpop.permute.xlu2 %1821 }
  0xf4   : > { %v1629_v53 = vsel %vm1628_vm7, %v1613_v51, %v11787_v30  ;;  %10304 = vmatmul.msk.f32.vlgmr.msra.gmra.mxu0 %vm457_vm1, %v11817_v37 }
  0xf5   : > { %10316 = vmatpush.msk.msrb.mxu2 %vm461_vm0, %v1629_v53 }
  0xf6   : > { %10308 = vmatmul.msk.f32.vlgmr.msra.gmra.mxu2 %vm457_vm1, %v11817_v37  ;;  %10306 = vmatmul.msk.f32.vlgmr.msra.gmra.mxu1 %vm457_vm1, %v11817_v37 }
  0xf7   : > { %2446 = vrot.lane.b32.xlu0 %v11769_v25, %s15485_s17  ;;  %s11302_s17 = smov 32  }
  0xf9   : > { %2637 = vrot.lane.b32.xlu1 %v11779_v27, %s11298_s18  ;;  %v1617_v56 = vpop.permute.xlu0 %1616  ;;  %2647 = vrot.lane.b32.xlu2 %v2634_v12, %s11298_s18 }
  0xfa   : > { %v1630_v57 = vsel %vm1628_vm7, %v11787_v30, %v1617_v56  ;;  %v11971_v30 = vld.sshfl [vmem:[#allocation1 + $0x8] sm:$0xff pattern:$0x75316420] }
  0xfb   : > { %v1420_v58 = vpop.permute.xlu1 %1419  ;;  %10318 = vmatpush.msk.msrb.mxu3 %vm461_vm0, %v1630_v57  ;;  %v1818_v59 = vpop.permute.xlu2 %1817  ;;  %3442 = vst [vmem:[#allocation1] ss:$2 sm:$0xff] %v11432_v1 }
  0xfc   : > { %v1429_v61 = vsel %vm1423_vm6, %v11751_v18, %v1420_v58  ;;  %v1430_v62 = vsel %vm1423_vm6, %v1420_v58, %v1422_v39  ;;  %10319 = vmatmul.msk.f32.vlgmr.msrb.gmra.mxu3 %vm457_vm1, %v11901_v60  ;;  %v3043_v18 = vld.sshfl [vmem:[#allocation1 + $0x20] sm:$0xff pattern:$0x75316420] }
  0xfd   : > { %10311 = vmatpush.msk.msrb.mxu0 %vm461_vm0, %v1429_v61  ;;  %10313 = vmatpush.msk.msrb.mxu1 %vm461_vm0, %v1430_v62  ;;  %3241 = vst [vmem:[#allocation1 + $0x20] ss:$2 sm:$0xff] %v11434_v2 }
  0xfe   : > { %10317 = vmatmul.msk.f32.vlgmr.msrb.gmra.mxu2 %vm457_vm1, %v11901_v60  ;;  %10314 = vmatmul.msk.f32.vlgmr.msrb.gmra.mxu1 %vm457_vm1, %v11817_v37 }
  0xff   : > { %2649 = vrot.lane.b32.xlu0 %v11805_v34, %s11298_s18  ;;  %10312 = vmatmul.msk.f32.vlgmr.msrb.gmra.mxu0 %vm457_vm1, %v11817_v37  ;;  %v11988_v37 = vld.sshfl [vmem:[#allocation1 + $0x38] sm:$0xff pattern:$0x75316420] }
 0x100   : > { %3243 = vst [vmem:[#allocation1 + $0x30] ss:$2 sm:$0xff] %v11437_v3 }
 0x101   : > { %2651 = vrot.lane.b32.xlu1 %v11807_v35, %s11298_s18  ;;  %v1621_v7 = vpop.permute.xlu0 %1620  ;;  %2645 = vrot.lane.b32.xlu2 %v11830_v17, %s11298_s18  ;;  %s15483_s18 = smov 62   ;;  %v3246_v17 = vld.sshfl [vmem:[#allocation1 + $0x10] sm:$0xff pattern:$0x75316420] }
 0x102   : > { %v12053_v61 = vld.sshfl [vmem:[#allocation1] sm:$0xff pattern:$0x75316420] }
 0x103   : > { %v1623_v8 = vpop.permute.xlu1 %1622  ;;  %v1832_v9 = vpop.permute.xlu2 %1831 }
 0x104   : > { %v1633_v10 = vsel %vm1628_vm7, %v1621_v7, %v1623_v8  ;;  %v1634_v13 = vsel %vm1628_vm7, %v1623_v8, %v11847_v44  ;;  %v3248_v42 = vld.sshfl [vmem:[#allocation1 + $0x20] sm:$0xff pattern:$0x75316420]  ;;  %v3249_v43 = vld.sshfl [vmem:[#allocation1 + $0x28] sm:$0xff pattern:$0x75316420] }
 0x105   : > { %10324 = vmatpush.msk.msra.mxu2 %vm461_vm0, %v1633_v10  ;;  %10326 = vmatpush.msk.msra.mxu3 %vm461_vm0, %v1634_v13  ;;  %3446 = vst [vmem:[#allocation1 + $0x20] ss:$2 sm:$0xff] %v11434_v2 }
 0x106   : > { %10325 = vmatmul.msk.f32.vlgmr.msra.gmra.mxu2 %vm457_vm1, %v11901_v60  ;;  %10327 = vmatmul.msk.f32.vlgmr.msra.gmra.mxu3 %vm457_vm1, %v11901_v60 }
 0x107   : > { %2846 = vrot.lane.b32.xlu0 %v11839_v40, %s15483_s18  ;;  %v12001_v40 = vld.sshfl [vmem:[#allocation1 + $0x18] sm:$0xff pattern:$0x75316420]  ;;  %v3250_v57 = vld.sshfl [vmem:[#allocation1 + $0x30] sm:$0xff pattern:$0x75316420] }
 0x108   : > { %3444 = vst [vmem:[#allocation1 + $0x10] ss:$2 sm:$0xff] %v11430_v0 }
 0x109   : > { %2848 = vrot.lane.b32.xlu1 %v11841_v41, %s15483_s18  ;;  %v1619_v21 = vpop.permute.xlu0 %1618  ;;  %2850 = vrot.lane.b32.xlu2 %v2838_v63, %s15483_s18 }
 0x10a   : > { %v1631_v22 = vsel %vm1628_vm7, %v1617_v56, %v1619_v21  ;;  %v1632_v23 = vsel %vm1628_vm7, %v1619_v21, %v1621_v7  ;;  %v12071_v7 = vld [vmem:[%s15535_s1 + $0x48] sm:$0x3f] }
 0x10b   : > { %v1820_v24 = vpop.permute.xlu1 %1819  ;;  %10320 = vmatpush.msk.msra.mxu0 %vm461_vm0, %v1631_v22  ;;  %10322 = vmatpush.msk.msra.mxu1 %vm461_vm0, %v1632_v23  ;;  %v11950_v25 = vpop.permute.xlu2 %2028 }
 0x10c   : > { %v1834_v27 = vsel %vm1833_vm8, %v1818_v59, %v1820_v24  ;;  %v1835_v28 = vsel %vm1833_vm8, %v1820_v24, %v11874_v52  ;;  %10323 = vmatmul.msk.f32.vlgmr.msra.gmra.mxu1 %vm457_vm1, %v11901_v60  ;;  %10321 = vmatmul.msk.f32.vlgmr.msra.gmra.mxu0 %vm457_vm1, %v11901_v60  ;;  %v3450_v59 = vld.sshfl [vmem:[#allocation1 + $0x8] sm:$0xff pattern:$0x75316420] }
 0x10d   : > { %10333 = vmatpush.msk.msrb.mxu2 %vm461_vm0, %v1835_v28  ;;  %10331 = vmatpush.msk.msrb.mxu1 %vm461_vm0, %v1834_v27  ;;  %3647 = vst [vmem:[#allocation1] ss:$2 sm:$0xff] %v11432_v1 }
 0x10e   : > { %10334 = vmatmul.msk.f32.vlgmr.msrb.gmra.mxu2 %vm457_vm1, %v10330_v26 }
 0x10f   : > { %2842 = vrot.lane.b32.xlu0 %v11867_v48, %s15483_s18  ;;  %v12032_v51 = vld.sshfl [vmem:[#allocation1 + $0x18] sm:$0xff pattern:$0x75316420] }
 0x111   : > { %2844 = vrot.lane.b32.xlu1 %v11861_v15, %s15483_s18  ;;  %v1824_v29 = vpop.permute.xlu0 %1823  ;;  %2854 = vrot.lane.b32.xlu2 %v11885_v54, %s15483_s18  ;;  %v12014_v15 = vld [vmem:[%s15535_s1 + $0x40] sm:$0x3f] }
 0x112   : > { %v1836_v32 = vsel %vm1833_vm8, %v11874_v52, %v1824_v29  ;;  %v12034_v52 = vld.sshfl [vmem:[#allocation1 + $0x10] sm:$0xff pattern:$0x75316420] }
 0x113   : > { %v1627_v33 = vpop.permute.xlu1 %1626  ;;  %10335 = vmatpush.msk.msrb.mxu3 %vm461_vm0, %v1836_v32  ;;  %v2025_v34 = vpop.permute.xlu2 %2024  ;;  %3649 = vst [vmem:[#allocation1 + $0x10] ss:$2 sm:$0xff] %v11430_v0 }
 0x114   : > { %v1635_v35 = vsel %vm1628_vm7, %v11847_v44, %v1627_v33  ;;  %10332 = vmatmul.msk.f32.vlgmr.msrb.gmra.mxu1 %vm457_vm1, %v10330_v26  ;;  %10336 = vmatmul.msk.f32.vlgmr.msrb.gmra.mxu3 %vm457_vm1, %v10330_v26  ;;  %v3654_v32 = vld.sshfl [vmem:[#allocation1] sm:$0xff pattern:$0x75316420]  ;;  %vm3473_vm7 = vcmask 261120  }
 0x115   : > { %10328 = vmatpush.msk.msrb.mxu0 %vm461_vm0, %v1635_v35 }
 0x116   : > { %10329 = vmatmul.msk.f32.vlgmr.msrb.gmra.mxu0 %vm457_vm1, %v11901_v60  ;;  %v3251_v60 = vld.sshfl [vmem:[#allocation1 + $0x38] sm:$0xff pattern:$0x75316420] }
 0x117   : > { %2856 = vrot.lane.b32.xlu0 %v11887_v55, %s15483_s18  ;;  %3448 = vst [vmem:[#allocation1 + $0x30] ss:$2 sm:$0xff] %v11437_v3 }
 0x119   : > { %3047 = vrot.lane.b32.xlu1 %v3039_v4, %s11300_s16  ;;  %v1828_v36 = vpop.permute.xlu0 %1827  ;;  %3049 = vrot.lane.b32.xlu2 %v3040_v6, %s11300_s16  ;;  %v12066_v6 = vld.sshfl [vmem:[#allocation1 + $0x20] sm:$0xff pattern:$0x75316420] }
 0x11a   : > { %v3656_v24 = vld.sshfl [vmem:[#allocation1 + $0x10] sm:$0xff pattern:$0x75316420] }
 0x11b   : > { %v1830_v14 = vpop.permute.xlu1 %1829  ;;  %v11991_v39 = vpop.permute.xlu2 %2227 }
 0x11c   : > { %v1839_v11 = vsel %vm1833_vm8, %v1828_v36, %v1830_v14  ;;  %v1840_v12 = vsel %vm1833_vm8, %v1830_v14, %v1832_v9 }
 0x11d   : > { %10341 = vmatpush.msk.msra.mxu2 %vm461_vm0, %v1839_v11  ;;  %10343 = vmatpush.msk.msra.mxu3 %vm461_vm0, %v1840_v12 }
 0x11e   : > { %10342 = vmatmul.msk.f32.vlgmr.msra.gmra.mxu2 %vm457_vm1, %v10330_v26  ;;  %10344 = vmatmul.msk.f32.vlgmr.msra.gmra.mxu3 %vm457_vm1, %v10330_v26  ;;  %v3455_v9 = vld.sshfl [vmem:[#allocation1 + $0x30] sm:$0xff pattern:$0x75316420]  ;;  %v12076_v10 = vld.sshfl [vmem:[#allocation1 + $0x38] sm:$0xff pattern:$0x75316420] }
 0x11f   : > { %2852 = vrot.lane.b32.xlu0 %v11914_v5, %s15483_s18  ;;  %s15487_s18 = smov 60   ;;  %v12064_v5 = vld.sshfl [vmem:[#allocation1 + $0x28] sm:$0xff pattern:$0x75316420]  ;;  %3653 = vst [vmem:[#allocation1 + $0x30] ss:$2 sm:$0xff] %v11437_v3 }
 0x120   : > { %3651 = vst [vmem:[#allocation1 + $0x20] ss:$2 sm:$0xff] %v11434_v2 }
 0x121   : > { %3053 = vrot.lane.b32.xlu1 %v3042_v20, %s11300_s16  ;;  %v1826_v41 = vpop.permute.xlu0 %1825  ;;  %3055 = vrot.lane.b32.xlu2 %v3043_v18, %s11300_s16 }
 0x122   : > { %v1837_v44 = vsel %vm1833_vm8, %v1824_v29, %v1826_v41  ;;  %v1838_v45 = vsel %vm1833_vm8, %v1826_v41, %v1828_v36  ;;  %vm3678_vm8 = vcmask 252928  }
 0x123   : > { %v2027_v46 = vpop.permute.xlu1 %2026  ;;  %10337 = vmatpush.msk.msra.mxu0 %vm461_vm0, %v1837_v44  ;;  %10339 = vmatpush.msk.msra.mxu1 %vm461_vm0, %v1838_v45  ;;  %v12016_v47 = vpop.permute.xlu2 %2233 }
 0x124   : > { %v2040_v48 = vsel %vm2038_vm9, %v2025_v34, %v2027_v46  ;;  %v2041_v49 = vsel %vm2038_vm9, %v2027_v46, %v11950_v25  ;;  %10338 = vmatmul.msk.f32.vlgmr.msra.gmra.mxu0 %vm457_vm1, %v10330_v26  ;;  %10340 = vmatmul.msk.f32.vlgmr.msra.gmra.mxu1 %vm457_vm1, %v10330_v26 }
 0x125   : > { %10350 = vmatpush.msk.msrb.mxu2 %vm461_vm0, %v2041_v49  ;;  %10348 = vmatpush.msk.msrb.mxu1 %vm461_vm0, %v2040_v48  ;;  %v12184_v48 = vpop.f32.mrf.mxu1 }
 0x126   : > { %10351 = vmatmul.msk.f32.vlgmr.msrb.gmra.mxu2 %vm457_vm1, %v12014_v15  ;;  %v12145_v14 = vld.sshfl [vmem:[#allocation1 + $0x38] sm:$0xff pattern:$0x75316420] }
 0x127   : > { %3057 = vrot.lane.b32.xlu0 %v11935_v16, %s11300_s16  ;;  %v12159_v41 = vld.sshfl [vmem:[#allocation1 + $0x28] sm:$0xff pattern:$0x75316420] }
 0x129   : > { %3051 = vrot.lane.b32.xlu1 %v11939_v19, %s11300_s16  ;;  %v2031_v50 = vpop.permute.xlu0 %2030  ;;  %3252 = vrot.lane.b32.xlu2 %v3244_v31, %s15487_s18  ;;  %v12124_v31 = vld.sshfl [vmem:[#allocation1 + $0x8] sm:$0xff pattern:$0x75316420] }
 0x12a   : > { %v2042_v53 = vsel %vm2038_vm9, %v11950_v25, %v2031_v50  ;;  %v12103_v25 = vld.sshfl [vmem:[#allocation1 + $0x18] sm:$0xff pattern:$0x75316420]  ;;  %3852 = vst [vmem:[#allocation1] ss:$2 sm:$0xff] %v11432_v1 }
 0x12b   : > { %v2023_v54 = vpop.permute.xlu1 %2022  ;;  %10352 = vmatpush.msk.msrb.mxu3 %vm461_vm0, %v2042_v53  ;;  %v2232_v55 = vpop.permute.xlu2 %2231  ;;  %3854 = vst [vmem:[#allocation1 + $0x10] ss:$2 sm:$0xff] %v11430_v0 }
 0x12c   : > { %v2039_v56 = vsel %vm2038_vm9, %v2023_v54, %v2025_v34  ;;  %10349 = vmatmul.msk.f32.vlgmr.msrb.gmra.mxu1 %vm457_vm1, %v12014_v15  ;;  %10353 = vmatmul.msk.f32.vlgmr.msrb.gmra.mxu3 %vm457_vm1, %v12014_v15  ;;  %v2246_v19 = vsel %vm2243_vm10, %v2232_v55, %v12016_v47  ;;  %v12130_v34 = vld [vmem:[%s15535_s1 + $0x50] sm:$0x3f] }
 0x12d   : > { %10346 = vmatpush.msk.msrb.mxu0 %vm461_vm0, %v2039_v56 }
 0x12e   : > { %10347 = vmatmul.msk.f32.vlgmr.msrb.gmra.mxu0 %vm457_vm1, %v12014_v15 }
 0x12f   : > { %3254 = vrot.lane.b32.xlu0 %v11971_v30, %s15487_s18 }
 0x131   : > { %3256 = vrot.lane.b32.xlu1 %v3246_v17, %s15487_s18  ;;  %v2035_v58 = vpop.permute.xlu0 %2034  ;;  %3059 = vrot.lane.b32.xlu2 %v3045_v38, %s11300_s16  ;;  %v12143_v38 = vld.sshfl [vmem:[#allocation1 + $0x30] sm:$0xff pattern:$0x75316420]  ;;  %v12153_v12 = vld.sshfl [vmem:[#allocation1 + $0x8] sm:$0xff pattern:$0x75316420] }
 0x132   : > { %3858 = vst [vmem:[#allocation1 + $0x30] ss:$2 sm:$0xff] %v11437_v3  ;;  %v12155_v17 = vld.sshfl [vmem:[#allocation1] sm:$0xff pattern:$0x75316420] }
 0x133   : > { %v2037_v62 = vpop.permute.xlu1 %2036  ;;  %v12055_v63 = vpop.permute.xlu2 %2436  ;;  %4057 = vst [vmem:[#allocation1] ss:$2 sm:$0xff] %v11432_v1  ;;  %v12199_v53 = vld.sshfl [vmem:[#allocation1 + $0x18] sm:$0xff pattern:$0x75316420] }
 0x134   : > { %v2045_v4 = vsel %vm2038_vm9, %v2035_v58, %v2037_v62  ;;  %v12201_v54 = vld.sshfl [vmem:[#allocation1 + $0x10] sm:$0xff pattern:$0x75316420] }
 0x135   : > { %10358 = vmatpush.msk.msra.mxu2 %vm461_vm0, %v2045_v4  ;;  %4059 = vst [vmem:[#allocation1 + $0x10] ss:$2 sm:$0xff] %v11430_v0 }
 0x136   : > { %10359 = vmatmul.msk.f32.vlgmr.msra.gmra.mxu2 %vm457_vm1, %v12014_v15 }
 0x137   : > { %3061 = vrot.lane.b32.xlu0 %v11988_v37, %s11300_s16  ;;  %s11303_s16 = smov 31  }
 0x139   : > { %3260 = vrot.lane.b32.xlu1 %v3248_v42, %s15487_s18  ;;  %v2230_v8 = vpop.permute.xlu0 %2229  ;;  %3262 = vrot.lane.b32.xlu2 %v3249_v43, %s15487_s18 }
 0x13a   : > { %v2244_v13 = vsel %vm2243_vm10, %v11991_v39, %v2230_v8  ;;  %v2245_v22 = vsel %vm2243_vm10, %v2230_v8, %v2232_v55  ;;  %v3658_v39 = vld.sshfl [vmem:[#allocation1 + $0x20] sm:$0xff pattern:$0x75316420] }
 0x13b   : > { %v2033_v16 = vpop.permute.xlu1 %2032  ;;  %10361 = vmatpush.msk.msra.mxu3 %vm461_vm0, %v2244_v13  ;;  %v12082_v18 = vpop.permute.xlu2 %2440  ;;  %3856 = vst [vmem:[#allocation1 + $0x20] ss:$2 sm:$0xff] %v11434_v2 }
 0x13c   : > { %v2043_v20 = vsel %vm2038_vm9, %v2031_v50, %v2033_v16  ;;  %v2044_v21 = vsel %vm2038_vm9, %v2033_v16, %v2035_v58  ;;  %10362 = vmatmul.msk.f32.vlgmr.msra.gmra.mxu3 %vm457_vm1, %v12071_v7  ;;  %v10390_v58 = vld [vmem:[%s15535_s1 + $0x58] sm:$0x3f]  ;;  %v12239_v13 = vpop.f32.mrf.mxu0  ;;  %vm3883_vm9 = vcmask 244736  }
 0x13d   : > { %10354 = vmatpush.msk.msra.mxu0 %vm461_vm0, %v2043_v20  ;;  %10356 = vmatpush.msk.msra.mxu1 %vm461_vm0, %v2044_v21  ;;  %v4064_v21 = vld.sshfl [vmem:[#allocation1] sm:$0xff pattern:$0x75316420] }
 0x13e   : > { %10355 = vmatmul.msk.f32.vlgmr.msra.gmra.mxu0 %vm457_vm1, %v12014_v15  ;;  %10357 = vmatmul.msk.f32.vlgmr.msra.gmra.mxu1 %vm457_vm1, %v12014_v15  ;;  %v12174_v15 = vpop.f32.mrf.mxu2 }
 0x13f   : > { %10363 = vmatpush.msk.msrb.mxu0 %vm461_vm0, %v2245_v22  ;;  %10365 = vmatpush.msk.msrb.mxu1 %vm461_vm0, %v2246_v19 }
 0x140   : > { %3264 = vrot.lane.b32.xlu0 %v3250_v57, %s15487_s18 }
 0x141   : > { %3258 = vrot.lane.b32.xlu1 %v12001_v40, %s15487_s18  ;;  %v2236_v23 = vpop.permute.xlu0 %2235  ;;  %3459 = vrot.lane.b32.xlu2 %v3450_v59, %s11302_s17 }
 0x142   : > { %v2247_v26 = vsel %vm2243_vm10, %v12016_v47, %v2236_v23  ;;  %v3864_v4 = vld.sshfl [vmem:[#allocation1 + $0x28] sm:$0xff pattern:$0x75316420] }
 0x143   : > { %v2238_v27 = vpop.permute.xlu1 %2237  ;;  %10367 = vmatpush.msk.msrb.mxu2 %vm461_vm0, %v2247_v26  ;;  %v2439_v28 = vpop.permute.xlu2 %2438 }
 0x144   : > { %v2248_v29 = vsel %vm2243_vm10, %v2236_v23, %v2238_v27  ;;  %10368 = vmatmul.msk.f32.vlgmr.msrb.gmra.mxu2 %vm457_vm1, %v12071_v7  ;;  %v2451_v44 = vsel %vm2448_vm11, %v12055_v63, %v2439_v28  ;;  %v2452_v45 = vsel %vm2448_vm11, %v2439_v28, %v12082_v18  ;;  %v4065_v23 = vld.sshfl [vmem:[#allocation1 + $0x8] sm:$0xff pattern:$0x75316420] }
 0x145   : > { %10369 = vmatpush.msk.msrb.mxu3 %vm461_vm0, %v2248_v29  ;;  %4262 = vst [vmem:[#allocation1] ss:$2 sm:$0xff] %v11432_v1 }
 0x146   : > { %10364 = vmatmul.msk.f32.vlgmr.msrb.gmra.mxu0 %vm457_vm1, %v12071_v7  ;;  %10366 = vmatmul.msk.f32.vlgmr.msrb.gmra.mxu1 %vm457_vm1, %v12071_v7  ;;  %v12204_v55 = vpop.f32.mrf.mxu2 }
 0x147   : > { %10370 = vmatmul.msk.f32.vlgmr.msrb.gmra.mxu3 %vm457_vm1, %v12071_v7 }
 0x148   : > { %3461 = vrot.lane.b32.xlu0 %v12034_v52, %s11302_s17 }
 0x149   : > { %3463 = vrot.lane.b32.xlu1 %v12032_v51, %s11302_s17  ;;  %v2433_v30 = vpop.permute.xlu0 %2432  ;;  %3266 = vrot.lane.b32.xlu2 %v3251_v60, %s15487_s18  ;;  %v12215_v60 = vpop.f32.mrf.mxu1  ;;  %s11306_s18 = smov 28  }
 0x14b   : > { %v2435_v33 = vpop.permute.xlu1 %2434  ;;  %v12132_v35 = vpop.permute.xlu2 %2643 }
 0x14c   : > { %v2450_v36 = vsel %vm2448_vm11, %v2435_v33, %v12055_v63  ;;  %v2449_v37 = vsel %vm2448_vm11, %v2433_v30, %v2435_v33  ;;  %v3863_v63 = vld.sshfl [vmem:[#allocation1 + $0x20] sm:$0xff pattern:$0x75316420]  ;;  %v4066_v33 = vld.sshfl [vmem:[#allocation1 + $0x10] sm:$0xff pattern:$0x75316420] }
 0x14d   : > { %10376 = vmatpush.msk.msra.mxu2 %vm461_vm0, %v2449_v37  ;;  %10378 = vmatpush.msk.msra.mxu3 %vm461_vm0, %v2450_v36  ;;  %4061 = vst [vmem:[#allocation1 + $0x20] ss:$2 sm:$0xff] %v11434_v2  ;;  %v3865_v36 = vld.sshfl [vmem:[#allocation1 + $0x30] sm:$0xff pattern:$0x75316420] }
 0x14e   : > { %10377 = vmatmul.msk.f32.vlgmr.msra.gmra.mxu2 %vm457_vm1, %v12130_v34  ;;  %v3866_v37 = vld.sshfl [vmem:[#allocation1 + $0x38] sm:$0xff pattern:$0x75316420] }
 0x14f   : > { %10379 = vmatmul.msk.f32.vlgmr.msra.gmra.mxu3 %vm457_vm1, %v12130_v34  ;;  %4063 = vst [vmem:[#allocation1 + $0x30] ss:$2 sm:$0xff] %v11437_v3 }
 0x150   : > { %3457 = vrot.lane.b32.xlu0 %v12053_v61, %s11302_s17 }
 0x151   : > { %3467 = vrot.lane.b32.xlu1 %v12064_v5, %s11302_s17  ;;  %v2240_v11 = vpop.permute.xlu0 %2239  ;;  %3469 = vrot.lane.b32.xlu2 %v3455_v9, %s11302_s17  ;;  %v12250_v20 = vpop.f32.mrf.mxu1 }
 0x152   : > { %v2249_v40 = vsel %vm2243_vm10, %v2238_v27, %v2240_v11 }
 0x153   : > { %v2242_v42 = vpop.permute.xlu1 %2241  ;;  %10371 = vmatpush.msk.msra.mxu0 %vm461_vm0, %v2249_v40  ;;  %v12162_v43 = vpop.permute.xlu2 %2647 }
 0x154   : > { %v2250_v46 = vsel %vm2243_vm10, %v2240_v11, %v2242_v42  ;;  %10372 = vmatmul.msk.f32.vlgmr.msra.gmra.mxu0 %vm457_vm1, %v12071_v7  ;;  %v12256_v22 = vld.sshfl [vmem:[#allocation1 + $0x20] sm:$0xff pattern:$0x75316420]  ;;  %vm4088_vm10 = vcmask 236544  }
 0x155   : > { %10373 = vmatpush.msk.msra.mxu1 %vm461_vm0, %v2250_v46  ;;  %10380 = vmatpush.msk.msrb.mxu0 %vm461_vm0, %v2451_v44 }
 0x156   : > { %10374 = vmatmul.msk.f32.vlgmr.msra.gmra.mxu1 %vm457_vm1, %v12071_v7  ;;  %v12233_v7 = vpop.f32.mrf.mxu3  ;;  %v4070_v44 = vld.sshfl [vmem:[#allocation1 + $0x30] sm:$0xff pattern:$0x75316420]  ;;  %v12321_v46 = vld.sshfl [vmem:[#allocation1 + $0x38] sm:$0xff pattern:$0x75316420] }
 0x157   : > { %10382 = vmatpush.msk.msrb.mxu1 %vm461_vm0, %v2452_v45  ;;  %4268 = vst [vmem:[#allocation1 + $0x30] ss:$2 sm:$0xff] %v11437_v3 }
 0x158   : > { %3471 = vrot.lane.b32.xlu0 %v12076_v10, %s11302_s17 }
 0x159   : > { %3465 = vrot.lane.b32.xlu1 %v12066_v6, %s11302_s17  ;;  %v2443_v47 = vpop.permute.xlu0 %2442  ;;  %3666 = vrot.lane.b32.xlu2 %v3656_v24, %s11303_s16  ;;  %v12231_v6 = vpop.f32.mrf.mxu2  ;;  %s11304_s17 = smov 30  }
 0x15a   : > { %v2453_v49 = vsel %vm2448_vm11, %v12082_v18, %v2443_v47 }
 0x15b   : > { %v2445_v50 = vpop.permute.xlu1 %2444  ;;  %10384 = vmatpush.msk.msrb.mxu2 %vm461_vm0, %v2453_v49  ;;  %v2646_v51 = vpop.permute.xlu2 %2645 }
 0x15c   : > { %v2454_v52 = vsel %vm2448_vm11, %v2443_v47, %v2445_v50  ;;  %10381 = vmatmul.msk.f32.vlgmr.msrb.gmra.mxu0 %vm457_vm1, %v12130_v34  ;;  %10385 = vmatmul.msk.f32.vlgmr.msrb.gmra.mxu2 %vm457_vm1, %v12130_v34  ;;  %v2657_v16 = vsel %vm2653_vm12, %v12132_v35, %v2646_v51  ;;  %v2658_v18 = vsel %vm2653_vm12, %v2646_v51, %v12162_v43  ;;  %v12323_v47 = vld.sshfl [vmem:[#allocation1] sm:$0xff pattern:$0x75316420]  ;;  %v12327_v51 = vld.sshfl [vmem:[#allocation1 + $0x8] sm:$0xff pattern:$0x75316420] }
 0x15d   : > { %10386 = vmatpush.msk.msrb.mxu3 %vm461_vm0, %v2454_v52  ;;  %4467 = vst [vmem:[#allocation1] ss:$2 sm:$0xff] %v11432_v1 }
 0x15e   : > { %10383 = vmatmul.msk.f32.vlgmr.msrb.gmra.mxu1 %vm457_vm1, %v12130_v34  ;;  %10387 = vmatmul.msk.f32.vlgmr.msrb.gmra.mxu3 %vm457_vm1, %v12130_v34  ;;  %v12271_v29 = vpop.f32.mrf.mxu3 }
 0x160   : > { %3668 = vrot.lane.b32.xlu0 %v12103_v25, %s11303_s16  ;;  %v12263_v25 = vld.sshfl [vmem:[#allocation1 + $0x28] sm:$0xff pattern:$0x75316420] }
 0x161   : > { %3670 = vrot.lane.b32.xlu1 %v3658_v39, %s11303_s16  ;;  %v2640_v56 = vpop.permute.xlu0 %2639  ;;  %3662 = vrot.lane.b32.xlu2 %v3654_v32, %s11303_s16  ;;  %4266 = vst [vmem:[#allocation1 + $0x20] ss:$2 sm:$0xff] %v11434_v2  ;;  %v12279_v32 = vpop.f32.mrf.mxu0  ;;  %v12296_v39 = vld [vmem:[%s15535_s1 + $0x60] sm:$0x3f] }
 0x163   : > { %v2642_v57 = vpop.permute.xlu1 %2641  ;;  %v12213_v59 = vpop.permute.xlu2 %2850 }
 0x164   : > { %v2656_v61 = vsel %vm2653_vm12, %v2642_v57, %v12132_v35  ;;  %v2655_v62 = vsel %vm2653_vm12, %v2640_v56, %v2642_v57  ;;  %v12286_v35 = vpop.f32.mrf.mxu1 }
 0x165   : > { %10393 = vmatpush.msk.msra.mxu2 %vm461_vm0, %v2655_v62  ;;  %10395 = vmatpush.msk.msra.mxu3 %vm461_vm0, %v2656_v61 }
 0x166   : > { %10394 = vmatmul.msk.f32.vlgmr.msra.gmra.mxu2 %vm457_vm1, %v10390_v58  ;;  %10396 = vmatmul.msk.f32.vlgmr.msra.gmra.mxu3 %vm457_vm1, %v10390_v58  ;;  %v12305_v40 = vpop.f32.mrf.mxu3 }
 0x168   : > { %3664 = vrot.lane.b32.xlu0 %v12124_v31, %s11303_s16  ;;  %v12276_v31 = vpop.f32.mrf.mxu2  ;;  %v12348_v61 = vld.sshfl [vmem:[#allocation1 + $0x28] sm:$0xff pattern:$0x75316420] }
 0x169   : > { %3674 = vrot.lane.b32.xlu1 %v12143_v38, %s11303_s16  ;;  %v2447_v5 = vpop.permute.xlu0 %2446  ;;  %3676 = vrot.lane.b32.xlu2 %v12145_v14, %s11303_s16  ;;  %v12313_v42 = vpop.f32.mrf.mxu0 }
 0x16a   : > { %v2455_v8 = vsel %vm2448_vm11, %v2445_v50, %v2447_v5  ;;  %v12357_v5 = vld [vmem:[%s15535_s1 + $0x68] sm:$0x3f] }
 0x16b   : > { %v2638_v9 = vpop.permute.xlu1 %2637  ;;  %10388 = vmatpush.msk.msra.mxu0 %vm461_vm0, %v2455_v8  ;;  %v12237_v10 = vpop.permute.xlu2 %2854 }
 0x16c   : > { %v2654_v19 = vsel %vm2653_vm12, %v2638_v9, %v2640_v56  ;;  %10389 = vmatmul.msk.f32.vlgmr.msra.gmra.mxu0 %vm457_vm1, %v12130_v34  ;;  %v12283_v34 = vld.sshfl [vmem:[#allocation1 + $0x18] sm:$0xff pattern:$0x75316420]  ;;  %v12319_v45 = vpop.f32.mrf.mxu1 }
 0x16d   : > { %10391 = vmatpush.msk.msra.mxu1 %vm461_vm0, %v2654_v19  ;;  %10397 = vmatpush.msk.msrb.mxu0 %vm461_vm0, %v2657_v16  ;;  %4264 = vst [vmem:[#allocation1 + $0x10] ss:$2 sm:$0xff] %v11430_v0  ;;  %v12363_v16 = vld.sshfl [vmem:[#allocation1 + $0x20] sm:$0xff pattern:$0x75316420] }
 0x16e   : > { %10392 = vmatmul.msk.f32.vlgmr.msra.gmra.mxu1 %vm457_vm1, %v10390_v58  ;;  %4471 = vst [vmem:[#allocation1 + $0x20] ss:$2 sm:$0xff] %v11434_v2 }
 0x16f   : > { %10399 = vmatpush.msk.msrb.mxu1 %vm461_vm0, %v2658_v18  ;;  %v12365_v18 = vld.sshfl [vmem:[#allocation1 + $0x8] sm:$0xff pattern:$0x75316420] }
 0x170   : > { %3867 = vrot.lane.b32.xlu0 %v12155_v17, %s11304_s17  ;;  %4647 = vst [vmem:[#allocation1] ss:$2 sm:$0xff] %v11432_v1 }
 0x171   : > { %3869 = vrot.lane.b32.xlu1 %v12153_v12, %s11304_s17  ;;  %v2650_v24 = vpop.permute.xlu0 %2649  ;;  %3672 = vrot.lane.b32.xlu2 %v12159_v41, %s11303_s16  ;;  %v12311_v41 = vpop.f32.mrf.mxu2  ;;  %s11305_s16 = smov 29  }
 0x172   : > { %v2659_v26 = vsel %vm2653_vm12, %v12162_v43, %v2650_v24 }
 0x173   : > { %v2652_v27 = vpop.permute.xlu1 %2651  ;;  %10401 = vmatpush.msk.msrb.mxu2 %vm461_vm0, %v2659_v26  ;;  %v12269_v28 = vpop.permute.xlu2 %3049 }
 0x174   : > { %v2660_v30 = vsel %vm2653_vm12, %v2650_v24, %v2652_v27  ;;  %10398 = vmatmul.msk.f32.vlgmr.msrb.gmra.mxu0 %vm457_vm1, %v10390_v58  ;;  %10402 = vmatmul.msk.f32.vlgmr.msrb.gmra.mxu2 %vm457_vm1, %v10390_v58  ;;  %v12342_v56 = vld.sshfl [vmem:[#allocation1 + $0x18] sm:$0xff pattern:$0x75316420]  ;;  %v4271_v62 = vld.sshfl [vmem:[#allocation1 + $0x10] sm:$0xff pattern:$0x75316420] }
 0x175   : > { %10403 = vmatpush.msk.msrb.mxu3 %vm461_vm0, %v2660_v30  ;;  %4469 = vst [vmem:[#allocation1 + $0x10] ss:$2 sm:$0xff] %v11430_v0  ;;  %vm4293_vm12 = vcmask 228352  }
 0x176   : > { %10400 = vmatmul.msk.f32.vlgmr.msrb.gmra.mxu1 %vm457_vm1, %v10390_v58  ;;  %10404 = vmatmul.msk.f32.vlgmr.msrb.gmra.mxu3 %vm457_vm1, %v10390_v58 }
 0x178   : > { %3873 = vrot.lane.b32.xlu0 %v12199_v53, %s11304_s17 }
 0x179   : > { %3875 = vrot.lane.b32.xlu1 %v3863_v63, %s11304_s17  ;;  %v2847_v38 = vpop.permute.xlu0 %2846  ;;  %3877 = vrot.lane.b32.xlu2 %v3864_v4, %s11304_s17  ;;  %v12344_v57 = vpop.f32.mrf.mxu2 }
 0x17a   : > { %v12350_v63 = vpop.f32.mrf.mxu0 }
 0x17b   : > { %v2849_v14 = vpop.permute.xlu1 %2848  ;;  %v12298_v11 = vpop.permute.xlu2 %3055 }
 0x17c   : > { %v2861_v12 = vsel %vm2858_vm13, %v2847_v38, %v2849_v14  ;;  %v2862_v17 = vsel %vm2858_vm13, %v2849_v14, %v12213_v59  ;;  %v12383_v24 = vld.sshfl [vmem:[#allocation1 + $0x10] sm:$0xff pattern:$0x75316420]  ;;  %v12385_v26 = vld.sshfl [vmem:[#allocation1 + $0x18] sm:$0xff pattern:$0x75316420] }
 0x17d   : > { %10410 = vmatpush.msk.msra.mxu2 %vm461_vm0, %v2861_v12  ;;  %10412 = vmatpush.msk.msra.mxu3 %vm461_vm0, %v2862_v17  ;;  %4649 = vst [vmem:[#allocation1 + $0x10] ss:$2 sm:$0xff] %v11430_v0  ;;  %v4275_v17 = vld.sshfl [vmem:[#allocation1 + $0x30] sm:$0xff pattern:$0x75316420] }
 0x17e   : > { %10411 = vmatmul.msk.f32.vlgmr.msra.gmra.mxu2 %vm457_vm1, %v12296_v39  ;;  %10413 = vmatmul.msk.f32.vlgmr.msra.gmra.mxu3 %vm457_vm1, %v12296_v39 }
 0x180   : > { %3871 = vrot.lane.b32.xlu0 %v12201_v54, %s11304_s17  ;;  %v12339_v54 = vpop.f32.mrf.mxu3 }
 0x181   : > { %4072 = vrot.lane.b32.xlu1 %v4064_v21, %s11305_s16  ;;  %v2843_v43 = vpop.permute.xlu0 %2842  ;;  %4074 = vrot.lane.b32.xlu2 %v4065_v23, %s11305_s16  ;;  %v12372_v21 = vpop.f32.mrf.mxu1 }
 0x182   : > { %v12413_v14 = vpop.f32.mrf.mxu0 }
 0x183   : > { %v2845_v49 = vpop.permute.xlu1 %2844  ;;  %v12325_v50 = vpop.permute.xlu2 %3252  ;;  %15536 = vst [vmem:[#allocation5_spill] sm:$0xff] %v12413_v14 }
 0x184   : > { %v2860_v52 = vsel %vm2858_vm13, %v2845_v49, %v2847_v38  ;;  %v2859_v53 = vsel %vm2858_vm13, %v2843_v43, %v2845_v49  ;;  %v4276_v43 = vld.sshfl [vmem:[#allocation1 + $0x38] sm:$0xff pattern:$0x75316420] }
 0x185   : > { %10406 = vmatpush.msk.msra.mxu0 %vm461_vm0, %v2859_v53  ;;  %10408 = vmatpush.msk.msra.mxu1 %vm461_vm0, %v2860_v52  ;;  %4473 = vst [vmem:[#allocation1 + $0x30] ss:$2 sm:$0xff] %v11437_v3 }
 0x186   : > { %10407 = vmatmul.msk.f32.vlgmr.msra.gmra.mxu0 %vm457_vm1, %v12296_v39  ;;  %10409 = vmatmul.msk.f32.vlgmr.msra.gmra.mxu1 %vm457_vm1, %v12296_v39 }
 0x188   : > { %4076 = vrot.lane.b32.xlu0 %v4066_v33, %s11305_s16  ;;  %v12387_v27 = vpop.f32.mrf.mxu3 }
 0x189   : > { %3879 = vrot.lane.b32.xlu1 %v3865_v36, %s11304_s17  ;;  %v2857_v58 = vpop.permute.xlu0 %2856  ;;  %3881 = vrot.lane.b32.xlu2 %v3866_v37, %s11304_s17  ;;  %v12398_v36 = vld.sshfl [vmem:[#allocation1 + $0x20] sm:$0xff pattern:$0x75316420]  ;;  %v12400_v37 = vld.sshfl [vmem:[#allocation1 + $0x28] sm:$0xff pattern:$0x75316420]  ;;  %v12419_v12 = vpop.f32.mrf.mxu1 }
 0x18a   : > { %v2865_v4 = vsel %vm2858_vm13, %v12237_v10, %v2857_v58  ;;  %4651 = vst [vmem:[#allocation1 + $0x20] ss:$2 sm:$0xff] %v11434_v2  ;;  %s15491_s17 = smov 120  }
 0x18b   : > { %v3048_v8 = vpop.permute.xlu1 %3047  ;;  %10418 = vmatpush.msk.msrb.mxu2 %vm461_vm0, %v2865_v4  ;;  %v12361_v9 = vpop.permute.xlu2 %3059 }
 0x18c   : > { %v3064_v19 = vsel %vm3063_vm14, %v3048_v8, %v12269_v28  ;;  %10419 = vmatmul.msk.f32.vlgmr.msrb.gmra.mxu2 %vm457_vm1, %v12296_v39  ;;  %v12459_v8 = vld.sshfl [vmem:[#allocation1 + $0x18] sm:$0xff pattern:$0x75316420] }
 0x18d   : > { %10421 = vmatpush.msk.msrb.mxu3 %vm461_vm0, %v3064_v19  ;;  %v4655_v19 = vld.sshfl [vmem:[#allocation1 + $0x10] sm:$0xff pattern:$0x75316420] }
 0x18e   : > { %10422 = vmatmul.msk.f32.vlgmr.msrb.gmra.mxu3 %vm457_vm1, %v12357_v5  ;;  %4849 = vst [vmem:[#allocation1 + $0x10] ss:$2 sm:$0xff] %v11430_v0 }
 0x190   : > { %4080 = vrot.lane.b32.xlu0 %v12256_v22, %s11305_s16  ;;  %v12394_v22 = vpop.f32.mrf.mxu2  ;;  %v12446_v4 = vpop.f32.mrf.mxu3 }
 0x191   : > { %4082 = vrot.lane.b32.xlu1 %v12263_v25, %s11305_s16  ;;  %v2853_v23 = vpop.permute.xlu0 %2852  ;;  %4084 = vrot.lane.b32.xlu2 %v4070_v44, %s11305_s16  ;;  %v12430_v52 = vld.sshfl [vmem:[#allocation1 + $0x20] sm:$0xff pattern:$0x75316420]  ;;  %15538 = vst [vmem:[#allocation7_spill] sm:$0xff] %v12446_v4 }
 0x192   : > { %v2863_v30 = vsel %vm2858_vm13, %v12213_v59, %v2853_v23  ;;  %v2864_v33 = vsel %vm2858_vm13, %v2853_v23, %v12237_v10  ;;  %v12411_v10 = vld.sshfl [vmem:[#allocation1 + $0x8] sm:$0xff pattern:$0x75316420]  ;;  %v12461_v23 = vpop.f32.mrf.mxu1 }
 0x193   : > { %v3054_v25 = vpop.permute.xlu1 %3053  ;;  %10414 = vmatpush.msk.msrb.mxu0 %vm461_vm0, %v2863_v30  ;;  %10416 = vmatpush.msk.msrb.mxu1 %vm461_vm0, %v2864_v33  ;;  %v12408_v59 = vpop.permute.xlu2 %3262  ;;  %4847 = vst [vmem:[#allocation1] ss:$2 sm:$0xff] %v11432_v1  ;;  %v12467_v30 = vld.sshfl [vmem:[#allocation1 + $0x30] sm:$0xff pattern:$0x75316420] }
 0x194   : > { %v3067_v38 = vsel %vm3063_vm14, %v3054_v25, %v12298_v11  ;;  %10415 = vmatmul.msk.f32.vlgmr.msrb.gmra.mxu0 %vm457_vm1, %v12296_v39  ;;  %10417 = vmatmul.msk.f32.vlgmr.msrb.gmra.mxu1 %vm457_vm1, %v12296_v39  ;;  %15539 = vst [vmem:[#allocation8_spill] sm:$0xff] %v12461_v23  ;;  %v12469_v33 = vld.sshfl [vmem:[#allocation1 + $0x38] sm:$0xff pattern:$0x75316420] }
 0x195   : > { %10427 = vmatpush.msk.msra.mxu2 %vm461_vm0, %v3067_v38  ;;  %4653 = vst [vmem:[#allocation1 + $0x30] ss:$2 sm:$0xff] %v11437_v3 }
 0x196   : > { %10428 = vmatmul.msk.f32.vlgmr.msra.gmra.mxu2 %vm457_vm1, %v12357_v5 }
 0x198   : > { %4078 = vrot.lane.b32.xlu0 %v12283_v34, %s11305_s16  ;;  %v12432_v34 = vld.sshfl [vmem:[#allocation1 + $0x28] sm:$0xff pattern:$0x75316420] }
 0x199   : > { %4279 = vrot.lane.b32.xlu1 %v12327_v51, %s11306_s18  ;;  %v3058_v39 = vpop.permute.xlu0 %3057  ;;  %4281 = vrot.lane.b32.xlu2 %v4271_v62, %s11306_s18  ;;  %4851 = vst [vmem:[#allocation1 + $0x20] ss:$2 sm:$0xff] %v11434_v2  ;;  %v12444_v62 = vpop.f32.mrf.mxu2 }
 0x19a   : > { %v3068_v44 = vsel %vm3063_vm14, %v12298_v11, %v3058_v39  ;;  %v3069_v51 = vsel %vm3063_vm14, %v3058_v39, %v12361_v9  ;;  %15537 = vst [vmem:[#allocation6_spill] sm:$0xff] %v12444_v62 }
 0x19b   : > { %v3052_v49 = vpop.permute.xlu1 %3051  ;;  %10429 = vmatpush.msk.msra.mxu3 %vm461_vm0, %v3068_v44  ;;  %v12441_v11 = vpop.permute.xlu2 %3459 }
 0x19c   : > { %v3065_v53 = vsel %vm3063_vm14, %v12269_v28, %v3052_v49  ;;  %v3066_v58 = vsel %vm3063_vm14, %v3052_v49, %v3054_v25  ;;  %10430 = vmatmul.msk.f32.vlgmr.msra.gmra.mxu3 %vm457_vm1, %v12357_v5  ;;  %v12454_v28 = vpop.f32.mrf.mxu0  ;;  %v12494_v49 = vpop.f32.mrf.mxu3 }
 0x19d   : > { %10423 = vmatpush.msk.msra.mxu0 %vm461_vm0, %v3065_v53  ;;  %10425 = vmatpush.msk.msra.mxu1 %vm461_vm0, %v3066_v58  ;;  %15540 = vst [vmem:[#allocation9_spill] sm:$0xff] %v12494_v49  ;;  %v4659_v53 = vld.sshfl [vmem:[#allocation1 + $0x30] sm:$0xff pattern:$0x75316420] }
 0x19e   : > { %10424 = vmatmul.msk.f32.vlgmr.msra.gmra.mxu0 %vm457_vm1, %v12357_v5  ;;  %10426 = vmatmul.msk.f32.vlgmr.msra.gmra.mxu1 %vm457_vm1, %v12357_v5  ;;  %v12502_v58 = vld.sshfl [vmem:[#allocation1 + $0x38] sm:$0xff pattern:$0x75316420] }
 0x19f   : > { %10431 = vmatpush.msk.msrb.mxu0 %vm461_vm0, %v3069_v51  ;;  %4853 = vst [vmem:[#allocation1 + $0x30] ss:$2 sm:$0xff] %v11437_v3 }
 0x1a0   : > { %4283 = vrot.lane.b32.xlu0 %v12342_v56, %s11306_s18  ;;  %v12474_v56 = vld [vmem:[%s15535_s1 + $0x70] sm:$0x3f] }
 0x1a1   : > { %4086 = vrot.lane.b32.xlu1 %v12321_v46, %s11305_s16  ;;  %4277 = vrot.lane.b32.xlu2 %v12323_v47, %s11306_s18  ;;  %v3255_v25 = vpop.permute.xlu0 %3254  ;;  %v12480_v46 = vld.sshfl [vmem:[#allocation1 + $0x8] sm:$0xff pattern:$0x75316420]  ;;  %s15718_s16 = smov 60  }
 0x1a2   : > { %v3269_v39 = vsel %vm3268_vm15, %v12325_v50, %v3255_v25  ;;  %5047 = vst [vmem:[#allocation1] ss:$2 sm:$0xff] %v11432_v1  ;;  %v12492_v50 = vpop.f32.mrf.mxu2 }
 0x1a3   : > { %v3257_v38 = vpop.permute.xlu1 %3256  ;;  %10436 = vmatpush.msk.msrb.mxu2 %vm461_vm0, %v3269_v39  ;;  %v3267_v44 = vpop.permute.xlu2 %3266 }
 0x1a4   : > { %v3270_v47 = vsel %vm3268_vm15, %v3255_v25, %v3257_v38  ;;  %10437 = vmatmul.msk.f32.vlgmr.msrb.gmra.mxu2 %vm457_vm1, %v12474_v56  ;;  %v12498_v51 = vpop.f32.mrf.mxu0  ;;  %v12505_v39 = vpop.f32.mrf.mxu1 }
 0x1a5   : > { %10438 = vmatpush.msk.msrb.mxu3 %vm461_vm0, %v3270_v47 }
 0x1a6   : > { %10432 = vmatmul.msk.f32.vlgmr.msrb.gmra.mxu0 %vm457_vm1, %v12357_v5  ;;  %10439 = vmatmul.msk.f32.vlgmr.msrb.gmra.mxu3 %vm457_vm1, %v12474_v56  ;;  %v12533_v49 = vld.sshfl [vmem:[#allocation1 + $0x38] sm:$0xff pattern:$0x75316420] }
 0x1a8   : > { %4287 = vrot.lane.b32.xlu0 %v12348_v61, %s11306_s18 }
 0x1a9   : > { %4289 = vrot.lane.b32.xlu1 %v4275_v17, %s11306_s18  ;;  %4291 = vrot.lane.b32.xlu2 %v4276_v43, %s11306_s18  ;;  %v3062_v25 = vpop.permute.xlu0 %3061  ;;  %v12521_v43 = vld.sshfl [vmem:[#allocation1 + $0x18] sm:$0xff pattern:$0x75316420] }
 0x1aa   : > { %v3070_v4 = vsel %vm3063_vm14, %v12361_v9, %v3062_v25  ;;  %v12523_v9 = vpop.f32.mrf.mxu2  ;;  %v12525_v25 = vpop.f32.mrf.mxu3  ;;  %vm6972_vm14 = vcmask 457728  }
 0x1ab   : > { %v3261_v47 = vpop.permute.xlu1 %3260  ;;  %10433 = vmatpush.msk.msrb.mxu1 %vm461_vm0, %v3070_v4  ;;  %v12512_v17 = vpop.permute.xlu2 %3469  ;;  %15541 = vst [vmem:[#allocation10_spill] sm:$0xff] %v12523_v9  ;;  %v12530_v4 = vld.sshfl [vmem:[#allocation1 + $0x30] sm:$0xff pattern:$0x75316420] }
 0x1ac   : > { %v3273_v61 = vsel %vm3268_vm15, %v3261_v47, %v12408_v59  ;;  %10434 = vmatmul.msk.f32.vlgmr.msrb.gmra.mxu1 %vm457_vm1, %v12357_v5  ;;  %15542 = vst [vmem:[#allocation11_spill] sm:$0xff] %v12525_v25  ;;  %v4855_v5 = vld.sshfl [vmem:[#allocation1 + $0x10] sm:$0xff pattern:$0x75316420]  ;;  %v12546_v23 = vpop.f32.mrf.mxu1 }
 0x1ad   : > { %10444 = vmatpush.msk.msra.mxu2 %vm461_vm0, %v3273_v61  ;;  %5049 = vst [vmem:[#allocation1 + $0x10] ss:$2 sm:$0xff] %v11430_v0 }
 0x1ae   : > { %10445 = vmatmul.msk.f32.vlgmr.msra.gmra.mxu2 %vm457_vm1, %v12474_v56  ;;  %5053 = vst [vmem:[#allocation1 + $0x30] ss:$2 sm:$0xff] %v11437_v3 }
 0x1b0   : > { %4285 = vrot.lane.b32.xlu0 %v12363_v16, %s11306_s18  ;;  %v12535_v16 = vpop.f32.mrf.mxu0  ;;  %s11310_s18 = smov 58  }
 0x1b1   : > { %4661 = vrot.lane.b32.xlu1 %v12411_v10, %s11288_s20  ;;  %4663 = vrot.lane.b32.xlu2 %v4655_v19, %s11288_s20 }
 0x1b2   : > { %v3265_v61 = vpop.permute.xlu0 %3264 }
 0x1b3   : > { %v3259_v14 = vpop.permute.xlu1 %3258  ;;  %v3274_v9 = vsel %vm3268_vm15, %v12408_v59, %v3265_v61  ;;  %v3275_v25 = vsel %vm3268_vm15, %v3265_v61, %v3267_v44  ;;  %v12544_v62 = vpop.permute.xlu2 %3666  ;;  %v10450_v44 = vld [vmem:[%s15535_s1 + $0x78] sm:$0x3f] }
 0x1b4   : > { %v3271_v10 = vsel %vm3268_vm15, %v3257_v38, %v3259_v14  ;;  %v3272_v19 = vsel %vm3268_vm15, %v3259_v14, %v3261_v47  ;;  %10446 = vmatpush.msk.msra.mxu3 %vm461_vm0, %v3274_v9  ;;  %v12562_v59 = vld.sshfl [vmem:[#allocation1 + $0x10] sm:$0xff pattern:$0x75316420]  ;;  %v12564_v14 = vld.sshfl [vmem:[#allocation1 + $0x18] sm:$0xff pattern:$0x75316420]  ;;  %v12570_v47 = vpop.f32.mrf.mxu2 }
 0x1b5   : > { %10440 = vmatpush.msk.msra.mxu0 %vm461_vm0, %v3271_v10  ;;  %10442 = vmatpush.msk.msra.mxu1 %vm461_vm0, %v3272_v19  ;;  %5249 = vst [vmem:[#allocation1 + $0x10] ss:$2 sm:$0xff] %v11430_v0  ;;  %v12586_v0 = vpop.f32.mrf.mxu1  ;;  %v4858_v10 = vld.sshfl [vmem:[#allocation1 + $0x28] sm:$0xff pattern:$0x75316420] }
 0x1b6   : > { %10441 = vmatmul.msk.f32.vlgmr.msra.gmra.mxu0 %vm457_vm1, %v12474_v56  ;;  %10443 = vmatmul.msk.f32.vlgmr.msra.gmra.mxu1 %vm457_vm1, %v12474_v56  ;;  %15543 = vst [vmem:[#allocation12_spill] sm:$0xff] %v12570_v47  ;;  %v4857_v19 = vld.sshfl [vmem:[#allocation1 + $0x20] sm:$0xff pattern:$0x75316420] }
 0x1b7   : > { %10447 = vmatmul.msk.f32.vlgmr.msra.gmra.mxu3 %vm457_vm1, %v12474_v56  ;;  %10448 = vmatpush.msk.msrb.mxu0 %vm461_vm0, %v3275_v25  ;;  %5051 = vst [vmem:[#allocation1 + $0x20] ss:$2 sm:$0xff] %v11434_v2 }
 0x1b8   : > { %4667 = vrot.lane.b32.xlu0 %v12430_v52, %s11288_s20  ;;  %v12572_v52 = vpop.f32.mrf.mxu3  ;;  %v12579_v25 = vpop.f32.mrf.mxu0 }
 0x1b9   : > { %4669 = vrot.lane.b32.xlu1 %v12432_v34, %s11288_s20  ;;  %4671 = vrot.lane.b32.xlu2 %v4659_v53, %s11288_s20  ;;  %15544 = vst [vmem:[#allocation13_spill] sm:$0xff] %v12572_v52 }
 0x1ba   : > { %v3462_v38 = vpop.permute.xlu0 %3461 }
 0x1bb   : > { %v3475_v34 = vsel %vm3473_vm7, %v12441_v11, %v3462_v38  ;;  %v3464_v9 = vpop.permute.xlu1 %3463  ;;  %v12577_v53 = vpop.permute.xlu2 %3662 }
 0x1bc   : > { %10453 = vmatpush.msk.msrb.mxu2 %vm461_vm0, %v3475_v34  ;;  %v3476_v61 = vsel %vm3473_vm7, %v3462_v38, %v3464_v9  ;;  %v12595_v38 = vld.sshfl [vmem:[#allocation1 + $0x8] sm:$0xff pattern:$0x75316420]  ;;  %v12603_v52 = vpop.f32.mrf.mxu2 }
 0x1bd   : > { %10454 = vmatmul.msk.f32.vlgmr.msrb.gmra.mxu2 %vm457_vm1, %v10450_v44  ;;  %10455 = vmatpush.msk.msrb.mxu3 %vm461_vm0, %v3476_v61  ;;  %5247 = vst [vmem:[#allocation1] ss:$2 sm:$0xff] %v11432_v1 }
 0x1be   : > { %10449 = vmatmul.msk.f32.vlgmr.msrb.gmra.mxu0 %vm457_vm1, %v12474_v56  ;;  %15545 = vst [vmem:[#allocation14_spill] sm:$0xff] %v12603_v52  ;;  %v12621_v47 = vld.sshfl [vmem:[#allocation1 + $0x28] sm:$0xff pattern:$0x75316420] }
 0x1bf   : > { %10456 = vmatmul.msk.f32.vlgmr.msrb.gmra.mxu3 %vm457_vm1, %v10450_v44 }
 0x1c0   : > { %4665 = vrot.lane.b32.xlu0 %v12459_v8, %s11288_s20  ;;  %v12611_v1 = vpop.f32.mrf.mxu0 }
 0x1c1   : > { %4861 = vrot.lane.b32.xlu1 %v12480_v46, %s15495_s26  ;;  %4863 = vrot.lane.b32.xlu2 %v4855_v5, %s15495_s26  ;;  %v12605_v46 = vpop.f32.mrf.mxu3  ;;  %15546 = vst [vmem:[#allocation15_spill] sm:$0xff] %v12611_v1 }
 0x1c2   : > { %v3458_v34 = vpop.permute.xlu0 %3457 }
 0x1c3   : > { %v3474_v56 = vsel %vm3473_vm7, %v3458_v34, %v12441_v11  ;;  %v3468_v61 = vpop.permute.xlu1 %3467  ;;  %v12601_v8 = vpop.permute.xlu2 %3676  ;;  %v5057_v34 = vld.sshfl [vmem:[#allocation1 + $0x20] sm:$0xff pattern:$0x75316420] }
 0x1c4   : > { %10451 = vmatpush.msk.msrb.mxu1 %vm461_vm0, %v3474_v56  ;;  %v3479_v5 = vsel %vm3473_vm7, %v3468_v61, %v12512_v17  ;;  %v12616_v11 = vpop.f32.mrf.mxu1  ;;  %5251 = vst [vmem:[#allocation1 + $0x20] ss:$2 sm:$0xff] %v11434_v2  ;;  %v5059_v2 = vld.sshfl [vmem:[#allocation1 + $0x30] sm:$0xff pattern:$0x75316420] }
 0x1c5   : > { %10452 = vmatmul.msk.f32.vlgmr.msrb.gmra.mxu1 %vm457_vm1, %v10450_v44  ;;  %10461 = vmatpush.msk.msra.mxu2 %vm461_vm0, %v3479_v5  ;;  %15547 = vst [vmem:[#allocation16_spill] sm:$0xff] %v12616_v11 }
 0x1c6   : > { %10462 = vmatmul.msk.f32.vlgmr.msra.gmra.mxu2 %vm457_vm1, %v10450_v44 }
 0x1c8   : > { %4865 = vrot.lane.b32.xlu0 %v12521_v43, %s15495_s26 }
 0x1c9   : > { %4673 = vrot.lane.b32.xlu1 %v12502_v58, %s11288_s20  ;;  %4869 = vrot.lane.b32.xlu2 %v4858_v10, %s15495_s26  ;;  %v12632_v58 = vpop.f32.mrf.mxu2  ;;  %v12634_v10 = vpop.f32.mrf.mxu3 }
 0x1ca   : > { %v3472_v56 = vpop.permute.xlu0 %3471  ;;  %15548 = vst [vmem:[#allocation17_spill] sm:$0xff] %v12632_v58 }
 0x1cb   : > { %v3480_v5 = vsel %vm3473_vm7, %v12512_v17, %v3472_v56  ;;  %v3466_v1 = vpop.permute.xlu1 %3465  ;;  %v3673_v43 = vpop.permute.xlu2 %3672  ;;  %15549 = vst [vmem:[#allocation18_spill] sm:$0xff] %v12634_v10  ;;  %v5060_v17 = vld.sshfl [vmem:[#allocation1 + $0x38] sm:$0xff pattern:$0x75316420] }
 0x1cc   : > { %10463 = vmatpush.msk.msra.mxu3 %vm461_vm0, %v3480_v5  ;;  %v3477_v11 = vsel %vm3473_vm7, %v3464_v9, %v3466_v1  ;;  %v3478_v52 = vsel %vm3473_vm7, %v3466_v1, %v3468_v61  ;;  %5253 = vst [vmem:[#allocation1 + $0x30] ss:$2 sm:$0xff] %v11437_v3  ;;  %v12641_v9 = vpop.f32.mrf.mxu0  ;;  %v12649_v61 = vpop.f32.mrf.mxu1  ;;  %vm10150_vm7 = vcmask 73728  }
 0x1cd   : > { %10464 = vmatmul.msk.f32.vlgmr.msra.gmra.mxu3 %vm457_vm1, %v10450_v44  ;;  %10457 = vmatpush.msk.msra.mxu0 %vm461_vm0, %v3477_v11 }
 0x1ce   : > { %10459 = vmatpush.msk.msra.mxu1 %vm461_vm0, %v3478_v52  ;;  %10458 = vmatmul.msk.f32.vlgmr.msra.gmra.mxu0 %vm457_vm1, %v10450_v44 }
 0x1cf   : > { %10460 = vmatmul.msk.f32.vlgmr.msra.gmra.mxu1 %vm457_vm1, %v10450_v44  ;;  %v10465_v44 = vld [vmem:[%s15535_s1 + $0x80] sm:$0x3f] }
 0x1d0   : > { %4871 = vrot.lane.b32.xlu0 %v12530_v4, %s15495_s26 }
 0x1d1   : > { %4873 = vrot.lane.b32.xlu1 %v12533_v49, %s15495_s26  ;;  %4867 = vrot.lane.b32.xlu2 %v4857_v19, %s15495_s26  ;;  %v12662_v49 = vpop.f32.mrf.mxu2  ;;  %v12664_v19 = vpop.f32.mrf.mxu3 }
 0x1d2   : > { %v3669_v52 = vpop.permute.xlu0 %3668 }
 0x1d3   : > { %v3681_v4 = vsel %vm3678_vm8, %v12544_v62, %v3669_v52  ;;  %v3671_v1 = vpop.permute.xlu1 %3670  ;;  %v12654_v3 = vpop.permute.xlu2 %3877 }
 0x1d4   : > { %10470 = vmatpush.msk.msrb.mxu2 %vm461_vm0, %v3681_v4  ;;  %v3682_v11 = vsel %vm3678_vm8, %v3669_v52, %v3671_v1  ;;  %v12669_v5 = vpop.f32.mrf.mxu0 }
 0x1d5   : > { %10471 = vmatmul.msk.f32.vlgmr.msrb.gmra.mxu2 %vm457_vm1, %v10465_v44  ;;  %10472 = vmatpush.msk.msrb.mxu3 %vm461_vm0, %v3682_v11  ;;  %15550 = vst [vmem:[#allocation19_spill] sm:$0xff] %v12669_v5 }
 0x1d6   : > { %10473 = vmatmul.msk.f32.vlgmr.msrb.gmra.mxu3 %vm457_vm1, %v10465_v44 }
 0x1d8   : > { %5063 = vrot.lane.b32.xlu0 %v12562_v59, %s11290_s28 }
 0x1d9   : > { %5065 = vrot.lane.b32.xlu1 %v12564_v14, %s11290_s28  ;;  %5067 = vrot.lane.b32.xlu2 %v5057_v34, %s11290_s28  ;;  %v3683_v14 = vsel %vm3678_vm8, %v3671_v1, %v3673_v43 }
 0x1da   : > { %v3665_v56 = vpop.permute.xlu0 %3664 }
 0x1db   : > { %v3679_v52 = vsel %vm3678_vm8, %v12577_v53, %v3665_v56  ;;  %v3680_v4 = vsel %vm3678_vm8, %v3665_v56, %v12544_v62  ;;  %v3675_v11 = vpop.permute.xlu1 %3674  ;;  %v12677_v59 = vpop.permute.xlu2 %4074  ;;  %v12702_v56 = vld [vmem:[%s15535_s1 + $0x88] sm:$0x3f] }
 0x1dc   : > { %10466 = vmatpush.msk.msrb.mxu0 %vm461_vm0, %v3679_v52  ;;  %10468 = vmatpush.msk.msrb.mxu1 %vm461_vm0, %v3680_v4  ;;  %v3684_v34 = vsel %vm3678_vm8, %v3673_v43, %v3675_v11  ;;  %v3685_v5 = vsel %vm3678_vm8, %v3675_v11, %v12601_v8  ;;  %v12685_v53 = vpop.f32.mrf.mxu1  ;;  %v12695_v8 = vpop.f32.mrf.mxu2  ;;  %v5257_v4 = vld.sshfl [vmem:[#allocation1 + $0x20] sm:$0xff pattern:$0x75316420] }
 0x1dd   : > { %10467 = vmatmul.msk.f32.vlgmr.msrb.gmra.mxu0 %vm457_vm1, %v10465_v44  ;;  %10469 = vmatmul.msk.f32.vlgmr.msrb.gmra.mxu1 %vm457_vm1, %v10465_v44  ;;  %15551 = vst [vmem:[#allocation20_spill] sm:$0xff] %v12695_v8  ;;  %v12697_v43 = vpop.f32.mrf.mxu3  ;;  %v12704_v52 = vpop.f32.mrf.mxu0 }
 0x1de   : > { %10478 = vmatpush.msk.msra.mxu2 %vm461_vm0, %v3685_v5  ;;  %10474 = vmatpush.msk.msra.mxu0 %vm461_vm0, %v3683_v14  ;;  %15552 = vst [vmem:[#allocation21_spill] sm:$0xff] %v12697_v43  ;;  %v5258_v43 = vld.sshfl [vmem:[#allocation1 + $0x28] sm:$0xff pattern:$0x75316420] }
 0x1df   : > { %10476 = vmatpush.msk.msra.mxu1 %vm461_vm0, %v3684_v34  ;;  %10479 = vmatmul.msk.f32.vlgmr.msra.gmra.mxu2 %vm457_vm1, %v10465_v44  ;;  %15553 = vst [vmem:[#allocation22_spill] sm:$0xff] %v12704_v52  ;;  %v12747_v52 = vld [vmem:[%s15535_s1 + $0x90] sm:$0x3f] }
 0x1e0   : > { %5061 = vrot.lane.b32.xlu0 %v12595_v38, %s11290_s28 }
 0x1e1   : > { %5071 = vrot.lane.b32.xlu1 %v5059_v2, %s11290_s28  ;;  %5073 = vrot.lane.b32.xlu2 %v5060_v17, %s11290_s28  ;;  %v5256_v17 = vld.sshfl [vmem:[#allocation1 + $0x18] sm:$0xff pattern:$0x75316420] }
 0x1e2   : > { %v3868_v62 = vpop.permute.xlu0 %3867 }
 0x1e3   : > { %v3870_v1 = vpop.permute.xlu1 %3869  ;;  %v3882_v5 = vpop.permute.xlu2 %3881 }
 0x1e4   : > { %v3884_v38 = vsel %vm3883_vm9, %v3868_v62, %v3870_v1  ;;  %v12709_v2 = vpop.f32.mrf.mxu1 }
 0x1e5   : > { %10475 = vmatmul.msk.f32.vlgmr.msra.gmra.mxu0 %vm457_vm1, %v10465_v44  ;;  %10477 = vmatmul.msk.f32.vlgmr.msra.gmra.mxu1 %vm457_vm1, %v10465_v44  ;;  %15554 = vst [vmem:[#allocation23_spill] sm:$0xff] %v12709_v2  ;;  %v12720_v44 = vpop.f32.mrf.mxu3  ;;  %v12725_v2 = vpop.f32.mrf.mxu2 }
 0x1e6   : > { %10481 = vmatpush.msk.msra.mxu3 %vm461_vm0, %v3884_v38  ;;  %15555 = vst [vmem:[#allocation24_spill] sm:$0xff] %v12720_v44 }
 0x1e7   : > { %10482 = vmatmul.msk.f32.vlgmr.msra.gmra.mxu3 %vm457_vm1, %v12702_v56 }
 0x1e8   : > { %5069 = vrot.lane.b32.xlu0 %v12621_v47, %s11290_s28  ;;  %v5254_v47 = vld.sshfl [vmem:[#allocation1 + $0x8] sm:$0xff pattern:$0x75316420]  ;;  %s11244_s28 = scalar_lea.hbm %s15482_s12, 2 }
 0x1e9   : > { %5265 = vrot.lane.b32.xlu1 %v5256_v17, %s11291_s29  ;;  %5267 = vrot.lane.b32.xlu2 %v5257_v4, %s11291_s29  ;;  %v5255_v17 = vld.sshfl [vmem:[#allocation1 + $0x10] sm:$0xff pattern:$0x75316420]  ;;  %v12729_v4 = vpop.f32.mrf.mxu0 }
 0x1ea   : > { %v3874_v11 = vpop.permute.xlu0 %3873 }
 0x1eb   : > { %v3876_v14 = vpop.permute.xlu1 %3875  ;;  %v12718_v34 = vpop.permute.xlu2 %4084 }
 0x1ec   : > { %v3888_v62 = vsel %vm3883_vm9, %v3876_v14, %v12654_v3  ;;  %v3887_v38 = vsel %vm3883_vm9, %v3874_v11, %v3876_v14  ;;  %v12735_v8 = vpop.f32.mrf.mxu1 }
 0x1ed   : > { %10487 = vmatpush.msk.msrb.mxu2 %vm461_vm0, %v3887_v38  ;;  %10489 = vmatpush.msk.msrb.mxu3 %vm461_vm0, %v3888_v62 }
 0x1ee   : > { %10488 = vmatmul.msk.f32.vlgmr.msrb.gmra.mxu2 %vm457_vm1, %v12702_v56 }
 0x1ef   : > { %10490 = vmatmul.msk.f32.vlgmr.msrb.gmra.mxu3 %vm457_vm1, %v12702_v56 }
 0x1f0   : > { %5269 = vrot.lane.b32.xlu0 %v5258_v43, %s11291_s29 }
 0x1f1   : > { %5261 = vrot.lane.b32.xlu1 %v5254_v47, %s11291_s29  ;;  %5263 = vrot.lane.b32.xlu2 %v5255_v17, %s11291_s29  ;;  %v12751_v47 = vpop.f32.mrf.mxu3 }
 0x1f2   : > { %v3872_v14 = vpop.permute.xlu0 %3871  ;;  %15556 = vst [vmem:[#allocation25_spill] sm:$0xff] %v12751_v47 }
 0x1f3   : > { %v3885_v62 = vsel %vm3883_vm9, %v3870_v1, %v3872_v14  ;;  %v3886_v38 = vsel %vm3883_vm9, %v3872_v14, %v3874_v11  ;;  %v4073_v44 = vpop.permute.xlu1 %4072  ;;  %v12749_v43 = vpop.permute.xlu2 %4281  ;;  %v5260_v1 = vld.sshfl [vmem:[#allocation1 + $0x38] sm:$0xff pattern:$0x75316420]  ;;  %v5259_v14 = vld.sshfl [vmem:[#allocation1 + $0x30] sm:$0xff pattern:$0x75316420] }
 0x1f4   : > { %10483 = vmatpush.msk.msrb.mxu0 %vm461_vm0, %v3885_v62  ;;  %10485 = vmatpush.msk.msrb.mxu1 %vm461_vm0, %v3886_v38  ;;  %v4089_v17 = vsel %vm4088_vm10, %v4073_v44, %v12677_v59  ;;  %v12759_v11 = vpop.f32.mrf.mxu2  ;;  %v12762_v62 = vpop.f32.mrf.mxu0 }
 0x1f5   : > { %10484 = vmatmul.msk.f32.vlgmr.msrb.gmra.mxu0 %vm457_vm1, %v12702_v56  ;;  %10486 = vmatmul.msk.f32.vlgmr.msrb.gmra.mxu1 %vm457_vm1, %v12702_v56  ;;  %15557 = vst [vmem:[#allocation26_spill] sm:$0xff] %v12759_v11  ;;  %v12766_v38 = vpop.f32.mrf.mxu1 }
 0x1f6   : > { %10496 = vmatpush.msk.msra.mxu2 %vm461_vm0, %v4089_v17  ;;  %15558 = vst [vmem:[#allocation27_spill] sm:$0xff] %v12762_v62 }
 0x1f7   : > { %10497 = vmatmul.msk.f32.vlgmr.msra.gmra.mxu2 %vm457_vm1, %v12747_v52  ;;  %15559 = vst [vmem:[#allocation28_spill] sm:$0xff] %v12766_v38 }
 0x1f8   : > { %5273 = vrot.lane.b32.xlu0 %v5260_v1, %s11291_s29 }
 0x1f9   : > { %5271 = vrot.lane.b32.xlu1 %v5259_v14, %s11291_s29  ;;  %v12782_v1 = vpop.f32.mrf.mxu3 }
 0x1fa   : > { %v4077_v44 = vpop.permute.xlu0 %4076  ;;  %15561 = vst [vmem:[#allocation30_spill] sm:$0xff] %v12782_v1 }
 0x1fb   : > { %v4090_v47 = vsel %vm4088_vm10, %v12677_v59, %v4077_v44  ;;  %v3880_v10 = vpop.permute.xlu1 %3879  ;;  %v4278_v17 = vpop.permute.xlu2 %4277 }
 0x1fc   : > { %10498 = vmatpush.msk.msra.mxu3 %vm461_vm0, %v4090_v47  ;;  %v3889_v11 = vsel %vm3883_vm9, %v12654_v3, %v3880_v10  ;;  %v3890_v62 = vsel %vm3883_vm9, %v3880_v10, %v3882_v5  ;;  %v12778_v38 = vpop.f32.mrf.mxu2  ;;  %v12788_v3 = vpop.f32.mrf.mxu0 }
 0x1fd   : > { %10499 = vmatmul.msk.f32.vlgmr.msra.gmra.mxu3 %vm457_vm1, %v12747_v52  ;;  %15560 = vst [vmem:[#allocation29_spill] sm:$0xff] %v12778_v38  ;;  %10491 = vmatpush.msk.msra.mxu0 %vm461_vm0, %v3889_v11  ;;  %v12790_v10 = vpop.f32.mrf.mxu1 }
 0x1fe   : > { %10493 = vmatpush.msk.msra.mxu1 %vm461_vm0, %v3890_v62  ;;  %10492 = vmatmul.msk.f32.vlgmr.msra.gmra.mxu0 %vm457_vm1, %v12702_v56 }
 0x1ff   : > { %10494 = vmatmul.msk.f32.vlgmr.msra.gmra.mxu1 %vm457_vm1, %v12702_v56 }
 0x201   : > { %v12803_v62 = vpop.f32.mrf.mxu3 }
 0x202   : > { %v4081_v59 = vpop.permute.xlu0 %4080  ;;  %15563 = vst [vmem:[#allocation32_spill] sm:$0xff] %v12803_v62 }
 0x203   : > { %v4083_v5 = vpop.permute.xlu1 %4082  ;;  %v4292_v47 = vpop.permute.xlu2 %4291 }
 0x204   : > { %v4093_v14 = vsel %vm4088_vm10, %v4081_v59, %v4083_v5  ;;  %v4094_v11 = vsel %vm4088_vm10, %v4083_v5, %v12718_v34  ;;  %v12801_v56 = vpop.f32.mrf.mxu2  ;;  %v12805_v1 = vpop.f32.mrf.mxu0 }
 0x205   : > { %10504 = vmatpush.msk.msrb.mxu2 %vm461_vm0, %v4093_v14  ;;  %10506 = vmatpush.msk.msrb.mxu3 %vm461_vm0, %v4094_v11  ;;  %15562 = vst [vmem:[#allocation31_spill] sm:$0xff] %v12801_v56  ;;  %v12807_v38 = vpop.f32.mrf.mxu1  ;;  %v10510_v56 = vld [vmem:[%s15535_s1 + $0x98] sm:$0x3f] }
 0x206   : > { %10505 = vmatmul.msk.f32.vlgmr.msrb.gmra.mxu2 %vm457_vm1, %v12747_v52  ;;  %10507 = vmatmul.msk.f32.vlgmr.msrb.gmra.mxu3 %vm457_vm1, %v12747_v52  ;;  %15564 = vst [vmem:[#allocation33_spill] sm:$0xff] %v12805_v1 }
 0x207   : > { %15565 = vst [vmem:[#allocation34_spill] sm:$0xff] %v12807_v38 }
 0x20a   : > { %v4079_v58 = vpop.permute.xlu0 %4078 }
 0x20b   : > { %v4091_v5 = vsel %vm4088_vm10, %v4077_v44, %v4079_v58  ;;  %v4092_v14 = vsel %vm4088_vm10, %v4079_v58, %v4081_v59  ;;  %v4280_v11 = vpop.permute.xlu1 %4279  ;;  %v12816_v62 = vpop.permute.xlu2 %4663 }
 0x20c   : > { %10500 = vmatpush.msk.msrb.mxu0 %vm461_vm0, %v4091_v5  ;;  %10502 = vmatpush.msk.msrb.mxu1 %vm461_vm0, %v4092_v14  ;;  %v4295_v38 = vsel %vm4293_vm12, %v4280_v11, %v12749_v43  ;;  %v4294_v1 = vsel %vm4293_vm12, %v4278_v17, %v4280_v11  ;;  %v12828_v58 = vpop.f32.mrf.mxu2  ;;  %v12830_v44 = vpop.f32.mrf.mxu3 }
 0x20d   : > { %10501 = vmatmul.msk.f32.vlgmr.msrb.gmra.mxu0 %vm457_vm1, %v12747_v52  ;;  %10503 = vmatmul.msk.f32.vlgmr.msrb.gmra.mxu1 %vm457_vm1, %v12747_v52  ;;  %15566 = vst [vmem:[#allocation35_spill] sm:$0xff] %v12828_v58  ;;  %v12832_v5 = vpop.f32.mrf.mxu0  ;;  %v12836_v14 = vpop.f32.mrf.mxu1 }
 0x20e   : > { %10513 = vmatpush.msk.msra.mxu2 %vm461_vm0, %v4295_v38  ;;  %10511 = vmatpush.msk.msra.mxu1 %vm461_vm0, %v4294_v1  ;;  %15567 = vst [vmem:[#allocation36_spill] sm:$0xff] %v12830_v44 }
 0x20f   : > { %10514 = vmatmul.msk.f32.vlgmr.msra.gmra.mxu2 %vm457_vm1, %v10510_v56  ;;  %15568 = vst [vmem:[#allocation37_spill] sm:$0xff] %v12832_v5 }
 0x210   : > { %15569 = vst [vmem:[#allocation38_spill] sm:$0xff] %v12836_v14 }
 0x212   : > { %v4284_v59 = vpop.permute.xlu0 %4283 }
 0x213   : > { %v4296_v17 = vsel %vm4293_vm12, %v12749_v43, %v4284_v59  ;;  %v4087_v11 = vpop.permute.xlu1 %4086  ;;  %v12843_v1 = vpop.permute.xlu2 %4671 }
 0x214   : > { %10515 = vmatpush.msk.msra.mxu3 %vm461_vm0, %v4296_v17  ;;  %v4095_v38 = vsel %vm4088_vm10, %v12718_v34, %v4087_v11  ;;  %v12848_v43 = vpop.f32.mrf.mxu2  ;;  %v12850_v58 = vpop.f32.mrf.mxu3 }
 0x215   : > { %10512 = vmatmul.msk.f32.vlgmr.msra.gmra.mxu1 %vm457_vm1, %v10510_v56  ;;  %10516 = vmatmul.msk.f32.vlgmr.msra.gmra.mxu3 %vm457_vm1, %v10510_v56  ;;  %v12852_v17 = vpop.f32.mrf.mxu0  ;;  %v12854_v14 = vpop.f32.mrf.mxu1 }
 0x216   : > { %10508 = vmatpush.msk.msra.mxu0 %vm461_vm0, %v4095_v38  ;;  %15570 = vst [vmem:[#allocation39_spill] sm:$0xff] %v12852_v17 }
 0x217   : > { %10509 = vmatmul.msk.f32.vlgmr.msra.gmra.mxu0 %vm457_vm1, %v12747_v52 }
 0x21a   : > { %v4288_v44 = vpop.permute.xlu0 %4287 }
 0x21b   : > { %v4290_v34 = vpop.permute.xlu1 %4289  ;;  %v4864_v52 = vpop.permute.xlu2 %4863 }
 0x21c   : > { %v4299_v11 = vsel %vm4293_vm12, %v4288_v44, %v4290_v34  ;;  %v4300_v5 = vsel %vm4293_vm12, %v4290_v34, %v4292_v47  ;;  %v12868_v47 = vpop.f32.mrf.mxu2  ;;  %v12870_v34 = vpop.f32.mrf.mxu3 }
 0x21d   : > { %10521 = vmatpush.msk.msrb.mxu2 %vm461_vm0, %v4299_v11  ;;  %10523 = vmatpush.msk.msrb.mxu3 %vm461_vm0, %v4300_v5  ;;  %15571 = vst [vmem:[#allocation40_spill] sm:$0xff] %v12868_v47 }
 0x21e   : > { %10522 = vmatmul.msk.f32.vlgmr.msrb.gmra.mxu2 %vm457_vm1, %v10510_v56  ;;  %10524 = vmatmul.msk.f32.vlgmr.msrb.gmra.mxu3 %vm457_vm1, %v10510_v56  ;;  %15572 = vst [vmem:[#allocation41_spill] sm:$0xff] %v12870_v34 }
 0x21f   : > { %10532 = vmatpush.msk.msra.mxu3 %vm461_vm0, %v12398_v36  ;;  %10530 = vmatpush.msk.msra.mxu2 %vm461_vm0, %v12385_v26  ;;  %v10525_v26 = vld [vmem:[%s15535_s1 + $0xa0] sm:$0x3f] }
 0x221   : > { %10538 = vmatpush.msk.msrb.mxu2 %vm461_vm0, %v12469_v33  ;;  %v12883_v33 = vpop.f32.mrf.mxu0 }
 0x222   : > { %v4286_v38 = vpop.permute.xlu0 %4285  ;;  %15573 = vst [vmem:[#allocation42_spill] sm:$0xff] %v12883_v33 }
 0x223   : > { %v4297_v5 = vsel %vm4293_vm12, %v4284_v59, %v4286_v38  ;;  %v4298_v11 = vsel %vm4293_vm12, %v4286_v38, %v4288_v44  ;;  %v4662_v17 = vpop.permute.xlu1 %4661  ;;  %v12885_v59 = vpop.f32.mrf.mxu1 }
 0x224   : > { %10517 = vmatpush.msk.msrb.mxu0 %vm461_vm0, %v4297_v5  ;;  %10519 = vmatpush.msk.msrb.mxu1 %vm461_vm0, %v4298_v11  ;;  %v4675_v36 = vsel %vm450_vm2, %v4662_v17, %v12816_v62  ;;  %15574 = vst [vmem:[#allocation43_spill] sm:$0xff] %v12885_v59  ;;  %v12901_v38 = vpop.f32.mrf.mxu2  ;;  %v12903_v5 = vpop.f32.mrf.mxu3 }
 0x225   : > { %10518 = vmatmul.msk.f32.vlgmr.msrb.gmra.mxu0 %vm457_vm1, %v10510_v56  ;;  %10520 = vmatmul.msk.f32.vlgmr.msrb.gmra.mxu1 %vm457_vm1, %v10510_v56  ;;  %v4870_v56 = vpop.permute.xlu2 %4869  ;;  %15575 = vst [vmem:[#allocation44_spill] sm:$0xff] %v12903_v5 }
 0x226   : > { %10541 = vmatpush.msk.msrb.mxu3 %vm461_vm0, %v4675_v36  ;;  %10526 = vmatpush.msk.msra.mxu0 %vm461_vm0, %v12365_v18  ;;  %v10540_v18 = vld [vmem:[%s15535_s1 + $0xa8] sm:$0x3f] }
 0x227   : > { %10531 = vmatmul.msk.f32.vlgmr.msra.gmra.mxu2 %vm457_vm1, %v10525_v26  ;;  %10533 = vmatmul.msk.f32.vlgmr.msra.gmra.mxu3 %vm457_vm1, %v10525_v26 }
 0x228   : > { %10528 = vmatpush.msk.msra.mxu1 %vm461_vm0, %v12383_v24  ;;  %10534 = vmatpush.msk.msrb.mxu0 %vm461_vm0, %v12400_v37 }
 0x229   : > { %v12910_v37 = vpop.f32.mrf.mxu0 }
 0x22a   : > { %10536 = vmatpush.msk.msrb.mxu1 %vm461_vm0, %v12467_v30  ;;  %v4668_v44 = vpop.permute.xlu0 %4667 }
 0x22b   : > { %v4670_v17 = vpop.permute.xlu1 %4669  ;;  %v12912_v30 = vpop.f32.mrf.mxu1 }
 0x22c   : > { %v4678_v11 = vsel %vm450_vm2, %v4668_v44, %v4670_v17  ;;  %v4679_v24 = vsel %vm450_vm2, %v4670_v17, %v12843_v1  ;;  %v12923_v5 = vpop.f32.mrf.mxu2 }
 0x22d   : > { %10527 = vmatmul.msk.f32.vlgmr.msra.gmra.mxu0 %vm457_vm1, %v10525_v26  ;;  %10529 = vmatmul.msk.f32.vlgmr.msra.gmra.mxu1 %vm457_vm1, %v10525_v26  ;;  %v4868_v47 = vpop.permute.xlu2 %4867  ;;  %15576 = vst [vmem:[#allocation45_spill] sm:$0xff] %v12923_v5 }
 0x22e   : > { %10547 = vmatpush.msk.msra.mxu2 %vm461_vm0, %v4678_v11  ;;  %10549 = vmatpush.msk.msra.mxu3 %vm461_vm0, %v4679_v24  ;;  %v12925_v11 = vpop.f32.mrf.mxu3 }
 0x22f   : > { %10539 = vmatmul.msk.f32.vlgmr.msrb.gmra.mxu2 %vm457_vm1, %v10525_v26  ;;  %10542 = vmatmul.msk.f32.vlgmr.msrb.gmra.mxu3 %vm457_vm1, %v10540_v18  ;;  %15577 = vst [vmem:[#allocation46_spill] sm:$0xff] %v12925_v11 }
 0x231   : > { %v12930_v33 = vpop.f32.mrf.mxu0 }
 0x232   : > { %v4666_v36 = vpop.permute.xlu0 %4665  ;;  %15578 = vst [vmem:[#allocation47_spill] sm:$0xff] %v12930_v33 }
 0x233   : > { %v4676_v17 = vsel %vm450_vm2, %v12816_v62, %v4666_v36  ;;  %v4677_v34 = vsel %vm450_vm2, %v4666_v36, %v4668_v44  ;;  %v4862_v59 = vpop.permute.xlu1 %4861  ;;  %v12932_v62 = vpop.f32.mrf.mxu1 }
 0x234   : > { %10543 = vmatpush.msk.msra.mxu0 %vm461_vm0, %v4676_v17  ;;  %10545 = vmatpush.msk.msra.mxu1 %vm461_vm0, %v4677_v34  ;;  %v4875_v24 = vsel %vm817_vm3, %v4862_v59, %v4864_v52  ;;  %15579 = vst [vmem:[#allocation48_spill] sm:$0xff] %v12932_v62  ;;  %v4878_v17 = vsel %vm817_vm3, %v4868_v47, %v4870_v56 }
 0x235   : > { %10535 = vmatmul.msk.f32.vlgmr.msrb.gmra.mxu0 %vm457_vm1, %v10525_v26  ;;  %10537 = vmatmul.msk.f32.vlgmr.msrb.gmra.mxu1 %vm457_vm1, %v10525_v26  ;;  %v10555_v26 = vld [vmem:[%s15535_s1 + $0xb0] sm:$0x3f]  ;;  %v5068_v5 = vpop.permute.xlu2 %5067 }
 0x236   : > { %10556 = vmatpush.msk.msrb.mxu2 %vm461_vm0, %v4875_v24 }
 0x237   : > { %10548 = vmatmul.msk.f32.vlgmr.msra.gmra.mxu2 %vm457_vm1, %v10540_v18  ;;  %10550 = vmatmul.msk.f32.vlgmr.msra.gmra.mxu3 %vm457_vm1, %v10540_v18 }
 0x23a   : > { %v4866_v34 = vpop.permute.xlu0 %4865 }
 0x23b   : > { %v4876_v44 = vsel %vm817_vm3, %v4864_v52, %v4866_v34  ;;  %v4674_v36 = vpop.permute.xlu1 %4673  ;;  %v4877_v59 = vsel %vm817_vm3, %v4866_v34, %v4868_v47  ;;  %v12948_v52 = vpop.f32.mrf.mxu3 }
 0x23c   : > { %10558 = vmatpush.msk.msrb.mxu3 %vm461_vm0, %v4876_v44  ;;  %v4680_v24 = vsel %vm450_vm2, %v12843_v1, %v4674_v36  ;;  %10553 = vmatpush.msk.msrb.mxu1 %vm461_vm0, %v4674_v36  ;;  %15580 = vst [vmem:[#allocation49_spill] sm:$0xff] %v12948_v52  ;;  %v12952_v44 = vpop.f32.mrf.mxu2  ;;  %v12956_v47 = vpop.f32.mrf.mxu0 }
 0x23d   : > { %10544 = vmatmul.msk.f32.vlgmr.msra.gmra.mxu0 %vm457_vm1, %v10540_v18  ;;  %10546 = vmatmul.msk.f32.vlgmr.msra.gmra.mxu1 %vm457_vm1, %v10540_v18  ;;  %15581 = vst [vmem:[#allocation50_spill] sm:$0xff] %v12952_v44  ;;  %v12958_v1 = vpop.f32.mrf.mxu1 }
 0x23e   : > { %10551 = vmatpush.msk.msrb.mxu0 %vm461_vm0, %v4680_v24  ;;  %10562 = vmatpush.msk.msra.mxu1 %vm461_vm0, %v4878_v17 }
 0x23f   : > { %10557 = vmatmul.msk.f32.vlgmr.msrb.gmra.mxu2 %vm457_vm1, %v10555_v26  ;;  %10559 = vmatmul.msk.f32.vlgmr.msrb.gmra.mxu3 %vm457_vm1, %v10555_v26 }
 0x240   : > { %10560 = vmatpush.msk.msra.mxu0 %vm461_vm0, %v4877_v59  ;;  %v5074_v59 = vpop.permute.xlu2 %5073 }
 0x242   : > { %v4872_v34 = vpop.permute.xlu0 %4871 }
 0x243   : > { %v4879_v36 = vsel %vm817_vm3, %v4870_v56, %v4872_v34  ;;  %v4874_v24 = vpop.permute.xlu1 %4873  ;;  %v12972_v17 = vpop.f32.mrf.mxu3 }
 0x244   : > { %v4880_v52 = vsel %vm817_vm3, %v4872_v34, %v4874_v24  ;;  %10564 = vmatpush.msk.msra.mxu2 %vm461_vm0, %v4879_v36  ;;  %v12968_v62 = vpop.f32.mrf.mxu2  ;;  %15583 = vst [vmem:[#allocation52_spill] sm:$0xff] %v12972_v17  ;;  %v12977_v34 = vpop.f32.mrf.mxu0 }
 0x245   : > { %10552 = vmatmul.msk.f32.vlgmr.msrb.gmra.mxu0 %vm457_vm1, %v10540_v18  ;;  %10566 = vmatpush.msk.msra.mxu3 %vm461_vm0, %v4880_v52  ;;  %15582 = vst [vmem:[#allocation51_spill] sm:$0xff] %v12968_v62  ;;  %v12974_v56 = vpop.f32.mrf.mxu1 }
 0x246   : > { %10554 = vmatmul.msk.f32.vlgmr.msrb.gmra.mxu1 %vm457_vm1, %v10540_v18  ;;  %15584 = vst [vmem:[#allocation53_spill] sm:$0xff] %v12974_v56  ;;  %10568 = vmatpush.msk.msrb.mxu0 %vm461_vm0, %v4874_v24  ;;  %v10570_v18 = vld [vmem:[%s15535_s1 + $0xb8] sm:$0x3f] }
 0x247   : > { %10565 = vmatmul.msk.f32.vlgmr.msra.gmra.mxu2 %vm457_vm1, %v10555_v26  ;;  %10567 = vmatmul.msk.f32.vlgmr.msra.gmra.mxu3 %vm457_vm1, %v10555_v26  ;;  %15585 = vst [vmem:[#allocation54_spill] sm:$0xff] %v12977_v34 }
 0x248   : > { %v5268_v34 = vpop.permute.xlu2 %5267 }
 0x24a   : > { %v5064_v36 = vpop.permute.xlu0 %5063 }
 0x24b   : > { %v5066_v33 = vpop.permute.xlu1 %5065  ;;  %v12988_v24 = vpop.f32.mrf.mxu3 }
 0x24c   : > { %v5076_v52 = vsel %vm1018_vm4, %v5064_v36, %v5066_v33  ;;  %v5077_v44 = vsel %vm1018_vm4, %v5066_v33, %v5068_v5  ;;  %15586 = vst [vmem:[#allocation55_spill] sm:$0xff] %v12988_v24  ;;  %v12992_v56 = vpop.f32.mrf.mxu2  ;;  %v12995_v62 = vpop.f32.mrf.mxu0 }
 0x24d   : > { %10561 = vmatmul.msk.f32.vlgmr.msra.gmra.mxu0 %vm457_vm1, %v10555_v26  ;;  %10573 = vmatpush.msk.msrb.mxu2 %vm461_vm0, %v5076_v52  ;;  %15587 = vst [vmem:[#allocation56_spill] sm:$0xff] %v12992_v56  ;;  %v12997_v33 = vpop.f32.mrf.mxu1 }
 0x24e   : > { %10563 = vmatmul.msk.f32.vlgmr.msra.gmra.mxu1 %vm457_vm1, %v10555_v26  ;;  %10575 = vmatpush.msk.msrb.mxu3 %vm461_vm0, %v5077_v44  ;;  %15588 = vst [vmem:[#allocation57_spill] sm:$0xff] %v12995_v62 }
 0x24f   : > { %10574 = vmatmul.msk.f32.vlgmr.msrb.gmra.mxu2 %vm457_vm1, %v10570_v18  ;;  %10576 = vmatmul.msk.f32.vlgmr.msrb.gmra.mxu3 %vm457_vm1, %v10570_v18  ;;  %15589 = vst [vmem:[#allocation58_spill] sm:$0xff] %v12997_v33 }
 0x250   : > { %10583 = vmatpush.msk.msra.mxu3 %vm461_vm0, %v5074_v59 }
 0x252   : > { %v5062_v17 = vpop.permute.xlu0 %5061 }
 0x253   : > { %v5075_v52 = vsel %vm1018_vm4, %v5062_v17, %v5064_v36  ;;  %v5072_v11 = vpop.permute.xlu1 %5071  ;;  %v13009_v56 = vpop.f32.mrf.mxu3 }
 0x254   : > { %10571 = vmatpush.msk.msrb.mxu1 %vm461_vm0, %v5075_v52  ;;  %v5080_v44 = vsel %vm1018_vm4, %v5072_v11, %v5074_v59  ;;  %v13007_v24 = vpop.f32.mrf.mxu2  ;;  %v5264_v36 = vpop.permute.xlu2 %5263 }
 0x255   : > { %10569 = vmatmul.msk.f32.vlgmr.msrb.gmra.mxu0 %vm457_vm1, %v10555_v26  ;;  %10581 = vmatpush.msk.msra.mxu2 %vm461_vm0, %v5080_v44  ;;  %15590 = vst [vmem:[#allocation59_spill] sm:$0xff] %v13007_v24  ;;  %v13011_v17 = vpop.f32.mrf.mxu1  ;;  %v13013_v33 = vpop.f32.mrf.mxu0  ;;  %v10585_v44 = vld [vmem:[%s15535_s1 + $0xc0] sm:$0x3f] }
 0x256   : > { %10572 = vmatmul.msk.f32.vlgmr.msrb.gmra.mxu1 %vm457_vm1, %v10570_v18  ;;  %15591 = vst [vmem:[#allocation60_spill] sm:$0xff] %v13011_v17 }
 0x257   : > { %10582 = vmatmul.msk.f32.vlgmr.msra.gmra.mxu2 %vm457_vm1, %v10570_v18  ;;  %10584 = vmatmul.msk.f32.vlgmr.msra.gmra.mxu3 %vm457_vm1, %v10570_v18  ;;  %15592 = vst [vmem:[#allocation61_spill] sm:$0xff] %v13013_v33 }
 0x25a   : > { %v5070_v52 = vpop.permute.xlu0 %5069 }
 0x25b   : > { %v5078_v26 = vsel %vm1018_vm4, %v5068_v5, %v5070_v52  ;;  %v5079_v59 = vsel %vm1018_vm4, %v5070_v52, %v5072_v11  ;;  %v5266_v62 = vpop.permute.xlu1 %5265  ;;  %v13029_v5 = vpop.f32.mrf.mxu3  ;;  %v11307_v11 = vmov 0   ;;  %vm6165_vm4 = vcmask 982016  }
 0x25c   : > { %10577 = vmatpush.msk.msra.mxu0 %vm461_vm0, %v5078_v26  ;;  %10579 = vmatpush.msk.msra.mxu1 %vm461_vm0, %v5079_v59  ;;  %v5276_v24 = vsel %vm1219_vm5, %v5264_v36, %v5266_v62  ;;  %v5277_v17 = vsel %vm1219_vm5, %v5266_v62, %v5268_v34  ;;  %15593 = vst [vmem:[#allocation62_spill] sm:$0xff] %v13029_v5  ;;  %v13031_v52 = vpop.f32.mrf.mxu2 }
 0x25d   : > { %10578 = vmatmul.msk.f32.vlgmr.msra.gmra.mxu0 %vm457_vm1, %v10570_v18  ;;  %10590 = vmatpush.msk.msrb.mxu2 %vm461_vm0, %v5277_v17  ;;  %15594 = vst [vmem:[#allocation63_spill] sm:$0xff] %v13031_v52  ;;  %v13033_v59 = vpop.f32.mrf.mxu0  ;;  %v13036_v33 = vpop.f32.mrf.mxu1  ;;  %v5445_v17 = vld [vmem:[%s15597_s2] sm:$0x3f] }
 0x25e   : > { %10580 = vmatmul.msk.f32.vlgmr.msra.gmra.mxu1 %vm457_vm1, %v10570_v18  ;;  %11187 = vset.pattern.permute.xlu2 %v11307_v11  ;;  %15595 = vst [vmem:[#allocation64_spill] sm:$0xff] %v13033_v59 }
 0x25f   : > { %10588 = vmatpush.msk.msrb.mxu1 %vm461_vm0, %v5276_v24  ;;  %10591 = vmatmul.msk.f32.vlgmr.msrb.gmra.mxu2 %vm457_vm1, %v10585_v44  ;;  %15596 = vst [vmem:[#allocation65_spill] sm:$0xff] %v13036_v33 }
 0x260   : > { %11188 = vset.pattern.permute.xlu0 %v11307_v11  ;;  %5448 = vperm.xlu2 %11187, %v5445_v17  }
 0x262   : > { %v5270_v26 = vpop.permute.xlu0 %5269 }
 0x263   : > { %v5278_v62 = vsel %vm1219_vm5, %v5268_v34, %v5270_v26  ;;  %v5262_v18 = vpop.permute.xlu1 %5261  ;;  %v13049_v5 = vpop.f32.mrf.mxu3 }
 0x264   : > { %10592 = vmatpush.msk.msrb.mxu3 %vm461_vm0, %v5278_v62  ;;  %v5275_v24 = vsel %vm1219_vm5, %v5262_v18, %v5264_v36  ;;  %v13047_v34 = vpop.f32.mrf.mxu2  ;;  %15598 = vst [vmem:[#allocation66_spill] sm:$0xff] %v13049_v5 }
 0x265   : > { %10593 = vmatmul.msk.f32.vlgmr.msrb.gmra.mxu3 %vm457_vm1, %v10585_v44  ;;  %10586 = vmatpush.msk.msrb.mxu0 %vm461_vm0, %v5275_v24  ;;  %v13051_v62 = vpop.f32.mrf.mxu0  ;;  %v13054_v36 = vpop.f32.mrf.mxu1 }
 0x266   : > { %10589 = vmatmul.msk.f32.vlgmr.msrb.gmra.mxu1 %vm457_vm1, %v10585_v44  ;;  %10587 = vmatmul.msk.f32.vlgmr.msrb.gmra.mxu0 %vm457_vm1, %v10585_v44  ;;  %15599 = vst [vmem:[#allocation67_spill] sm:$0xff] %v13051_v62 }
 0x26a   : > { %v5274_v11 = vpop.permute.xlu0 %5273 }
 0x26b   : > { %10598 = vmatpush.msk.msra.mxu2 %vm461_vm0, %v5274_v11  ;;  %v5272_v18 = vpop.permute.xlu1 %5271  ;;  %v13063_v17 = vpop.f32.mrf.mxu3 }
 0x26c   : > { %10599 = vmatmul.msk.f32.vlgmr.msra.gmra.mxu2 %vm457_vm1, %v10585_v44  ;;  %v5279_v24 = vsel %vm1219_vm5, %v5270_v26, %v5272_v18  ;;  %v5280_v33 = vsel %vm1219_vm5, %v5272_v18, %v5274_v11  ;;  %15600 = vst [vmem:[#allocation68_spill] sm:$0xff] %v13063_v17  ;;  %v13065_v52 = vpop.f32.mrf.mxu2 }
 0x26d   : > { %10594 = vmatpush.msk.msra.mxu0 %vm461_vm0, %v5279_v24  ;;  %10596 = vmatpush.msk.msra.mxu1 %vm461_vm0, %v5280_v33  ;;  %15601 = vst [vmem:[#allocation69_spill] sm:$0xff] %v13065_v52  ;;  %v13067_v5 = vpop.f32.mrf.mxu0  ;;  %v13069_v59 = vpop.f32.mrf.mxu1  ;;  %vm5578_vm0 = vcmask 1045504  }
 0x26e   : > { %10595 = vmatmul.msk.f32.vlgmr.msra.gmra.mxu0 %vm457_vm1, %v10585_v44  ;;  %10597 = vmatmul.msk.f32.vlgmr.msra.gmra.mxu1 %vm457_vm1, %v10585_v44  ;;  %15602 = vst [vmem:[#allocation70_spill] sm:$0xff] %v13067_v5  ;;  %vm5571_vm1 = vcmask 48128  }
 0x26f   : > { %15603 = vst [vmem:[#allocation71_spill] sm:$0xff] %v13069_v59 }
 0x273   : > { %v13073_v26 = vpop.f32.mrf.mxu3 }
 0x274   : > { %v13071_v62 = vpop.f32.mrf.mxu2  ;;  %15605 = vst [vmem:[#allocation73_spill] sm:$0xff] %v13073_v26 }
 0x275   : > { %15604 = vst [vmem:[#allocation72_spill] sm:$0xff] %v13071_v62  ;;  %v13075_v11 = vpop.f32.mrf.mxu0  ;;  %v13077_v18 = vpop.f32.mrf.mxu1 }
 0x276   : > { %15606 = vst [vmem:[#allocation74_spill] sm:$0xff] %v13075_v11 }
 0x277   : > { %15607 = vst [vmem:[#allocation75_spill] sm:$0xff] %v13077_v18 }
 0x27c   : > { %v13081_v24 = vpop.f32.mrf.mxu2 }
 0x27d   : > { %15609 = vst [vmem:[#allocation77_spill] sm:$0xff] %v13081_v24  ;;  %v13083_v44 = vpop.f32.mrf.mxu0  ;;  %v13085_v17 = vpop.f32.mrf.mxu1 }
 0x27e   : > { %15610 = vst [vmem:[#allocation78_spill] sm:$0xff] %v13083_v44 }
 0x27f   : > { %15611 = vst [vmem:[#allocation79_spill] sm:$0xff] %v13085_v17 }
 0x280   : > { %v13079_v33 = vpop.f32.mrf.mxu3 }
 0x281   : > { %15608 = vst [vmem:[#allocation76_spill] sm:$0xff] %v13079_v33 }
 0x289   : > { %v13087_v52 = vpop.f32.mrf.mxu2  ;;  %v13089_v5 = vpop.f32.mrf.mxu3 }
 0x28a   : > { %15612 = vst [vmem:[#allocation80_spill] sm:$0xff] %v13087_v52  ;;  %v13091_v59 = vpop.f32.mrf.mxu0  ;;  %v13093_v62 = vpop.f32.mrf.mxu1 }
 0x28b   : > { %15613 = vst [vmem:[#allocation81_spill] sm:$0xff] %v13089_v5  ;;  %v705_v5 = vadd.f32 %v12286_v35, %v12174_v15  ;;  %v725_v35 = vadd.f32 %v12276_v31, %v12204_v55 }
 0x28c   : > { %15614 = vst [vmem:[#allocation82_spill] sm:$0xff] %v13093_v62 }
 0x28d   : > { %v984_v31 = vadd.f32 %v12372_v21, %v725_v35  ;;  %v15630_v35 = vld [vmem:[#allocation14_spill] sm:$0xff] }
 0x292   : > { %v13097_v11 = vpop.f32.mrf.mxu2  ;;  %v13101_v33 = vpop.f32.mrf.mxu1 }
 0x293   : > { %15616 = vst [vmem:[#allocation84_spill] sm:$0xff] %v13097_v11 }
 0x294   : > { %v13099_v18 = vpop.f32.mrf.mxu0  ;;  %15618 = vst [vmem:[#allocation86_spill] sm:$0xff] %v13101_v33 }
 0x295   : > { %15617 = vst [vmem:[#allocation85_spill] sm:$0xff] %v13099_v18  ;;  %v685_v18 = vadd.f32 %v12279_v32, %v12215_v60 }
 0x298   : > { %v13095_v26 = vpop.f32.mrf.mxu3 }
 0x299   : > { %15615 = vst [vmem:[#allocation83_spill] sm:$0xff] %v13095_v26 }
 0x2a1   : > { %v13103_v24 = vpop.f32.mrf.mxu2  ;;  %v13105_v44 = vpop.f32.mrf.mxu3 }
 0x2a2   : > { %15619 = vst [vmem:[#allocation87_spill] sm:$0xff] %v13103_v24  ;;  %v13107_v17 = vpop.f32.mrf.mxu0  ;;  %v13109_v52 = vpop.f32.mrf.mxu1  ;;  %v983_v24 = vadd.f32 %v12350_v63, %v705_v5 }
 0x2a3   : > { %15620 = vst [vmem:[#allocation88_spill] sm:$0xff] %v13105_v44  ;;  %v665_v44 = vadd.f32 %v12233_v7, %v12184_v48  ;;  %v745_v7 = vadd.f32 %v12271_v29, %v12239_v13  ;;  %v785_v13 = vadd.f32 %v12319_v45, %v12231_v6  ;;  %v1185_v29 = vadd.f32 %v12454_v28, %v984_v31  ;;  %v15628_v45 = vld [vmem:[#allocation5_spill] sm:$0xff] }
 0x2a4   : > { %15621 = vst [vmem:[#allocation89_spill] sm:$0xff] %v13107_v17 }
 0x2a5   : > { %15622 = vst [vmem:[#allocation90_spill] sm:$0xff] %v13109_v52  ;;  %v982_v52 = vadd.f32 %v12305_v40, %v685_v18  ;;  %v981_v15 = vadd.f32 %v12311_v41, %v665_v44  ;;  %v765_v40 = vadd.f32 %v12313_v42, %v12250_v20  ;;  %v987_v28 = vadd.f32 %v15628_v45, %v785_v13  ;;  %v15629_v18 = vld [vmem:[#allocation9_spill] sm:$0xff]  ;;  %v15637_v45 = vld [vmem:[#allocation18_spill] sm:$0xff] }
 0x2a7   : > { %v1183_v32 = vadd.f32 %v12394_v22, %v982_v52  ;;  %v1182_v55 = vadd.f32 %v12419_v12, %v981_v15  ;;  %v986_v22 = vadd.f32 %v12339_v54, %v765_v40  ;;  %v15625_v54 = vld [vmem:[#allocation8_spill] sm:$0xff] }
 0x2a9   : > { %v1384_v63 = vadd.f32 %v12505_v39, %v1183_v32  ;;  %v1383_v5 = vadd.f32 %v12498_v51, %v1182_v55  ;;  %v15626_v51 = vld [vmem:[#allocation6_spill] sm:$0xff]  ;;  %v15632_v55 = vld [vmem:[#allocation12_spill] sm:$0xff] }
 0x2aa   : > { %v13113_v62 = vpop.f32.mrf.mxu2  ;;  %v13115_v26 = vpop.f32.mrf.mxu3  ;;  %v1187_v52 = vadd.f32 %v15626_v51, %v986_v22 }
 0x2ab   : > { %15623 = vst [vmem:[#allocation91_spill] sm:$0xff] %v13115_v26  ;;  %v13119_v11 = vpop.f32.mrf.mxu0  ;;  %v13121_v33 = vpop.f32.mrf.mxu1  ;;  %v1184_v26 = vadd.f32 %v12387_v27, %v983_v24  ;;  %v985_v27 = vadd.f32 %v12344_v57, %v745_v7  ;;  %v1589_v12 = vadd.f32 %v12579_v25, %v1384_v63  ;;  %v15631_v7 = vld [vmem:[#allocation7_spill] sm:$0xff] }
 0x2ac   : > { %15624 = vst [vmem:[#allocation92_spill] sm:$0xff] %v13119_v11  ;;  %v1388_v25 = vadd.f32 %v12546_v23, %v1187_v52  ;;  %v1188_v40 = vadd.f32 %v15631_v7, %v987_v28  ;;  %v15633_v23 = vld [vmem:[#allocation13_spill] sm:$0xff] }
 0x2ad   : > { %v1385_v41 = vadd.f32 %v12492_v50, %v1184_v26  ;;  %v1186_v39 = vadd.f32 %v15625_v54, %v985_v27  ;;  %v15627_v26 = vld [vmem:[#allocation11_spill] sm:$0xff]  ;;  %v1794_v44 = vadd.f32 %v12605_v46, %v1589_v12  ;;  %v15635_v12 = vld [vmem:[#allocation10_spill] sm:$0xff] }
 0x2ae   : > { %v1588_v6 = vadd.f32 %v15627_v26, %v1383_v5  ;;  %v15634_v5 = vld [vmem:[#allocation15_spill] sm:$0xff]  ;;  %v15636_v26 = vld [vmem:[#allocation17_spill] sm:$0xff] }
 0x2af   : > { %v1590_v20 = vadd.f32 %v12586_v0, %v1385_v41  ;;  %v1386_v0 = vadd.f32 %v15629_v18, %v1185_v29  ;;  %v1387_v15 = vadd.f32 %v12535_v16, %v1186_v39  ;;  %v1593_v13 = vadd.f32 %v15634_v5, %v1388_v25  ;;  %v15638_v18 = vld [vmem:[#allocation25_spill] sm:$0xff]  ;;  %v15641_v25 = vld [vmem:[#allocation22_spill] sm:$0xff] }
 0x2b0   : > { %v1793_v32 = vadd.f32 %v15630_v35, %v1588_v6  ;;  %v15643_v35 = vld [vmem:[#allocation31_spill] sm:$0xff] }
 0x2b1   : > { %v1795_v24 = vadd.f32 %v12641_v9, %v1590_v20  ;;  %v1591_v31 = vadd.f32 %v15632_v55, %v1386_v0  ;;  %v1999_v9 = vadd.f32 %v12662_v49, %v1794_v44  ;;  %v1592_v16 = vadd.f32 %v15633_v23, %v1387_v15  ;;  %v15639_v0 = vld [vmem:[#allocation37_spill] sm:$0xff]  ;;  %v15642_v15 = vld [vmem:[#allocation32_spill] sm:$0xff]  ;;  %v15646_v23 = vld [vmem:[#allocation23_spill] sm:$0xff] }
 0x2b2   : > { %v13131_v17 = vpop.f32.mrf.mxu2  ;;  %v13133_v60 = vpop.f32.mrf.mxu3  ;;  %v1998_v29 = vadd.f32 %v12685_v53, %v1793_v32  ;;  %v1798_v28 = vadd.f32 %v15637_v45, %v1593_v13  ;;  %v15652_v45 = vld [vmem:[#allocation30_spill] sm:$0xff] }
 0x2b3   : > { %v13136_v11 = vpop.f32.mrf.mxu0  ;;  %v13138_v48 = vpop.f32.mrf.mxu1  ;;  %v2000_v41 = vadd.f32 %v12664_v19, %v1795_v24  ;;  %v1389_v19 = vadd.f32 %v15635_v12, %v1188_v40  ;;  %v1796_v54 = vadd.f32 %v12649_v61, %v1591_v31  ;;  %v2204_v39 = vadd.f32 %v12735_v8, %v1999_v9  ;;  %v15640_v24 = vld [vmem:[#allocation16_spill] sm:$0xff] }
 0x2b4   : > { %v2203_v49 = vadd.f32 %v12729_v4, %v1998_v29  ;;  %v1797_v6 = vadd.f32 %v15636_v26, %v1592_v16  ;;  %v15647_v29 = vld [vmem:[#allocation19_spill] sm:$0xff] }
 0x2b5   : > { %v2205_v20 = vadd.f32 %v12725_v2, %v2000_v41  ;;  %v2409_v52 = vadd.f32 %v12788_v3, %v2204_v39  ;;  %v1594_v44 = vadd.f32 %v15640_v24, %v1389_v19  ;;  %v2001_v61 = vadd.f32 %v15641_v25, %v1796_v54  ;;  %v15644_v3 = vld [vmem:[#allocation24_spill] sm:$0xff] }
 0x2b6   : > { %v2408_v53 = vadd.f32 %v15638_v18, %v2203_v49  ;;  %v15645_v41 = vld [vmem:[#allocation20_spill] sm:$0xff]  ;;  %v2002_v16 = vadd.f32 %v15646_v23, %v1797_v6  ;;  %v15651_v6 = vld [vmem:[#allocation38_spill] sm:$0xff]  ;;  %v15653_v18 = vld [vmem:[#allocation33_spill] sm:$0xff] }
 0x2b7   : > { %v2410_v51 = vadd.f32 %v12790_v10, %v2205_v20  ;;  %v2614_v8 = vadd.f32 %v15642_v15, %v2409_v52  ;;  %v2206_v7 = vadd.f32 %v15644_v3, %v2001_v61  ;;  %v2003_v9 = vadd.f32 %v15645_v41, %v1798_v28  ;;  %v15648_v20 = vld [vmem:[#allocation29_spill] sm:$0xff]  ;;  %v15650_v49 = vld [vmem:[#allocation28_spill] sm:$0xff]  ;;  %v15657_v61 = vld [vmem:[#allocation42_spill] sm:$0xff] }
 0x2b8   : > { %v2613_v4 = vadd.f32 %v15643_v35, %v2408_v53  ;;  %v15659_v35 = vld [vmem:[#allocation35_spill] sm:$0xff] }
 0x2b9   : > { %v2615_v2 = vadd.f32 %v15639_v0, %v2410_v51  ;;  %v2819_v40 = vadd.f32 %v12848_v43, %v2614_v8  ;;  %v2411_v12 = vadd.f32 %v15648_v20, %v2206_v7  ;;  %v15649_v43 = vld [vmem:[#allocation27_spill] sm:$0xff]  ;;  %v2208_v51 = vadd.f32 %v15650_v49, %v2003_v9  ;;  %v15654_v0 = vld [vmem:[#allocation46_spill] sm:$0xff]  ;;  %v15658_v8 = vld [vmem:[#allocation52_spill] sm:$0xff] }
 0x2ba   : > { %v13155_v42 = vpop.f32.mrf.mxu2  ;;  %v13157_v21 = vpop.f32.mrf.mxu3  ;;  %v2818_v5 = vadd.f32 %v12854_v14, %v2613_v4  ;;  %v2207_v39 = vadd.f32 %v15649_v43, %v2002_v16  ;;  %v15660_v4 = vld [vmem:[#allocation36_spill] sm:$0xff]  ;;  %v15661_v3 = vld [vmem:[#allocation51_spill] sm:$0xff] }
 0x2bb   : > { %v13160_v50 = vpop.f32.mrf.mxu0  ;;  %v13162_v57 = vpop.f32.mrf.mxu1  ;;  %v2820_v10 = vadd.f32 %v12850_v58, %v2615_v2  ;;  %v1799_v58 = vadd.f32 %v15647_v29, %v1594_v44  ;;  %v3024_v19 = vadd.f32 %v12912_v30, %v2819_v40  ;;  %v2616_v14 = vadd.f32 %v15651_v6, %v2411_v12  ;;  %v15655_v2 = vld [vmem:[#allocation57_spill] sm:$0xff]  ;;  %v15662_v40 = vld [vmem:[#allocation26_spill] sm:$0xff]  ;;  %v15663_v9 = vld [vmem:[#allocation44_spill] sm:$0xff] }
 0x2bc   : > { %v3023_v52 = vadd.f32 %v12910_v37, %v2818_v5  ;;  %v2412_v28 = vadd.f32 %v15652_v45, %v2207_v39  ;;  %v2413_v53 = vadd.f32 %v15653_v18, %v2208_v51  ;;  %v15656_v44 = vld [vmem:[#allocation21_spill] sm:$0xff]  ;;  %v15664_v16 = vld [vmem:[#allocation59_spill] sm:$0xff]  ;;  %v15666_v20 = vld [vmem:[#allocation40_spill] sm:$0xff] }
 0x2bd   : > { %v3025_v13 = vadd.f32 %v12901_v38, %v2820_v10  ;;  %v3229_v38 = vadd.f32 %v12956_v47, %v3024_v19  ;;  %v2004_v25 = vadd.f32 %v15656_v44, %v1799_v58  ;;  %v2821_v15 = vadd.f32 %v15657_v61, %v2616_v14  ;;  %v15665_v29 = vld [vmem:[#allocation43_spill] sm:$0xff]  ;;  %v15667_v19 = vld [vmem:[#allocation60_spill] sm:$0xff]  ;;  %v15676_v61 = vld [vmem:[#allocation74_spill] sm:$0xff] }
 0x2be   : > { %v3228_v30 = vadd.f32 %v15654_v0, %v3023_v52  ;;  %v2618_v10 = vadd.f32 %v15660_v4, %v2413_v53  ;;  %v15672_v53 = vld [vmem:[#allocation67_spill] sm:$0xff] }
 0x2bf   : > { %v3230_v26 = vadd.f32 %v12958_v1, %v3025_v13  ;;  %v3434_v37 = vadd.f32 %v15658_v8, %v3229_v38  ;;  %v2617_v1 = vadd.f32 %v15659_v35, %v2412_v28  ;;  %v2209_v41 = vadd.f32 %v15662_v40, %v2004_v25  ;;  %v15670_v38 = vld [vmem:[#allocation47_spill] sm:$0xff]  ;;  %v15671_v28 = vld [vmem:[#allocation48_spill] sm:$0xff] }
 0x2c0   : > { %v3433_v47 = vadd.f32 %v15661_v3, %v3228_v30  ;;  %v3026_v23 = vadd.f32 %v15663_v9, %v2821_v15  ;;  %v2823_v12 = vadd.f32 %v15666_v20, %v2618_v10  ;;  %v15673_v30 = vld [vmem:[#allocation75_spill] sm:$0xff]  ;;  %v15681_v40 = vld [vmem:[#allocation64_spill] sm:$0xff]  ;;  %v15685_v20 = vld [vmem:[#allocation77_spill] sm:$0xff] }
 0x2c1   : > { %v3435_v24 = vadd.f32 %v15655_v2, %v3230_v26  ;;  %v3639_v5 = vadd.f32 %v15664_v16, %v3434_v37  ;;  %v2822_v58 = vadd.f32 %v15665_v29, %v2617_v1  ;;  %v15669_v26 = vld [vmem:[#allocation50_spill] sm:$0xff]  ;;  %v15677_v37 = vld [vmem:[#allocation49_spill] sm:$0xff]  ;;  %v15682_v9 = vld [vmem:[#allocation76_spill] sm:$0xff] }
 0x2c2   : > { %v13177_v63 = vpop.f32.mrf.mxu2  ;;  %v13179_v27 = vpop.f32.mrf.mxu3  ;;  %v3638_v43 = vadd.f32 %v15667_v19, %v3433_v47  ;;  %v3231_v6 = vadd.f32 %v15669_v26, %v3026_v23  ;;  %v3028_v18 = vadd.f32 %v15671_v28, %v2823_v12  ;;  %v15678_v1 = vld [vmem:[#allocation54_spill] sm:$0xff]  ;;  %v15680_v47 = vld [vmem:[#allocation41_spill] sm:$0xff]  ;;  %v15683_v16 = vld [vmem:[#allocation56_spill] sm:$0xff] }
 0x2c3   : > { %v13182_v22 = vpop.f32.mrf.mxu0  ;;  %v13184_v46 = vpop.f32.mrf.mxu1  ;;  %v3640_v7 = vadd.f32 %v13009_v56, %v3435_v24  ;;  %v15668_v56 = vld [vmem:[#allocation34_spill] sm:$0xff]  ;;  %v3844_v14 = vadd.f32 %v13054_v36, %v3639_v5  ;;  %v3027_v45 = vadd.f32 %v15670_v38, %v2822_v58  ;;  %v15674_v24 = vld [vmem:[#allocation39_spill] sm:$0xff]  ;;  %v15679_v36 = vld [vmem:[#allocation68_spill] sm:$0xff] }
 0x2c4   : > { %v2414_v52 = vadd.f32 %v15668_v56, %v2209_v41  ;;  %v3843_v0 = vadd.f32 %v15672_v53, %v3638_v43  ;;  %v3233_v4 = vadd.f32 %v15678_v1, %v3028_v18  ;;  %v15684_v29 = vld [vmem:[#allocation55_spill] sm:$0xff]  ;;  %v15691_v28 = vld [vmem:[#allocation65_spill] sm:$0xff]  ;;  %v15692_v53 = vld [vmem:[#allocation86_spill] sm:$0xff] }
 0x2c5   : > { %v3845_v39 = vadd.f32 %v13047_v34, %v3640_v7  ;;  %v15675_v34 = vld [vmem:[#allocation58_spill] sm:$0xff]  ;;  %v4049_v15 = vadd.f32 %v15676_v61, %v3844_v14  ;;  %v3232_v35 = vadd.f32 %v15677_v37, %v3027_v45  ;;  %v15686_v19 = vld [vmem:[#allocation83_spill] sm:$0xff] }
 0x2c6   : > { %v2619_v44 = vadd.f32 %v15674_v24, %v2414_v52  ;;  %v3436_v25 = vadd.f32 %v15675_v34, %v3231_v6  ;;  %v4048_v10 = vadd.f32 %v15679_v36, %v3843_v0  ;;  %v3438_v58 = vadd.f32 %v15684_v29, %v3233_v4  ;;  %v15688_v52 = vld [vmem:[#allocation66_spill] sm:$0xff]  ;;  %v15689_v6 = vld [vmem:[#allocation84_spill] sm:$0xff]  ;;  %v15690_v38 = vld [vmem:[#allocation63_spill] sm:$0xff] }
 0x2c7   : > { %v4050_v2 = vadd.f32 %v15673_v30, %v3845_v39  ;;  %v4254_v23 = vadd.f32 %v15682_v9, %v4049_v15  ;;  %v3437_v5 = vadd.f32 %v15683_v16, %v3232_v35  ;;  %v15687_v39 = vld [vmem:[#allocation45_spill] sm:$0xff]  ;;  %v15695_v37 = vld [vmem:[#allocation70_spill] sm:$0xff]  ;;  %v15696_v1 = vld [vmem:[#allocation71_spill] sm:$0xff] }
 0x2c8   : > { %v2824_v7 = vadd.f32 %v15680_v47, %v2619_v44  ;;  %v3641_v41 = vadd.f32 %v15681_v40, %v3436_v25  ;;  %v4253_v12 = vadd.f32 %v15685_v20, %v4048_v10  ;;  %v3643_v45 = vadd.f32 %v15690_v38, %v3438_v58  ;;  %v15693_v44 = vld [vmem:[#allocation53_spill] sm:$0xff]  ;;  %v15694_v25 = vld [vmem:[#allocation72_spill] sm:$0xff]  ;;  %v15699_v40 = vld [vmem:[#allocation82_spill] sm:$0xff] }
 0x2c9   : > { %v4255_v3 = vadd.f32 %v13091_v59, %v4050_v2  ;;  %v4459_v59 = vadd.f32 %v15689_v6, %v4254_v23  ;;  %v3642_v18 = vadd.f32 %v15691_v28, %v3437_v5  ;;  %v15697_v36 = vld [vmem:[#allocation92_spill] sm:$0xff]  ;;  %v15698_v47 = vld [vmem:[#allocation61_spill] sm:$0xff]  ;;  %v15701_v16 = vld [vmem:[#allocation78_spill] sm:$0xff] }
 0x2ca   : > { %v13205_v32 = vpop.f32.mrf.mxu2  ;;  %v13220_v54 = vpop.f32.mrf.mxu3  ;;  %v3029_v56 = vadd.f32 %v15687_v39, %v2824_v7  ;;  %v3846_v26 = vadd.f32 %v15688_v52, %v3641_v41  ;;  %v4458_v0 = vadd.f32 %v15692_v53, %v4253_v12  ;;  %v3848_v4 = vadd.f32 %v15696_v1, %v3643_v45  ;;  %v15700_v9 = vld [vmem:[#allocation73_spill] sm:$0xff]  ;;  %v15702_v58 = vld [vmem:[#allocation62_spill] sm:$0xff]  ;;  %v15704_v39 = vld [vmem:[#allocation80_spill] sm:$0xff] }
 0x2cb   : > { %v13209_v55 = vpop.f32.mrf.mxu0  ;;  %v13211_v31 = vpop.f32.mrf.mxu1  ;;  %v4460_v43 = vadd.f32 %v15686_v19, %v4255_v3  ;;  %v4639_v15 = vadd.f32 %v13121_v33, %v4459_v59  ;;  %v3847_v35 = vadd.f32 %v15695_v37, %v3642_v18  ;;  %v15703_v12 = vld [vmem:[#allocation89_spill] sm:$0xff]  ;;  %v15707_v45 = vld [vmem:[#allocation91_spill] sm:$0xff] }
 0x2cc   : > { %v3234_v34 = vadd.f32 %v15693_v44, %v3029_v56  ;;  %v4051_v61 = vadd.f32 %v15694_v25, %v3846_v26  ;;  %v4638_v10 = vadd.f32 %v15697_v36, %v4458_v0  ;;  %v4053_v5 = vadd.f32 %v15701_v16, %v3848_v4  ;;  %v15705_v52 = vld [vmem:[#allocation81_spill] sm:$0xff]  ;;  %v5449_v18 = vpop.permute.xlu2 %5448  ;;  %v15708_v53 = vld [vmem:[#allocation87_spill] sm:$0xff] }
 0x2cd   : > { %v4640_v30 = vadd.f32 %v13113_v62, %v4460_v43  ;;  %v4839_v41 = vadd.f32 %v13160_v50, %v4639_v15  ;;  %v4052_v23 = vadd.f32 %v15700_v9, %v3847_v35  ;;  %v15706_v59 = vld [vmem:[#allocation69_spill] sm:$0xff] }
 0x2ce   : > { %v3439_v7 = vadd.f32 %v15698_v47, %v3234_v34  ;;  %v4256_v62 = vadd.f32 %v15699_v40, %v4051_v61  ;;  %v4838_v33 = vadd.f32 %v13133_v60, %v4638_v10  ;;  %v4258_v26 = vadd.f32 %v15705_v52, %v4053_v5  ;;  %v15710_v61 = vld [vmem:[#allocation79_spill] sm:$0xff]  ;;  %v15711_v36 = vld [vmem:[#allocation85_spill] sm:$0xff] }
 0x2cf   : > { %v4840_v3 = vadd.f32 %v13162_v57, %v4640_v30  ;;  %v5039_v57 = vadd.f32 %v13179_v27, %v4839_v41  ;;  %v4257_v56 = vadd.f32 %v15704_v39, %v4052_v23  ;;  %v15709_v30 = vld [vmem:[#allocation90_spill] sm:$0xff] }
 0x2d0   : > { %v3644_v20 = vadd.f32 %v15702_v58, %v3439_v7  ;;  %v4461_v19 = vadd.f32 %v15703_v12, %v4256_v62  ;;  %v5038_v50 = vadd.f32 %v13177_v63, %v4838_v33  ;;  %v4463_v0 = vadd.f32 %v15708_v53, %v4258_v26 }
 0x2d1   : > { %v5040_v29 = vadd.f32 %v13209_v55, %v4840_v3  ;;  %v4462_v27 = vadd.f32 %v15709_v30, %v4257_v56 }
 0x2d2   : > { %v13242_v13 = vpop.f32.mrf.mxu2  ;;  %v5155_v8 = vpop.f32.mrf.mxu3  ;;  %v3849_v38 = vadd.f32 %v15706_v59, %v3644_v20  ;;  %v4641_v60 = vadd.f32 %v15707_v45, %v4461_v19  ;;  %v4643_v1 = vadd.f32 %v13138_v48, %v4463_v0 }
 0x2d3   : > { %v13248_v49 = vpop.f32.mrf.mxu0  ;;  %v5115_v51 = vpop.f32.mrf.mxu1  ;;  %v5240_v6 = vadd.f32 %v5155_v8, %v5040_v29  ;;  %v5239_v55 = vadd.f32 %v13242_v13, %v5039_v57  ;;  %v4642_v35 = vadd.f32 %v13136_v11, %v4462_v27 }
 0x2d4   : > { %v5238_v44 = vadd.f32 %v5115_v51, %v5038_v50  ;;  %v4054_v15 = vadd.f32 %v15710_v61, %v3849_v38  ;;  %v4841_v63 = vadd.f32 %v13155_v42, %v4641_v60  ;;  %v4843_v7 = vadd.f32 %v13182_v22, %v4643_v1  ;;  %v15712_v42 = vld [vmem:[#allocation88_spill] sm:$0xff] }
 0x2d5   : > { %v4842_v51 = vadd.f32 %v13157_v21, %v4642_v35 }
 0x2d6   : > { %v4259_v10 = vadd.f32 %v15711_v36, %v4054_v15  ;;  %v5041_v3 = vadd.f32 %v13211_v31, %v4841_v63  ;;  %v5043_v16 = vadd.f32 %v13220_v54, %v4843_v7 }
 0x2d7   : > { %v5042_v48 = vadd.f32 %v13205_v32, %v4842_v51 }
 0x2d8   : > { %v4464_v41 = vadd.f32 %v15712_v42, %v4259_v10 }
 0x2da   : > { %v13274_v14 = vpop.f32.mrf.mxu2  ;;  %v5235_v43 = vpop.f32.mrf.mxu3  ;;  %v4644_v31 = vadd.f32 %v13131_v17, %v4464_v41 }
 0x2db   : > { %v5175_v2 = vpop.f32.mrf.mxu0  ;;  %v5195_v24 = vpop.f32.mrf.mxu1  ;;  %v5243_v21 = vadd.f32 %v13274_v14, %v5043_v16 }
 0x2dc   : > { %v5241_v9 = vadd.f32 %v5175_v2, %v5041_v3  ;;  %v5242_v22 = vadd.f32 %v5195_v24, %v5042_v48  ;;  %v4844_v2 = vadd.f32 %v13184_v46, %v4644_v31  ;;  %v10601_v31 = vld [vmem:[%s15473_s3 + $0x18] sm:$0xff] }
 0x2de   : > { %v5044_v54 = vadd.f32 %v13248_v49, %v4844_v2 }
 0x2e0   : > { %v5244_v39 = vadd.f32 %v5235_v43, %v5044_v54 }
 0x2e2   : > { %v5355_v28 = vpop.f32.mrf.mxu2 }
 0x2e3   : > { %v5440_v34 = vadd.f32 %v5355_v28, %v5240_v6  ;;  %v5335_v25 = vpop.f32.mrf.mxu1  ;;  %v5315_v8 = vpop.f32.mrf.mxu0 }
 0x2e4   : > { %v5439_v37 = vadd.f32 %v5335_v25, %v5239_v55  ;;  %v5438_v13 = vadd.f32 %v5315_v8, %v5238_v44 }
 0x2e5   : > { %v5453_v4 = vadd.f32 %v5449_v18, %v5440_v34 }
 0x2e6   : > { %v5452_v47 = vadd.f32 %v5449_v18, %v5439_v37  ;;  %v5451_v40 = vadd.f32 %v5449_v18, %v5438_v13 }
 0x2e7   : > { %v5460_v62 = vmax.f32 %v5453_v4, 0.0 }
 0x2e8   : > { %v5459_v23 = vmax.f32 %v5452_v47, 0.0  ;;  %v5375_v11 = vpop.f32.mrf.mxu3  ;;  %v5458_v5 = vmax.f32 %v5451_v40, 0.0 }
 0x2e9   : > { %5476 = vrot.lane.b32.xlu2 %v5460_v62, %s11288_s20  ;;  %v5441_v33 = vadd.f32 %v5375_v11, %v5241_v9 }
 0x2ea   : > { %5474 = vrot.lane.b32.xlu1 %v5459_v23, %s11288_s20  ;;  %5472 = vrot.lane.b32.xlu0 %v5458_v5, %s11288_s20 }
 0x2eb   : > { %v5395_v29 = vpop.f32.mrf.mxu0  ;;  %v5415_v58 = vpop.f32.mrf.mxu1  ;;  %v5454_v12 = vadd.f32 %v5449_v18, %v5441_v33 }
 0x2ec   : > { %v5442_v32 = vadd.f32 %v5395_v29, %v5242_v22  ;;  %v5443_v20 = vadd.f32 %v5415_v58, %v5243_v21 }
 0x2ed   : > { %v5461_v26 = vmax.f32 %v5454_v12, 0.0 }
 0x2ee   : > { %v5455_v19 = vadd.f32 %v5449_v18, %v5442_v32  ;;  %v5456_v57 = vadd.f32 %v5449_v18, %v5443_v20 }
 0x2ef   : > { %v5435_v17 = vpop.f32.mrf.mxu2 }
 0x2f0   : > { %v5462_v56 = vmax.f32 %v5455_v19, 0.0  ;;  %v5463_v52 = vmax.f32 %v5456_v57, 0.0  ;;  %v5444_v14 = vadd.f32 %v5435_v17, %v5244_v39  ;;  %v5547_v57 = vld [vmem:[%s15473_s3] sm:$0xff] }
 0x2f2   : > { %5482 = vrot.lane.b32.xlu2 %v5463_v52, %s11288_s20  ;;  %5480 = vrot.lane.b32.xlu1 %v5462_v56, %s11288_s20  ;;  %v13326_v46 = vadd.f32 %v5449_v18, %v5444_v14  ;;  %v5548_v14 = vld [vmem:[%s15473_s3 + $0x8] sm:$0xff] }
 0x2f3   : > { %5478 = vrot.lane.b32.xlu0 %v5461_v26, %s11288_s20 }
 0x2f4   : > { %v5464_v24 = vmax.f32 %v13326_v46, 0.0 }
 0x2fb   : > { %5484 = vrot.lane.b32.xlu0 %v5464_v24, %s11288_s20  ;;  %s15489_s20 = smov 122  }
 0x343   : > { %v5477_v49 = vpop.permute.xlu2 %5476 }
 0x34c   : > { %v5483_v60 = vpop.permute.xlu2 %5482 }
 0x35c   : > { %v5475_v50 = vpop.permute.xlu1 %5474  ;;  %v5473_v6 = vpop.permute.xlu0 %5472 }
 0x35d   : > { %v5487_v43 = vsel %vm450_vm2, %v5475_v50, %v5477_v49  ;;  %v5486_v38 = vsel %vm450_vm2, %v5473_v6, %v5475_v50  ;;  %v10632_v50 = vld [vmem:[%s15473_s3 + $0x20] sm:$0xff] }
 0x35e   : > { %v5500_v59 = vmax.f32 %v5459_v23, %v5487_v43  ;;  %v5499_v45 = vmax.f32 %v5458_v5, %v5486_v38  ;;  %v10600_v23 = vld [vmem:[%s15473_s3 + $0x10] sm:$0xff] }
 0x360   : > { %5515 = vrot.lane.b32.xlu2 %v5500_v59, %s11292_s15  ;;  %5513 = vrot.lane.b32.xlu1 %v5499_v45, %s11292_s15 }
 0x364   : > { %v5481_v55 = vpop.permute.xlu1 %5480 }
 0x365   : > { %v5490_v28 = vsel %vm450_vm2, %v5481_v55, %v5483_v60  ;;  %v5479_v18 = vpop.permute.xlu0 %5478 }
 0x366   : > { %v5503_v53 = vmax.f32 %v5462_v56, %v5490_v28  ;;  %v5488_v0 = vsel %vm450_vm2, %v5477_v49, %v5479_v18  ;;  %v5489_v30 = vsel %vm450_vm2, %v5479_v18, %v5481_v55  ;;  %v10633_v55 = vld [vmem:[%s15473_s3 + $0x28] sm:$0xff] }
 0x367   : > { %v5501_v27 = vmax.f32 %v5460_v62, %v5488_v0  ;;  %v5502_v44 = vmax.f32 %v5461_v26, %v5489_v30 }
 0x368   : > { %5521 = vrot.lane.b32.xlu2 %v5503_v53, %s11292_s15 }
 0x369   : > { %5519 = vrot.lane.b32.xlu1 %v5502_v44, %s11292_s15  ;;  %5517 = vrot.lane.b32.xlu0 %v5501_v27, %s11292_s15 }
 0x36d   : > { %v5485_v34 = vpop.permute.xlu0 %5484 }
 0x36e   : > { %v5491_v25 = vsel %vm450_vm2, %v5483_v60, %v5485_v34  ;;  %v13395_v42 = vmax.f32 %v5464_v24, %v5485_v34  ;;  %vm6006_vm2 = vcmask 998400  }
 0x36f   : > { %v13341_v61 = vmax.f32 %v5463_v52, %v5491_v25 }
 0x371   : > { %5523 = vrot.lane.b32.xlu0 %v13341_v61, %s11292_s15 }
 0x3ba   : > { %v5516_v15 = vpop.permute.xlu2 %5515 }
 0x3c2   : > { %v5522_v35 = vpop.permute.xlu2 %5521 }
 0x3d2   : > { %v5514_v63 = vpop.permute.xlu1 %5513 }
 0x3d3   : > { %v5527_v8 = vsel %vm1423_vm6, %v5514_v63, %v5516_v15  ;;  %v10650_v63 = vld [vmem:[%s15473_s3 + $0x38] sm:$0xff] }
 0x3d4   : > { %v13346_v37 = vmax.f32 %v5499_v45, %v5527_v8 }
 0x3d6   : > { %5557 = vrot.lane.b32.xlu1 %v13346_v37, %s15495_s26 }
 0x3db   : > { %v5520_v1 = vpop.permute.xlu1 %5519  ;;  %v5518_v13 = vpop.permute.xlu0 %5517 }
 0x3dc   : > { %v5530_v4 = vsel %vm1423_vm6, %v5520_v1, %v5522_v35  ;;  %v5528_v36 = vsel %vm1423_vm6, %v5516_v15, %v5518_v13  ;;  %v5529_v10 = vsel %vm1423_vm6, %v5518_v13, %v5520_v1 }
 0x3dd   : > { %v13353_v3 = vmax.f32 %v5502_v44, %v5530_v4  ;;  %v13355_v47 = vmax.f32 %v5500_v59, %v5528_v36  ;;  %v13357_v51 = vmax.f32 %v5501_v27, %v5529_v10  ;;  %v10649_v27 = vld [vmem:[%s15473_s3 + $0x30] sm:$0xff]  ;;  %v10666_v36 = vld [vmem:[%s15473_s3 + $0x40] sm:$0xff] }
 0x3df   : > { %15713 = vst [vmem:[#allocation8_spill] sm:$0xff] %v13353_v3  ;;  %5563 = vrot.lane.b32.xlu1 %v13353_v3, %s15495_s26  ;;  %5561 = vrot.lane.b32.xlu0 %v13357_v51, %s15495_s26 }
 0x3e0   : > { %15714 = vst [vmem:[#allocation6_spill] sm:$0xff] %v13357_v51  ;;  %5559 = vrot.lane.b32.xlu2 %v13355_v47, %s15495_s26 }
 0x3e3   : > { %v13365_v7 = vpop.permute.xlu0 %5523 }
 0x3e4   : > { %v5531_v40 = vsel %vm1423_vm6, %v5522_v35, %v13365_v7 }
 0x3e5   : > { %v13369_v62 = vmax.f32 %v5503_v53, %v5531_v40  ;;  %v9215_v40 = vld [vmem:[%s15474_s4] sm:$0xff] }
 0x3e7   : > { %15715 = vst [vmem:[#allocation11_spill] sm:$0xff] %v13369_v62  ;;  %5838 = vrot.lane.b32.xlu0 %v13346_v37, %s11291_s29  ;;  %5840 = vrot.lane.b32.xlu1 %v13355_v47, %s11291_s29 }
 0x3e8   : > { %5565 = vrot.lane.b32.xlu2 %v13369_v62, %s15495_s26 }
 0x3ef   : > { %5844 = vrot.lane.b32.xlu0 %v13353_v3, %s11291_s29  ;;  %5846 = vrot.lane.b32.xlu1 %v13369_v62, %s11291_s29 }
 0x3f0   : > { %5842 = vrot.lane.b32.xlu2 %v13357_v51, %s11291_s29 }
 0x3f7   : > { %5998 = vrot.lane.b32.xlu0 %v13355_v47, %s15489_s20  ;;  %6000 = vrot.lane.b32.xlu1 %v13357_v51, %s15489_s20 }
 0x3f8   : > { %5996 = vrot.lane.b32.xlu2 %v13346_v37, %s15489_s20 }
 0x3ff   : > { %6004 = vrot.lane.b32.xlu0 %v13369_v62, %s15489_s20  ;;  %6155 = vrot.lane.b32.xlu1 %v13346_v37, %s15491_s17 }
 0x400   : > { %6002 = vrot.lane.b32.xlu2 %v13353_v3, %s15489_s20  ;;  %s15729_s20 = smov 120  }
 0x407   : > { %5525 = vrot.lane.b32.xlu0 %v13395_v42, %s11292_s15  ;;  %6159 = vrot.lane.b32.xlu1 %v13357_v51, %s15491_s17  ;;  %s15717_s15 = smov 62  }
 0x408   : > { %6157 = vrot.lane.b32.xlu2 %v13355_v47, %s15491_s17 }
 0x40f   : > { %6163 = vrot.lane.b32.xlu0 %v13369_v62, %s15491_s17  ;;  %6315 = vrot.lane.b32.xlu1 %v13346_v37, %s15716_s19 }
 0x410   : > { %6161 = vrot.lane.b32.xlu2 %v13353_v3, %s15491_s17  ;;  %s15493_s17 = smov 56  }
 0x417   : > { %6319 = vrot.lane.b32.xlu0 %v13357_v51, %s15716_s19  ;;  %6321 = vrot.lane.b32.xlu1 %v13353_v3, %s15716_s19 }
 0x418   : > { %6317 = vrot.lane.b32.xlu2 %v13355_v47, %s15716_s19 }
 0x41f   : > { %6480 = vrot.lane.b32.xlu0 %v13357_v51, %s15717_s15  ;;  %6476 = vrot.lane.b32.xlu1 %v13346_v37, %s15717_s15 }
 0x420   : > { %6323 = vrot.lane.b32.xlu2 %v13369_v62, %s15716_s19 }
 0x427   : > { %6482 = vrot.lane.b32.xlu1 %v13353_v3, %s15717_s15 }
 0x428   : > { %6478 = vrot.lane.b32.xlu2 %v13355_v47, %s15717_s15 }
 0x42f   : > { %6637 = vrot.lane.b32.xlu1 %v13346_v37, %s15718_s16 }
 0x430   : > { %6639 = vrot.lane.b32.xlu2 %v13355_v47, %s15718_s16 }
 0x437   : > { %6643 = vrot.lane.b32.xlu1 %v13353_v3, %s15718_s16 }
 0x438   : > { %6484 = vrot.lane.b32.xlu2 %v13369_v62, %s15717_s15 }
 0x43a   : > { %v5560_v41 = vpop.permute.xlu2 %5559 }
 0x43f   : > { %6798 = vrot.lane.b32.xlu1 %v13346_v37, %s11310_s18 }
 0x440   : > { %6645 = vrot.lane.b32.xlu2 %v13369_v62, %s15718_s16 }
 0x442   : > { %v13446_v48 = vpop.permute.xlu2 %5565 }
 0x447   : > { %6804 = vrot.lane.b32.xlu1 %v13353_v3, %s11310_s18 }
 0x448   : > { %6800 = vrot.lane.b32.xlu2 %v13355_v47, %s11310_s18  ;;  %v5558_v9 = vpop.permute.xlu1 %5557 }
 0x449   : > { %v5567_v11 = vsel %vm817_vm3, %v5558_v9, %v5560_v41 }
 0x44a   : > { %10602 = vmatpush.msk.msra.mxu3 %vm5578_vm0, %v5567_v11  ;;  %v5843_v2 = vpop.permute.xlu2 %5842 }
 0x44b   : > { %10603 = vmatmul.msk.f32.vlgmr.msra.gmra.mxu3 %vm5571_vm1, %v10600_v23 }
 0x44c   : > { %10614 = vmatpush.msk.msrb.mxu3 %vm5578_vm0, %v13446_v48 }
 0x44e   : > { %10626 = vmatpush.msk.msra.mxu3 %vm5578_vm0, %v13353_v3 }
 0x44f   : > { %6960 = vrot.lane.b32.xlu1 %v13346_v37, %s15493_s17 }
 0x450   : > { %6806 = vrot.lane.b32.xlu2 %v13369_v62, %s11310_s18 }
 0x451   : > { %v5564_v16 = vpop.permute.xlu1 %5563  ;;  %v5562_v5 = vpop.permute.xlu0 %5561 }
 0x452   : > { %v13462_v33 = vsel %vm817_vm3, %v5564_v16, %v13446_v48  ;;  %v13465_v21 = vsel %vm817_vm3, %v5560_v41, %v5562_v5  ;;  %v13468_v22 = vsel %vm817_vm3, %v5562_v5, %v5564_v16  ;;  %v5997_v39 = vpop.permute.xlu2 %5996  ;;  %v10667_v41 = vld [vmem:[%s15473_s3 + $0x48] sm:$0xff] }
 0x453   : > { %15719 = vst [vmem:[#allocation5_spill] sm:$0xff] %v13462_v33  ;;  %10605 = vmatpush.msk.msrb.mxu0 %vm5578_vm0, %v13465_v21  ;;  %10608 = vmatpush.msk.msrb.mxu1 %vm5578_vm0, %v13468_v22 }
 0x454   : > { %15720 = vst [vmem:[#allocation9_spill] sm:$0xff] %v13468_v22  ;;  %10611 = vmatpush.msk.msrb.mxu2 %vm5578_vm0, %v13462_v33  ;;  %10604 = vmatmul.msk.f32.gmra.mxu3 %vm5571_vm1, %v10601_v31 }
 0x455   : > { %10606 = vmatmul.msk.f32.vlgmr.msrb.gmra.mxu0 %vm5571_vm1, %v10600_v23  ;;  %10609 = vmatmul.msk.f32.vlgmr.msrb.gmra.mxu1 %vm5571_vm1, %v10600_v23 }
 0x456   : > { %10612 = vmatmul.msk.f32.vlgmr.msrb.gmra.mxu2 %vm5571_vm1, %v10600_v23  ;;  %10617 = vmatpush.msk.msra.mxu0 %vm5578_vm0, %v13346_v37 }
 0x457   : > { %10620 = vmatpush.msk.msra.mxu1 %vm5578_vm0, %v13355_v47  ;;  %10623 = vmatpush.msk.msra.mxu2 %vm5578_vm0, %v13357_v51 }
 0x458   : > { %10629 = vmatpush.msk.msrb.mxu0 %vm5578_vm0, %v13369_v62  ;;  %6966 = vrot.lane.b32.xlu1 %v13353_v3, %s15493_s17 }
 0x459   : > { %6962 = vrot.lane.b32.xlu2 %v13355_v47, %s15493_s17  ;;  %v5841_v29 = vpop.permute.xlu1 %5840  ;;  %v5839_v58 = vpop.permute.xlu0 %5838 }
 0x45a   : > { %v13493_v32 = vsel %vm1219_vm5, %v5841_v29, %v5843_v2  ;;  %v5848_v20 = vsel %vm1219_vm5, %v5839_v58, %v5841_v29  ;;  %v6003_v24 = vpop.permute.xlu2 %6002 }
 0x45b   : > { %10634 = vmatpush.msk.msrb.mxu1 %vm5578_vm0, %v5848_v20  ;;  %10637 = vmatpush.msk.msrb.mxu2 %vm5578_vm0, %v13493_v32 }
 0x45c   : > { %10615 = vmatmul.msk.f32.vlgmr.msrb.gmra.mxu3 %vm5571_vm1, %v10600_v23 }
 0x45d   : > { %10607 = vmatmul.msk.f32.gmra.mxu0 %vm5571_vm1, %v10601_v31  ;;  %10610 = vmatmul.msk.f32.gmra.mxu1 %vm5571_vm1, %v10601_v31 }
 0x45e   : > { %10613 = vmatmul.msk.f32.gmra.mxu2 %vm5571_vm1, %v10601_v31 }
 0x461   : > { %6968 = vrot.lane.b32.xlu2 %v13369_v62, %s15493_s17  ;;  %v13505_v54 = vpop.permute.xlu1 %5846  ;;  %v5845_v12 = vpop.permute.xlu0 %5844 }
 0x462   : > { %v13508_v19 = vsel %vm1219_vm5, %v5843_v2, %v5845_v12  ;;  %v13515_v17 = vsel %vm1219_vm5, %v5845_v12, %v13505_v54  ;;  %v6158_v38 = vpop.permute.xlu2 %6157  ;;  %v10683_v2 = vld [vmem:[%s15473_s3 + $0x50] sm:$0xff]  ;;  %v10684_v12 = vld [vmem:[%s15473_s3 + $0x58] sm:$0xff] }
 0x463   : > { %15721 = vst [vmem:[#allocation14_spill] sm:$0xff] %v13508_v19  ;;  %10640 = vmatpush.msk.msrb.mxu3 %vm5578_vm0, %v13508_v19 }
 0x464   : > { %15722 = vst [vmem:[#allocation7_spill] sm:$0xff] %v13515_v17  ;;  %10616 = vmatmul.msk.f32.gmra.mxu3 %vm5571_vm1, %v10601_v31 }
 0x465   : > { %10618 = vmatmul.msk.f32.vlgmr.msra.gmra.mxu0 %vm5571_vm1, %v5547_v57  ;;  %10621 = vmatmul.msk.f32.vlgmr.msra.gmra.mxu1 %vm5571_vm1, %v5547_v57 }
 0x466   : > { %10624 = vmatmul.msk.f32.vlgmr.msra.gmra.mxu2 %vm5571_vm1, %v5547_v57  ;;  %10643 = vmatpush.msk.msra.mxu0 %vm5578_vm0, %v13515_v17 }
 0x467   : > { %10646 = vmatpush.msk.msra.mxu1 %vm5578_vm0, %v13505_v54 }
 0x469   : > { %v6001_v56 = vpop.permute.xlu1 %6000  ;;  %v5999_v52 = vpop.permute.xlu0 %5998 }
 0x46a   : > { %v6007_v26 = vsel %vm6006_vm2, %v5997_v39, %v5999_v52  ;;  %v13532_v46 = vsel %vm6006_vm2, %v5999_v52, %v6001_v56  ;;  %v13552_v6 = vsel %vm6006_vm2, %v6001_v56, %v6003_v24  ;;  %v6162_v30 = vpop.permute.xlu2 %6161  ;;  %v13737_v39 = vld [vmem:[%s15473_s3 + $0x68] sm:$0xff]  ;;  %v13749_v56 = vld [vmem:[%s15473_s3 + $0x70] sm:$0xff] }
 0x46b   : > { %10651 = vmatpush.msk.msra.mxu2 %vm5578_vm0, %v6007_v26  ;;  %15724 = vst [vmem:[#allocation13_spill] sm:$0xff] %v13552_v6  ;;  %v13762_v26 = vld [vmem:[%s15473_s3 + $0x78] sm:$0xff] }
 0x46c   : > { %10627 = vmatmul.msk.f32.vlgmr.msra.gmra.mxu3 %vm5571_vm1, %v5547_v57 }
 0x46d   : > { %10619 = vmatmul.msk.f32.gmra.mxu0 %vm5571_vm1, %v5548_v14  ;;  %10622 = vmatmul.msk.f32.gmra.mxu1 %vm5571_vm1, %v5548_v14 }
 0x46e   : > { %10625 = vmatmul.msk.f32.gmra.mxu2 %vm5571_vm1, %v5548_v14  ;;  %10654 = vmatpush.msk.msra.mxu3 %vm5578_vm0, %v13532_v46 }
 0x471   : > { %v13541_v49 = vpop.permute.xlu0 %6004  ;;  %v6156_v59 = vpop.permute.xlu1 %6155 }
 0x472   : > { %v13548_v43 = vsel %vm6006_vm2, %v6003_v24, %v13541_v49  ;;  %v6166_v18 = vsel %vm6165_vm4, %v6156_v59, %v6158_v38  ;;  %v6318_v8 = vpop.permute.xlu2 %6317 }
 0x473   : > { %15723 = vst [vmem:[#allocation12_spill] sm:$0xff] %v13548_v43 }
 0x474   : > { %10628 = vmatmul.msk.f32.gmra.mxu3 %vm5571_vm1, %v5548_v14 }
 0x475   : > { %10630 = vmatmul.msk.f32.vlgmr.msrb.gmra.mxu0 %vm5571_vm1, %v5547_v57  ;;  %10635 = vmatmul.msk.f32.vlgmr.msrb.gmra.mxu1 %vm5571_vm1, %v10632_v50  ;;  %v10700_v57 = vld [vmem:[%s15473_s3 + $0x60] sm:$0xff] }
 0x476   : > { %10638 = vmatmul.msk.f32.vlgmr.msrb.gmra.mxu2 %vm5571_vm1, %v10632_v50  ;;  %10657 = vmatpush.msk.msrb.mxu0 %vm5578_vm0, %v13552_v6 }
 0x477   : > { %10660 = vmatpush.msk.msrb.mxu1 %vm5578_vm0, %v13548_v43  ;;  %10663 = vmatpush.msk.msrb.mxu2 %vm5578_vm0, %v13541_v49 }
 0x479   : > { %v5526_v45 = vpop.permute.xlu0 %5525  ;;  %v6160_v53 = vpop.permute.xlu1 %6159 }
 0x47a   : > { %v5532_v60 = vsel %vm1423_vm6, %v13365_v7, %v5526_v45  ;;  %v13594_v34 = vsel %vm6165_vm4, %v6158_v38, %v6160_v53  ;;  %v13599_v25 = vsel %vm6165_vm4, %v6160_v53, %v6162_v30  ;;  %v13657_v10 = vpop.permute.xlu2 %6323  ;;  %vm6810_vm6 = vcmask 474112  }
 0x47b   : > { %v13569_v28 = vmax.f32 %v13341_v61, %v5532_v60  ;;  %15727 = vst [vmem:[#allocation17_spill] sm:$0xff] %v13599_v25  ;;  %v13602_v61 = vmax.f32 %v13395_v42, %v5526_v45 }
 0x47c   : > { %10641 = vmatmul.msk.f32.vlgmr.msrb.gmra.mxu3 %vm5571_vm1, %v10632_v50 }
 0x47d   : > { %15725 = vst [vmem:[#allocation15_spill] sm:$0xff] %v13569_v28  ;;  %10631 = vmatmul.msk.f32.gmra.mxu0 %vm5571_vm1, %v5548_v14  ;;  %10636 = vmatmul.msk.f32.gmra.mxu1 %vm5571_vm1, %v10633_v55 }
 0x47e   : > { %10639 = vmatmul.msk.f32.gmra.mxu2 %vm5571_vm1, %v10633_v55  ;;  %10668 = vmatpush.msk.msrb.mxu3 %vm5578_vm0, %v6166_v18  ;;  %15728 = vst [vmem:[#allocation18_spill] sm:$0xff] %v13602_v61 }
 0x47f   : > { %7399 = vrot.lane.b32.xlu2 %v13569_v28, %s11291_s29  ;;  %7258 = vrot.lane.b32.xlu1 %v13569_v28, %s15495_s26 }
 0x480   : > { %6325 = vrot.lane.b32.xlu0 %v13569_v28, %s15716_s19 }
 0x481   : > { %v13583_v0 = vpop.permute.xlu0 %6163  ;;  %v6316_v15 = vpop.permute.xlu1 %6315 }
 0x482   : > { %v13590_v44 = vsel %vm6165_vm4, %v6162_v30, %v13583_v0  ;;  %v6327_v1 = vsel %vm2448_vm11, %v6316_v15, %v6318_v8  ;;  %v6479_v23 = vpop.permute.xlu2 %6478 }
 0x483   : > { %15726 = vst [vmem:[#allocation10_spill] sm:$0xff] %v13590_v44 }
 0x484   : > { %10642 = vmatmul.msk.f32.gmra.mxu3 %vm5571_vm1, %v10633_v55 }
 0x485   : > { %10644 = vmatmul.msk.f32.vlgmr.msra.gmra.mxu0 %vm5571_vm1, %v10632_v50  ;;  %10647 = vmatmul.msk.f32.vlgmr.msra.gmra.mxu1 %vm5571_vm1, %v10632_v50 }
 0x486   : > { %10652 = vmatmul.msk.f32.vlgmr.msra.gmra.mxu2 %vm5571_vm1, %v10649_v27  ;;  %10671 = vmatpush.msk.msra.mxu0 %vm5578_vm0, %v13594_v34 }
 0x487   : > { %10674 = vmatpush.msk.msra.mxu1 %vm5578_vm0, %v13599_v25  ;;  %10677 = vmatpush.msk.msra.mxu2 %vm5578_vm0, %v13590_v44 }
 0x488   : > { %7823 = vrot.lane.b32.xlu2 %v13602_v61, %s15716_s19  ;;  %7681 = vrot.lane.b32.xlu1 %v13569_v28, %s15729_s20 }
 0x489   : > { %6486 = vrot.lane.b32.xlu0 %v13569_v28, %s15717_s15  ;;  %v6322_v37 = vpop.permute.xlu1 %6321  ;;  %v6320_v35 = vpop.permute.xlu0 %6319 }
 0x48a   : > { %v13637_v13 = vsel %vm2448_vm11, %v6318_v8, %v6320_v35  ;;  %v13640_v4 = vsel %vm2448_vm11, %v6320_v35, %v6322_v37  ;;  %v13662_v7 = vsel %vm2448_vm11, %v6322_v37, %v13657_v10  ;;  %v13707_v58 = vpop.permute.xlu2 %6639 }
 0x48c   : > { %10655 = vmatmul.msk.f32.vlgmr.msra.gmra.mxu3 %vm5571_vm1, %v10649_v27 }
 0x48d   : > { %10645 = vmatmul.msk.f32.gmra.mxu0 %vm5571_vm1, %v10633_v55  ;;  %10648 = vmatmul.msk.f32.gmra.mxu1 %vm5571_vm1, %v10633_v55 }
 0x48e   : > { %10653 = vmatmul.msk.f32.gmra.mxu2 %vm5571_vm1, %v10650_v63  ;;  %10680 = vmatpush.msk.msra.mxu3 %vm5578_vm0, %v13583_v0 }
 0x490   : > { %8240 = vrot.lane.b32.xlu2 %v13602_v61, %s11310_s18  ;;  %8101 = vrot.lane.b32.xlu1 %v13602_v61, %s15718_s16 }
 0x491   : > { %6641 = vrot.lane.b32.xlu0 %v13357_v51, %s15718_s16  ;;  %v6477_v42 = vpop.permute.xlu1 %6476  ;;  %v6481_v9 = vpop.permute.xlu0 %6480 }
 0x492   : > { %v6488_v11 = vsel %vm2858_vm13, %v6477_v42, %v6479_v23  ;;  %v13684_v16 = vsel %vm2858_vm13, %v6479_v23, %v6481_v9  ;;  %v6485_v60 = vpop.permute.xlu2 %6484 }
 0x494   : > { %10656 = vmatmul.msk.f32.gmra.mxu3 %vm5571_vm1, %v10650_v63 }
 0x495   : > { %10658 = vmatmul.msk.f32.vlgmr.msrb.gmra.mxu0 %vm5571_vm1, %v10649_v27  ;;  %10661 = vmatmul.msk.f32.vlgmr.msrb.gmra.mxu1 %vm5571_vm1, %v10649_v27 }
 0x496   : > { %10664 = vmatmul.msk.f32.vlgmr.msrb.gmra.mxu2 %vm5571_vm1, %v10649_v27  ;;  %10685 = vmatpush.msk.msrb.mxu0 %vm5578_vm0, %v6327_v1 }
 0x497   : > { %10688 = vmatpush.msk.msrb.mxu1 %vm5578_vm0, %v13637_v13  ;;  %10691 = vmatpush.msk.msrb.mxu2 %vm5578_vm0, %v13640_v4 }
 0x498   : > { %8795 = vrot.lane.b32.xlu2 %v13602_v61, %s11291_s29  ;;  %8654 = vrot.lane.b32.xlu1 %v13602_v61, %s15495_s26  ;;  %s15730_s26 = smov 56  }
 0x499   : > { %6647 = vrot.lane.b32.xlu0 %v13569_v28, %s15718_s16  ;;  %v6483_v5 = vpop.permute.xlu1 %6482  ;;  %s15731_s16 = smov 122  }
 0x49a   : > { %v13694_v31 = vsel %vm2858_vm13, %v6481_v9, %v6483_v5  ;;  %v13796_v8 = vsel %vm2858_vm13, %v6483_v5, %v6485_v60  ;;  %v6646_v37 = vpop.permute.xlu2 %6645 }
 0x49c   : > { %10669 = vmatmul.msk.f32.vlgmr.msrb.gmra.mxu3 %vm5571_vm1, %v10666_v36 }
 0x49d   : > { %10659 = vmatmul.msk.f32.gmra.mxu0 %vm5571_vm1, %v10650_v63  ;;  %10662 = vmatmul.msk.f32.gmra.mxu1 %vm5571_vm1, %v10650_v63 }
 0x49e   : > { %10665 = vmatmul.msk.f32.gmra.mxu2 %vm5571_vm1, %v10650_v63  ;;  %10694 = vmatpush.msk.msrb.mxu3 %vm5578_vm0, %v13662_v7 }
 0x4a0   : > { %9219 = vperm.xlu2 %11187, %v9215_v40   ;;  %9077 = vrot.lane.b32.xlu1 %v13602_v61, %s15729_s20 }
 0x4a1   : > { %6802 = vrot.lane.b32.xlu0 %v13357_v51, %s11310_s18  ;;  %v6638_v29 = vpop.permute.xlu1 %6637 }
 0x4a2   : > { %v6649_v20 = vsel %vm3268_vm15, %v6638_v29, %v13707_v58  ;;  %v6801_v23 = vpop.permute.xlu2 %6800 }
 0x4a4   : > { %10670 = vmatmul.msk.f32.gmra.mxu3 %vm5571_vm1, %v10667_v41 }
 0x4a5   : > { %10672 = vmatmul.msk.f32.vlgmr.msra.gmra.mxu0 %vm5571_vm1, %v10666_v36  ;;  %10675 = vmatmul.msk.f32.vlgmr.msra.gmra.mxu1 %vm5571_vm1, %v10666_v36 }
 0x4a6   : > { %10678 = vmatmul.msk.f32.vlgmr.msra.gmra.mxu2 %vm5571_vm1, %v10666_v36  ;;  %10702 = vmatpush.msk.msra.mxu1 %vm5578_vm0, %v6488_v11 }
 0x4a7   : > { %10705 = vmatpush.msk.msra.mxu2 %vm5578_vm0, %v13684_v16 }
 0x4a9   : > { %6808 = vrot.lane.b32.xlu0 %v13569_v28, %s11310_s18  ;;  %v6644_v15 = vpop.permute.xlu1 %6643  ;;  %s10161_s18 = scalar_lea.hbm %s15482_s12, %s11398_s25 }
 0x4aa   : > { %v13817_v42 = vsel %vm3268_vm15, %v6644_v15, %v6646_v37  ;;  %s10165_s1 = sshll.u32 %s10161_s18, 4  ;;  %s10166_s1 = int_to_ptr.hbm [resolvable:$true] %s10165_s1 }
 0x4ab   : > { %s11238_s20 = sshra.s32 %s10166_s1, 4  ;;  %s11239_s20 = int_to_ptr.hbm [resolvable:$true] %s11238_s20 }
 0x4ac   : > { %10681 = vmatmul.msk.f32.vlgmr.msra.gmra.mxu3 %vm5571_vm1, %v10666_v36  ;;  %s11240_s2 = scalar_lea.hbm %s11239_s20, 1  ;;  %p11245_p0 = scmp.lt.s32.totalorder %s11239_s20, %s15482_s12 }
 0x4ad   : > { %10673 = vmatmul.msk.f32.gmra.mxu0 %vm5571_vm1, %v10667_v41  ;;  %10676 = vmatmul.msk.f32.gmra.mxu1 %vm5571_vm1, %v10667_v41  ;;  %p11241_p11 = scmp.ne.s32.totalorder %s11239_s20, %s11240_s2  ;;  %p11246_p1 = scmp.lt.s32.totalorder %s11244_s28, %s11240_s2 }
 0x4ae   : > { %10679 = vmatmul.msk.f32.gmra.mxu2 %vm5571_vm1, %v10667_v41  ;;  %10708 = vmatpush.msk.msra.mxu3 %vm5578_vm0, %v13694_v31 }
 0x4af   : > { %p11242_p12 = pnand %p11241_p11, %p11415_p5  ;;  %p11247_p2 = por %p11246_p1, %p11245_p0 }
 0x4b1   : > { %6964 = vrot.lane.b32.xlu0 %v13357_v51, %s15730_s26  ;;  %p11243_p13 = pneg %p11242_p12 }
 0x4b3   : > { %p11248_p3 = pnand %p11247_p2, %p11243_p13 }
 0x4b4   : > { %10682 = vmatmul.msk.f32.gmra.mxu3 %vm5571_vm1, %v10667_v41  ;;  %v6799_v41 = vpop.permute.xlu1 %6798 }
 0x4b5   : > { %10686 = vmatmul.msk.f32.vlgmr.msrb.gmra.mxu0 %vm5571_vm1, %v10683_v2  ;;  %10689 = vmatmul.msk.f32.vlgmr.msrb.gmra.mxu1 %vm5571_vm1, %v10683_v2 }
 0x4b6   : > { %10692 = vmatmul.msk.f32.vlgmr.msrb.gmra.mxu2 %vm5571_vm1, %v10683_v2 }
 0x4b7   : > { %10719 = vmatpush.msk.msrb.mxu2 %vm5578_vm0, %v6649_v20 }
 0x4b9   : > { %6970 = vrot.lane.b32.xlu0 %v13569_v28, %s15730_s26 }
 0x4bc   : > { %10695 = vmatmul.msk.f32.vlgmr.msrb.gmra.mxu3 %vm5571_vm1, %v10683_v2 }
 0x4bd   : > { %10687 = vmatmul.msk.f32.gmra.mxu0 %vm5571_vm1, %v10684_v12  ;;  %10690 = vmatmul.msk.f32.gmra.mxu1 %vm5571_vm1, %v10684_v12 }
 0x4be   : > { %10693 = vmatmul.msk.f32.gmra.mxu2 %vm5571_vm1, %v10684_v12 }
 0x4c1   : > { %7540 = vrot.lane.b32.xlu0 %v13569_v28, %s15731_s16 }
 0x4c4   : > { %10696 = vmatmul.msk.f32.gmra.mxu3 %vm5571_vm1, %v10684_v12 }
 0x4c5   : > { %10703 = vmatmul.msk.f32.vlgmr.msra.gmra.mxu1 %vm5571_vm1, %v10700_v57 }
 0x4c6   : > { %10706 = vmatmul.msk.f32.vlgmr.msra.gmra.mxu2 %vm5571_vm1, %v10700_v57 }
 0x4c9   : > { %7962 = vrot.lane.b32.xlu0 %v13602_v61, %s15717_s15  ;;  %s15853_s15 = smov 126  }
 0x4cc   : > { %10709 = vmatmul.msk.f32.vlgmr.msra.gmra.mxu3 %vm5571_vm1, %v10700_v57 }
 0x4cd   : > { %10704 = vmatmul.msk.f32.gmra.mxu1 %vm5571_vm1, %v13737_v39 }
 0x4ce   : > { %10707 = vmatmul.msk.f32.gmra.mxu2 %vm5571_vm1, %v13737_v39  ;;  %v13755_v52 = vpop.f32.mrf.mxu3 }
 0x4cf   : > { %15732 = vst [vmem:[#allocation25_spill] sm:$0xff] %v13755_v52 }
 0x4d1   : > { %8379 = vrot.lane.b32.xlu0 %v13602_v61, %s15730_s26  ;;  %s404_s26 = sand.u32 1, %s11278_s22  }
 0x4d2   : > { %v13764_v14 = vpop.f32.mrf.mxu1  ;;  %v13774_v38 = vpop.f32.mrf.mxu0 }
 0x4d4   : > { %10710 = vmatmul.msk.f32.gmra.mxu3 %vm5571_vm1, %v13737_v39 }
 0x4d6   : > { %10720 = vmatmul.msk.f32.vlgmr.msrb.gmra.mxu2 %vm5571_vm1, %v13749_v56 }
 0x4d7   : > { %v13770_v50 = vpop.f32.mrf.mxu3 }
 0x4d8   : > { %15733 = vst [vmem:[#allocation37_spill] sm:$0xff] %v13770_v50 }
 0x4d9   : > { %8936 = vrot.lane.b32.xlu0 %v13602_v61, %s15731_s16  ;;  %v13768_v24 = vpop.f32.mrf.mxu2 }
 0x4da   : > { %v13772_v59 = vpop.f32.mrf.mxu1  ;;  %v13782_v53 = vpop.f32.mrf.mxu0 }
 0x4db   : > { %15734 = vst [vmem:[#allocation16_spill] sm:$0xff] %v13772_v59 }
 0x4de   : > { %10721 = vmatmul.msk.f32.gmra.mxu2 %vm5571_vm1, %v13762_v26 }
 0x4df   : > { %v13778_v55 = vpop.f32.mrf.mxu3 }
 0x4e1   : > { %v13776_v45 = vpop.f32.mrf.mxu2 }
 0x4e2   : > { %v13780_v18 = vpop.f32.mrf.mxu1 }
 0x4e7   : > { %v13799_v35 = vpop.f32.mrf.mxu3 }
 0x4e9   : > { %v13791_v63 = vpop.f32.mrf.mxu2 }
 0x4ea   : > { %v13803_v1 = vpop.f32.mrf.mxu1 }
 0x4ef   : > { %v13824_v11 = vpop.f32.mrf.mxu3 }
 0x4f1   : > { %v13819_v9 = vpop.f32.mrf.mxu2 }
 0x4f2   : > { %v13784_v30 = vpop.permute.xlu0 %6325  ;;  %15736 = vst [vmem:[#allocation32_spill] sm:$0xff] %v13819_v9  ;;  %v13833_v20 = vpop.f32.mrf.mxu1 }
 0x4f3   : > { %v13789_v27 = vsel %vm2448_vm11, %v13657_v10, %v13784_v30  ;;  %v13807_v10 = vpop.f32.mrf.mxu0  ;;  %15737 = vst [vmem:[#allocation31_spill] sm:$0xff] %v13833_v20 }
 0x4f4   : > { %10697 = vmatpush.msk.msra.mxu0 %vm5578_vm0, %v13789_v27  ;;  %15735 = vst [vmem:[#allocation22_spill] sm:$0xff] %v13807_v10  ;;  %v10734_v10 = vld [vmem:[%s15473_s3 + $0x80] sm:$0xff] }
 0x4f5   : > { %10698 = vmatmul.msk.f32.vlgmr.msra.gmra.mxu0 %vm5571_vm1, %v10683_v2 }
 0x4f6   : > { %10711 = vmatpush.msk.msrb.mxu0 %vm5578_vm0, %v13796_v8 }
 0x4f7   : > { %v13850_v61 = vpop.f32.mrf.mxu3 }
 0x4fb   : > { %v13805_v36 = vpop.permute.xlu0 %6486 }
 0x4fc   : > { %v13811_v40 = vsel %vm2858_vm13, %v6485_v60, %v13805_v36  ;;  %v6805_v60 = vpop.permute.xlu1 %6804 }
 0x4fd   : > { %10714 = vmatpush.msk.msrb.mxu1 %vm5578_vm0, %v13811_v40  ;;  %10699 = vmatmul.msk.f32.gmra.mxu0 %vm5571_vm1, %v10684_v12  ;;  %v13839_v12 = vpop.f32.mrf.mxu0 }
 0x4fe   : > { %10715 = vmatmul.msk.f32.vlgmr.msrb.gmra.mxu1 %vm5571_vm1, %v10700_v57  ;;  %15738 = vst [vmem:[#allocation24_spill] sm:$0xff] %v13839_v12 }
 0x4ff   : > { %10728 = vmatpush.msk.msra.mxu1 %vm5578_vm0, %v13817_v42  ;;  %v13879_v9 = vpop.f32.mrf.mxu3 }
 0x503   : > { %v6642_v5 = vpop.permute.xlu0 %6641 }
 0x504   : > { %v13828_v2 = vsel %vm3268_vm15, %v13707_v58, %v6642_v5  ;;  %v13831_v29 = vsel %vm3268_vm15, %v6642_v5, %v6644_v15  ;;  %v6811_v58 = vsel %vm6810_vm6, %v6799_v41, %v6801_v23  ;;  %v13847_v15 = vpop.f32.mrf.mxu2  ;;  %v6807_v5 = vpop.permute.xlu2 %6806 }
 0x505   : > { %10722 = vmatpush.msk.msrb.mxu3 %vm5578_vm0, %v13828_v2  ;;  %10725 = vmatpush.msk.msra.mxu0 %vm5578_vm0, %v13831_v29  ;;  %v13865_v41 = vsel %vm6810_vm6, %v6805_v60, %v6807_v5 }
 0x506   : > { %10712 = vmatmul.msk.f32.vlgmr.msrb.gmra.mxu0 %vm5571_vm1, %v10700_v57  ;;  %10716 = vmatmul.msk.f32.gmra.mxu1 %vm5571_vm1, %v13737_v39  ;;  %15740 = vst [vmem:[#allocation23_spill] sm:$0xff] %v13865_v41 }
 0x507   : > { %10723 = vmatmul.msk.f32.vlgmr.msrb.gmra.mxu3 %vm5571_vm1, %v13749_v56  ;;  %v13920_v52 = vpop.f32.mrf.mxu3 }
 0x508   : > { %10736 = vmatpush.msk.msra.mxu3 %vm5578_vm0, %v6811_v58  ;;  %v13867_v58 = vpop.f32.mrf.mxu1  ;;  %15748 = vst [vmem:[#allocation46_spill] sm:$0xff] %v13920_v52 }
 0x509   : > { %15741 = vst [vmem:[#allocation19_spill] sm:$0xff] %v13867_v58 }
 0x50b   : > { %v13852_v50 = vpop.permute.xlu0 %6647 }
 0x50c   : > { %15739 = vst [vmem:[#allocation20_spill] sm:$0xff] %v13852_v50  ;;  %v13856_v57 = vsel %vm3268_vm15, %v6646_v37, %v13852_v50  ;;  %v13873_v37 = vpop.f32.mrf.mxu0  ;;  %v13877_v50 = vpop.f32.mrf.mxu2 }
 0x50d   : > { %10731 = vmatpush.msk.msra.mxu2 %vm5578_vm0, %v13856_v57  ;;  %15742 = vst [vmem:[#allocation29_spill] sm:$0xff] %v13877_v50  ;;  %v6963_v20 = vpop.permute.xlu2 %6962 }
 0x50e   : > { %10713 = vmatmul.msk.f32.gmra.mxu0 %vm5571_vm1, %v13737_v39  ;;  %10729 = vmatmul.msk.f32.vlgmr.msra.gmra.mxu1 %vm5571_vm1, %v13749_v56  ;;  %v6961_v39 = vpop.permute.xlu1 %6960 }
 0x50f   : > { %10724 = vmatmul.msk.f32.gmra.mxu3 %vm5571_vm1, %v13762_v26  ;;  %10732 = vmatmul.msk.f32.vlgmr.msra.gmra.mxu2 %vm5571_vm1, %v13749_v56 }
 0x510   : > { %10745 = vmatpush.msk.msrb.mxu2 %vm5578_vm0, %v13865_v41 }
 0x513   : > { %v6803_v12 = vpop.permute.xlu0 %6802 }
 0x514   : > { %v13882_v58 = vsel %vm6810_vm6, %v6801_v23, %v6803_v12  ;;  %v13885_v59 = vsel %vm6810_vm6, %v6803_v12, %v6805_v60  ;;  %v6973_v23 = vsel %vm6972_vm14, %v6961_v39, %v6963_v20  ;;  %v13903_v12 = vpop.f32.mrf.mxu1  ;;  %v13905_v60 = vpop.f32.mrf.mxu0  ;;  %v10735_v39 = vld [vmem:[%s15473_s3 + $0x88] sm:$0xff] }
 0x515   : > { %15743 = vst [vmem:[#allocation27_spill] sm:$0xff] %v13882_v58  ;;  %10739 = vmatpush.msk.msrb.mxu0 %vm5578_vm0, %v13882_v58  ;;  %10742 = vmatpush.msk.msrb.mxu1 %vm5578_vm0, %v13885_v59 }
 0x516   : > { %15744 = vst [vmem:[#allocation28_spill] sm:$0xff] %v13885_v59  ;;  %10726 = vmatmul.msk.f32.vlgmr.msra.gmra.mxu0 %vm5571_vm1, %v13749_v56  ;;  %10730 = vmatmul.msk.f32.gmra.mxu1 %vm5571_vm1, %v13762_v26  ;;  %v6967_v59 = vpop.permute.xlu1 %6966  ;;  %v13909_v56 = vpop.f32.mrf.mxu2 }
 0x517   : > { %10733 = vmatmul.msk.f32.gmra.mxu2 %vm5571_vm1, %v13762_v26  ;;  %10737 = vmatmul.msk.f32.vlgmr.msra.gmra.mxu3 %vm5571_vm1, %v10734_v10  ;;  %15746 = vst [vmem:[#allocation30_spill] sm:$0xff] %v13909_v56 }
 0x518   : > { %10753 = vmatpush.msk.msra.mxu0 %vm5578_vm0, %v6973_v23  ;;  %v6969_v23 = vpop.permute.xlu2 %6968 }
 0x519   : > { %v13926_v56 = vsel %vm6972_vm14, %v6967_v59, %v6969_v23 }
 0x51a   : > { %15749 = vst [vmem:[#allocation57_spill] sm:$0xff] %v13926_v56 }
 0x51b   : > { %v13907_v41 = vpop.permute.xlu0 %6808 }
 0x51c   : > { %15745 = vst [vmem:[#allocation38_spill] sm:$0xff] %v13907_v41  ;;  %v13913_v58 = vsel %vm6810_vm6, %v6807_v5, %v13907_v41  ;;  %v13932_v5 = vpop.f32.mrf.mxu1  ;;  %v13934_v41 = vpop.f32.mrf.mxu0 }
 0x51d   : > { %15747 = vst [vmem:[#allocation33_spill] sm:$0xff] %v13913_v58  ;;  %10748 = vmatpush.msk.msrb.mxu3 %vm5578_vm0, %v13913_v58 }
 0x51e   : > { %10727 = vmatmul.msk.f32.gmra.mxu0 %vm5571_vm1, %v13762_v26  ;;  %10743 = vmatmul.msk.f32.vlgmr.msrb.gmra.mxu1 %vm5571_vm1, %v10734_v10  ;;  %v13946_v50 = vpop.f32.mrf.mxu2 }
 0x51f   : > { %10738 = vmatmul.msk.f32.gmra.mxu3 %vm5571_vm1, %v10735_v39  ;;  %10746 = vmatmul.msk.f32.vlgmr.msrb.gmra.mxu2 %vm5571_vm1, %v10734_v10  ;;  %15752 = vst [vmem:[#allocation52_spill] sm:$0xff] %v13946_v50  ;;  %v10769_v50 = vld [vmem:[%s15473_s3 + $0xa8] sm:$0xff] }
 0x520   : > { %10762 = vmatpush.msk.msra.mxu3 %vm5578_vm0, %v13926_v56 }
 0x523   : > { %v6965_v58 = vpop.permute.xlu0 %6964 }
 0x524   : > { %v13937_v52 = vsel %vm6972_vm14, %v6963_v20, %v6965_v58  ;;  %v13940_v26 = vsel %vm6972_vm14, %v6965_v58, %v6967_v59  ;;  %v13952_v20 = vpop.f32.mrf.mxu3  ;;  %v10751_v58 = vld [vmem:[%s15473_s3 + $0x90] sm:$0xff]  ;;  %v13969_v56 = vpop.f32.mrf.mxu1 }
 0x525   : > { %15750 = vst [vmem:[#allocation21_spill] sm:$0xff] %v13937_v52  ;;  %10756 = vmatpush.msk.msra.mxu1 %vm5578_vm0, %v13937_v52  ;;  %10759 = vmatpush.msk.msra.mxu2 %vm5578_vm0, %v13940_v26 }
 0x526   : > { %15751 = vst [vmem:[#allocation42_spill] sm:$0xff] %v13940_v26  ;;  %10740 = vmatmul.msk.f32.vlgmr.msrb.gmra.mxu0 %vm5571_vm1, %v10734_v10  ;;  %10744 = vmatmul.msk.f32.gmra.mxu1 %vm5571_vm1, %v10735_v39 }
 0x527   : > { %10747 = vmatmul.msk.f32.gmra.mxu2 %vm5571_vm1, %v10735_v39  ;;  %10749 = vmatmul.msk.f32.vlgmr.msrb.gmra.mxu3 %vm5571_vm1, %v10734_v10 }
 0x528   : > { %10770 = vmatpush.msk.msrb.mxu1 %vm5578_vm0, %v13355_v47  ;;  %10773 = vmatpush.msk.msrb.mxu2 %vm5578_vm0, %v13357_v51  ;;  %v13973_v47 = vpop.f32.mrf.mxu0  ;;  %v10752_v51 = vld [vmem:[%s15473_s3 + $0x98] sm:$0xff] }
 0x529   : > { %10776 = vmatpush.msk.msrb.mxu3 %vm5578_vm0, %v13353_v3  ;;  %v13979_v3 = vpop.f32.mrf.mxu2 }
 0x52b   : > { %v13960_v59 = vpop.permute.xlu0 %6970 }
 0x52c   : > { %15753 = vst [vmem:[#allocation35_spill] sm:$0xff] %v13960_v59  ;;  %v13967_v10 = vsel %vm6972_vm14, %v6969_v23, %v13960_v59  ;;  %v13985_v23 = vpop.f32.mrf.mxu3  ;;  %v14007_v59 = vpop.permute.xlu1 %7258 }
 0x52d   : > { %15754 = vst [vmem:[#allocation36_spill] sm:$0xff] %v13967_v10  ;;  %10765 = vmatpush.msk.msrb.mxu0 %vm5578_vm0, %v13967_v10  ;;  %v10768_v10 = vld [vmem:[%s15473_s3 + $0xa0] sm:$0xff] }
 0x52e   : > { %10741 = vmatmul.msk.f32.gmra.mxu0 %vm5571_vm1, %v10735_v39  ;;  %10757 = vmatmul.msk.f32.vlgmr.msra.gmra.mxu1 %vm5571_vm1, %v10751_v58  ;;  %15755 = vst [vmem:[#allocation51_spill] sm:$0xff] %v14007_v59 }
 0x52f   : > { %10750 = vmatmul.msk.f32.gmra.mxu3 %vm5571_vm1, %v10735_v39  ;;  %10760 = vmatmul.msk.f32.vlgmr.msra.gmra.mxu2 %vm5571_vm1, %v10751_v58  ;;  %v13992_v39 = vpop.f32.mrf.mxu1 }
 0x530   : > { %10782 = vmatpush.msk.msra.mxu1 %vm5578_vm0, %v13569_v28  ;;  %10787 = vmatpush.msk.msra.mxu2 %vm5578_vm0, %v13465_v21  ;;  %v13996_v28 = vpop.f32.mrf.mxu0 }
 0x531   : > { %v14002_v21 = vpop.f32.mrf.mxu2 }
 0x534   : > { %v14009_v26 = vpop.f32.mrf.mxu3 }
 0x535   : > { %15756 = vst [vmem:[#allocation26_spill] sm:$0xff] %v14009_v26 }
 0x536   : > { %10754 = vmatmul.msk.f32.vlgmr.msra.gmra.mxu0 %vm5571_vm1, %v10751_v58  ;;  %10758 = vmatmul.msk.f32.gmra.mxu1 %vm5571_vm1, %v10752_v51 }
 0x537   : > { %10761 = vmatmul.msk.f32.gmra.mxu2 %vm5571_vm1, %v10752_v51  ;;  %10763 = vmatmul.msk.f32.vlgmr.msra.gmra.mxu3 %vm5571_vm1, %v10751_v58 }
 0x538   : > { %10779 = vmatpush.msk.msra.mxu0 %vm5578_vm0, %v13369_v62  ;;  %10790 = vmatpush.msk.msra.mxu3 %vm5578_vm0, %v13468_v22  ;;  %v14016_v62 = vsel %vm817_vm3, %v13446_v48, %v14007_v59  ;;  %v14024_v22 = vpop.f32.mrf.mxu1  ;;  %v14026_v52 = vpop.f32.mrf.mxu0 }
 0x539   : > { %15757 = vst [vmem:[#allocation44_spill] sm:$0xff] %v14016_v62  ;;  %v14031_v48 = vpop.f32.mrf.mxu2 }
 0x53a   : > { %15758 = vst [vmem:[#allocation59_spill] sm:$0xff] %v14024_v22 }
 0x53b   : > { %15759 = vst [vmem:[#allocation43_spill] sm:$0xff] %v14026_v52 }
 0x53c   : > { %v14033_v26 = vpop.f32.mrf.mxu3 }
 0x53d   : > { %15760 = vst [vmem:[#allocation40_spill] sm:$0xff] %v14033_v26 }
 0x53e   : > { %10755 = vmatmul.msk.f32.gmra.mxu0 %vm5571_vm1, %v10752_v51  ;;  %10771 = vmatmul.msk.f32.vlgmr.msrb.gmra.mxu1 %vm5571_vm1, %v10768_v10 }
 0x53f   : > { %10764 = vmatmul.msk.f32.gmra.mxu3 %vm5571_vm1, %v10752_v51  ;;  %10774 = vmatmul.msk.f32.vlgmr.msrb.gmra.mxu2 %vm5571_vm1, %v10768_v10 }
 0x540   : > { %10796 = vmatpush.msk.msrb.mxu1 %vm5578_vm0, %v14016_v62  ;;  %10799 = vmatpush.msk.msrb.mxu2 %vm5578_vm0, %v14007_v59  ;;  %v14043_v59 = vpop.f32.mrf.mxu1  ;;  %v14045_v62 = vpop.permute.xlu2 %7399 }
 0x541   : > { %15761 = vst [vmem:[#allocation60_spill] sm:$0xff] %v14043_v59  ;;  %v14047_v52 = vpop.f32.mrf.mxu0  ;;  %v14052_v26 = vpop.f32.mrf.mxu2 }
 0x542   : > { %15762 = vst [vmem:[#allocation34_spill] sm:$0xff] %v14045_v62 }
 0x546   : > { %10766 = vmatmul.msk.f32.vlgmr.msrb.gmra.mxu0 %vm5571_vm1, %v10751_v58  ;;  %10772 = vmatmul.msk.f32.gmra.mxu1 %vm5571_vm1, %v10769_v50  ;;  %v10785_v58 = vld [vmem:[%s15473_s3 + $0xb0] sm:$0xff] }
 0x547   : > { %10775 = vmatmul.msk.f32.gmra.mxu2 %vm5571_vm1, %v10769_v50  ;;  %10777 = vmatmul.msk.f32.vlgmr.msrb.gmra.mxu3 %vm5571_vm1, %v10768_v10 }
 0x548   : > { %10793 = vmatpush.msk.msrb.mxu0 %vm5578_vm0, %v13462_v33  ;;  %10804 = vmatpush.msk.msrb.mxu3 %vm5578_vm0, %v13493_v32  ;;  %v14059_v32 = vsel %vm1219_vm5, %v13505_v54, %v14045_v62  ;;  %v14063_v33 = vpop.f32.mrf.mxu3  ;;  %v14072_v59 = vpop.f32.mrf.mxu1 }
 0x549   : > { %15763 = vst [vmem:[#allocation50_spill] sm:$0xff] %v14059_v32  ;;  %v14074_v54 = vpop.f32.mrf.mxu0 }
 0x54a   : > { %15764 = vst [vmem:[#allocation47_spill] sm:$0xff] %v14074_v54 }
 0x54e   : > { %10767 = vmatmul.msk.f32.gmra.mxu0 %vm5571_vm1, %v10752_v51  ;;  %10783 = vmatmul.msk.f32.vlgmr.msra.gmra.mxu1 %vm5571_vm1, %v10768_v10  ;;  %v10786_v51 = vld [vmem:[%s15473_s3 + $0xb8] sm:$0xff] }
 0x54f   : > { %10778 = vmatmul.msk.f32.gmra.mxu3 %vm5571_vm1, %v10769_v50  ;;  %10788 = vmatmul.msk.f32.vlgmr.msra.gmra.mxu2 %vm5571_vm1, %v10785_v58 }
 0x550   : > { %10810 = vmatpush.msk.msra.mxu1 %vm5578_vm0, %v13515_v17  ;;  %10813 = vmatpush.msk.msra.mxu2 %vm5578_vm0, %v14059_v32  ;;  %v14080_v17 = vpop.f32.mrf.mxu2  ;;  %v14086_v32 = vpop.f32.mrf.mxu3 }
 0x551   : > { %15765 = vst [vmem:[#allocation48_spill] sm:$0xff] %v14080_v17  ;;  %v14094_v54 = vpop.f32.mrf.mxu0 }
 0x552   : > { %15767 = vst [vmem:[#allocation75_spill] sm:$0xff] %v14094_v54 }
 0x556   : > { %10780 = vmatmul.msk.f32.vlgmr.msra.gmra.mxu0 %vm5571_vm1, %v10768_v10  ;;  %10784 = vmatmul.msk.f32.gmra.mxu1 %vm5571_vm1, %v10769_v50  ;;  %v14090_v10 = vpop.f32.mrf.mxu1 }
 0x557   : > { %10789 = vmatmul.msk.f32.gmra.mxu2 %vm5571_vm1, %v10786_v51  ;;  %10791 = vmatmul.msk.f32.vlgmr.msra.gmra.mxu3 %vm5571_vm1, %v10785_v58  ;;  %15766 = vst [vmem:[#allocation67_spill] sm:$0xff] %v14090_v10  ;;  %v10802_v10 = vld [vmem:[%s15473_s3 + $0xc0] sm:$0xff] }
 0x558   : > { %10807 = vmatpush.msk.msra.mxu0 %vm5578_vm0, %v13508_v19  ;;  %10816 = vmatpush.msk.msra.mxu3 %vm5578_vm0, %v14045_v62  ;;  %v14100_v62 = vpop.f32.mrf.mxu2  ;;  %v14102_v19 = vpop.permute.xlu0 %7540 }
 0x559   : > { %15768 = vst [vmem:[#allocation39_spill] sm:$0xff] %v14100_v62 }
 0x55a   : > { %15769 = vst [vmem:[#allocation58_spill] sm:$0xff] %v14102_v19 }
 0x55e   : > { %10781 = vmatmul.msk.f32.gmra.mxu0 %vm5571_vm1, %v10769_v50  ;;  %10797 = vmatmul.msk.f32.vlgmr.msrb.gmra.mxu1 %vm5571_vm1, %v10785_v58  ;;  %v14104_v50 = vpop.f32.mrf.mxu3 }
 0x55f   : > { %10792 = vmatmul.msk.f32.gmra.mxu3 %vm5571_vm1, %v10786_v51  ;;  %10800 = vmatmul.msk.f32.vlgmr.msrb.gmra.mxu2 %vm5571_vm1, %v10785_v58 }
 0x560   : > { %10824 = vmatpush.msk.msrb.mxu1 %vm5578_vm0, %v13552_v6  ;;  %10827 = vmatpush.msk.msrb.mxu2 %vm5578_vm0, %v13548_v43  ;;  %v14114_v6 = vsel %vm6006_vm2, %v13541_v49, %v14102_v19  ;;  %v14122_v43 = vpop.f32.mrf.mxu1  ;;  %v14126_v62 = vpop.f32.mrf.mxu2  ;;  %v10803_v49 = vld [vmem:[%s15473_s3 + $0xc8] sm:$0xff] }
 0x561   : > { %15770 = vst [vmem:[#allocation74_spill] sm:$0xff] %v14114_v6 }
 0x562   : > { %15771 = vst [vmem:[#allocation49_spill] sm:$0xff] %v14122_v43 }
 0x566   : > { %10794 = vmatmul.msk.f32.vlgmr.msrb.gmra.mxu0 %vm5571_vm1, %v10785_v58  ;;  %10798 = vmatmul.msk.f32.gmra.mxu1 %vm5571_vm1, %v10786_v51  ;;  %v14124_v58 = vpop.f32.mrf.mxu0  ;;  %v14131_v54 = vpop.f32.mrf.mxu3 }
 0x567   : > { %10801 = vmatmul.msk.f32.gmra.mxu2 %vm5571_vm1, %v10786_v51  ;;  %10805 = vmatmul.msk.f32.vlgmr.msrb.gmra.mxu3 %vm5571_vm1, %v10802_v10  ;;  %15772 = vst [vmem:[#allocation54_spill] sm:$0xff] %v14124_v58 }
 0x568   : > { %10821 = vmatpush.msk.msrb.mxu0 %vm5578_vm0, %v13532_v46  ;;  %10830 = vmatpush.msk.msrb.mxu3 %vm5578_vm0, %v14114_v6  ;;  %v14143_v6 = vpop.f32.mrf.mxu1  ;;  %v14145_v58 = vpop.f32.mrf.mxu2 }
 0x569   : > { %15773 = vst [vmem:[#allocation68_spill] sm:$0xff] %v14143_v6  ;;  %v10819_v6 = vld [vmem:[%s15473_s3 + $0xd0] sm:$0xff] }
 0x56a   : > { %15774 = vst [vmem:[#allocation41_spill] sm:$0xff] %v14145_v58 }
 0x56e   : > { %10795 = vmatmul.msk.f32.gmra.mxu0 %vm5571_vm1, %v10786_v51  ;;  %10811 = vmatmul.msk.f32.vlgmr.msra.gmra.mxu1 %vm5571_vm1, %v10802_v10  ;;  %v14151_v51 = vpop.f32.mrf.mxu3 }
 0x56f   : > { %10806 = vmatmul.msk.f32.gmra.mxu3 %vm5571_vm1, %v10803_v49  ;;  %10814 = vmatmul.msk.f32.vlgmr.msra.gmra.mxu2 %vm5571_vm1, %v10802_v10  ;;  %15775 = vst [vmem:[#allocation64_spill] sm:$0xff] %v14151_v51 }
 0x570   : > { %10838 = vmatpush.msk.msra.mxu1 %vm5578_vm0, %v13594_v34  ;;  %10841 = vmatpush.msk.msra.mxu2 %vm5578_vm0, %v13599_v25 }
 0x572   : > { %v14141_v46 = vpop.f32.mrf.mxu0 }
 0x576   : > { %10808 = vmatmul.msk.f32.vlgmr.msra.gmra.mxu0 %vm5571_vm1, %v10802_v10  ;;  %10812 = vmatmul.msk.f32.gmra.mxu1 %vm5571_vm1, %v10803_v49 }
 0x577   : > { %10815 = vmatmul.msk.f32.gmra.mxu2 %vm5571_vm1, %v10803_v49  ;;  %10817 = vmatmul.msk.f32.vlgmr.msra.gmra.mxu3 %vm5571_vm1, %v10802_v10  ;;  %v14166_v10 = vpop.permute.xlu1 %7681 }
 0x578   : > { %10833 = vmatpush.msk.msra.mxu0 %vm5578_vm0, %v14102_v19  ;;  %10844 = vmatpush.msk.msra.mxu3 %vm5578_vm0, %v13590_v44  ;;  %15776 = vst [vmem:[#allocation76_spill] sm:$0xff] %v14166_v10  ;;  %v14170_v19 = vpop.f32.mrf.mxu2  ;;  %v14176_v44 = vpop.f32.mrf.mxu3 }
 0x579   : > { %15777 = vst [vmem:[#allocation56_spill] sm:$0xff] %v14170_v19  ;;  %v14190_v19 = vsel %vm6165_vm4, %v13583_v0, %v14166_v10  ;;  %v10836_v0 = vld [vmem:[%s15473_s3 + $0xe0] sm:$0xff] }
 0x57a   : > { %v14157_v34 = vpop.f32.mrf.mxu0  ;;  %15778 = vst [vmem:[#allocation55_spill] sm:$0xff] %v14176_v44 }
 0x57b   : > { %v14159_v25 = vpop.f32.mrf.mxu1  ;;  %15779 = vst [vmem:[#allocation77_spill] sm:$0xff] %v14190_v19 }
 0x57e   : > { %10809 = vmatmul.msk.f32.gmra.mxu0 %vm5571_vm1, %v10803_v49  ;;  %10825 = vmatmul.msk.f32.vlgmr.msrb.gmra.mxu1 %vm5571_vm1, %v10819_v6 }
 0x57f   : > { %10818 = vmatmul.msk.f32.gmra.mxu3 %vm5571_vm1, %v10803_v49  ;;  %10828 = vmatmul.msk.f32.vlgmr.msrb.gmra.mxu2 %vm5571_vm1, %v10819_v6  ;;  %v10820_v49 = vld [vmem:[%s15473_s3 + $0xd8] sm:$0xff] }
 0x580   : > { %10850 = vmatpush.msk.msrb.mxu1 %vm5578_vm0, %v14166_v10  ;;  %10855 = vmatpush.msk.msrb.mxu2 %vm5578_vm0, %v13637_v13  ;;  %v14198_v13 = vpop.f32.mrf.mxu2  ;;  %v7824_v10 = vpop.permute.xlu2 %7823 }
 0x581   : > { %15780 = vst [vmem:[#allocation83_spill] sm:$0xff] %v14198_v13 }
 0x583   : > { %v14178_v43 = vpop.f32.mrf.mxu0  ;;  %v14180_v51 = vpop.f32.mrf.mxu1 }
 0x586   : > { %10822 = vmatmul.msk.f32.vlgmr.msrb.gmra.mxu0 %vm5571_vm1, %v10819_v6  ;;  %10826 = vmatmul.msk.f32.gmra.mxu1 %vm5571_vm1, %v10820_v49 }
 0x587   : > { %10829 = vmatmul.msk.f32.gmra.mxu2 %vm5571_vm1, %v10820_v49  ;;  %10831 = vmatmul.msk.f32.vlgmr.msrb.gmra.mxu3 %vm5571_vm1, %v10819_v6 }
 0x588   : > { %10847 = vmatpush.msk.msrb.mxu0 %vm5578_vm0, %v14190_v19  ;;  %10858 = vmatpush.msk.msrb.mxu3 %vm5578_vm0, %v13640_v4  ;;  %v7825_v4 = vsel %vm2448_vm11, %v13784_v30, %v7824_v10  ;;  %v10837_v30 = vld [vmem:[%s15473_s3 + $0xe8] sm:$0xff] }
 0x58a   : > { %v14200_v44 = vpop.f32.mrf.mxu3 }
 0x58b   : > { %v14202_v58 = vpop.f32.mrf.mxu0  ;;  %v14204_v17 = vpop.f32.mrf.mxu1 }
 0x58c   : > { %15781 = vst [vmem:[#allocation45_spill] sm:$0xff] %v14202_v58 }
 0x58e   : > { %10823 = vmatmul.msk.f32.gmra.mxu0 %vm5571_vm1, %v10820_v49  ;;  %10839 = vmatmul.msk.f32.vlgmr.msra.gmra.mxu1 %vm5571_vm1, %v10836_v0 }
 0x58f   : > { %10832 = vmatmul.msk.f32.gmra.mxu3 %vm5571_vm1, %v10820_v49  ;;  %10842 = vmatmul.msk.f32.vlgmr.msra.gmra.mxu2 %vm5571_vm1, %v10836_v0 }
 0x590   : > { %10864 = vmatpush.msk.msra.mxu1 %vm5578_vm0, %v13789_v27  ;;  %10867 = vmatpush.msk.msra.mxu2 %vm5578_vm0, %v7825_v4  ;;  %v5830_v4 = vadd.f32 %v13873_v37, %v13778_v55 }
 0x592   : > { %v14218_v19 = vpop.f32.mrf.mxu3  ;;  %v6779_v13 = vpop.f32.mrf.mxu2 }
 0x593   : > { %15782 = vst [vmem:[#allocation66_spill] sm:$0xff] %v14218_v19  ;;  %v14220_v22 = vpop.f32.mrf.mxu0  ;;  %v14222_v58 = vpop.f32.mrf.mxu1  ;;  %v14246_v19 = vld [vmem:[%s15473_s3 + $0xf0] sm:$0xff] }
 0x594   : > { %15783 = vst [vmem:[#allocation84_spill] sm:$0xff] %v14220_v22 }
 0x596   : > { %10834 = vmatmul.msk.f32.vlgmr.msra.gmra.mxu0 %vm5571_vm1, %v10819_v6  ;;  %10840 = vmatmul.msk.f32.gmra.mxu1 %vm5571_vm1, %v10837_v30 }
 0x597   : > { %10843 = vmatmul.msk.f32.gmra.mxu2 %vm5571_vm1, %v10837_v30  ;;  %10845 = vmatmul.msk.f32.vlgmr.msra.gmra.mxu3 %vm5571_vm1, %v10836_v0 }
 0x598   : > { %10861 = vmatpush.msk.msra.mxu0 %vm5578_vm0, %v13662_v7  ;;  %10872 = vmatpush.msk.msra.mxu3 %vm5578_vm0, %v13684_v16  ;;  %v5987_v7 = vadd.f32 %v13903_v12, %v5830_v4  ;;  %v5833_v12 = vadd.f32 %v13905_v60, %v13799_v35 }
 0x59a   : > { %v6782_v27 = vpop.f32.mrf.mxu2  ;;  %v14235_v10 = vpop.f32.mrf.mxu3  ;;  %v6146_v16 = vadd.f32 %v13979_v3, %v5987_v7 }
 0x59b   : > { %15784 = vst [vmem:[#allocation63_spill] sm:$0xff] %v14235_v10  ;;  %v14239_v22 = vpop.f32.mrf.mxu0  ;;  %v14241_v6 = vpop.f32.mrf.mxu1 }
 0x59c   : > { %15785 = vst [vmem:[#allocation65_spill] sm:$0xff] %v14239_v22  ;;  %v7963_v10 = vpop.permute.xlu0 %7962 }
 0x59d   : > { %v7964_v35 = vsel %vm2858_vm13, %v13805_v36, %v7963_v10  ;;  %vm10126_vm13 = vcmask 1043456  }
 0x59e   : > { %10835 = vmatmul.msk.f32.gmra.mxu0 %vm5571_vm1, %v10820_v49  ;;  %10851 = vmatmul.msk.f32.vlgmr.msrb.gmra.mxu1 %vm5571_vm1, %v10836_v0  ;;  %v6305_v49 = vadd.f32 %v14063_v33, %v6146_v16  ;;  %v5992_v33 = vadd.f32 %v13932_v5, %v5833_v12  ;;  %v5761_v16 = vadd.f32 %v13780_v18, %v13774_v38 }
 0x59f   : > { %10846 = vmatmul.msk.f32.gmra.mxu3 %vm5571_vm1, %v10837_v30  ;;  %10856 = vmatmul.msk.f32.vlgmr.msrb.gmra.mxu2 %vm5571_vm1, %v14246_v19 }
 0x5a0   : > { %10878 = vmatpush.msk.msrb.mxu1 %vm5578_vm0, %v13796_v8  ;;  %10881 = vmatpush.msk.msrb.mxu2 %vm5578_vm0, %v13811_v40  ;;  %v14273_v8 = vld [vmem:[%s15473_s3 + $0xf8] sm:$0xff]  ;;  %v6467_v3 = vadd.f32 %v14141_v46, %v6305_v49  ;;  %v5807_v40 = vadd.f32 %v13824_v11, %v13768_v24  ;;  %v6151_v24 = vadd.f32 %v14002_v21, %v5992_v33  ;;  %v15789_v33 = vld [vmem:[#allocation45_spill] sm:$0xff] }
 0x5a2   : > { %v14259_v55 = vpop.f32.mrf.mxu3  ;;  %v14261_v37 = vpop.f32.mrf.mxu2  ;;  %v6628_v60 = vadd.f32 %v14159_v25, %v6467_v3  ;;  %v5986_v36 = vadd.f32 %v13934_v41, %v5807_v40  ;;  %v6310_v25 = vadd.f32 %v14086_v32, %v6151_v24  ;;  %v5810_v41 = vadd.f32 %v13850_v61, %v13776_v45  ;;  %v15788_v3 = vld [vmem:[#allocation22_spill] sm:$0xff]  ;;  %v14379_v40 = vld [vmem:[%s15473_s3 + $0x108] sm:$0xff] }
 0x5a3   : > { %v14266_v4 = vpop.f32.mrf.mxu0  ;;  %v14268_v22 = vpop.f32.mrf.mxu1  ;;  %v15791_v24 = vld [vmem:[#allocation32_spill] sm:$0xff] }
 0x5a4   : > { %v6789_v11 = vadd.f32 %v6779_v13, %v6628_v60  ;;  %v6145_v21 = vadd.f32 %v13969_v56, %v5986_v36  ;;  %v5984_v56 = vadd.f32 %v13847_v15, %v5761_v16  ;;  %v5784_v15 = vadd.f32 %v13791_v63, %v13764_v14  ;;  %v15786_v63 = vld [vmem:[#allocation29_spill] sm:$0xff]  ;;  %v15790_v60 = vld [vmem:[#allocation16_spill] sm:$0xff] }
 0x5a6   : > { %10848 = vmatmul.msk.f32.vlgmr.msrb.gmra.mxu0 %vm5571_vm1, %v10836_v0  ;;  %10852 = vmatmul.msk.f32.gmra.mxu1 %vm5571_vm1, %v10837_v30  ;;  %v6304_v38 = vadd.f32 %v14031_v48, %v6145_v21  ;;  %v6143_v48 = vadd.f32 %v13952_v20, %v5984_v56  ;;  %v15797_v21 = vld [vmem:[#allocation48_spill] sm:$0xff] }
 0x5a7   : > { %10857 = vmatmul.msk.f32.gmra.mxu2 %vm5571_vm1, %v14273_v8  ;;  %10859 = vmatmul.msk.f32.vlgmr.msrb.gmra.mxu3 %vm5571_vm1, %v14246_v19 }
 0x5a8   : > { %10875 = vmatpush.msk.msrb.mxu0 %vm5578_vm0, %v13694_v31  ;;  %10884 = vmatpush.msk.msrb.mxu3 %vm5578_vm0, %v7964_v35  ;;  %v6472_v31 = vadd.f32 %v14157_v34, %v6310_v25  ;;  %v6466_v34 = vadd.f32 %v14104_v50, %v6304_v38  ;;  %v6302_v12 = vadd.f32 %v14047_v52, %v6143_v48  ;;  %v15798_v38 = vld [vmem:[#allocation67_spill] sm:$0xff] }
 0x5aa   : > { %v14292_v5 = vpop.f32.mrf.mxu2  ;;  %v6941_v46 = vpop.f32.mrf.mxu3  ;;  %v6633_v32 = vadd.f32 %v14180_v51, %v6472_v31  ;;  %v5991_v51 = vadd.f32 %v13973_v47, %v5810_v41  ;;  %v5764_v47 = vadd.f32 %v13803_v1, %v13782_v53  ;;  %v15795_v41 = vld [vmem:[#allocation27_spill] sm:$0xff] }
 0x5ab   : > { %v14296_v0 = vadd.f32 %v6941_v46, %v6789_v11  ;;  %v14298_v10 = vpop.f32.mrf.mxu0  ;;  %v14300_v7 = vpop.f32.mrf.mxu1  ;;  %v5787_v11 = vadd.f32 %v15791_v24, %v15790_v60  ;;  %v15792_v46 = vld [vmem:[#allocation59_spill] sm:$0xff] }
 0x5ac   : > { %v6794_v18 = vadd.f32 %v6782_v27, %v6633_v32  ;;  %v6627_v27 = vadd.f32 %v14178_v43, %v6466_v34  ;;  %v6150_v50 = vadd.f32 %v13992_v39, %v5991_v51  ;;  %v6464_v43 = vadd.f32 %v14072_v59, %v6302_v12  ;;  %v15787_v59 = vld [vmem:[#allocation25_spill] sm:$0xff]  ;;  %v15800_v51 = vld [vmem:[#allocation30_spill] sm:$0xff]  ;;  %v15811_v60 = vld [vmem:[#allocation75_spill] sm:$0xff] }
 0x5ad   : > { %v5989_v1 = vadd.f32 %v15786_v63, %v5764_v47 }
 0x5ae   : > { %10849 = vmatmul.msk.f32.gmra.mxu0 %vm5571_vm1, %v10837_v30  ;;  %10865 = vmatmul.msk.f32.vlgmr.msra.gmra.mxu1 %vm5571_vm1, %v14246_v19  ;;  %v6788_v20 = vadd.f32 %v14204_v17, %v6627_v27  ;;  %v5985_v17 = vadd.f32 %v13879_v9, %v5784_v15  ;;  %v15801_v15 = vld [vmem:[#allocation41_spill] sm:$0xff] }
 0x5af   : > { %10860 = vmatmul.msk.f32.gmra.mxu3 %vm5571_vm1, %v14273_v8  ;;  %10868 = vmatmul.msk.f32.vlgmr.msra.gmra.mxu2 %vm5571_vm1, %v14246_v19 }
 0x5b0   : > { %10892 = vmatpush.msk.msra.mxu1 %vm5578_vm0, %v13831_v29  ;;  %10895 = vmatpush.msk.msra.mxu2 %vm5578_vm0, %v13817_v42  ;;  %v14335_v42 = vld [vmem:[%s15473_s3 + $0x100] sm:$0xff]  ;;  %v6950_v52 = vadd.f32 %v14261_v37, %v6788_v20  ;;  %v5738_v37 = vadd.f32 %v15788_v3, %v15787_v59  ;;  %v6144_v9 = vadd.f32 %v13996_v28, %v5985_v17  ;;  %v15807_v59 = vld [vmem:[#allocation66_spill] sm:$0xff] }
 0x5b1   : > { %v15793_v28 = vld [vmem:[#allocation47_spill] sm:$0xff] }
 0x5b2   : > { %v6944_v61 = vpop.f32.mrf.mxu3  ;;  %v14321_v45 = vpop.f32.mrf.mxu2  ;;  %v6303_v36 = vadd.f32 %v15792_v46, %v6144_v9 }
 0x5b3   : > { %v14326_v13 = vadd.f32 %v6944_v61, %v6794_v18  ;;  %v14328_v30 = vpop.f32.mrf.mxu0  ;;  %v14330_v29 = vpop.f32.mrf.mxu1  ;;  %v15799_v61 = vld [vmem:[#allocation46_spill] sm:$0xff] }
 0x5b4   : > { %v6465_v32 = vadd.f32 %v15797_v21, %v6303_v36  ;;  %v5990_v56 = vadd.f32 %v15799_v61, %v5787_v11  ;;  %v15812_v36 = vld [vmem:[#allocation19_spill] sm:$0xff] }
 0x5b6   : > { %10862 = vmatmul.msk.f32.vlgmr.msra.gmra.mxu0 %vm5571_vm1, %v14246_v19  ;;  %10866 = vmatmul.msk.f32.gmra.mxu1 %vm5571_vm1, %v14273_v8  ;;  %v6309_v19 = vadd.f32 %v14052_v26, %v6150_v50  ;;  %v15802_v50 = vld [vmem:[#allocation64_spill] sm:$0xff] }
 0x5b7   : > { %10869 = vmatmul.msk.f32.gmra.mxu2 %vm5571_vm1, %v14273_v8  ;;  %10873 = vmatmul.msk.f32.vlgmr.msra.gmra.mxu3 %vm5571_vm1, %v14335_v42  ;;  %v6626_v12 = vadd.f32 %v15802_v50, %v6465_v32 }
 0x5b8   : > { %10889 = vmatpush.msk.msra.mxu0 %vm5578_vm0, %v13828_v2  ;;  %10898 = vmatpush.msk.msra.mxu3 %vm5578_vm0, %v13856_v57  ;;  %v6471_v39 = vadd.f32 %v14131_v54, %v6309_v19  ;;  %v6625_v2 = vadd.f32 %v14126_v62, %v6464_v43  ;;  %v6148_v54 = vadd.f32 %v13985_v23, %v5989_v1  ;;  %v8102_v1 = vpop.permute.xlu1 %8101 }
 0x5ba   : > { %v14362_v14 = vpop.f32.mrf.mxu2  ;;  %v7080_v53 = vpop.f32.mrf.mxu3  ;;  %v6786_v62 = vadd.f32 %v14200_v44, %v6625_v2  ;;  %v6632_v35 = vadd.f32 %v15789_v33, %v6471_v39  ;;  %v6307_v25 = vadd.f32 %v15793_v28, %v6148_v54  ;;  %v15794_v44 = vld [vmem:[#allocation31_spill] sm:$0xff]  ;;  %v15806_v39 = vld [vmem:[#allocation26_spill] sm:$0xff]  ;;  %v15809_v54 = vld [vmem:[#allocation20_spill] sm:$0xff] }
 0x5bb   : > { %v14367_v49 = vadd.f32 %v7080_v53, %v6950_v52  ;;  %v14369_v57 = vpop.f32.mrf.mxu0  ;;  %v14371_v26 = vpop.f32.mrf.mxu1  ;;  %v5983_v16 = vadd.f32 %v15794_v44, %v5738_v37  ;;  %v15805_v53 = vld [vmem:[#allocation43_spill] sm:$0xff]  ;;  %v15808_v37 = vld [vmem:[#allocation84_spill] sm:$0xff]  ;;  %v15815_v44 = vld [vmem:[#allocation49_spill] sm:$0xff] }
 0x5bc   : > { %v6793_v31 = vadd.f32 %v14222_v58, %v6632_v35  ;;  %v6948_v23 = vadd.f32 %v14266_v4, %v6786_v62  ;;  %v6469_v58 = vadd.f32 %v15798_v38, %v6307_v25  ;;  %v6149_v63 = vadd.f32 %v15805_v53, %v5990_v56  ;;  %v15810_v33 = vld [vmem:[#allocation60_spill] sm:$0xff]  ;;  %v15813_v25 = vld [vmem:[#allocation23_spill] sm:$0xff] }
 0x5bd   : > { %v6142_v34 = vadd.f32 %v15800_v51, %v5983_v16  ;;  %v6787_v9 = vadd.f32 %v15808_v37, %v6626_v12  ;;  %v8103_v62 = vsel %vm3268_vm15, %v15809_v54, %v8102_v1  ;;  %v15822_v12 = vld [vmem:[#allocation38_spill] sm:$0xff]  ;;  %v15824_v1 = vld [vmem:[#allocation21_spill] sm:$0xff]  ;;  %vm10122_vm15 = vcmask 687104  }
 0x5be   : > { %10863 = vmatmul.msk.f32.gmra.mxu0 %vm5571_vm1, %v14273_v8  ;;  %10879 = vmatmul.msk.f32.vlgmr.msrb.gmra.mxu1 %vm5571_vm1, %v14335_v42  ;;  %v15796_v8 = vld [vmem:[#allocation28_spill] sm:$0xff]  ;;  %v6955_v4 = vadd.f32 %v14292_v5, %v6793_v31  ;;  %v7110_v18 = vadd.f32 %v14300_v7, %v6948_v23  ;;  %v6630_v47 = vadd.f32 %v15801_v15, %v6469_v58  ;;  %v15803_v5 = vld [vmem:[#allocation37_spill] sm:$0xff]  ;;  %v15814_v31 = vld [vmem:[#allocation39_spill] sm:$0xff] }
 0x5bf   : > { %10874 = vmatmul.msk.f32.gmra.mxu3 %vm5571_vm1, %v14379_v40  ;;  %10882 = vmatmul.msk.f32.vlgmr.msrb.gmra.mxu2 %vm5571_vm1, %v14335_v42  ;;  %v15804_v7 = vld [vmem:[#allocation24_spill] sm:$0xff]  ;;  %v6301_v2 = vadd.f32 %v15806_v39, %v6142_v34  ;;  %v6308_v35 = vadd.f32 %v15810_v33, %v6149_v63  ;;  %v6949_v11 = vadd.f32 %v14241_v6, %v6787_v9  ;;  %v8241_v34 = vpop.permute.xlu2 %8240  ;;  %v15826_v9 = vld [vmem:[#allocation83_spill] sm:$0xff] }
 0x5c0   : > { %10906 = vmatpush.msk.msrb.mxu1 %vm5578_vm0, %v15795_v41  ;;  %10909 = vmatpush.msk.msrb.mxu2 %vm5578_vm0, %v15796_v8  ;;  %v5741_v17 = vadd.f32 %v15804_v7, %v15803_v5  ;;  %v6791_v3 = vadd.f32 %v15807_v59, %v6630_v47  ;;  %v15816_v41 = vld [vmem:[#allocation52_spill] sm:$0xff]  ;;  %v15821_v47 = vld [vmem:[#allocation65_spill] sm:$0xff]  ;;  %v8242_v5 = vsel %vm6810_vm6, %v15822_v12, %v8241_v34  ;;  %v15823_v7 = vld [vmem:[#allocation54_spill] sm:$0xff] }
 0x5c1   : > { %v6463_v24 = vadd.f32 %v15811_v60, %v6301_v2  ;;  %v6470_v23 = vadd.f32 %v15814_v31, %v6308_v35  ;;  %v7111_v6 = vadd.f32 %v14321_v45, %v6949_v11  ;;  %v15818_v58 = vld [vmem:[#allocation56_spill] sm:$0xff]  ;;  %v10887_v45 = vld [vmem:[%s15473_s3 + $0x110] sm:$0xff]  ;;  %v10888_v35 = vld [vmem:[%s15473_s3 + $0x118] sm:$0xff] }
 0x5c2   : > { %v7083_v48 = vpop.f32.mrf.mxu3  ;;  %v7170_v27 = vpop.f32.mrf.mxu2  ;;  %v6953_v46 = vadd.f32 %v14298_v10, %v6791_v3  ;;  %v5988_v28 = vadd.f32 %v15812_v36, %v5741_v17  ;;  %v15825_v39 = vld [vmem:[#allocation68_spill] sm:$0xff] }
 0x5c3   : > { %v14411_v20 = vadd.f32 %v7083_v48, %v6955_v4  ;;  %v14413_v19 = vadd.f32 %v7170_v27, %v7110_v18  ;;  %v14415_v43 = vpop.f32.mrf.mxu0  ;;  %v14417_v52 = vpop.f32.mrf.mxu1  ;;  %v6624_v16 = vadd.f32 %v15815_v44, %v6463_v24  ;;  %v15820_v27 = vld [vmem:[#allocation63_spill] sm:$0xff]  ;;  %v15828_v24 = vld [vmem:[#allocation42_spill] sm:$0xff] }
 0x5c4   : > { %v7115_v10 = vadd.f32 %v14330_v29, %v6953_v46  ;;  %v6147_v8 = vadd.f32 %v15816_v41, %v5988_v28  ;;  %v15819_v29 = vld [vmem:[#allocation40_spill] sm:$0xff]  ;;  %v15829_v44 = vld [vmem:[#allocation35_spill] sm:$0xff] }
 0x5c5   : > { %v6785_v4 = vadd.f32 %v15818_v58, %v6624_v16  ;;  %v10904_v31 = vld [vmem:[%s15473_s3 + $0x120] sm:$0xff]  ;;  %v7113_v16 = vadd.f32 %v14415_v43, %v14296_v0  ;;  %v10905_v0 = vld [vmem:[%s15473_s3 + $0x128] sm:$0xff]  ;;  %v15832_v58 = vld [vmem:[#allocation6_spill] sm:$0xff] }
 0x5c6   : > { %10876 = vmatmul.msk.f32.vlgmr.msrb.gmra.mxu0 %vm5571_vm1, %v14335_v42  ;;  %10880 = vmatmul.msk.f32.gmra.mxu1 %vm5571_vm1, %v14379_v40  ;;  %v6306_v48 = vadd.f32 %v15819_v29, %v6147_v8 }
 0x5c7   : > { %10883 = vmatmul.msk.f32.gmra.mxu2 %vm5571_vm1, %v14379_v40  ;;  %10885 = vmatmul.msk.f32.vlgmr.msrb.gmra.mxu3 %vm5571_vm1, %v14335_v42  ;;  %v15817_v42 = vld [vmem:[#allocation55_spill] sm:$0xff]  ;;  %v6947_v15 = vadd.f32 %v15820_v27, %v6785_v4 }
 0x5c8   : > { %10901 = vmatpush.msk.msrb.mxu0 %vm5578_vm0, %v8103_v62  ;;  %10912 = vmatpush.msk.msrb.mxu3 %vm5578_vm0, %v15813_v25  ;;  %v6631_v38 = vadd.f32 %v15817_v42, %v6470_v23  ;;  %v6468_v17 = vadd.f32 %v15823_v7, %v6306_v48  ;;  %v8380_v23 = vpop.permute.xlu0 %8379  ;;  %v15833_v27 = vld [vmem:[#allocation11_spill] sm:$0xff] }
 0x5c9   : > { %v7109_v63 = vadd.f32 %v14328_v30, %v6947_v15  ;;  %v15834_v15 = vld [vmem:[#allocation15_spill] sm:$0xff] }
 0x5ca   : > { %v7173_v21 = vpop.f32.mrf.mxu2  ;;  %v7193_v32 = vpop.f32.mrf.mxu3  ;;  %v6792_v50 = vadd.f32 %v15821_v47, %v6631_v38  ;;  %v6629_v2 = vadd.f32 %v15825_v39, %v6468_v17  ;;  %v15831_v38 = vld [vmem:[#allocation57_spill] sm:$0xff]  ;;  %v15836_v39 = vld [vmem:[#allocation18_spill] sm:$0xff] }
 0x5cb   : > { %v7251_v18 = vadd.f32 %v7173_v21, %v7115_v10  ;;  %v14450_v61 = vadd.f32 %v7193_v32, %v7111_v6  ;;  %v14452_v56 = vpop.f32.mrf.mxu0  ;;  %v7239_v51 = vpop.f32.mrf.mxu1  ;;  %v7245_v3 = vadd.f32 %v14371_v26, %v7109_v63  ;;  %v15827_v26 = vld [vmem:[#allocation33_spill] sm:$0xff] }
 0x5cc   : > { %v6954_v53 = vadd.f32 %v14268_v22, %v6792_v50  ;;  %v6790_v30 = vadd.f32 %v15826_v9, %v6629_v2  ;;  %v7249_v6 = vadd.f32 %v7239_v51, %v7113_v16  ;;  %v7118_v43 = vadd.f32 %v14452_v56, %v14326_v13  ;;  %v10921_v13 = vld [vmem:[%s15473_s3 + $0x130] sm:$0xff] }
 0x5ce   : > { %10877 = vmatmul.msk.f32.gmra.mxu0 %vm5571_vm1, %v14379_v40  ;;  %10893 = vmatmul.msk.f32.vlgmr.msra.gmra.mxu1 %vm5571_vm1, %v10887_v45  ;;  %v7116_v59 = vadd.f32 %v14362_v14, %v6954_v53  ;;  %v6952_v60 = vadd.f32 %v14259_v55, %v6790_v30 }
 0x5cf   : > { %10886 = vmatmul.msk.f32.gmra.mxu3 %vm5571_vm1, %v14379_v40  ;;  %10896 = vmatmul.msk.f32.vlgmr.msra.gmra.mxu2 %vm5571_vm1, %v10887_v45 }
 0x5d0   : > { %10918 = vmatpush.msk.msra.mxu1 %vm5578_vm0, %v8242_v5  ;;  %10923 = vmatpush.msk.msra.mxu2 %vm5578_vm0, %v15824_v1  ;;  %v7114_v14 = vadd.f32 %v14369_v57, %v6952_v60  ;;  %v15835_v1 = vld [vmem:[#allocation8_spill] sm:$0xff] }
 0x5d2   : > { %v7196_v37 = vpop.f32.mrf.mxu3  ;;  %v7288_v22 = vpop.f32.mrf.mxu2  ;;  %v7250_v11 = vadd.f32 %v14417_v52, %v7114_v14  ;;  %v8381_v52 = vsel %vm6972_vm14, %v15829_v44, %v8380_v23 }
 0x5d3   : > { %v14478_v54 = vadd.f32 %v7196_v37, %v7116_v59  ;;  %v7386_v40 = vadd.f32 %v7288_v22, %v7245_v3  ;;  %v7216_v62 = vpop.f32.mrf.mxu0  ;;  %v7242_v33 = vpop.f32.mrf.mxu1 }
 0x5d4   : > { %v7254_v4 = vadd.f32 %v7242_v33, %v7118_v43  ;;  %v7248_v56 = vadd.f32 %v7216_v62, %v14367_v49  ;;  %v10922_v49 = vld [vmem:[%s15473_s3 + $0x138] sm:$0xff]  ;;  %v15838_v62 = vld [vmem:[#allocation44_spill] sm:$0xff] }
 0x5d6   : > { %10890 = vmatmul.msk.f32.vlgmr.msra.gmra.mxu0 %vm5571_vm1, %v10887_v45  ;;  %10894 = vmatmul.msk.f32.gmra.mxu1 %vm5571_vm1, %v10888_v35 }
 0x5d7   : > { %10897 = vmatmul.msk.f32.gmra.mxu2 %vm5571_vm1, %v10888_v35  ;;  %10899 = vmatmul.msk.f32.vlgmr.msra.gmra.mxu3 %vm5571_vm1, %v10887_v45 }
 0x5d8   : > { %10915 = vmatpush.msk.msra.mxu0 %vm5578_vm0, %v15827_v26  ;;  %10926 = vmatpush.msk.msra.mxu3 %vm5578_vm0, %v15828_v24 }
 0x5da   : > { %v7291_v46 = vpop.f32.mrf.mxu2  ;;  %v7311_v55 = vpop.f32.mrf.mxu3 }
 0x5db   : > { %v7391_v36 = vadd.f32 %v7291_v46, %v7250_v11  ;;  %v14495_v28 = vadd.f32 %v7311_v55, %v14413_v19  ;;  %v7219_v25 = vpop.f32.mrf.mxu0  ;;  %v7357_v57 = vpop.f32.mrf.mxu1  ;;  %v15830_v19 = vld [vmem:[#allocation36_spill] sm:$0xff]  ;;  %v15839_v55 = vld [vmem:[#allocation51_spill] sm:$0xff] }
 0x5dc   : > { %v7389_v47 = vadd.f32 %v7357_v57, %v7248_v56  ;;  %v7253_v63 = vadd.f32 %v7219_v25, %v14411_v20  ;;  %v8655_v46 = vpop.permute.xlu1 %8654  ;;  %v15840_v57 = vld [vmem:[#allocation9_spill] sm:$0xff] }
 0x5de   : > { %10891 = vmatmul.msk.f32.gmra.mxu0 %vm5571_vm1, %v10888_v35  ;;  %10907 = vmatmul.msk.f32.vlgmr.msrb.gmra.mxu1 %vm5571_vm1, %v10904_v31 }
 0x5df   : > { %10900 = vmatmul.msk.f32.gmra.mxu3 %vm5571_vm1, %v10888_v35  ;;  %10910 = vmatmul.msk.f32.vlgmr.msrb.gmra.mxu2 %vm5571_vm1, %v10904_v31 }
 0x5e0   : > { %10932 = vmatpush.msk.msrb.mxu1 %vm5578_vm0, %v15830_v19  ;;  %10935 = vmatpush.msk.msrb.mxu2 %vm5578_vm0, %v8381_v52 }
 0x5e2   : > { %v7314_v10 = vpop.f32.mrf.mxu3  ;;  %v7380_v41 = vpop.f32.mrf.mxu2 }
 0x5e3   : > { %v14511_v8 = vadd.f32 %v7314_v10, %v7251_v18  ;;  %v7390_v21 = vadd.f32 %v7380_v41, %v7249_v6  ;;  %v7334_v32 = vpop.f32.mrf.mxu0  ;;  %v7360_v42 = vpop.f32.mrf.mxu1  ;;  %v15841_v41 = vld [vmem:[#allocation14_spill] sm:$0xff] }
 0x5e4   : > { %v7394_v2 = vadd.f32 %v7360_v42, %v7253_v63  ;;  %v7388_v20 = vadd.f32 %v7334_v32, %v14450_v61  ;;  %v10938_v61 = vld [vmem:[%s15473_s3 + $0x140] sm:$0xff] }
 0x5e6   : > { %10902 = vmatmul.msk.f32.vlgmr.msrb.gmra.mxu0 %vm5571_vm1, %v10887_v45  ;;  %10908 = vmatmul.msk.f32.gmra.mxu1 %vm5571_vm1, %v10905_v0 }
 0x5e7   : > { %10911 = vmatmul.msk.f32.gmra.mxu2 %vm5571_vm1, %v10905_v0  ;;  %10913 = vmatmul.msk.f32.vlgmr.msrb.gmra.mxu3 %vm5571_vm1, %v10904_v31 }
 0x5e8   : > { %10929 = vmatpush.msk.msrb.mxu0 %vm5578_vm0, %v15831_v38  ;;  %10940 = vmatpush.msk.msrb.mxu3 %vm5578_vm0, %v15832_v58 }
 0x5ea   : > { %v7383_v18 = vpop.f32.mrf.mxu2  ;;  %v7429_v51 = vpop.f32.mrf.mxu3 }
 0x5eb   : > { %v7395_v34 = vadd.f32 %v7383_v18, %v7254_v4  ;;  %v14526_v45 = vadd.f32 %v7429_v51, %v7386_v40  ;;  %v7337_v29 = vpop.f32.mrf.mxu0  ;;  %v7475_v48 = vpop.f32.mrf.mxu1  ;;  %v15837_v40 = vld [vmem:[#allocation5_spill] sm:$0xff]  ;;  %v15843_v18 = vld [vmem:[#allocation50_spill] sm:$0xff] }
 0x5ec   : > { %v7529_v33 = vadd.f32 %v7475_v48, %v7388_v20  ;;  %v7393_v25 = vadd.f32 %v7337_v29, %v14478_v54  ;;  %v10939_v54 = vld [vmem:[%s15473_s3 + $0x148] sm:$0xff] }
 0x5ee   : > { %10903 = vmatmul.msk.f32.gmra.mxu0 %vm5571_vm1, %v10888_v35  ;;  %10919 = vmatmul.msk.f32.vlgmr.msra.gmra.mxu1 %vm5571_vm1, %v10904_v31 }
 0x5ef   : > { %10914 = vmatmul.msk.f32.gmra.mxu3 %vm5571_vm1, %v10905_v0  ;;  %10924 = vmatmul.msk.f32.vlgmr.msra.gmra.mxu2 %vm5571_vm1, %v10921_v13 }
 0x5f0   : > { %10946 = vmatpush.msk.msra.mxu1 %vm5578_vm0, %v15833_v27  ;;  %10949 = vmatpush.msk.msra.mxu2 %vm5578_vm0, %v15834_v15  ;;  %v8796_v15 = vpop.permute.xlu2 %8795 }
 0x5f2   : > { %v7432_v50 = vpop.f32.mrf.mxu3  ;;  %v7498_v12 = vpop.f32.mrf.mxu2 }
 0x5f3   : > { %v14540_v5 = vadd.f32 %v7432_v50, %v7391_v36  ;;  %v7530_v7 = vadd.f32 %v7498_v12, %v7389_v47  ;;  %v7452_v17 = vpop.f32.mrf.mxu0  ;;  %v7478_v53 = vpop.f32.mrf.mxu1  ;;  %v8656_v36 = vsel %vm817_vm3, %v15839_v55, %v8655_v46  ;;  %v15844_v50 = vld [vmem:[#allocation13_spill] sm:$0xff] }
 0x5f4   : > { %v7528_v10 = vadd.f32 %v7452_v17, %v14495_v28 }
 0x5f6   : > { %10916 = vmatmul.msk.f32.vlgmr.msra.gmra.mxu0 %vm5571_vm1, %v10904_v31  ;;  %10920 = vmatmul.msk.f32.gmra.mxu1 %vm5571_vm1, %v10905_v0  ;;  %v7534_v31 = vadd.f32 %v7478_v53, %v7393_v25  ;;  %v15848_v25 = vld [vmem:[#allocation74_spill] sm:$0xff] }
 0x5f7   : > { %10925 = vmatmul.msk.f32.gmra.mxu2 %vm5571_vm1, %v10922_v49  ;;  %10927 = vmatmul.msk.f32.vlgmr.msra.gmra.mxu3 %vm5571_vm1, %v10921_v13 }
 0x5f8   : > { %10943 = vmatpush.msk.msra.mxu0 %vm5578_vm0, %v15835_v1  ;;  %10952 = vmatpush.msk.msra.mxu3 %vm5578_vm0, %v15836_v39  ;;  %v15845_v39 = vld [vmem:[#allocation34_spill] sm:$0xff] }
 0x5fa   : > { %v7501_v59 = vpop.f32.mrf.mxu2  ;;  %v7521_v3 = vpop.f32.mrf.mxu3 }
 0x5fb   : > { %v7535_v37 = vadd.f32 %v7501_v59, %v7394_v2  ;;  %v14554_v22 = vadd.f32 %v7521_v3, %v7390_v21  ;;  %v7455_v9 = vpop.f32.mrf.mxu0  ;;  %v7593_v30 = vpop.f32.mrf.mxu1  ;;  %v15842_v21 = vld [vmem:[#allocation7_spill] sm:$0xff]  ;;  %v8797_v2 = vsel %vm1219_vm5, %v15845_v39, %v8796_v15  ;;  %v15846_v3 = vld [vmem:[#allocation12_spill] sm:$0xff]  ;;  %vm9430_vm5 = vcmask 138240  }
 0x5fc   : > { %v7669_v32 = vadd.f32 %v7593_v30, %v7528_v10  ;;  %v7533_v28 = vadd.f32 %v7455_v9, %v14511_v8  ;;  %v10955_v8 = vld [vmem:[%s15473_s3 + $0x150] sm:$0xff]  ;;  %v11007_v39 = vld [vmem:[%s15473_s3 + $0x188] sm:$0xff] }
 0x5fe   : > { %10917 = vmatmul.msk.f32.gmra.mxu0 %vm5571_vm1, %v10905_v0  ;;  %10933 = vmatmul.msk.f32.vlgmr.msrb.gmra.mxu1 %vm5571_vm1, %v10921_v13 }
 0x5ff   : > { %10928 = vmatmul.msk.f32.gmra.mxu3 %vm5571_vm1, %v10922_v49  ;;  %10936 = vmatmul.msk.f32.vlgmr.msrb.gmra.mxu2 %vm5571_vm1, %v10921_v13 }
 0x600   : > { %10960 = vmatpush.msk.msrb.mxu1 %vm5578_vm0, %v15837_v40  ;;  %10963 = vmatpush.msk.msrb.mxu2 %vm5578_vm0, %v15838_v62 }
 0x602   : > { %v7524_v35 = vpop.f32.mrf.mxu3  ;;  %v7616_v60 = vpop.f32.mrf.mxu2 }
 0x603   : > { %v14565_v14 = vadd.f32 %v7524_v35, %v7395_v34  ;;  %v7670_v26 = vadd.f32 %v7616_v60, %v7529_v33  ;;  %v7570_v24 = vpop.f32.mrf.mxu0  ;;  %v7596_v11 = vpop.f32.mrf.mxu1  ;;  %v15847_v60 = vld [vmem:[#allocation58_spill] sm:$0xff] }
 0x604   : > { %v7674_v51 = vadd.f32 %v7596_v11, %v7533_v28  ;;  %v7668_v47 = vadd.f32 %v7570_v24, %v14526_v45  ;;  %v10956_v45 = vld [vmem:[%s15473_s3 + $0x158] sm:$0xff]  ;;  %v8937_v35 = vpop.permute.xlu0 %8936 }
 0x606   : > { %10930 = vmatmul.msk.f32.vlgmr.msrb.gmra.mxu0 %vm5571_vm1, %v10921_v13  ;;  %10934 = vmatmul.msk.f32.gmra.mxu1 %vm5571_vm1, %v10922_v49 }
 0x607   : > { %10937 = vmatmul.msk.f32.gmra.mxu2 %vm5571_vm1, %v10922_v49  ;;  %10941 = vmatmul.msk.f32.vlgmr.msrb.gmra.mxu3 %vm5571_vm1, %v10938_v61 }
 0x608   : > { %10957 = vmatpush.msk.msrb.mxu0 %vm5578_vm0, %v15840_v57  ;;  %10966 = vmatpush.msk.msrb.mxu3 %vm5578_vm0, %v8656_v36  ;;  %v10973_v36 = vld [vmem:[%s15473_s3 + $0x168] sm:$0xff] }
 0x609   : > { %v15849_v57 = vld [vmem:[#allocation17_spill] sm:$0xff] }
 0x60a   : > { %v7619_v23 = vpop.f32.mrf.mxu2  ;;  %v7639_v44 = vpop.f32.mrf.mxu3 }
 0x60b   : > { %v7675_v52 = vadd.f32 %v7619_v23, %v7534_v31  ;;  %v14580_v16 = vadd.f32 %v7639_v44, %v7530_v7  ;;  %v7573_v19 = vpop.f32.mrf.mxu0  ;;  %v7711_v6 = vpop.f32.mrf.mxu1 }
 0x60c   : > { %v7809_v12 = vadd.f32 %v7711_v6, %v7668_v47  ;;  %v7673_v59 = vadd.f32 %v7573_v19, %v14540_v5  ;;  %v10972_v5 = vld [vmem:[%s15473_s3 + $0x160] sm:$0xff]  ;;  %v9078_v19 = vpop.permute.xlu1 %9077  ;;  %v10989_v6 = vld [vmem:[%s15473_s3 + $0x170] sm:$0xff] }
 0x60e   : > { %10931 = vmatmul.msk.f32.gmra.mxu0 %vm5571_vm1, %v10922_v49  ;;  %10947 = vmatmul.msk.f32.vlgmr.msra.gmra.mxu1 %vm5571_vm1, %v10938_v61 }
 0x60f   : > { %10942 = vmatmul.msk.f32.gmra.mxu3 %vm5571_vm1, %v10939_v54  ;;  %10950 = vmatmul.msk.f32.vlgmr.msra.gmra.mxu2 %vm5571_vm1, %v10938_v61 }
 0x610   : > { %10974 = vmatpush.msk.msra.mxu1 %vm5578_vm0, %v15841_v41  ;;  %10977 = vmatpush.msk.msra.mxu2 %vm5578_vm0, %v15842_v21  ;;  %v15851_v41 = vld [vmem:[#allocation77_spill] sm:$0xff] }
 0x612   : > { %v7642_v42 = vpop.f32.mrf.mxu3  ;;  %v7734_v0 = vpop.f32.mrf.mxu2 }
 0x613   : > { %v14594_v43 = vadd.f32 %v7642_v42, %v7535_v37  ;;  %v7810_v38 = vadd.f32 %v7734_v0, %v7669_v32  ;;  %v14596_v58 = vpop.f32.mrf.mxu0  ;;  %v7714_v4 = vpop.f32.mrf.mxu1 }
 0x614   : > { %v7814_v37 = vadd.f32 %v7714_v4, %v7673_v59  ;;  %v15852_v4 = vld [vmem:[#allocation10_spill] sm:$0xff]  ;;  %v7672_v59 = vadd.f32 %v14596_v58, %v14554_v22 }
 0x616   : > { %10944 = vmatmul.msk.f32.vlgmr.msra.gmra.mxu0 %vm5571_vm1, %v10938_v61  ;;  %10948 = vmatmul.msk.f32.gmra.mxu1 %vm5571_vm1, %v10939_v54 }
 0x617   : > { %10951 = vmatmul.msk.f32.gmra.mxu2 %vm5571_vm1, %v10939_v54  ;;  %10953 = vmatmul.msk.f32.vlgmr.msra.gmra.mxu3 %vm5571_vm1, %v10938_v61 }
 0x618   : > { %10969 = vmatpush.msk.msra.mxu0 %vm5578_vm0, %v8655_v46  ;;  %10980 = vmatpush.msk.msra.mxu3 %vm5578_vm0, %v15843_v18 }
 0x61a   : > { %v7737_v34 = vpop.f32.mrf.mxu2  ;;  %v7757_v29 = vpop.f32.mrf.mxu3 }
 0x61b   : > { %v7815_v48 = vadd.f32 %v7737_v34, %v7674_v51  ;;  %v14606_v13 = vadd.f32 %v7757_v29, %v7670_v26  ;;  %v14608_v56 = vpop.f32.mrf.mxu0  ;;  %v14610_v27 = vpop.f32.mrf.mxu1  ;;  %v8938_v26 = vsel %vm6006_vm2, %v15847_v60, %v8937_v35  ;;  %v9216_v29 = vld [vmem:[%s15474_s4 + $0x8] sm:$0xff] }
 0x61c   : > { %9224 = vperm.xlu0 %11188, %v9216_v29  }
 0x61e   : > { %10945 = vmatmul.msk.f32.gmra.mxu0 %vm5571_vm1, %v10939_v54  ;;  %10961 = vmatmul.msk.f32.vlgmr.msrb.gmra.mxu1 %vm5571_vm1, %v10955_v8 }
 0x61f   : > { %10954 = vmatmul.msk.f32.gmra.mxu3 %vm5571_vm1, %v10939_v54  ;;  %10964 = vmatmul.msk.f32.vlgmr.msrb.gmra.mxu2 %vm5571_vm1, %v10955_v8  ;;  %v15850_v54 = vld [vmem:[#allocation76_spill] sm:$0xff] }
 0x620   : > { %10986 = vmatpush.msk.msrb.mxu1 %vm5578_vm0, %v8796_v15  ;;  %10991 = vmatpush.msk.msrb.mxu2 %vm5578_vm0, %v15844_v50  ;;  %v9079_v10 = vsel %vm6165_vm4, %v15850_v54, %v9078_v19  ;;  %v11006_v50 = vld [vmem:[%s15473_s3 + $0x180] sm:$0xff] }
 0x622   : > { %v7760_v7 = vpop.f32.mrf.mxu3  ;;  %v7851_v17 = vpop.f32.mrf.mxu2 }
 0x623   : > { %v14623_v53 = vadd.f32 %v7760_v7, %v7675_v52  ;;  %v14625_v49 = vadd.f32 %v7851_v17, %v7809_v12  ;;  %v14627_v63 = vpop.f32.mrf.mxu0  ;;  %v14629_v1 = vpop.f32.mrf.mxu1 }
 0x626   : > { %10958 = vmatmul.msk.f32.vlgmr.msrb.gmra.mxu0 %vm5571_vm1, %v10955_v8  ;;  %10962 = vmatmul.msk.f32.gmra.mxu1 %vm5571_vm1, %v10956_v45 }
 0x627   : > { %10965 = vmatmul.msk.f32.gmra.mxu2 %vm5571_vm1, %v10956_v45  ;;  %10967 = vmatmul.msk.f32.vlgmr.msrb.gmra.mxu3 %vm5571_vm1, %v10955_v8 }
 0x628   : > { %10983 = vmatpush.msk.msrb.mxu0 %vm5578_vm0, %v8797_v2  ;;  %10994 = vmatpush.msk.msrb.mxu3 %vm5578_vm0, %v15846_v3 }
 0x62a   : > { %v7854_v9 = vpop.f32.mrf.mxu2  ;;  %v7874_v30 = vpop.f32.mrf.mxu3 }
 0x62b   : > { %v14644_v20 = vadd.f32 %v7854_v9, %v7814_v37  ;;  %v14646_v40 = vadd.f32 %v7874_v30, %v7810_v38  ;;  %v14648_v62 = vpop.f32.mrf.mxu0  ;;  %v14650_v33 = vpop.f32.mrf.mxu1  ;;  %v10990_v38 = vld [vmem:[%s15473_s3 + $0x178] sm:$0xff] }
 0x62e   : > { %10959 = vmatmul.msk.f32.gmra.mxu0 %vm5571_vm1, %v10956_v45  ;;  %10975 = vmatmul.msk.f32.vlgmr.msra.gmra.mxu1 %vm5571_vm1, %v10972_v5 }
 0x62f   : > { %10968 = vmatmul.msk.f32.gmra.mxu3 %vm5571_vm1, %v10956_v45  ;;  %10978 = vmatmul.msk.f32.vlgmr.msra.gmra.mxu2 %vm5571_vm1, %v10972_v5 }
 0x630   : > { %11000 = vmatpush.msk.msra.mxu1 %vm5578_vm0, %v8938_v26  ;;  %11003 = vmatpush.msk.msra.mxu2 %vm5578_vm0, %v8937_v35  ;;  %v7813_v35 = vadd.f32 %v14610_v27, %v7672_v59 }
 0x632   : > { %v7877_v24 = vpop.f32.mrf.mxu3  ;;  %v14663_v11 = vpop.f32.mrf.mxu2 }
 0x633   : > { %v14665_v46 = vadd.f32 %v7877_v24, %v7815_v48  ;;  %v14667_v61 = vpop.f32.mrf.mxu0  ;;  %v14669_v55 = vpop.f32.mrf.mxu1  ;;  %v7953_v24 = vadd.f32 %v14663_v11, %v7813_v35 }
 0x634   : > { %v7951_v26 = vadd.f32 %v14667_v61, %v14606_v13 }
 0x636   : > { %10970 = vmatmul.msk.f32.vlgmr.msra.gmra.mxu0 %vm5571_vm1, %v10955_v8  ;;  %10976 = vmatmul.msk.f32.gmra.mxu1 %vm5571_vm1, %v10973_v36 }
 0x637   : > { %10979 = vmatmul.msk.f32.gmra.mxu2 %vm5571_vm1, %v10973_v36  ;;  %10981 = vmatmul.msk.f32.vlgmr.msra.gmra.mxu3 %vm5571_vm1, %v10972_v5 }
 0x638   : > { %10997 = vmatpush.msk.msra.mxu0 %vm5578_vm0, %v15848_v25  ;;  %11008 = vmatpush.msk.msra.mxu3 %vm5578_vm0, %v15849_v57  ;;  %v7677_v25 = vadd.f32 %v14608_v56, %v14565_v14 }
 0x63a   : > { %v14682_v31 = vpop.f32.mrf.mxu2  ;;  %v14684_v23 = vpop.f32.mrf.mxu3 }
 0x63b   : > { %v14686_v44 = vpop.f32.mrf.mxu0  ;;  %v8036_v52 = vpop.f32.mrf.mxu1 }
 0x63e   : > { %10971 = vmatmul.msk.f32.gmra.mxu0 %vm5571_vm1, %v10956_v45  ;;  %10987 = vmatmul.msk.f32.vlgmr.msrb.gmra.mxu1 %vm5571_vm1, %v10972_v5 }
 0x63f   : > { %10982 = vmatmul.msk.f32.gmra.mxu3 %vm5571_vm1, %v10973_v36  ;;  %10992 = vmatmul.msk.f32.vlgmr.msrb.gmra.mxu2 %vm5571_vm1, %v10989_v6 }
 0x640   : > { %11014 = vmatpush.msk.msrb.mxu1 %vm5578_vm0, %v15851_v41  ;;  %11017 = vmatpush.msk.msrb.mxu2 %vm5578_vm0, %v9079_v10  ;;  %v8088_v41 = vadd.f32 %v14684_v23, %v14625_v49 }
 0x642   : > { %v7993_v21 = vpop.f32.mrf.mxu3  ;;  %v14700_v32 = vpop.f32.mrf.mxu2 }
 0x643   : > { %v14702_v42 = vpop.f32.mrf.mxu0  ;;  %v14704_v0 = vpop.f32.mrf.mxu1  ;;  %v8093_v2 = vadd.f32 %v7993_v21, %v14644_v20  ;;  %v8090_v20 = vadd.f32 %v8036_v52, %v7951_v26  ;;  %v7818_v52 = vadd.f32 %v14629_v1, %v7677_v25  ;;  %v7956_v21 = vadd.f32 %v14686_v44, %v14623_v53 }
 0x645   : > { %v7958_v56 = vadd.f32 %v14682_v31, %v7818_v52 }
 0x646   : > { %10984 = vmatmul.msk.f32.vlgmr.msrb.gmra.mxu0 %vm5571_vm1, %v10972_v5  ;;  %10988 = vmatmul.msk.f32.gmra.mxu1 %vm5571_vm1, %v10973_v36 }
 0x647   : > { %10993 = vmatmul.msk.f32.gmra.mxu2 %vm5571_vm1, %v10990_v38  ;;  %10995 = vmatmul.msk.f32.vlgmr.msrb.gmra.mxu3 %vm5571_vm1, %v10989_v6 }
 0x648   : > { %11011 = vmatpush.msk.msrb.mxu0 %vm5578_vm0, %v15852_v4  ;;  %11020 = vmatpush.msk.msrb.mxu3 %vm5578_vm0, %v9078_v19 }
 0x64a   : > { %v14716_v28 = vpop.f32.mrf.mxu2  ;;  %v8082_v18 = vpop.f32.mrf.mxu3 }
 0x64b   : > { %v8016_v51 = vpop.f32.mrf.mxu0  ;;  %v14718_v34 = vpop.f32.mrf.mxu1  ;;  %v8092_v58 = vadd.f32 %v8082_v18, %v7953_v24 }
 0x64c   : > { %v8094_v22 = vadd.f32 %v8016_v51, %v14665_v46  ;;  %v7812_v46 = vadd.f32 %v14627_v63, %v14580_v16 }
 0x64e   : > { %10985 = vmatmul.msk.f32.gmra.mxu0 %vm5571_vm1, %v10973_v36  ;;  %11001 = vmatmul.msk.f32.vlgmr.msra.gmra.mxu1 %vm5571_vm1, %v10989_v6  ;;  %v7952_v14 = vadd.f32 %v14650_v33, %v7812_v46 }
 0x64f   : > { %10996 = vmatmul.msk.f32.gmra.mxu3 %vm5571_vm1, %v10990_v38  ;;  %11004 = vmatmul.msk.f32.vlgmr.msra.gmra.mxu2 %vm5571_vm1, %v10989_v6 }
 0x650   : > { %v8091_v16 = vadd.f32 %v14700_v32, %v7952_v14 }
 0x652   : > { %v8085_v48 = vpop.f32.mrf.mxu3  ;;  %v8175_v8 = vpop.f32.mrf.mxu2 }
 0x653   : > { %v8129_v15 = vpop.f32.mrf.mxu0  ;;  %v8155_v47 = vpop.f32.mrf.mxu1  ;;  %v8229_v36 = vadd.f32 %v8175_v8, %v8090_v20  ;;  %v8097_v63 = vadd.f32 %v8085_v48, %v7958_v56  ;;  %v7817_v8 = vadd.f32 %v14648_v62, %v14594_v43 }
 0x654   : > { %v8233_v27 = vadd.f32 %v8155_v47, %v8094_v22  ;;  %v8227_v4 = vadd.f32 %v8129_v15, %v8088_v41  ;;  %v8089_v47 = vadd.f32 %v14702_v42, %v14646_v40 }
 0x655   : > { %v7957_v32 = vadd.f32 %v14669_v55, %v7817_v8 }
 0x656   : > { %10998 = vmatmul.msk.f32.vlgmr.msra.gmra.mxu0 %vm5571_vm1, %v10989_v6  ;;  %11002 = vmatmul.msk.f32.gmra.mxu1 %vm5571_vm1, %v10990_v38  ;;  %v8228_v48 = vadd.f32 %v14718_v34, %v8089_v47 }
 0x657   : > { %11005 = vmatmul.msk.f32.gmra.mxu2 %vm5571_vm1, %v10990_v38  ;;  %11009 = vmatmul.msk.f32.vlgmr.msra.gmra.mxu3 %vm5571_vm1, %v11006_v50 }
 0x65a   : > { %v8178_v12 = vpop.f32.mrf.mxu2  ;;  %v8198_v7 = vpop.f32.mrf.mxu3 }
 0x65b   : > { %v8132_v17 = vpop.f32.mrf.mxu0  ;;  %v8268_v45 = vpop.f32.mrf.mxu1  ;;  %v8230_v49 = vadd.f32 %v8198_v7, %v8091_v16 }
 0x65c   : > { %v8232_v3 = vadd.f32 %v8132_v17, %v8093_v2  ;;  %v8366_v18 = vadd.f32 %v8268_v45, %v8227_v4 }
 0x65e   : > { %10999 = vmatmul.msk.f32.gmra.mxu0 %vm5571_vm1, %v10990_v38  ;;  %11015 = vmatmul.msk.f32.vlgmr.msrb.gmra.mxu1 %vm5571_vm1, %v11006_v50  ;;  %v8095_v38 = vadd.f32 %v14704_v0, %v7956_v21 }
 0x65f   : > { %11010 = vmatmul.msk.f32.gmra.mxu3 %vm5571_vm1, %v11007_v39  ;;  %11018 = vmatmul.msk.f32.vlgmr.msrb.gmra.mxu2 %vm5571_vm1, %v11006_v50 }
 0x660   : > { %v8234_v1 = vadd.f32 %v8178_v12, %v8095_v38 }
 0x662   : > { %v8201_v37 = vpop.f32.mrf.mxu3  ;;  %v8291_v9 = vpop.f32.mrf.mxu2 }
 0x663   : > { %v8221_v30 = vpop.f32.mrf.mxu0  ;;  %v8271_v5 = vpop.f32.mrf.mxu1  ;;  %v8367_v12 = vadd.f32 %v8291_v9, %v8228_v48 }
 0x664   : > { %v8371_v60 = vadd.f32 %v8271_v5, %v8232_v3  ;;  %v8231_v13 = vadd.f32 %v8221_v30, %v8092_v58 }
 0x666   : > { %11012 = vmatmul.msk.f32.vlgmr.msrb.gmra.mxu0 %vm5571_vm1, %v11006_v50  ;;  %11016 = vmatmul.msk.f32.gmra.mxu1 %vm5571_vm1, %v11007_v39 }
 0x667   : > { %11019 = vmatmul.msk.f32.gmra.mxu2 %vm5571_vm1, %v11007_v39  ;;  %11021 = vmatmul.msk.f32.vlgmr.msrb.gmra.mxu3 %vm5571_vm1, %v11006_v50  ;;  %v8096_v50 = vadd.f32 %v14716_v28, %v7957_v32 }
 0x669   : > { %v8235_v7 = vadd.f32 %v8201_v37, %v8096_v50 }
 0x66a   : > { %v8294_v61 = vpop.f32.mrf.mxu2  ;;  %v8314_v11 = vpop.f32.mrf.mxu3 }
 0x66b   : > { %v8372_v57 = vadd.f32 %v8294_v61, %v8233_v27  ;;  %v8368_v19 = vadd.f32 %v8314_v11, %v8229_v36  ;;  %v8224_v6 = vpop.f32.mrf.mxu0  ;;  %v8360_v54 = vpop.f32.mrf.mxu1 }
 0x66c   : > { %v8370_v10 = vadd.f32 %v8360_v54, %v8231_v13  ;;  %v8236_v23 = vadd.f32 %v8224_v6, %v8097_v63 }
 0x66e   : > { %11013 = vmatmul.msk.f32.gmra.mxu0 %vm5571_vm1, %v11007_v39 }
 0x66f   : > { %11022 = vmatmul.msk.f32.gmra.mxu3 %vm5571_vm1, %v11007_v39 }
 0x672   : > { %v8317_v51 = vpop.f32.mrf.mxu3  ;;  %v8407_v53 = vpop.f32.mrf.mxu2 }
 0x673   : > { %v8373_v44 = vadd.f32 %v8317_v51, %v8234_v1  ;;  %v8505_v33 = vadd.f32 %v8407_v53, %v8366_v18  ;;  %v8337_v29 = vpop.f32.mrf.mxu0  ;;  %v8363_v31 = vpop.f32.mrf.mxu1 }
 0x674   : > { %v8369_v0 = vadd.f32 %v8337_v29, %v8230_v49  ;;  %v8375_v15 = vadd.f32 %v8363_v31, %v8236_v23 }
 0x67a   : > { %v8410_v17 = vpop.f32.mrf.mxu2  ;;  %v8430_v45 = vpop.f32.mrf.mxu3 }
 0x67b   : > { %v8510_v39 = vadd.f32 %v8410_v17, %v8371_v60  ;;  %v8506_v2 = vadd.f32 %v8430_v45, %v8367_v12  ;;  %v8340_v59 = vpop.f32.mrf.mxu0  ;;  %v8476_v3 = vpop.f32.mrf.mxu1 }
 0x67c   : > { %v8374_v43 = vadd.f32 %v8340_v59, %v8235_v7  ;;  %v8508_v62 = vadd.f32 %v8476_v3, %v8369_v0 }
 0x682   : > { %v8433_v30 = vpop.f32.mrf.mxu3  ;;  %v8499_v5 = vpop.f32.mrf.mxu2 }
 0x683   : > { %v8511_v35 = vadd.f32 %v8433_v30, %v8372_v57  ;;  %v8509_v40 = vadd.f32 %v8499_v5, %v8370_v10  ;;  %v8453_v42 = vpop.f32.mrf.mxu0  ;;  %v8479_v55 = vpop.f32.mrf.mxu1 }
 0x684   : > { %v8507_v26 = vadd.f32 %v8453_v42, %v8368_v19  ;;  %v8513_v34 = vadd.f32 %v8479_v55, %v8374_v43 }
 0x68a   : > { %v8502_v24 = vpop.f32.mrf.mxu2  ;;  %v8543_v28 = vpop.f32.mrf.mxu3 }
 0x68b   : > { %v8514_v9 = vadd.f32 %v8502_v24, %v8375_v15  ;;  %v8641_v37 = vadd.f32 %v8543_v28, %v8505_v33  ;;  %v8456_v20 = vpop.f32.mrf.mxu0  ;;  %v8589_v22 = vpop.f32.mrf.mxu1 }
 0x68c   : > { %v8512_v60 = vadd.f32 %v8456_v20, %v8373_v44  ;;  %v8643_v58 = vadd.f32 %v8589_v22, %v8507_v26 }
 0x692   : > { %v8546_v36 = vpop.f32.mrf.mxu3  ;;  %v8612_v27 = vpop.f32.mrf.mxu2 }
 0x693   : > { %v14775_v25 = vadd.f32 %v8546_v36, %v8510_v39  ;;  %v8644_v13 = vadd.f32 %v8612_v27, %v8508_v62  ;;  %v8566_v61 = vpop.f32.mrf.mxu0  ;;  %v8592_v11 = vpop.f32.mrf.mxu1 }
 0x694   : > { %v8642_v57 = vadd.f32 %v8566_v61, %v8506_v2  ;;  %v8648_v6 = vadd.f32 %v8592_v11, %v8512_v60  ;;  %v9220_v27 = vpop.permute.xlu2 %9219 }
 0x69a   : > { %v8615_v54 = vpop.f32.mrf.mxu2  ;;  %v8635_v19 = vpop.f32.mrf.mxu3 }
 0x69b   : > { %v14777_v46 = vadd.f32 %v8615_v54, %v8513_v34  ;;  %v14779_v52 = vadd.f32 %v8635_v19, %v8509_v40  ;;  %v8569_v10 = vpop.f32.mrf.mxu0  ;;  %v8707_v41 = vpop.f32.mrf.mxu1 }
 0x69c   : > { %v8647_v21 = vadd.f32 %v8569_v10, %v8511_v35  ;;  %v8783_v14 = vadd.f32 %v8707_v41, %v8642_v57 }
 0x6a2   : > { %v8638_v56 = vpop.f32.mrf.mxu3  ;;  %v8730_v38 = vpop.f32.mrf.mxu2 }
 0x6a3   : > { %v14781_v4 = vadd.f32 %v8638_v56, %v8514_v9  ;;  %v8684_v16 = vpop.f32.mrf.mxu0  ;;  %v8710_v63 = vpop.f32.mrf.mxu1  ;;  %v8784_v43 = vadd.f32 %v8730_v38, %v8643_v58 }
 0x6a4   : > { %v14783_v1 = vadd.f32 %v8710_v63, %v8647_v21  ;;  %v8782_v62 = vadd.f32 %v8684_v16, %v8641_v37  ;;  %v9225_v63 = vpop.permute.xlu0 %9224 }
 0x6aa   : > { %v8733_v18 = vpop.f32.mrf.mxu2  ;;  %v8753_v49 = vpop.f32.mrf.mxu3 }
 0x6ab   : > { %v8687_v23 = vpop.f32.mrf.mxu0  ;;  %v8825_v51 = vpop.f32.mrf.mxu1  ;;  %v8785_v26 = vadd.f32 %v8753_v49, %v8644_v13  ;;  %v8789_v24 = vadd.f32 %v8733_v18, %v8648_v6 }
 0x6ac   : > { %v8923_v55 = vadd.f32 %v8825_v51, %v8782_v62  ;;  %v8787_v37 = vadd.f32 %v8687_v23, %v14775_v25 }
 0x6b2   : > { %v14785_v53 = vpop.f32.mrf.mxu3  ;;  %v8848_v44 = vpop.f32.mrf.mxu2 }
 0x6b3   : > { %v8776_v33 = vpop.f32.mrf.mxu0  ;;  %v8828_v29 = vpop.f32.mrf.mxu1  ;;  %v8924_v22 = vadd.f32 %v8848_v44, %v8783_v14 }
 0x6b4   : > { %v8928_v6 = vadd.f32 %v8828_v29, %v8787_v37  ;;  %v8786_v38 = vadd.f32 %v8776_v33, %v14779_v52 }
 0x6ba   : > { %v8851_v31 = vpop.f32.mrf.mxu2  ;;  %v8871_v8 = vpop.f32.mrf.mxu3 }
 0x6bb   : > { %v14787_v0 = vpop.f32.mrf.mxu0  ;;  %v8917_v15 = vpop.f32.mrf.mxu1  ;;  %v8925_v35 = vadd.f32 %v8871_v8, %v8784_v43  ;;  %v8929_v23 = vadd.f32 %v8851_v31, %v14783_v1 }
 0x6bc   : > { %v8927_v51 = vadd.f32 %v8917_v15, %v8786_v38 }
 0x6c2   : > { %v8874_v47 = vpop.f32.mrf.mxu3  ;;  %v8966_v32 = vpop.f32.mrf.mxu2 }
 0x6c3   : > { %v8894_v48 = vpop.f32.mrf.mxu0  ;;  %v14789_v50 = vpop.f32.mrf.mxu1  ;;  %v9064_v28 = vadd.f32 %v8966_v32, %v8923_v55  ;;  %v8930_v60 = vadd.f32 %v8874_v47, %v8789_v24 }
 0x6c4   : > { %v8926_v9 = vadd.f32 %v8894_v48, %v8785_v26 }
 0x6ca   : > { %v8969_v12 = vpop.f32.mrf.mxu2  ;;  %v8989_v7 = vpop.f32.mrf.mxu3 }
 0x6cb   : > { %v14791_v17 = vpop.f32.mrf.mxu0  ;;  %v9035_v45 = vpop.f32.mrf.mxu1  ;;  %v9065_v58 = vadd.f32 %v8989_v7, %v8924_v22  ;;  %v9069_v25 = vadd.f32 %v8969_v12, %v8928_v6 }
 0x6cc   : > { %v9067_v61 = vadd.f32 %v9035_v45, %v8926_v9  ;;  %v8790_v45 = vadd.f32 %v14785_v53, %v14777_v46 }
 0x6ce   : > { %v8931_v43 = vadd.f32 %v14791_v17, %v8790_v45  ;;  %v9374_v45 = vld [vmem:[%s15475_s5 + $0x58] sm:$0xff] }
 0x6d2   : > { %v8992_v39 = vpop.f32.mrf.mxu3  ;;  %v9058_v2 = vpop.f32.mrf.mxu2 }
 0x6d3   : > { %v9012_v59 = vpop.f32.mrf.mxu0  ;;  %v14793_v3 = vpop.f32.mrf.mxu1  ;;  %v9068_v32 = vadd.f32 %v9058_v2, %v8927_v51  ;;  %v9070_v12 = vadd.f32 %v8992_v39, %v8929_v23  ;;  %v8791_v39 = vadd.f32 %v14787_v0, %v14781_v4 }
 0x6d4   : > { %v9066_v34 = vadd.f32 %v9012_v59, %v8925_v35 }
 0x6d5   : > { %v8932_v35 = vadd.f32 %v14789_v50, %v8791_v39  ;;  %v9425_v39 = vld [vmem:[%s15475_s5 + $0x1f0] sm:$0xff] }
 0x6da   : > { %v14795_v30 = vpop.f32.mrf.mxu2  ;;  %v9107_v5 = vpop.f32.mrf.mxu3 }
 0x6db   : > { %v9015_v40 = vpop.f32.mrf.mxu0  ;;  %v9153_v42 = vpop.f32.mrf.mxu1  ;;  %v9205_v36 = vadd.f32 %v9107_v5, %v9064_v28  ;;  %v9073_v46 = vadd.f32 %v14795_v30, %v8932_v35  ;;  %v9377_v30 = vld [vmem:[%s15475_s5 + $0x70] sm:$0xff]  ;;  %v9424_v35 = vld [vmem:[%s15475_s5 + $0x1e8] sm:$0xff] }
 0x6dc   : > { %v9207_v20 = vadd.f32 %v9153_v42, %v9066_v34  ;;  %v9071_v11 = vadd.f32 %v9015_v40, %v8930_v60  ;;  %v9072_v42 = vadd.f32 %v14793_v3, %v8931_v43  ;;  %v9378_v3 = vld [vmem:[%s15475_s5 + $0x78] sm:$0xff]  ;;  %v9373_v43 = vld [vmem:[%s15475_s5 + $0x50] sm:$0xff] }
 0x6dd   : > { %v14800_v21 = vadd.f32 %v9220_v27, %v9205_v36  ;;  %9441 = vmatpush.msra.mxu0 %v9378_v3  ;;  %v9404_v3 = vld [vmem:[%s15475_s5 + $0x148] sm:$0xff] }
 0x6de   : > { %v14798_v19 = vadd.f32 %v9220_v27, %v9207_v20  ;;  %v9376_v20 = vld [vmem:[%s15475_s5 + $0x68] sm:$0xff] }
 0x6df   : > { %v9237_v8 = vmax.f32 %v14800_v21, 0.0  ;;  %9442 = vmatpush.msra.mxu0 %v9377_v30  ;;  %v9420_v30 = vld [vmem:[%s15475_s5 + $0x1c8] sm:$0xff] }
 0x6e0   : > { %v9239_v44 = vmax.f32 %v14798_v19, 0.0 }
 0x6e1   : > { %9443 = vmatpush.msra.mxu0 %v9376_v20  ;;  %v9368_v20 = vld [vmem:[%s15475_s5 + $0x28] sm:$0xff] }
 0x6e2   : > { %v9110_v57 = vpop.f32.mrf.mxu3  ;;  %v9176_v54 = vpop.f32.mrf.mxu2 }
 0x6e3   : > { %v9208_v10 = vadd.f32 %v9176_v54, %v9067_v61  ;;  %v9130_v13 = vpop.f32.mrf.mxu0  ;;  %v9156_v41 = vpop.f32.mrf.mxu1  ;;  %v9210_v47 = vadd.f32 %v9110_v57, %v9069_v25 }
 0x6e4   : > { %v9206_v56 = vadd.f32 %v9130_v13, %v9065_v58  ;;  %v9212_v14 = vadd.f32 %v9156_v41, %v9071_v11 }
 0x6e5   : > { %v14803_v16 = vadd.f32 %v9220_v27, %v9208_v10  ;;  %v9232_v59 = vadd.f32 %v9225_v63, %v9210_v47 }
 0x6e6   : > { %v14805_v18 = vadd.f32 %v9220_v27, %v9206_v56  ;;  %v14807_v49 = vadd.f32 %v9225_v63, %v9212_v14 }
 0x6e7   : > { %v9240_v29 = vmax.f32 %v14803_v16, 0.0  ;;  %v9242_v55 = vmax.f32 %v9232_v59, 0.0  ;;  %v9409_v59 = vld [vmem:[%s15475_s5 + $0x170] sm:$0xff] }
 0x6e8   : > { %v9238_v52 = vmax.f32 %v14805_v18, 0.0  ;;  %v9244_v33 = vmax.f32 %v14807_v49, 0.0  ;;  %v9394_v49 = vld [vmem:[%s15475_s5 + $0xf8] sm:$0xff] }
 0x6e9   : > { %v11194_v48 = vpack.i.bf16 %v9240_v29, %v9239_v44  ;;  %9464 = vmatpush.msra.mxu1 %v9394_v49  ;;  %v9380_v49 = vld [vmem:[%s15475_s5 + $0x88] sm:$0xff] }
 0x6ea   : > { %v11189_v1 = vpack.i.bf16 %v9238_v52, %v9237_v8  ;;  %v9199_v31 = vpop.f32.mrf.mxu3  ;;  %9271 = vrot.lane.b32.xlu0 %v9244_v33, %s15853_s15  ;;  %v9179_v40 = vpop.f32.mrf.mxu2 }
 0x6eb   : > { %v9209_v15 = vadd.f32 %v9199_v31, %v9068_v32  ;;  %11195 = vrot.lane.b32.xlu2 %v11194_v48, %s15853_s15  ;;  %v9133_v7 = vpop.f32.mrf.mxu0  ;;  %v9213_v53 = vadd.f32 %v9179_v40, %v9072_v42  ;;  %v9372_v40 = vld [vmem:[%s15475_s5 + $0x48] sm:$0xff]  ;;  %v9391_v42 = vld [vmem:[%s15475_s5 + $0xe0] sm:$0xff] }
 0x6ec   : > { %v9211_v2 = vadd.f32 %v9133_v7, %v9070_v12  ;;  %11190 = vrot.lane.b32.xlu1 %v11189_v1, %s15853_s15  ;;  %v9426_v7 = vld [vmem:[%s15475_s5 + $0x1f8] sm:$0xff] }
 0x6ed   : > { %v9231_v62 = vadd.f32 %v9220_v27, %v9209_v15  ;;  %v9235_v4 = vadd.f32 %v9225_v63, %v9213_v53  ;;  %v9375_v15 = vld [vmem:[%s15475_s5 + $0x60] sm:$0xff]  ;;  %9510 = vmatpush.msra.mxu3 %v9426_v7  ;;  %v9390_v53 = vld [vmem:[%s15475_s5 + $0xd8] sm:$0xff]  ;;  %v9412_v7 = vld [vmem:[%s15475_s5 + $0x188] sm:$0xff] }
 0x6ee   : > { %v9233_v5 = vadd.f32 %v9225_v63, %v9211_v2  ;;  %9444 = vmatpush.msra.mxu0 %v9375_v15  ;;  %v9393_v2 = vld [vmem:[%s15475_s5 + $0xf0] sm:$0xff] }
 0x6ef   : > { %v9241_v34 = vmax.f32 %v9231_v62, 0.0  ;;  %v9245_v17 = vmax.f32 %v9235_v4, 0.0  ;;  %9465 = vmatpush.msra.mxu1 %v9393_v2  ;;  %v9392_v62 = vld [vmem:[%s15475_s5 + $0xe8] sm:$0xff]  ;;  %9511 = vmatpush.msra.mxu3 %v9425_v39  ;;  %v9405_v4 = vld [vmem:[%s15475_s5 + $0x150] sm:$0xff]  ;;  %v9395_v2 = vld [vmem:[%s15475_s5 + $0x100] sm:$0xff] }
 0x6f0   : > { %v9243_v26 = vmax.f32 %v9233_v5, 0.0  ;;  %9445 = vmatpush.msra.mxu0 %v9374_v45  ;;  %v9408_v5 = vld [vmem:[%s15475_s5 + $0x168] sm:$0xff]  ;;  %v9413_v15 = vld [vmem:[%s15475_s5 + $0x190] sm:$0xff]  ;;  %v9379_v45 = vld [vmem:[%s15475_s5 + $0x80] sm:$0xff] }
 0x6f1   : > { %9466 = vmatpush.msra.mxu1 %v9392_v62  ;;  %9512 = vmatpush.msra.mxu3 %v9424_v35  ;;  %v9429_v39 = vld [vmem:[%s15475_s5 + $0x210] sm:$0x1]  ;;  %v9427_v62 = vld [vmem:[%s15475_s5 + $0x200] sm:$0xff] }
 0x6f2   : > { %v11199_v24 = vpack.i.bf16 %v9243_v26, %v9242_v55  ;;  %v9202_v28 = vpop.f32.mrf.mxu3  ;;  %9446 = vmatpush.msra.mxu0 %v9373_v43  ;;  %v9428_v43 = vld [vmem:[%s15475_s5 + $0x208] sm:$0xff] }
 0x6f3   : > { %v9214_v9 = vadd.f32 %v9202_v28, %v9073_v46  ;;  %9467 = vmatpush.msra.mxu1 %v9391_v42  ;;  %v9371_v46 = vld [vmem:[%s15475_s5 + $0x40] sm:$0xff]  ;;  %v9370_v28 = vld [vmem:[%s15475_s5 + $0x38] sm:$0xff] }
 0x6f4   : > { %9265 = vrot.lane.b32.xlu1 %v9241_v34, %s15853_s15  ;;  %11200 = vrot.lane.b32.xlu2 %v11199_v24, %s15853_s15  ;;  %v9422_v24 = vld [vmem:[%s15475_s5 + $0x1d8] sm:$0xff] }
 0x6f5   : > { %v9236_v0 = vadd.f32 %v9225_v63, %v9214_v9  ;;  %9447 = vmatpush.msra.mxu0 %v9372_v40  ;;  %9468 = vmatpush.msra.mxu1 %v9390_v53  ;;  %v9389_v9 = vld [vmem:[%s15475_s5 + $0xd0] sm:$0xff] }
 0x6f7   : > { %v9246_v50 = vmax.f32 %v9236_v0, 0.0  ;;  %9448 = vmatpush.msra.mxu0 %v9371_v46  ;;  %v9421_v0 = vld [vmem:[%s15475_s5 + $0x1d0] sm:$0xff]  ;;  %9469 = vmatpush.msra.mxu1 %v9389_v9 }
 0x6f9   : > { %9449 = vmatpush.msra.mxu0 %v9370_v28 }
 0x6fc   : > { %9273 = vrot.lane.b32.xlu1 %v9245_v17, %s15853_s15  ;;  %9275 = vrot.lane.b32.xlu2 %v9246_v50, %s15853_s15  ;;  %s10153_s15 = scalar_lea.sflag [#allocation3], %s404_s26 }
 0x745   : > { %v11196_v22 = vpop.permute.xlu2 %11195 }
 0x746   : > { %v11197_v36 = vunpack.i.l.bf16 %v11196_v22  ;;  %v11198_v58 = vunpack.i.h.bf16 %v11196_v22  ;;  %v9387_v22 = vld [vmem:[%s15475_s5 + $0xc0] sm:$0xff] }
 0x748   : > { %v9279_v56 = vsel %vm817_vm3, %v11197_v36, %v11198_v58 }
 0x749   : > { %v14864_v51 = vmax.f32 %v9239_v44, %v9279_v56  ;;  %v9400_v56 = vld [vmem:[%s15475_s5 + $0x128] sm:$0xff] }
 0x74e   : > { %v11201_v37 = vpop.permute.xlu2 %11200 }
 0x74f   : > { %v11203_v41 = vunpack.i.h.bf16 %v11201_v37  ;;  %v11202_v6 = vunpack.i.l.bf16 %v11201_v37  ;;  %v9402_v37 = vld [vmem:[%s15475_s5 + $0x138] sm:$0xff] }
 0x751   : > { %v9281_v63 = vsel %vm817_vm3, %v11202_v6, %v11203_v41  ;;  %v9365_v6 = vld [vmem:[%s15475_s5 + $0x10] sm:$0xff] }
 0x752   : > { %v14872_v47 = vmax.f32 %v9242_v55, %v9281_v63  ;;  %v9407_v55 = vld [vmem:[%s15475_s5 + $0x160] sm:$0xff] }
 0x753   : > { %v9383_v63 = vld [vmem:[%s15475_s5 + $0xa0] sm:$0xff] }
 0x756   : > { %v9276_v32 = vpop.permute.xlu2 %9275 }
 0x757   : > { %v14880_v16 = vmax.f32 %v9246_v50, %v9276_v32  ;;  %v9388_v50 = vld [vmem:[%s15475_s5 + $0xc8] sm:$0xff] }
 0x758   : > { %9470 = vmatpush.msra.mxu1 %v9388_v50 }
 0x75a   : > { %9471 = vmatpush.msra.mxu1 %v9387_v22 }
 0x75c   : > { %v9272_v54 = vpop.permute.xlu0 %9271 }
 0x75d   : > { %v9282_v14 = vsel %vm817_vm3, %v11203_v41, %v9272_v54  ;;  %v9417_v41 = vld [vmem:[%s15475_s5 + $0x1b0] sm:$0xff] }
 0x75e   : > { %v11191_v60 = vpop.permute.xlu1 %11190  ;;  %v14860_v23 = vmax.f32 %v9243_v26, %v9282_v14  ;;  %v9423_v26 = vld [vmem:[%s15475_s5 + $0x1e0] sm:$0xff]  ;;  %v9416_v14 = vld [vmem:[%s15475_s5 + $0x1a8] sm:$0xff] }
 0x75f   : > { %v11193_v27 = vunpack.i.h.bf16 %v11191_v60  ;;  %v11192_v61 = vunpack.i.l.bf16 %v11191_v60  ;;  %9513 = vmatpush.msra.mxu3 %v9423_v26  ;;  %v9403_v60 = vld [vmem:[%s15475_s5 + $0x140] sm:$0xff] }
 0x760   : > { %v11214_v48 = vpack.i.bf16 %v14860_v23, %v14872_v47 }
 0x761   : > { %v9277_v11 = vsel %vm817_vm3, %v11192_v61, %v11193_v27  ;;  %v9278_v57 = vsel %vm817_vm3, %v11193_v27, %v11197_v36  ;;  %9514 = vmatpush.msra.mxu3 %v9422_v24  ;;  %v9419_v36 = vld [vmem:[%s15475_s5 + $0x1c0] sm:$0xff]  ;;  %v9386_v61 = vld [vmem:[%s15475_s5 + $0xb8] sm:$0xff] }
 0x762   : > { %v14847_v10 = vmax.f32 %v9237_v8, %v9277_v11  ;;  %v14849_v13 = vmax.f32 %v9238_v52, %v9278_v57  ;;  %v9367_v27 = vld [vmem:[%s15475_s5 + $0x20] sm:$0xff]  ;;  %v9366_v11 = vld [vmem:[%s15475_s5 + $0x18] sm:$0xff]  ;;  %v9385_v57 = vld [vmem:[%s15475_s5 + $0xb0] sm:$0xff]  ;;  %9472 = vmatpush.msra.mxu1 %v9386_v61 }
 0x763   : > { %9515 = vmatpush.msra.mxu3 %v9421_v0 }
 0x764   : > { %v11204_v21 = vpack.i.bf16 %v14849_v13, %v14847_v10  ;;  %9473 = vmatpush.msra.mxu1 %v9385_v57  ;;  %v9560_v57 = vld [vmem:[%s15476_s6 + $0x18] sm:$0x1] }
 0x765   : > { %9516 = vmatpush.msra.mxu3 %v9420_v30 }
 0x766   : > { %v9266_v38 = vpop.permute.xlu1 %9265  ;;  %11205 = vrot.lane.b32.xlu0 %v11204_v21, %s15716_s19  ;;  %v9384_v21 = vld [vmem:[%s15475_s5 + $0xa8] sm:$0xff] }
 0x767   : > { %v9280_v25 = vsel %vm817_vm3, %v11198_v58, %v9266_v38  ;;  %v14858_v18 = vmax.f32 %v9241_v34, %v9266_v38  ;;  %v9406_v34 = vld [vmem:[%s15475_s5 + $0x158] sm:$0xff]  ;;  %9517 = vmatpush.msra.mxu3 %v9419_v36  ;;  %9474 = vmatpush.msra.mxu1 %v9384_v21  ;;  %v9364_v38 = vld [vmem:[%s15475_s5 + $0x8] sm:$0xff]  ;;  %v9557_v21 = vld [vmem:[%s15476_s6] sm:$0xff] }
 0x768   : > { %v14868_v8 = vmax.f32 %v9240_v29, %v9280_v25  ;;  %v9418_v58 = vld [vmem:[%s15475_s5 + $0x1b8] sm:$0xff]  ;;  %v9399_v25 = vld [vmem:[%s15475_s5 + $0x120] sm:$0xff] }
 0x769   : > { %9323 = vrot.lane.b32.xlu2 %v14858_v18, %s15716_s19  ;;  %9518 = vmatpush.msra.mxu3 %v9418_v58 }
 0x76a   : > { %v11209_v52 = vpack.i.bf16 %v14868_v8, %v14864_v51  ;;  %9475 = vmatpush.msra.mxu1 %v9383_v63  ;;  %v11028_v63 = vld [vmem:[%s15476_s6 + $0x20] sm:$0xff] }
 0x76b   : > { %9519 = vmatpush.msra.mxu3 %v9417_v41  ;;  %v11048_v41 = vld [vmem:[%s15476_s6 + $0x90] sm:$0xff] }
 0x76c   : > { %11210 = vrot.lane.b32.xlu1 %v11209_v52, %s15716_s19  ;;  %v9415_v52 = vld [vmem:[%s15475_s5 + $0x1a0] sm:$0xff] }
 0x76d   : > { %9520 = vmatpush.msra.mxu3 %v9416_v14  ;;  %v11047_v14 = vld [vmem:[%s15476_s6 + $0x88] sm:$0xff] }
 0x76e   : > { %v9274_v19 = vpop.permute.xlu1 %9273  ;;  %11215 = vrot.lane.b32.xlu0 %v11214_v48, %s15716_s19  ;;  %v9382_v48 = vld [vmem:[%s15475_s5 + $0x98] sm:$0xff] }
 0x76f   : > { %v9283_v44 = vsel %vm817_vm3, %v9272_v54, %v9274_v19  ;;  %v9284_v29 = vsel %vm817_vm3, %v9274_v19, %v9276_v32  ;;  %v9401_v54 = vld [vmem:[%s15475_s5 + $0x130] sm:$0xff]  ;;  %v9363_v32 = vld [vmem:[%s15475_s5] sm:$0xff]  ;;  %v9398_v19 = vld [vmem:[%s15475_s5 + $0x118] sm:$0xff]  ;;  %9521 = vmatpush.msra.mxu3 %v9415_v52  ;;  %9476 = vmatpush.msra.mxu1 %v9382_v48  ;;  %vm9437_vm3 = vcmask 1040384  }
 0x770   : > { %v14886_v12 = vmax.f32 %v9244_v33, %v9283_v44  ;;  %v14888_v1 = vmax.f32 %v9245_v17, %v9284_v29  ;;  %v9410_v33 = vld [vmem:[%s15475_s5 + $0x178] sm:$0xff]  ;;  %v9369_v17 = vld [vmem:[%s15475_s5 + $0x30] sm:$0xff]  ;;  %v11046_v52 = vld [vmem:[%s15476_s6 + $0x80] sm:$0xff] }
 0x771   : > { %9333 = vrot.lane.b32.xlu2 %v14880_v16, %s15716_s19  ;;  %9487 = vmatpush.msra.mxu2 %v9410_v33  ;;  %v9414_v44 = vld [vmem:[%s15475_s5 + $0x198] sm:$0xff]  ;;  %v9381_v29 = vld [vmem:[%s15475_s5 + $0x90] sm:$0xff]  ;;  %v9396_v33 = vld [vmem:[%s15475_s5 + $0x108] sm:$0xff] }
 0x772   : > { %v11219_v31 = vpack.i.bf16 %v14888_v1, %v14886_v12  ;;  %9450 = vmatpush.msra.mxu0 %v9369_v17  ;;  %9522 = vmatpush.msra.mxu3 %v9414_v44  ;;  %v11036_v48 = vld [vmem:[%s15476_s6 + $0x50] sm:$0xff]  ;;  %v11073_v44 = vld [vmem:[%s15476_s6 + $0x118] sm:$0x1] }
 0x773   : > { %9488 = vmatpush.msra.mxu2 %v9409_v59  ;;  %9477 = vmatpush.msra.mxu1 %v9381_v29  ;;  %v9411_v59 = vld [vmem:[%s15475_s5 + $0x180] sm:$0xff]  ;;  %v11079_v29 = vld [vmem:[%s15476_s6 + $0x138] sm:$0x1] }
 0x774   : > { %11220 = vrot.lane.b32.xlu1 %v11219_v31, %s15716_s19  ;;  %9451 = vmatpush.msra.mxu0 %v9368_v20  ;;  %v9397_v31 = vld [vmem:[%s15475_s5 + $0x110] sm:$0xff]  ;;  %s405_s19 = scalar_lea.vmem [#allocation2], %s404_s26 }
 0x775   : > { %9489 = vmatpush.msra.mxu2 %v9408_v5  ;;  %9523 = vmatpush.msra.mxu3 %v9413_v15  ;;  %v11042_v15 = vld [vmem:[%s15476_s6 + $0x70] sm:$0xff]  ;;  %s10163_s17 = sshll.u32 %s405_s19, 4  ;;  %s10164_s17 = int_to_ptr.vmem [resolvable:$true] %s10163_s17 }
 0x776   : > { %9452 = vmatpush.msra.mxu0 %v9367_v27  ;;  %9478 = vmatpush.msra.mxu1 %v9380_v49  ;;  %v11072_v49 = vld [vmem:[%s15476_s6 + $0x110] sm:$0xff] }
 0x777   : > { %9490 = vmatpush.msra.mxu2 %v9407_v55  ;;  %9524 = vmatpush.msra.mxu3 %v9412_v7  ;;  %v11034_v7 = vld [vmem:[%s15476_s6 + $0x40] sm:$0xff] }
 0x778   : > { %9453 = vmatpush.msra.mxu0 %v9366_v11  ;;  %9479 = vmatpush.msra.mxu1 %v9379_v45  ;;  %v11041_v45 = vld [vmem:[%s15476_s6 + $0x68] sm:$0xff] }
 0x779   : > { %9491 = vmatpush.msra.mxu2 %v9406_v34  ;;  %9525 = vmatpush.msra.mxu3 %v9411_v59  ;;  %v11077_v59 = vld [vmem:[%s15476_s6 + $0x128] sm:$0xff] }
 0x77a   : > { %9454 = vmatpush.msra.mxu0 %v9365_v6  ;;  %11026 = vmatpush.msk.msrb.mxu1 %vm9437_vm3, %v9560_v57  ;;  %v11054_v6 = vld [vmem:[%s15476_s6 + $0xb0] sm:$0xff] }
 0x77b   : > { %9492 = vmatpush.msra.mxu2 %v9405_v4 }
 0x77c   : > { %9455 = vmatpush.msra.mxu0 %v9364_v38  ;;  %v11053_v38 = vld [vmem:[%s15476_s6 + $0xa8] sm:$0xff] }
 0x77d   : > { %9493 = vmatpush.msra.mxu2 %v9404_v3 }
 0x77e   : > { %9456 = vmatpush.msra.mxu0 %v9363_v32  ;;  %v11052_v32 = vld [vmem:[%s15476_s6 + $0xa0] sm:$0xff] }
 0x77f   : > { %9494 = vmatpush.msra.mxu2 %v9403_v60 }
 0x780   : > { %11023 = vmatpush.msk.msrb.mxu0 %vm9437_vm3, %v9429_v39  ;;  %v11040_v39 = vld [vmem:[%s15476_s6 + $0x60] sm:$0xff] }
 0x781   : > { %9495 = vmatpush.msra.mxu2 %v9402_v37 }
 0x782   : > { %9547 = vmatpush.msrb.mxu0 %v9428_v43  ;;  %v11070_v43 = vld [vmem:[%s15476_s6 + $0x100] sm:$0xff] }
 0x783   : > { %9496 = vmatpush.msra.mxu2 %v9401_v54  ;;  %v11030_v54 = vld [vmem:[%s15476_s6 + $0x30] sm:$0xff] }
 0x784   : > { %9548 = vmatpush.msrb.mxu0 %v9427_v62  ;;  %v11076_v62 = vld [vmem:[%s15476_s6 + $0x120] sm:$0xff] }
 0x785   : > { %9497 = vmatpush.msra.mxu2 %v9400_v56  ;;  %v11029_v56 = vld [vmem:[%s15476_s6 + $0x28] sm:$0xff] }
 0x787   : > { %9498 = vmatpush.msra.mxu2 %v9399_v25  ;;  %v11037_v25 = vld [vmem:[%s15476_s6 + $0x58] sm:$0x1] }
 0x789   : > { %9499 = vmatpush.msra.mxu2 %v9398_v19  ;;  %v11043_v19 = vld [vmem:[%s15476_s6 + $0x78] sm:$0x1] }
 0x78b   : > { %9500 = vmatpush.msra.mxu2 %v9397_v31  ;;  %v11035_v31 = vld [vmem:[%s15476_s6 + $0x48] sm:$0xff] }
 0x78d   : > { %9501 = vmatpush.msra.mxu2 %v9396_v33  ;;  %v11078_v33 = vld [vmem:[%s15476_s6 + $0x130] sm:$0xff] }
 0x78f   : > { %9502 = vmatpush.msra.mxu2 %v9395_v2  ;;  %v11071_v2 = vld [vmem:[%s15476_s6 + $0x108] sm:$0xff] }
 0x7c3   : > { %v9324_v26 = vpop.permute.xlu2 %9323 }
 0x7cb   : > { %v9334_v27 = vpop.permute.xlu2 %9333 }
 0x7cc   : > { %v9362_v11 = vmax.f32 %v14880_v16, %v9334_v27  ;;  %v11055_v16 = vld [vmem:[%s15476_s6 + $0xb8] sm:$0x1] }
 0x7d8   : > { %v11206_v5 = vpop.permute.xlu0 %11205 }
 0x7d9   : > { %v11208_v35 = vunpack.i.h.bf16 %v11206_v5  ;;  %v11207_v40 = vunpack.i.l.bf16 %v11206_v5 }
 0x7db   : > { %v9335_v42 = vsel %vm2448_vm11, %v11207_v40, %v11208_v35 }
 0x7dc   : > { %v9353_v55 = vmax.f32 %v14847_v10, %v9335_v42 }
 0x7de   : > { %v11211_v46 = vpop.permute.xlu1 %11210  ;;  %9457 = vmatmul.f32.vlgmr.msra.gmra.mxu0 %v9353_v55 }
 0x7df   : > { %v11213_v53 = vunpack.i.h.bf16 %v11211_v46  ;;  %v11212_v34 = vunpack.i.l.bf16 %v11211_v46  ;;  %11056 = vmatpush.msk.msra.mxu0 %vm9437_vm3, %v11055_v16 }
 0x7e0   : > { %v11216_v24 = vpop.permute.xlu0 %11215 }
 0x7e1   : > { %v9336_v28 = vsel %vm2448_vm11, %v11208_v35, %v11212_v34  ;;  %v9337_v9 = vsel %vm2448_vm11, %v11212_v34, %v11213_v53  ;;  %v9338_v4 = vsel %vm2448_vm11, %v11213_v53, %v9324_v26  ;;  %v11218_v0 = vunpack.i.h.bf16 %v11216_v24  ;;  %9741 = vmatpush.msra.mxu0 %v11054_v6  ;;  %v11100_v6 = vld [vmem:[%s15476_s6 + $0x1a0] sm:$0xff] }
 0x7e2   : > { %v9354_v17 = vmax.f32 %v14849_v13, %v9336_v28  ;;  %v9355_v50 = vmax.f32 %v14864_v51, %v9337_v9  ;;  %v9356_v3 = vmax.f32 %v14868_v8, %v9338_v4  ;;  %v11217_v10 = vunpack.i.l.bf16 %v11216_v24  ;;  %v11061_v9 = vld [vmem:[%s15476_s6 + $0xd8] sm:$0x1] }
 0x7e3   : > { %9742 = vmatpush.msra.mxu0 %v11053_v38 }
 0x7e4   : > { %9480 = vmatmul.f32.vlgmr.msra.gmra.mxu1 %v9354_v17  ;;  %9503 = vmatmul.f32.vlgmr.msra.gmra.mxu2 %v9355_v50  ;;  %v9339_v30 = vsel %vm2448_vm11, %v11217_v10, %v11218_v0  ;;  %v11060_v10 = vld [vmem:[%s15476_s6 + $0xd0] sm:$0xff] }
 0x7e5   : > { %9526 = vmatmul.f32.vlgmr.msra.gmra.mxu3 %v9356_v3  ;;  %v9358_v20 = vmax.f32 %v14872_v47, %v9339_v30  ;;  %v9357_v47 = vmax.f32 %v14858_v18, %v9324_v26  ;;  %v11049_v18 = vld [vmem:[%s15476_s6 + $0x98] sm:$0x1]  ;;  %9743 = vmatpush.msra.mxu0 %v11052_v32 }
 0x7e6   : > { %v11221_v22 = vpop.permute.xlu1 %11220  ;;  %11050 = vmatpush.msk.msrb.mxu3 %vm9437_vm3, %v11049_v18 }
 0x7e7   : > { %v11223_v60 = vunpack.i.h.bf16 %v11221_v22  ;;  %v11222_v36 = vunpack.i.l.bf16 %v11221_v22  ;;  %9460 = vmatmul.f32.gmra.mxu0 %v9358_v20  ;;  %v11067_v20 = vld [vmem:[%s15476_s6 + $0xf8] sm:$0x1] }
 0x7e8   : > { %9709 = vmatpush.msrb.mxu3 %v11048_v41  ;;  %v11097_v22 = vld [vmem:[%s15476_s6 + $0x198] sm:$0x1]  ;;  %v11094_v41 = vld [vmem:[%s15476_s6 + $0x180] sm:$0xff] }
 0x7e9   : > { %v9340_v61 = vsel %vm2448_vm11, %v11218_v0, %v11222_v36  ;;  %v9341_v13 = vsel %vm2448_vm11, %v11222_v36, %v11223_v60  ;;  %v9342_v51 = vsel %vm2448_vm11, %v11223_v60, %v9334_v27  ;;  %vm9561_vm11 = vcmask 203776   ;;  %v11103_v36 = vld [vmem:[%s15476_s6 + $0x1b8] sm:$0x1]  ;;  %v11059_v27 = vld [vmem:[%s15476_s6 + $0xc8] sm:$0xff] }
 0x7ea   : > { %v9359_v8 = vmax.f32 %v14860_v23, %v9340_v61  ;;  %v9360_v37 = vmax.f32 %v14886_v12, %v9341_v13  ;;  %v9361_v58 = vmax.f32 %v14888_v1, %v9342_v51  ;;  %v9559_v23 = vld [vmem:[%s15476_s6 + $0x10] sm:$0xff]  ;;  %v11031_v12 = vld [vmem:[%s15476_s6 + $0x38] sm:$0x1]  ;;  %v9558_v1 = vld [vmem:[%s15476_s6 + $0x8] sm:$0xff]  ;;  %9710 = vmatpush.msrb.mxu3 %v11047_v14 }
 0x7eb   : > { %11032 = vmatpush.msk.msrb.mxu2 %vm9437_vm3, %v11031_v12  ;;  %9581 = vmatpush.msrb.mxu1 %v9559_v23  ;;  %v11066_v13 = vld [vmem:[%s15476_s6 + $0xf0] sm:$0xff]  ;;  %v11095_v23 = vld [vmem:[%s15476_s6 + $0x188] sm:$0xff] }
 0x7ec   : > { %9483 = vmatmul.f32.gmra.mxu1 %v9359_v8  ;;  %9506 = vmatmul.f32.gmra.mxu2 %v9360_v37  ;;  %v11096_v51 = vld [vmem:[%s15476_s6 + $0x190] sm:$0xff]  ;;  %v11058_v37 = vld [vmem:[%s15476_s6 + $0xc0] sm:$0xff]  ;;  %v11101_v12 = vld [vmem:[%s15476_s6 + $0x1a8] sm:$0xff] }
 0x7ed   : > { %9529 = vmatmul.f32.gmra.mxu3 %v9361_v58  ;;  %9582 = vmatpush.msrb.mxu1 %v9558_v1  ;;  %v11102_v8 = vld [vmem:[%s15476_s6 + $0x1b0] sm:$0xff]  ;;  %v11064_v1 = vld [vmem:[%s15476_s6 + $0xe0] sm:$0xff] }
 0x7ee   : > { %9613 = vmatpush.msrb.mxu2 %v11030_v54  ;;  %9711 = vmatpush.msrb.mxu3 %v11046_v52  ;;  %v11085_v54 = vld [vmem:[%s15476_s6 + $0x158] sm:$0x1]  ;;  %v11090_v14 = vld [vmem:[%s15476_s6 + $0x170] sm:$0xff] }
 0x7ef   : > { %11024 = vmatmul.msk.f32.vlgmr.msrb.gmra.mxu0 %vm9430_vm5, %v9357_v47  ;;  %9583 = vmatpush.msrb.mxu1 %v9557_v21  ;;  %v11065_v47 = vld [vmem:[%s15476_s6 + $0xe8] sm:$0xff]  ;;  %v11091_v21 = vld [vmem:[%s15476_s6 + $0x178] sm:$0x1] }
 0x7f0   : > { %9614 = vmatpush.msrb.mxu2 %v11029_v56  ;;  %11074 = vmatpush.msk.msra.mxu3 %vm9437_vm3, %v11073_v44  ;;  %v11084_v56 = vld [vmem:[%s15476_s6 + $0x150] sm:$0xff]  ;;  %v11088_v44 = vld [vmem:[%s15476_s6 + $0x160] sm:$0xff] }
 0x7f1   : > { %11038 = vmatpush.msk.msra.mxu1 %vm9437_vm3, %v11037_v25  ;;  %11080 = vmatpush.msk.msrb.mxu0 %vm9437_vm3, %v11079_v29  ;;  %v11089_v25 = vld [vmem:[%s15476_s6 + $0x168] sm:$0xff]  ;;  %v11109_v29 = vld [vmem:[%s15476_s6 + $0x1d8] sm:$0x1] }
 0x7f2   : > { %9615 = vmatpush.msrb.mxu2 %v11028_v63  ;;  %9837 = vmatpush.msra.mxu3 %v11072_v49  ;;  %v11083_v63 = vld [vmem:[%s15476_s6 + $0x148] sm:$0xff]  ;;  %v11114_v49 = vld [vmem:[%s15476_s6 + $0x1f0] sm:$0xff] }
 0x7f3   : > { %9645 = vmatpush.msra.mxu1 %v11036_v48  ;;  %9869 = vmatpush.msrb.mxu0 %v11078_v33  ;;  %v11082_v48 = vld [vmem:[%s15476_s6 + $0x140] sm:$0xff] }
 0x7f4   : > { %11044 = vmatpush.msk.msra.mxu2 %vm9437_vm3, %v11043_v19  ;;  %9838 = vmatpush.msra.mxu3 %v11071_v2 }
 0x7f5   : > { %9646 = vmatpush.msra.mxu1 %v11035_v31  ;;  %9870 = vmatpush.msrb.mxu0 %v11077_v59  ;;  %v11115_v31 = vld [vmem:[%s15476_s6 + $0x1f8] sm:$0x1]  ;;  %v11106_v59 = vld [vmem:[%s15476_s6 + $0x1c0] sm:$0xff] }
 0x7f6   : > { %9677 = vmatpush.msra.mxu2 %v11042_v15  ;;  %9839 = vmatpush.msra.mxu3 %v11070_v43  ;;  %v11108_v15 = vld [vmem:[%s15476_s6 + $0x1d0] sm:$0xff] }
 0x7f7   : > { %11025 = vmatmul.msk.f32.gmra.mxu0 %vm9430_vm5, %v9362_v11  ;;  %9647 = vmatpush.msra.mxu1 %v11034_v7  ;;  %v11107_v7 = vld [vmem:[%s15476_s6 + $0x1c8] sm:$0xff] }
 0x7f8   : > { %9678 = vmatpush.msra.mxu2 %v11041_v45  ;;  %9871 = vmatpush.msrb.mxu0 %v11076_v62  ;;  %v11113_v45 = vld [vmem:[%s15476_s6 + $0x1e8] sm:$0xff] }
 0x7fa   : > { %9679 = vmatpush.msra.mxu2 %v11040_v39  ;;  %v11112_v39 = vld [vmem:[%s15476_s6 + $0x1e0] sm:$0xff] }
 0x85b   : > { %v9458_v5 = vpop.f32.mrf.mxu0 }
 0x861   : > { %v9481_v35 = vpop.f32.mrf.mxu1 }
 0x862   : > { %v9482_v42 = vadd.f32 %v9481_v35, %v9458_v5  ;;  %v10084_v5 = vld [vmem:[%s15478_s8 + $0x70] sm:$0xff]  ;;  %v10083_v35 = vld [vmem:[%s15478_s8 + $0x68] sm:$0xff] }
 0x864   : > { %v9461_v40 = vpop.f32.mrf.mxu0 }
 0x867   : > { %v9504_v55 = vpop.f32.mrf.mxu2 }
 0x868   : > { %v9505_v26 = vadd.f32 %v9504_v55, %v9482_v42  ;;  %v9527_v46 = vpop.f32.mrf.mxu3  ;;  %v10081_v42 = vld [vmem:[%s15478_s8 + $0x58] sm:$0xff]  ;;  %v10080_v55 = vld [vmem:[%s15478_s8 + $0x50] sm:$0xff] }
 0x869   : > { %v9484_v34 = vpop.f32.mrf.mxu1 }
 0x86a   : > { %v9528_v53 = vadd.f32 %v9527_v46, %v9505_v26  ;;  %v9485_v4 = vadd.f32 %v9484_v34, %v9461_v40  ;;  %v10082_v40 = vld [vmem:[%s15478_s8 + $0x60] sm:$0xff]  ;;  %v10079_v26 = vld [vmem:[%s15478_s8 + $0x48] sm:$0xff] }
 0x86b   : > { %v10078_v46 = vld [vmem:[%s15478_s8 + $0x40] sm:$0xff] }
 0x86c   : > { %v9550_v24 = vpop.f32.mrf.mxu0 }
 0x86d   : > { %v15210_v28 = vadd.f32 %v9550_v24, %v9528_v53  ;;  %v10077_v53 = vld [vmem:[%s15478_s8 + $0x38] sm:$0xff]  ;;  %v10076_v24 = vld [vmem:[%s15478_s8 + $0x30] sm:$0xff] }
 0x86f   : > { %11027 = vmatmul.msk.f32.vlgmr.msrb.gmra.mxu1 %vm9561_vm11, %v15210_v28  ;;  %v9507_v0 = vpop.f32.mrf.mxu2  ;;  %v9594_v17 = vrot.slane %v15210_v28, 1  ;;  %v9690_v50 = vrot.slane %v15210_v28, 4  ;;  %v9722_v3 = vrot.slane %v15210_v28, 5  ;;  %v9626_v57 = vrot.slane %v15210_v28, 2 }
 0x870   : > { %v9508_v30 = vadd.f32 %v9507_v0, %v9485_v4  ;;  %11062 = vmatpush.msk.msrb.mxu1 %vm9437_vm3, %v11061_v9  ;;  %v9530_v60 = vpop.f32.mrf.mxu3  ;;  %v9658_v18 = vrot.slane %v15210_v28, 3  ;;  %v9754_v38 = vrot.slane %v15210_v28, 6  ;;  %v9786_v52 = vrot.slane %v15210_v28, 7  ;;  %v10075_v28 = vld [vmem:[%s15478_s8 + $0x28] sm:$0xff]  ;;  %v10074_v9 = vld [vmem:[%s15478_s8 + $0x20] sm:$0xff]  ;;  %v10073_v0 = vld [vmem:[%s15478_s8 + $0x18] sm:$0xff] }
 0x871   : > { %11033 = vmatmul.msk.f32.vlgmr.msrb.gmra.mxu2 %vm9561_vm11, %v9594_v17  ;;  %11051 = vmatmul.msk.f32.vlgmr.msrb.gmra.mxu3 %vm9561_vm11, %v9690_v50  ;;  %v9556_v4 = vld [vmem:[%s15477_s7] sm:$0x1] }
 0x872   : > { %v9531_v61 = vadd.f32 %v9530_v60, %v9508_v30  ;;  %11057 = vmatmul.msk.f32.vlgmr.msra.gmra.mxu0 %vm9561_vm11, %v9722_v3  ;;  %9773 = vmatpush.msrb.mxu1 %v11060_v10  ;;  %v10072_v10 = vld [vmem:[%s15478_s8 + $0x10] sm:$0xff] }
 0x873   : > { %11068 = vmatpush.msk.msrb.mxu2 %vm9437_vm3, %v11067_v20  ;;  %11098 = vmatpush.msk.msrb.mxu3 %vm9437_vm3, %v11097_v22  ;;  %v10071_v20 = vld [vmem:[%s15478_s8 + $0x8] sm:$0xff]  ;;  %v10070_v22 = vld [vmem:[%s15478_s8] sm:$0xff]  ;;  %v10120_v60 = vld [vmem:[%s15480_s10 + $0x50] sm:$0xf] }
 0x874   : > { %v9553_v58 = vpop.f32.mrf.mxu0  ;;  %11104 = vmatpush.msk.msra.mxu0 %vm9437_vm3, %v11103_v36  ;;  %9774 = vmatpush.msrb.mxu1 %v11059_v27  ;;  %v10119_v36 = vld [vmem:[%s15480_s10 + $0x48] sm:$0xff] }
 0x875   : > { %v15257_v11 = vadd.f32 %v9553_v58, %v9531_v61  ;;  %9805 = vmatpush.msrb.mxu2 %v11066_v13  ;;  %9965 = vmatpush.msrb.mxu3 %v11096_v51  ;;  %v10118_v13 = vld [vmem:[%s15480_s10 + $0x40] sm:$0xff]  ;;  %v10117_v58 = vld [vmem:[%s15480_s10 + $0x38] sm:$0xff] }
 0x876   : > { %9997 = vmatpush.msra.mxu0 %v11102_v8  ;;  %9775 = vmatpush.msrb.mxu1 %v11058_v37 }
 0x877   : > { %11039 = vmatmul.msk.f32.vlgmr.msra.gmra.mxu1 %vm9561_vm11, %v9626_v57  ;;  %v9850_v16 = vrot.slane %v15257_v11, 1  ;;  %9806 = vmatpush.msrb.mxu2 %v11065_v47  ;;  %v9946_v32 = vrot.slane %v15257_v11, 4  ;;  %v9978_v19 = vrot.slane %v15257_v11, 5  ;;  %v9882_v33 = vrot.slane %v15257_v11, 2  ;;  %v10116_v57 = vld [vmem:[%s15480_s10 + $0x30] sm:$0xff] }
 0x878   : > { %9966 = vmatpush.msrb.mxu3 %v11095_v23  ;;  %9998 = vmatpush.msra.mxu0 %v11101_v12  ;;  %v9914_v2 = vrot.slane %v15257_v11, 3  ;;  %v10010_v43 = vrot.slane %v15257_v11, 6  ;;  %v10042_v62 = vrot.slane %v15257_v11, 7  ;;  %v10115_v12 = vld [vmem:[%s15480_s10 + $0x28] sm:$0xff] }
 0x879   : > { %11045 = vmatmul.msk.f32.vlgmr.msra.gmra.mxu2 %vm9561_vm11, %v9658_v18  ;;  %11075 = vmatmul.msk.f32.vlgmr.msra.gmra.mxu3 %vm9561_vm11, %v15257_v11 }
 0x87a   : > { %11081 = vmatmul.msk.f32.vlgmr.msrb.gmra.mxu0 %vm9561_vm11, %v9850_v16  ;;  %9807 = vmatpush.msrb.mxu2 %v11064_v1  ;;  %v10114_v16 = vld [vmem:[%s15480_s10 + $0x20] sm:$0xff] }
 0x87b   : > { %11086 = vmatpush.msk.msra.mxu1 %vm9437_vm3, %v11085_v54  ;;  %9967 = vmatpush.msrb.mxu3 %v11094_v41 }
 0x87c   : > { %9999 = vmatpush.msra.mxu0 %v11100_v6  ;;  %11092 = vmatpush.msk.msra.mxu2 %vm9437_vm3, %v11091_v21  ;;  %v10113_v6 = vld [vmem:[%s15480_s10 + $0x18] sm:$0xff] }
 0x87d   : > { %9901 = vmatpush.msra.mxu1 %v11084_v56  ;;  %10090 = vmatpush.msra.mxu3 %v10084_v5  ;;  %v10121_v5 = vld [vmem:[%s15481_s11] sm:$0x1] }
 0x87e   : > { %9933 = vmatpush.msra.mxu2 %v11090_v14  ;;  %11119 = vmatpush.msk.msrb.mxu0 %vm10126_vm13, %v10120_v60 }
 0x87f   : > { %11063 = vmatmul.msk.f32.vlgmr.msrb.gmra.mxu1 %vm9561_vm11, %v9754_v38  ;;  %10091 = vmatpush.msra.mxu3 %v10083_v35 }
 0x880   : > { %9902 = vmatpush.msra.mxu1 %v11083_v63  ;;  %9934 = vmatpush.msra.mxu2 %v11089_v25 }
 0x881   : > { %11069 = vmatmul.msk.f32.vlgmr.msrb.gmra.mxu2 %vm9561_vm11, %v9786_v52  ;;  %11099 = vmatmul.msk.f32.vlgmr.msrb.gmra.mxu3 %vm9561_vm11, %v9946_v32 }
 0x882   : > { %11105 = vmatmul.msk.f32.vlgmr.msra.gmra.mxu0 %vm9561_vm11, %v9978_v19  ;;  %9903 = vmatpush.msra.mxu1 %v11082_v48 }
 0x883   : > { %9935 = vmatpush.msra.mxu2 %v11088_v44  ;;  %10092 = vmatpush.msra.mxu3 %v10082_v40 }
 0x884   : > { %11110 = vmatpush.msk.msrb.mxu1 %vm9437_vm3, %v11109_v29  ;;  %10136 = vmatpush.msrb.mxu0 %v10119_v36 }
 0x885   : > { %11116 = vmatpush.msk.msrb.mxu2 %vm9437_vm3, %v11115_v31  ;;  %10093 = vmatpush.msra.mxu3 %v10081_v42 }
 0x886   : > { %10029 = vmatpush.msrb.mxu1 %v11108_v15  ;;  %10137 = vmatpush.msrb.mxu0 %v10118_v13 }
 0x887   : > { %10061 = vmatpush.msrb.mxu2 %v11114_v49  ;;  %11087 = vmatmul.msk.f32.vlgmr.msra.gmra.mxu1 %vm9561_vm11, %v9882_v33 }
 0x888   : > { %10030 = vmatpush.msrb.mxu1 %v11107_v7  ;;  %10094 = vmatpush.msra.mxu3 %v10080_v55  ;;  %v10112_v7 = vld [vmem:[%s15480_s10 + $0x10] sm:$0xff] }
 0x889   : > { %10062 = vmatpush.msrb.mxu2 %v11113_v45  ;;  %10138 = vmatpush.msrb.mxu0 %v10117_v58  ;;  %v10111_v45 = vld [vmem:[%s15480_s10 + $0x8] sm:$0xff] }
 0x88a   : > { %11093 = vmatmul.msk.f32.vlgmr.msra.gmra.mxu2 %vm9561_vm11, %v9914_v2  ;;  %10031 = vmatpush.msrb.mxu1 %v11106_v59  ;;  %v10110_v2 = vld [vmem:[%s15480_s10] sm:$0xff] }
 0x88b   : > { %10063 = vmatpush.msrb.mxu2 %v11112_v39  ;;  %10095 = vmatpush.msra.mxu3 %v10079_v26  ;;  %v10085_v59 = vld [vmem:[%s15479_s9] sm:$0x1] }
 0x88c   : > { %10139 = vmatpush.msrb.mxu0 %v10116_v57 }
 0x88d   : > { %10096 = vmatpush.msra.mxu3 %v10078_v46 }
 0x88e   : > { %10140 = vmatpush.msrb.mxu0 %v10115_v12 }
 0x88f   : > { %11111 = vmatmul.msk.f32.vlgmr.msrb.gmra.mxu1 %vm9561_vm11, %v10010_v43  ;;  %10097 = vmatpush.msra.mxu3 %v10077_v53 }
 0x890   : > { %10141 = vmatpush.msrb.mxu0 %v10114_v16 }
 0x891   : > { %10098 = vmatpush.msra.mxu3 %v10076_v24 }
 0x892   : > { %11117 = vmatmul.msk.f32.vlgmr.msrb.gmra.mxu2 %vm9561_vm11, %v10042_v62  ;;  %10142 = vmatpush.msrb.mxu0 %v10113_v6 }
 0x893   : > { %10099 = vmatpush.msra.mxu3 %v10075_v28 }
 0x894   : > { %10143 = vmatpush.msrb.mxu0 %v10112_v7 }
 0x895   : > { %10100 = vmatpush.msra.mxu3 %v10074_v9 }
 0x896   : > { %10144 = vmatpush.msrb.mxu0 %v10111_v45 }
 0x897   : > { %10101 = vmatpush.msra.mxu3 %v10073_v0 }
 0x898   : > { %10145 = vmatpush.msrb.mxu0 %v10110_v2 }
 0x899   : > { %10102 = vmatpush.msra.mxu3 %v10072_v10 }
 0x89b   : > { %10103 = vmatpush.msra.mxu3 %v10071_v20 }
 0x89d   : > { %10104 = vmatpush.msra.mxu3 %v10070_v22 }
 0x8ec   : > { %v9585_v34 = vpop.f32.mrf.mxu1 }
 0x8ed   : > { %v9588_v3 = vadd.f32 %v9585_v34, %v9556_v4 }
 0x8ef   : > { %v9745_v51 = vpop.f32.mrf.mxu0 }
 0x8f4   : > { %v9617_v17 = vpop.f32.mrf.mxu2  ;;  %v9649_v50 = vpop.f32.mrf.mxu1 }
 0x8f5   : > { %v9620_v30 = vadd.f32 %v9617_v17, %v9588_v3  ;;  %v9713_v27 = vpop.f32.mrf.mxu3 }
 0x8f7   : > { %v9652_v61 = vadd.f32 %v9649_v50, %v9620_v30  ;;  %v9873_v21 = vpop.f32.mrf.mxu0 }
 0x8fc   : > { %v9681_v8 = vpop.f32.mrf.mxu2  ;;  %v9777_v47 = vpop.f32.mrf.mxu1 }
 0x8fd   : > { %v9684_v37 = vadd.f32 %v9681_v8, %v9652_v61  ;;  %v9841_v1 = vpop.f32.mrf.mxu3 }
 0x8ff   : > { %v9716_v11 = vadd.f32 %v9713_v27, %v9684_v37  ;;  %v10001_v19 = vpop.f32.mrf.mxu0 }
 0x901   : > { %v9748_v23 = vadd.f32 %v9745_v51, %v9716_v11 }
 0x903   : > { %v9780_v18 = vadd.f32 %v9777_v47, %v9748_v23 }
 0x904   : > { %v9809_v54 = vpop.f32.mrf.mxu2  ;;  %v9905_v14 = vpop.f32.mrf.mxu1 }
 0x905   : > { %v9812_v41 = vadd.f32 %v9809_v54, %v9780_v18  ;;  %v9969_v32 = vpop.f32.mrf.mxu3 }
 0x907   : > { %v9844_v56 = vadd.f32 %v9841_v1, %v9812_v41 }
 0x909   : > { %v9876_v38 = vadd.f32 %v9873_v21, %v9844_v56 }
 0x90b   : > { %v9908_v63 = vadd.f32 %v9905_v14, %v9876_v38 }
 0x90c   : > { %v10033_v29 = vpop.f32.mrf.mxu1 }
 0x90d   : > { %v9937_v25 = vpop.f32.mrf.mxu2 }
 0x90e   : > { %v9940_v52 = vadd.f32 %v9937_v25, %v9908_v63 }
 0x910   : > { %v9972_v48 = vadd.f32 %v9969_v32, %v9940_v52 }
 0x912   : > { %v10004_v44 = vadd.f32 %v10001_v19, %v9972_v48 }
 0x914   : > { %v10036_v31 = vadd.f32 %v10033_v29, %v10004_v44 }
 0x915   : > { %v10065_v15 = vpop.f32.mrf.mxu2 }
 0x916   : > { %v10068_v49 = vadd.f32 %v10065_v15, %v10036_v31 }
 0x918   : > { %v10069_v33 = vmax.f32 %v10068_v49, 0.0 }
 0x91a   : > { %11118 = vmatmul.msk.f32.vlgmr.msra.gmra.mxu3 %vm6165_vm4, %v10069_v33 }
 0x99d   : > { %v10106_v39 = vpop.f32.mrf.mxu3 }
 0x99e   : > { %v10107_v43 = vadd.f32 %v10106_v39, %v10085_v59 }
 0x9a0   : > { %v10109_v62 = vmax.f32 %v10107_v43, 0.0 }
 0x9a2   : > { %11120 = vmatmul.msk.f32.vlgmr.msrb.gmra.mxu0 %vm10122_vm15, %v10109_v62 }
 0xa1f   : > { %v10147_v35 = vpop.f32.mrf.mxu0 }
 0xa20   : > { %v10148_v40 = vadd.f32 %v10147_v35, %v10121_v5 }
 0xa22   : > { %10151 = vst.msk [vmem:[%s405_s19] sm:$0x1] %vm10150_vm7, %v10148_v40 }
 0xa23   : > { %11251 = shalt.err (!%p11248_p3)
}
 0xa24   : > { %11124 = dma.vmem_to_hbm [thread:$0]  (%p11415_p5), %s10164_s17, 16, %s10166_s1, %s10153_s15  }
 0xa25 PF: > { %p11130_p4 = scmp.ge.s32.totalorder %s11286_s24, 2  ;;  %s10177_s26 = sand.u32 1, %s11274_s21  }
 0xa26   : > { %s10178_s0 = scalar_lea.sflag [#allocation3], %s10177_s26 }
 0xa27   : > { %p11127_p7 = pnand %p11130_p4, %p11419_p6 }
 0xa29   : > { %p11128_p8 = pneg %p11127_p7 }
 0xa2b   : > { %11269 = dma.done.wait (%p11128_p8), %s10178_s0, 16  }
 0xa2c   : > { %11271 = vsyncadd (%p11128_p8), %s10178_s0, 4294967280  ;;  %p22_p9 = scmp.ge.s32.totalorder %s11402_s27, 4   ;;  %s15854_s21 = smov %s11278_s22 }
 0xa2d   : > { %s15855_s22 = smov %s11282_s23  ;;  %s15856_s23 = smov %s11413_s30 }
 0xa2e   : > { %s15857_s24 = smov %s11402_s27  ;;  %24 = sbr.rel (!%p22_p9) target bundleno = 7 (0x7), region = 241 }
 0xa33   :  { %10183 = vsyncpa [#allocation3], 1 }
 0xa34   :  { %10185 = vsyncpa [#allocation3 + $0x1], 1 }

</bundles_post_ra>
